<compile_context>
chip_gen: v7x
topology: tpu7x:2x2x1
jax: 0.10.0
libtpu: 0.0.40
codegen_flags: <defaults>
</compile_context>

<pallas_src>
import functools

import jax
import jax.numpy as jnp
from jax import lax
from jax.experimental import pallas as pl
from jax.experimental.pallas import tpu as pltpu


def _rcab_kernel(x_ref, mask_ref, w1_ref, b1_ref, w2_ref, b2_ref,
                 caw1_ref, cab1_ref, caw2_ref, cab2_ref,
                 o_ref, *, ks, H, W):
    """Fused RCAB body for one image in flat (H*W, C) layout."""
    HW = H * W
    halo = ks // 2
    op_dtype = x_ref.dtype

    x_op = x_ref[0]                                   # (HW, C), operand dtype
    x_f32 = x_op.astype(jnp.float32)

    # Static tap list (dh, dw) in row-major (kh, kw) order -> matches the
    # (ks*ks*C, C) weight reshape done in the wrapper.
    taps = [(kh - halo, kw - halo) for kh in range(ks) for kw in range(ks)]

    def conv(img_op, w_ref, b_ref):
        # im2col via flat rolls + edge masks, then ONE MXU matmul (K = ks*ks*C).
        pieces = []
        for t, (dh, dw) in enumerate(taps):
            if dh == 0 and dw == 0:
                piece = img_op                        # center tap: no shift/mask
            else:
                shift = (-(dh * W + dw)) % HW         # static, non-negative
                piece = pltpu.roll(img_op, shift=shift, axis=0)
                piece = piece * mask_ref[t]           # (HW,1) mask, lane-broadcast
            pieces.append(piece)
        col = jnp.concatenate(pieces, axis=-1)        # (HW, ks*ks*C)
        acc = jnp.dot(col, w_ref[...],
                      preferred_element_type=jnp.float32)
        return acc + b_ref[...].astype(jnp.float32)   # (HW, C) f32

    # conv1 + ReLU
    y1 = jnp.maximum(conv(x_op, w1_ref, b1_ref), 0.0)
    # conv2 (feed MXU in the operand dtype again)
    y2 = conv(y1.astype(op_dtype), w2_ref, b2_ref)

    # Channel attention: squeeze -> excite -> stable sigmoid gate.
    pooled = jnp.mean(y2, axis=0, keepdims=True)                     # (1, C)
    t1 = jnp.dot(pooled, caw1_ref[...].astype(jnp.float32),
                 preferred_element_type=jnp.float32)
    t1 = jnp.maximum(t1 + cab1_ref[...].astype(jnp.float32), 0.0)    # (1, C//r)
    z = jnp.dot(t1, caw2_ref[...].astype(jnp.float32),
                preferred_element_type=jnp.float32) + cab2_ref[...].astype(jnp.float32)
    scale = 0.5 * (jnp.tanh(0.5 * z) + 1.0)                          # sigmoid (EUP, stable)

    o_ref[0] = (y2 * scale + x_f32).astype(o_ref.dtype)              # residual add


def _round_up(x, m):
    return (x + m - 1) // m * m


def _vmem_footprint(shape, dtype):
    """Crude VMEM tile footprint (pad lanes to 128, sublanes to 8)."""
    s = list(shape)
    s[-1] = _round_up(max(s[-1], 1), 128)
    if len(s) >= 2:
        s[-2] = _round_up(max(s[-2], 1), 8)
    n = 1
    for d in s:
        n *= d
    return n * jnp.dtype(dtype).itemsize


def _full_spec(shape):
    n = len(shape)
    return pl.BlockSpec(shape, lambda b, _n=n: (0,) * _n)


def rcab_forward(x_nhwc, params, *, kernel_size=3):
    """RCAB forward. Input/output are NHWC (model is NHWC end-to-end)."""
    w1, b1, w2, b2, caw1, cab1, caw2, cab2 = params
    B, H, W, C = x_nhwc.shape
    ks = kernel_size
    halo = ks // 2
    HW = H * W
    op_dtype = x_nhwc.dtype

    # Free reshape: flatten spatial dims (same HBM layout, no data movement).
    x = x_nhwc.reshape(B, HW, C)

    # Pre-reshape conv weights for im2col: (ks, ks, Cin, Cout) -> (ks*ks*Cin, Cout).
    w1m = w1.reshape(ks * ks * C, C).astype(op_dtype)
    w2m = w2.reshape(ks * ks * C, C).astype(op_dtype)

    # Edge-validity masks per tap, shape (ks*ks, HW, 1), operand dtype (0/1).
    hh = jnp.arange(H).reshape(H, 1)
    ww = jnp.arange(W).reshape(1, W)
    mask_list = []
    for kh in range(ks):
        for kw in range(ks):
            dh, dw = kh - halo, kw - halo
            valid = ((hh + dh >= 0) & (hh + dh < H) &
                     (ww + dw >= 0) & (ww + dw < W))                 # (H, W)
            mask_list.append(valid.reshape(HW, 1))
    masks = jnp.stack(mask_list).astype(op_dtype)                    # (ks*ks, HW, 1)

    img_spec = pl.BlockSpec((1, HW, C), lambda b: (b, 0, 0))

    # Explicit VMEM budget (v5e scoped default is 16 MiB; v7x physical is 64 MiB).
    est = (4 * _vmem_footprint((1, HW, C), op_dtype)          # in + out, double-buffered
           + 2 * (_vmem_footprint(w1m.shape, op_dtype) + _vmem_footprint(w2m.shape, op_dtype)
                  + _vmem_footprint(b1.shape, b1.dtype) + _vmem_footprint(b2.shape, b2.dtype)
                  + _vmem_footprint(caw1.shape, caw1.dtype) + _vmem_footprint(cab1.shape, cab1.dtype)
                  + _vmem_footprint(caw2.shape, caw2.dtype) + _vmem_footprint(cab2.shape, cab2.dtype)
                  + _vmem_footprint(masks.shape, op_dtype))
           + 4 * _vmem_footprint((HW, ks * ks * C), jnp.float32))    # col + intermediates headroom
    vmem_limit = int(min(48 * 2 ** 20, max(2 * est, 16 * 2 ** 20)))

    out = pl.pallas_call(
        functools.partial(_rcab_kernel, ks=ks, H=H, W=W),
        out_shape=jax.ShapeDtypeStruct((B, HW, C), op_dtype),
        grid_spec=pltpu.PrefetchScalarGridSpec(
            num_scalar_prefetch=0,
            grid=(B,),
            in_specs=[img_spec,
                      _full_spec(masks.shape),
                      _full_spec(w1m.shape), _full_spec(b1.shape),
                      _full_spec(w2m.shape), _full_spec(b2.shape),
                      _full_spec(caw1.shape), _full_spec(cab1.shape),
                      _full_spec(caw2.shape), _full_spec(cab2.shape)],
            out_specs=img_spec,
        ),
        compiler_params=pltpu.CompilerParams(
            dimension_semantics=("parallel",),
            vmem_limit_bytes=vmem_limit),
    )(x, masks, w1m, b1, w2m, b2, caw1, cab1, caw2, cab2)

    return out.reshape(B, H, W, C)


class RCAB:
    """JAX/Pallas RCAB block (conv -> ReLU -> conv -> CA -> +x), NHWC layout."""

    def __init__(self, n_feat, kernel_size=3, reduction=4, dtype=jnp.float32, seed=42):
        assert kernel_size % 2 == 1
        self.n_feat = n_feat
        self.kernel_size = kernel_size
        c_red = max(n_feat // reduction, 1)
        keys = jax.random.split(jax.random.PRNGKey(seed), 4)
        fan = float(kernel_size * kernel_size * n_feat)
        # Conv weights stored HWIO (kh, kw, C_in, C_out); biases as (1, C) rows.
        self.w1 = (jax.random.normal(keys[0], (kernel_size, kernel_size, n_feat, n_feat),
                                     dtype) / jnp.sqrt(fan)).astype(dtype)
        self.b1 = (0.01 * jnp.arange(n_feat, dtype=dtype) - 0.05).reshape(1, n_feat)
        self.w2 = (jax.random.normal(keys[1], (kernel_size, kernel_size, n_feat, n_feat),
                                     dtype) / jnp.sqrt(fan)).astype(dtype)
        self.b2 = (0.02 * jnp.arange(n_feat, dtype=dtype) - 0.1).reshape(1, n_feat)
        # Channel-attention 1x1 convs as (C_in, C_out) matrices.
        self.ca_w1 = (jax.random.normal(keys[2], (n_feat, c_red), dtype)
                      / jnp.sqrt(float(n_feat))).astype(dtype)
        self.ca_b1 = (0.03 * jnp.arange(c_red, dtype=dtype)).reshape(1, c_red)
        self.ca_w2 = (jax.random.normal(keys[3], (c_red, n_feat), dtype)
                      / jnp.sqrt(float(c_red))).astype(dtype)
        self.ca_b2 = (-0.02 * jnp.arange(n_feat, dtype=dtype) + 0.1).reshape(1, n_feat)

    @property
    def params(self):
        return (self.w1, self.b1, self.w2, self.b2,
                self.ca_w1, self.ca_b1, self.ca_w2, self.ca_b2)

    def __call__(self, x_nhwc):
        return rcab_forward(x_nhwc, self.params, kernel_size=self.kernel_size)


def _rcab_reference(x_nhwc, params):
    """Pure-JAX NHWC reference with identical parameters/semantics."""
    w1, b1, w2, b2, caw1, cab1, caw2, cab2 = params
    x = x_nhwc.astype(jnp.float32)

    def conv(inp, w, b):
        y = lax.conv_general_dilated(
            inp, w.astype(jnp.float32), window_strides=(1, 1), padding="SAME",
            dimension_numbers=("NHWC", "HWIO", "NHWC"),
            precision=lax.Precision.HIGHEST)
        return y + b.reshape(1, 1, 1, -1)

    y1 = jnp.maximum(conv(x, w1, b1), 0.0)
    y2 = conv(y1, w2, b2)
    pooled = jnp.mean(y2, axis=(1, 2))                                   # (B, C)
    t = jnp.maximum(jnp.dot(pooled, caw1, precision=lax.Precision.HIGHEST) + cab1, 0.0)
    s = jax.nn.sigmoid(jnp.dot(t, caw2, precision=lax.Precision.HIGHEST) + cab2)
    out = y2 * s[:, None, None, :] + x
    return out.astype(x_nhwc.dtype)


if __name__ == "__main__":
    B, H, W, C = 2, 16, 16, 32        # small demo shapes (n_feat = 32)
    reduction = 4                     # -> squeeze width 8

    key = jax.random.PRNGKey(0)
    x = jax.random.normal(key, (B, H, W, C), dtype=jnp.float32)   # NHWC

    module = RCAB(n_feat=C, kernel_size=3, reduction=reduction)
    out = jax.block_until_ready(module(x))

    ref = _rcab_reference(x, module.params)
    assert out.shape == x.shape
    err = float(jnp.max(jnp.abs(out - ref)))
    assert err < 1e-3, f"max abs error {err}"
    print("KERNEL_OK")
</pallas_src>

<mosaic_0001>
module attributes {stable_mosaic.version = 11 : i64} {
  func.func @_rcab_kernel(%arg0: i32, %arg1: memref<1x256x32xf32, #tpu.memory_space<vmem>>, %arg2: memref<9x256x1xf32, #tpu.memory_space<vmem>>, %arg3: memref<288x32xf32, #tpu.memory_space<vmem>>, %arg4: memref<1x32xf32, #tpu.memory_space<vmem>>, %arg5: memref<288x32xf32, #tpu.memory_space<vmem>>, %arg6: memref<1x32xf32, #tpu.memory_space<vmem>>, %arg7: memref<32x8xf32, #tpu.memory_space<vmem>>, %arg8: memref<1x8xf32, #tpu.memory_space<vmem>>, %arg9: memref<8x32xf32, #tpu.memory_space<vmem>>, %arg10: memref<1x32xf32, #tpu.memory_space<vmem>>, %arg11: memref<1x256x32xf32, #tpu.memory_space<vmem>>) attributes {dimension_semantics = [#tpu.dimension_semantics<parallel>], iteration_bounds = array<i64: 2>, scalar_prefetch = 0 : i64, scratch_operands = 0 : i64, tpu.core_type = #tpu.core_type<tc>, window_params = [{transform_indices = @transform_0, window_bounds = array<i64: 1, 256, 32>}, {pipeline_mode = #tpu.pipeline_mode<synchronous>, transform_indices = @transform_1, window_bounds = array<i64: 9, 256, 1>}, {pipeline_mode = #tpu.pipeline_mode<synchronous>, transform_indices = @transform_2, window_bounds = array<i64: 288, 32>}, {pipeline_mode = #tpu.pipeline_mode<synchronous>, transform_indices = @transform_3, window_bounds = array<i64: 1, 32>}, {pipeline_mode = #tpu.pipeline_mode<synchronous>, transform_indices = @transform_4, window_bounds = array<i64: 288, 32>}, {pipeline_mode = #tpu.pipeline_mode<synchronous>, transform_indices = @transform_5, window_bounds = array<i64: 1, 32>}, {pipeline_mode = #tpu.pipeline_mode<synchronous>, transform_indices = @transform_6, window_bounds = array<i64: 32, 8>}, {pipeline_mode = #tpu.pipeline_mode<synchronous>, transform_indices = @transform_7, window_bounds = array<i64: 1, 8>}, {pipeline_mode = #tpu.pipeline_mode<synchronous>, transform_indices = @transform_8, window_bounds = array<i64: 8, 32>}, {pipeline_mode = #tpu.pipeline_mode<synchronous>, transform_indices = @transform_9, window_bounds = array<i64: 1, 32>}, {transform_indices = @transform_10, window_bounds = array<i64: 1, 256, 32>}]} {
    %c0 = arith.constant 0 : index
    %c0_0 = arith.constant 0 : index
    %c0_1 = arith.constant 0 : index
    %0 = vector.load %arg1[%c0, %c0_0, %c0_1] : memref<1x256x32xf32, #tpu.memory_space<vmem>>, vector<1x256x32xf32>
    %1 = vector.shape_cast %0 : vector<1x256x32xf32> to vector<256x32xf32>
    %c17_i32 = arith.constant 17 : i32
    %2 = tpu.dynamic_rotate %1 by %c17_i32 dim 0 : vector<256x32xf32>, i32 -> vector<256x32xf32>
    %c0_2 = arith.constant 0 : index
    %c0_3 = arith.constant 0 : index
    %c0_4 = arith.constant 0 : index
    %3 = vector.load %arg2[%c0_2, %c0_3, %c0_4] : memref<9x256x1xf32, #tpu.memory_space<vmem>>, vector<1x256x1xf32>
    %4 = vector.shape_cast %3 : vector<1x256x1xf32> to vector<256x1xf32>
    %5 = vector.broadcast %4 : vector<256x1xf32> to vector<256x32xf32>
    %6 = arith.mulf %2, %5 : vector<256x32xf32>
    %c16_i32 = arith.constant 16 : i32
    %7 = tpu.dynamic_rotate %1 by %c16_i32 dim 0 : vector<256x32xf32>, i32 -> vector<256x32xf32>
    %c1 = arith.constant 1 : index
    %c0_5 = arith.constant 0 : index
    %c0_6 = arith.constant 0 : index
    %8 = vector.load %arg2[%c1, %c0_5, %c0_6] : memref<9x256x1xf32, #tpu.memory_space<vmem>>, vector<1x256x1xf32>
    %9 = vector.shape_cast %8 : vector<1x256x1xf32> to vector<256x1xf32>
    %10 = vector.broadcast %9 : vector<256x1xf32> to vector<256x32xf32>
    %11 = arith.mulf %7, %10 : vector<256x32xf32>
    %c15_i32 = arith.constant 15 : i32
    %12 = tpu.dynamic_rotate %1 by %c15_i32 dim 0 : vector<256x32xf32>, i32 -> vector<256x32xf32>
    %c2 = arith.constant 2 : index
    %c0_7 = arith.constant 0 : index
    %c0_8 = arith.constant 0 : index
    %13 = vector.load %arg2[%c2, %c0_7, %c0_8] : memref<9x256x1xf32, #tpu.memory_space<vmem>>, vector<1x256x1xf32>
    %14 = vector.shape_cast %13 : vector<1x256x1xf32> to vector<256x1xf32>
    %15 = vector.broadcast %14 : vector<256x1xf32> to vector<256x32xf32>
    %16 = arith.mulf %12, %15 : vector<256x32xf32>
    %c1_i32 = arith.constant 1 : i32
    %17 = tpu.dynamic_rotate %1 by %c1_i32 dim 0 : vector<256x32xf32>, i32 -> vector<256x32xf32>
    %c3 = arith.constant 3 : index
    %c0_9 = arith.constant 0 : index
    %c0_10 = arith.constant 0 : index
    %18 = vector.load %arg2[%c3, %c0_9, %c0_10] : memref<9x256x1xf32, #tpu.memory_space<vmem>>, vector<1x256x1xf32>
    %19 = vector.shape_cast %18 : vector<1x256x1xf32> to vector<256x1xf32>
    %20 = vector.broadcast %19 : vector<256x1xf32> to vector<256x32xf32>
    %21 = arith.mulf %17, %20 : vector<256x32xf32>
    %c255_i32 = arith.constant 255 : i32
    %22 = tpu.dynamic_rotate %1 by %c255_i32 dim 0 : vector<256x32xf32>, i32 -> vector<256x32xf32>
    %c5 = arith.constant 5 : index
    %c0_11 = arith.constant 0 : index
    %c0_12 = arith.constant 0 : index
    %23 = vector.load %arg2[%c5, %c0_11, %c0_12] : memref<9x256x1xf32, #tpu.memory_space<vmem>>, vector<1x256x1xf32>
    %24 = vector.shape_cast %23 : vector<1x256x1xf32> to vector<256x1xf32>
    %25 = vector.broadcast %24 : vector<256x1xf32> to vector<256x32xf32>
    %26 = arith.mulf %22, %25 : vector<256x32xf32>
    %c241_i32 = arith.constant 241 : i32
    %27 = tpu.dynamic_rotate %1 by %c241_i32 dim 0 : vector<256x32xf32>, i32 -> vector<256x32xf32>
    %c6 = arith.constant 6 : index
    %c0_13 = arith.constant 0 : index
    %c0_14 = arith.constant 0 : index
    %28 = vector.load %arg2[%c6, %c0_13, %c0_14] : memref<9x256x1xf32, #tpu.memory_space<vmem>>, vector<1x256x1xf32>
    %29 = vector.shape_cast %28 : vector<1x256x1xf32> to vector<256x1xf32>
    %30 = vector.broadcast %29 : vector<256x1xf32> to vector<256x32xf32>
    %31 = arith.mulf %27, %30 : vector<256x32xf32>
    %c240_i32 = arith.constant 240 : i32
    %32 = tpu.dynamic_rotate %1 by %c240_i32 dim 0 : vector<256x32xf32>, i32 -> vector<256x32xf32>
    %c7 = arith.constant 7 : index
    %c0_15 = arith.constant 0 : index
    %c0_16 = arith.constant 0 : index
    %33 = vector.load %arg2[%c7, %c0_15, %c0_16] : memref<9x256x1xf32, #tpu.memory_space<vmem>>, vector<1x256x1xf32>
    %34 = vector.shape_cast %33 : vector<1x256x1xf32> to vector<256x1xf32>
    %35 = vector.broadcast %34 : vector<256x1xf32> to vector<256x32xf32>
    %36 = arith.mulf %32, %35 : vector<256x32xf32>
    %c239_i32 = arith.constant 239 : i32
    %37 = tpu.dynamic_rotate %1 by %c239_i32 dim 0 : vector<256x32xf32>, i32 -> vector<256x32xf32>
    %c8 = arith.constant 8 : index
    %c0_17 = arith.constant 0 : index
    %c0_18 = arith.constant 0 : index
    %38 = vector.load %arg2[%c8, %c0_17, %c0_18] : memref<9x256x1xf32, #tpu.memory_space<vmem>>, vector<1x256x1xf32>
    %39 = vector.shape_cast %38 : vector<1x256x1xf32> to vector<256x1xf32>
    %40 = vector.broadcast %39 : vector<256x1xf32> to vector<256x32xf32>
    %41 = arith.mulf %37, %40 : vector<256x32xf32>
    %42 = tpu.concatenate %6, %11, %16, %21, %1, %26, %31, %36, %41 in 1 : vector<256x32xf32>, vector<256x32xf32>, vector<256x32xf32>, vector<256x32xf32>, vector<256x32xf32>, vector<256x32xf32>, vector<256x32xf32>, vector<256x32xf32>, vector<256x32xf32> -> vector<256x288xf32>
    %c0_19 = arith.constant 0 : index
    %c0_20 = arith.constant 0 : index
    %43 = vector.load %arg3[%c0_19, %c0_20] : memref<288x32xf32, #tpu.memory_space<vmem>>, vector<288x32xf32>
    %cst = arith.constant dense<0.000000e+00> : vector<256x32xf32>
    %44 = tpu.matmul %42, %43, %cst {dimension_numbers = #tpu.dot_dimension_numbers<[1], [0], [0], [1], [0, 0, 1, 1], [], []>} : vector<256x288xf32>, vector<288x32xf32>, vector<256x32xf32> -> vector<256x32xf32>
    %c0_21 = arith.constant 0 : index
    %c0_22 = arith.constant 0 : index
    %45 = vector.load %arg4[%c0_21, %c0_22] : memref<1x32xf32, #tpu.memory_space<vmem>>, vector<1x32xf32>
    %46 = vector.broadcast %45 : vector<1x32xf32> to vector<256x32xf32>
    %47 = arith.addf %44, %46 : vector<256x32xf32>
    %cst_23 = arith.constant 0.000000e+00 : f32
    %48 = vector.broadcast %cst_23 : f32 to vector<256x32xf32>
    %49 = arith.maximumf %47, %48 : vector<256x32xf32>
    %c17_i32_24 = arith.constant 17 : i32
    %50 = tpu.dynamic_rotate %49 by %c17_i32_24 dim 0 : vector<256x32xf32>, i32 -> vector<256x32xf32>
    %c0_25 = arith.constant 0 : index
    %c0_26 = arith.constant 0 : index
    %c0_27 = arith.constant 0 : index
    %51 = vector.load %arg2[%c0_25, %c0_26, %c0_27] : memref<9x256x1xf32, #tpu.memory_space<vmem>>, vector<1x256x1xf32>
    %52 = vector.shape_cast %51 : vector<1x256x1xf32> to vector<256x1xf32>
    %53 = vector.broadcast %52 : vector<256x1xf32> to vector<256x32xf32>
    %54 = arith.mulf %50, %53 : vector<256x32xf32>
    %c16_i32_28 = arith.constant 16 : i32
    %55 = tpu.dynamic_rotate %49 by %c16_i32_28 dim 0 : vector<256x32xf32>, i32 -> vector<256x32xf32>
    %c1_29 = arith.constant 1 : index
    %c0_30 = arith.constant 0 : index
    %c0_31 = arith.constant 0 : index
    %56 = vector.load %arg2[%c1_29, %c0_30, %c0_31] : memref<9x256x1xf32, #tpu.memory_space<vmem>>, vector<1x256x1xf32>
    %57 = vector.shape_cast %56 : vector<1x256x1xf32> to vector<256x1xf32>
    %58 = vector.broadcast %57 : vector<256x1xf32> to vector<256x32xf32>
    %59 = arith.mulf %55, %58 : vector<256x32xf32>
    %c15_i32_32 = arith.constant 15 : i32
    %60 = tpu.dynamic_rotate %49 by %c15_i32_32 dim 0 : vector<256x32xf32>, i32 -> vector<256x32xf32>
    %c2_33 = arith.constant 2 : index
    %c0_34 = arith.constant 0 : index
    %c0_35 = arith.constant 0 : index
    %61 = vector.load %arg2[%c2_33, %c0_34, %c0_35] : memref<9x256x1xf32, #tpu.memory_space<vmem>>, vector<1x256x1xf32>
    %62 = vector.shape_cast %61 : vector<1x256x1xf32> to vector<256x1xf32>
    %63 = vector.broadcast %62 : vector<256x1xf32> to vector<256x32xf32>
    %64 = arith.mulf %60, %63 : vector<256x32xf32>
    %c1_i32_36 = arith.constant 1 : i32
    %65 = tpu.dynamic_rotate %49 by %c1_i32_36 dim 0 : vector<256x32xf32>, i32 -> vector<256x32xf32>
    %c3_37 = arith.constant 3 : index
    %c0_38 = arith.constant 0 : index
    %c0_39 = arith.constant 0 : index
    %66 = vector.load %arg2[%c3_37, %c0_38, %c0_39] : memref<9x256x1xf32, #tpu.memory_space<vmem>>, vector<1x256x1xf32>
    %67 = vector.shape_cast %66 : vector<1x256x1xf32> to vector<256x1xf32>
    %68 = vector.broadcast %67 : vector<256x1xf32> to vector<256x32xf32>
    %69 = arith.mulf %65, %68 : vector<256x32xf32>
    %c255_i32_40 = arith.constant 255 : i32
    %70 = tpu.dynamic_rotate %49 by %c255_i32_40 dim 0 : vector<256x32xf32>, i32 -> vector<256x32xf32>
    %c5_41 = arith.constant 5 : index
    %c0_42 = arith.constant 0 : index
    %c0_43 = arith.constant 0 : index
    %71 = vector.load %arg2[%c5_41, %c0_42, %c0_43] : memref<9x256x1xf32, #tpu.memory_space<vmem>>, vector<1x256x1xf32>
    %72 = vector.shape_cast %71 : vector<1x256x1xf32> to vector<256x1xf32>
    %73 = vector.broadcast %72 : vector<256x1xf32> to vector<256x32xf32>
    %74 = arith.mulf %70, %73 : vector<256x32xf32>
    %c241_i32_44 = arith.constant 241 : i32
    %75 = tpu.dynamic_rotate %49 by %c241_i32_44 dim 0 : vector<256x32xf32>, i32 -> vector<256x32xf32>
    %c6_45 = arith.constant 6 : index
    %c0_46 = arith.constant 0 : index
    %c0_47 = arith.constant 0 : index
    %76 = vector.load %arg2[%c6_45, %c0_46, %c0_47] : memref<9x256x1xf32, #tpu.memory_space<vmem>>, vector<1x256x1xf32>
    %77 = vector.shape_cast %76 : vector<1x256x1xf32> to vector<256x1xf32>
    %78 = vector.broadcast %77 : vector<256x1xf32> to vector<256x32xf32>
    %79 = arith.mulf %75, %78 : vector<256x32xf32>
    %c240_i32_48 = arith.constant 240 : i32
    %80 = tpu.dynamic_rotate %49 by %c240_i32_48 dim 0 : vector<256x32xf32>, i32 -> vector<256x32xf32>
    %c7_49 = arith.constant 7 : index
    %c0_50 = arith.constant 0 : index
    %c0_51 = arith.constant 0 : index
    %81 = vector.load %arg2[%c7_49, %c0_50, %c0_51] : memref<9x256x1xf32, #tpu.memory_space<vmem>>, vector<1x256x1xf32>
    %82 = vector.shape_cast %81 : vector<1x256x1xf32> to vector<256x1xf32>
    %83 = vector.broadcast %82 : vector<256x1xf32> to vector<256x32xf32>
    %84 = arith.mulf %80, %83 : vector<256x32xf32>
    %c239_i32_52 = arith.constant 239 : i32
    %85 = tpu.dynamic_rotate %49 by %c239_i32_52 dim 0 : vector<256x32xf32>, i32 -> vector<256x32xf32>
    %c8_53 = arith.constant 8 : index
    %c0_54 = arith.constant 0 : index
    %c0_55 = arith.constant 0 : index
    %86 = vector.load %arg2[%c8_53, %c0_54, %c0_55] : memref<9x256x1xf32, #tpu.memory_space<vmem>>, vector<1x256x1xf32>
    %87 = vector.shape_cast %86 : vector<1x256x1xf32> to vector<256x1xf32>
    %88 = vector.broadcast %87 : vector<256x1xf32> to vector<256x32xf32>
    %89 = arith.mulf %85, %88 : vector<256x32xf32>
    %90 = tpu.concatenate %54, %59, %64, %69, %49, %74, %79, %84, %89 in 1 : vector<256x32xf32>, vector<256x32xf32>, vector<256x32xf32>, vector<256x32xf32>, vector<256x32xf32>, vector<256x32xf32>, vector<256x32xf32>, vector<256x32xf32>, vector<256x32xf32> -> vector<256x288xf32>
    %c0_56 = arith.constant 0 : index
    %c0_57 = arith.constant 0 : index
    %91 = vector.load %arg5[%c0_56, %c0_57] : memref<288x32xf32, #tpu.memory_space<vmem>>, vector<288x32xf32>
    %cst_58 = arith.constant dense<0.000000e+00> : vector<256x32xf32>
    %92 = tpu.matmul %90, %91, %cst_58 {dimension_numbers = #tpu.dot_dimension_numbers<[1], [0], [0], [1], [0, 0, 1, 1], [], []>} : vector<256x288xf32>, vector<288x32xf32>, vector<256x32xf32> -> vector<256x32xf32>
    %c0_59 = arith.constant 0 : index
    %c0_60 = arith.constant 0 : index
    %93 = vector.load %arg6[%c0_59, %c0_60] : memref<1x32xf32, #tpu.memory_space<vmem>>, vector<1x32xf32>
    %94 = vector.broadcast %93 : vector<1x32xf32> to vector<256x32xf32>
    %95 = arith.addf %92, %94 : vector<256x32xf32>
    %cst_61 = arith.constant dense<0.000000e+00> : vector<32xf32>
    %96 = vector.multi_reduction <add>, %95, %cst_61 [0] : vector<256x32xf32> to vector<32xf32>
    %97 = vector.shape_cast %96 : vector<32xf32> to vector<1x32xf32>
    %cst_62 = arith.constant 2.560000e+02 : f32
    %98 = vector.broadcast %cst_62 : f32 to vector<1x32xf32>
    %99 = arith.divf %97, %98 : vector<1x32xf32>
    %c0_63 = arith.constant 0 : index
    %c0_64 = arith.constant 0 : index
    %100 = vector.load %arg7[%c0_63, %c0_64] : memref<32x8xf32, #tpu.memory_space<vmem>>, vector<32x8xf32>
    %cst_65 = arith.constant dense<0.000000e+00> : vector<1x8xf32>
    %101 = tpu.matmul %99, %100, %cst_65 {dimension_numbers = #tpu.dot_dimension_numbers<[1], [0], [0], [1], [0, 0, 1, 1], [], []>} : vector<1x32xf32>, vector<32x8xf32>, vector<1x8xf32> -> vector<1x8xf32>
    %c0_66 = arith.constant 0 : index
    %c0_67 = arith.constant 0 : index
    %102 = vector.load %arg8[%c0_66, %c0_67] : memref<1x8xf32, #tpu.memory_space<vmem>>, vector<1x8xf32>
    %103 = arith.addf %101, %102 : vector<1x8xf32>
    %cst_68 = arith.constant 0.000000e+00 : f32
    %104 = vector.broadcast %cst_68 : f32 to vector<1x8xf32>
    %105 = arith.maximumf %103, %104 : vector<1x8xf32>
    %c0_69 = arith.constant 0 : index
    %c0_70 = arith.constant 0 : index
    %106 = vector.load %arg9[%c0_69, %c0_70] : memref<8x32xf32, #tpu.memory_space<vmem>>, vector<8x32xf32>
    %cst_71 = arith.constant dense<0.000000e+00> : vector<1x32xf32>
    %107 = tpu.matmul %105, %106, %cst_71 {dimension_numbers = #tpu.dot_dimension_numbers<[1], [0], [0], [1], [0, 0, 1, 1], [], []>} : vector<1x8xf32>, vector<8x32xf32>, vector<1x32xf32> -> vector<1x32xf32>
    %c0_72 = arith.constant 0 : index
    %c0_73 = arith.constant 0 : index
    %108 = vector.load %arg10[%c0_72, %c0_73] : memref<1x32xf32, #tpu.memory_space<vmem>>, vector<1x32xf32>
    %109 = arith.addf %107, %108 : vector<1x32xf32>
    %cst_74 = arith.constant 5.000000e-01 : f32
    %110 = vector.broadcast %cst_74 : f32 to vector<1x32xf32>
    %111 = arith.mulf %110, %109 : vector<1x32xf32>
    %112 = math.tanh %111 : vector<1x32xf32>
    %cst_75 = arith.constant 1.000000e+00 : f32
    %113 = vector.broadcast %cst_75 : f32 to vector<1x32xf32>
    %114 = arith.addf %112, %113 : vector<1x32xf32>
    %cst_76 = arith.constant 5.000000e-01 : f32
    %115 = vector.broadcast %cst_76 : f32 to vector<1x32xf32>
    %116 = arith.mulf %115, %114 : vector<1x32xf32>
    %117 = vector.broadcast %116 : vector<1x32xf32> to vector<256x32xf32>
    %118 = arith.mulf %95, %117 : vector<256x32xf32>
    %119 = arith.addf %118, %1 : vector<256x32xf32>
    %c0_77 = arith.constant 0 : index
    %c0_78 = arith.constant 0 : index
    %c0_79 = arith.constant 0 : index
    %120 = vector.load %arg11[%c0_77, %c0_78, %c0_79] : memref<1x256x32xf32, #tpu.memory_space<vmem>>, vector<1x256x32xf32>
    %121 = vector.shape_cast %120 : vector<1x256x32xf32> to vector<256x32xf32>
    %122 = vector.shape_cast %119 : vector<256x32xf32> to vector<1x256x32xf32>
    tpu.vector_store %arg11[%c0_77, %c0_78, %c0_79], %122 {strides = array<i32>} : memref<1x256x32xf32, #tpu.memory_space<vmem>>, vector<1x256x32xf32>,
    return
  }
  func.func @transform_0(%arg0: i32) -> (i32, i32, i32) {
    %c0_i32 = arith.constant 0 : i32
    %c0_i32_0 = arith.constant 0 : i32
    %c0_i32_1 = arith.constant 0 : i32
    return %arg0, %c0_i32, %c0_i32_0 : i32, i32, i32
  }
  func.func @transform_1(%arg0: i32) -> (i32, i32, i32) {
    %c0_i32 = arith.constant 0 : i32
    %c0_i32_0 = arith.constant 0 : i32
    %c0_i32_1 = arith.constant 0 : i32
    %c0_i32_2 = arith.constant 0 : i32
    return %c0_i32, %c0_i32_0, %c0_i32_1 : i32, i32, i32
  }
  func.func @transform_2(%arg0: i32) -> (i32, i32) {
    %c0_i32 = arith.constant 0 : i32
    %c0_i32_0 = arith.constant 0 : i32
    %c0_i32_1 = arith.constant 0 : i32
    return %c0_i32, %c0_i32_0 : i32, i32
  }
  func.func @transform_3(%arg0: i32) -> (i32, i32) {
    %c0_i32 = arith.constant 0 : i32
    %c0_i32_0 = arith.constant 0 : i32
    %c0_i32_1 = arith.constant 0 : i32
    return %c0_i32, %c0_i32_0 : i32, i32
  }
  func.func @transform_4(%arg0: i32) -> (i32, i32) {
    %c0_i32 = arith.constant 0 : i32
    %c0_i32_0 = arith.constant 0 : i32
    %c0_i32_1 = arith.constant 0 : i32
    return %c0_i32, %c0_i32_0 : i32, i32
  }
  func.func @transform_5(%arg0: i32) -> (i32, i32) {
    %c0_i32 = arith.constant 0 : i32
    %c0_i32_0 = arith.constant 0 : i32
    %c0_i32_1 = arith.constant 0 : i32
    return %c0_i32, %c0_i32_0 : i32, i32
  }
  func.func @transform_6(%arg0: i32) -> (i32, i32) {
    %c0_i32 = arith.constant 0 : i32
    %c0_i32_0 = arith.constant 0 : i32
    %c0_i32_1 = arith.constant 0 : i32
    return %c0_i32, %c0_i32_0 : i32, i32
  }
  func.func @transform_7(%arg0: i32) -> (i32, i32) {
    %c0_i32 = arith.constant 0 : i32
    %c0_i32_0 = arith.constant 0 : i32
    %c0_i32_1 = arith.constant 0 : i32
    return %c0_i32, %c0_i32_0 : i32, i32
  }
  func.func @transform_8(%arg0: i32) -> (i32, i32) {
    %c0_i32 = arith.constant 0 : i32
    %c0_i32_0 = arith.constant 0 : i32
    %c0_i32_1 = arith.constant 0 : i32
    return %c0_i32, %c0_i32_0 : i32, i32
  }
  func.func @transform_9(%arg0: i32) -> (i32, i32) {
    %c0_i32 = arith.constant 0 : i32
    %c0_i32_0 = arith.constant 0 : i32
    %c0_i32_1 = arith.constant 0 : i32
    return %c0_i32, %c0_i32_0 : i32, i32
  }
  func.func @transform_10(%arg0: i32) -> (i32, i32, i32) {
    %c0_i32 = arith.constant 0 : i32
    %c0_i32_0 = arith.constant 0 : i32
    %c0_i32_1 = arith.constant 0 : i32
    return %arg0, %c0_i32, %c0_i32_0 : i32, i32, i32
  }
}

</mosaic_0001>

<bundles_post_ra>
// kernel: tpu_custom_call.1
= control target key start
LH: loop header
LB: loop body
LE: loop exit
PB: predicated region body
PF: predicated region fallthrough
CT: control target
= control target key end

     0   :  { %s7968_s13 = smov 0   ;;  %s12860_s0 = inlined_call_operand.vmem [shape: f32[2,256,32], index: 0, kind: input, shape index: {}]   ;;  %s12861_s1 = inlined_call_operand.vmem [shape: f32[9,256,1], index: 1, kind: input, shape index: {}]   ;;  %s12862_s2 = inlined_call_operand.vmem [shape: f32[288,32], index: 2, kind: input, shape index: {}]   ;;  %s12863_s3 = inlined_call_operand.vmem [shape: f32[1,32], index: 3, kind: input, shape index: {}]   ;;  %s12864_s4 = inlined_call_operand.vmem [shape: f32[288,32], index: 4, kind: input, shape index: {}]   ;;  %s12865_s5 = inlined_call_operand.vmem [shape: f32[1,32], index: 5, kind: input, shape index: {}]   ;;  %s12866_s6 = inlined_call_operand.vmem [shape: f32[32,8], index: 6, kind: input, shape index: {}]   ;;  %s12867_s7 = inlined_call_operand.vmem [shape: f32[1,8], index: 7, kind: input, shape index: {}]   ;;  %s12868_s8 = inlined_call_operand.vmem [shape: f32[8,32], index: 8, kind: input, shape index: {}]   ;;  %s12869_s9 = inlined_call_operand.vmem [shape: f32[1,32], index: 9, kind: input, shape index: {}]   ;;  %s12870_s10 = inlined_call_operand.vmem [shape: f32[2,256,32], index: 10, kind: output, shape index: {}]  }
   0x1 LB: > { %s6225_s14 = sadd.s32 4294967295, %s7904_s13   ;;  %p6229_p0 = scmp.ge.s32.totalorder %s7904_s13, 1  ;;  %s7904_s13 = sphi %s7968_s13, %s20_s13  }
   0x2   : > { %p312_p1 = scmp.lt.s32.totalorder %s7904_s13, 3 }
   0x4   : > { %p313_p2 = pnand %p6229_p0, %p312_p1 }
   0x6   : > { %316 = sbr.rel (%p313_p2) target bundleno = 2133 (0x855), region = 60 }
   0xd   : > { %v461_v0 = vld [vmem:[%s12861_s1 + $0x10] sm:$0xff]  ;;  %v459_v1 = vld [vmem:[%s12861_s1] sm:$0xff]  ;;  %v7906_v2 = vmov 0   ;;  %v462_v3 = vld [vmem:[%s12861_s1 + $0x18] sm:$0xff]  ;;  %p350_p3 = scmp.lt.s32.totalorder %s6225_s14, 1  ;;  %s7908_s21 = smov 32  }
   0xe   : > { %6875 = vset.pattern.permute.xlu1 %v7906_v2  ;;  %6874 = vset.pattern.permute.xlu0 %v7906_v2  ;;  %v460_v4 = vld [vmem:[%s12861_s1 + $0x8] sm:$0xff]  ;;  %v463_v6 = vld [vmem:[%s12861_s1 + $0x20] sm:$0xff]  ;;  %v466_v7 = vld [vmem:[%s12861_s1 + $0x38] sm:$0xff]  ;;  %s7909_s22 = smov 64   ;;  %s7910_s23 = smov 96   ;;  %vm3091_vm2 = vcmask 261120  }
   0xf   : > { %503 = vperm.xlu1 %6875, %v461_v0   ;;  %493 = vperm.xlu0 %6874, %v459_v1   ;;  %v464_v5 = vld [vmem:[%s12861_s1 + $0x28] sm:$0xff]  ;;  %v465_v8 = vld [vmem:[%s12861_s1 + $0x30] sm:$0xff]  ;;  %v467_v10 = vld [vmem:[%s12861_s1 + $0x40] sm:$0xff]  ;;  %s14105_s14 = smov (!%p350_p3, %s6225_s14), 1  ;;  %vm3124_vm3 = vcmask 523264   ;;  %vm3157_vm4 = vcmask 785408  }
  0x10   : > { %v468_v9 = vld [vmem:[%s12861_s1 + $0x48] sm:$0xff]  ;;  %v470_v11 = vld [vmem:[%s12861_s1 + $0x58] sm:$0xff]  ;;  %v469_v12 = vld [vmem:[%s12861_s1 + $0x50] sm:$0xff]  ;;  %s6528_s25 = sshll.u32 %s14105_s14, 8  ;;  %vm7911_vm5 = vmmov 0   ;;  %vm5992_vm6 = vcmask 64512  }
  0x11   : > { %v472_v13 = vld [vmem:[%s12861_s1 + $0x68] sm:$0xff]  ;;  %v471_v14 = vld [vmem:[%s12861_s1 + $0x60] sm:$0xff]  ;;  %v474_v15 = vld [vmem:[%s12861_s1 + $0x78] sm:$0xff]  ;;  %s8792_s28 = scalar_lea.vmem %s12860_s0, %s6528_s25 }
  0x12   : > { %v473_v16 = vld [vmem:[%s12861_s1 + $0x70] sm:$0xff]  ;;  %v476_v17 = vld [vmem:[%s12861_s1 + $0x88] sm:$0xff]  ;;  %v475_v18 = vld [vmem:[%s12861_s1 + $0x80] sm:$0xff] }
  0x13   : > { %508 = vperm.xlu1 %6875, %v462_v3   ;;  %498 = vperm.xlu0 %6874, %v460_v4   ;;  %v478_v19 = vld [vmem:[%s12861_s1 + $0x98] sm:$0xff]  ;;  %v477_v20 = vld [vmem:[%s12861_s1 + $0x90] sm:$0xff]  ;;  %v480_v21 = vld [vmem:[%s12861_s1 + $0xa8] sm:$0xff] }
  0x14   : > { %v479_v22 = vld [vmem:[%s12861_s1 + $0xa0] sm:$0xff]  ;;  %v482_v23 = vld [vmem:[%s12861_s1 + $0xb8] sm:$0xff]  ;;  %v481_v24 = vld [vmem:[%s12861_s1 + $0xb0] sm:$0xff] }
  0x15   : > { %v484_v25 = vld [vmem:[%s12861_s1 + $0xc8] sm:$0xff]  ;;  %v483_v26 = vld [vmem:[%s12861_s1 + $0xc0] sm:$0xff]  ;;  %v486_v27 = vld [vmem:[%s12861_s1 + $0xd8] sm:$0xff] }
  0x16   : > { %v485_v28 = vld [vmem:[%s12861_s1 + $0xd0] sm:$0xff]  ;;  %v488_v29 = vld [vmem:[%s12861_s1 + $0xe8] sm:$0xff]  ;;  %v487_v30 = vld [vmem:[%s12861_s1 + $0xe0] sm:$0xff] }
  0x17   : > { %518 = vperm.xlu1 %6875, %v464_v5   ;;  %513 = vperm.xlu0 %6874, %v463_v6   ;;  %v490_v31 = vld [vmem:[%s12861_s1 + $0xf8] sm:$0xff]  ;;  %v489_v32 = vld [vmem:[%s12861_s1 + $0xf0] sm:$0xff]  ;;  %v6235_v33 = vld [vmem:[%s12861_s1 + $0x108] sm:$0xff] }
  0x18   : > { %v6234_v34 = vld [vmem:[%s12861_s1 + $0x100] sm:$0xff]  ;;  %v6237_v35 = vld [vmem:[%s12861_s1 + $0x118] sm:$0xff]  ;;  %v6236_v36 = vld [vmem:[%s12861_s1 + $0x110] sm:$0xff] }
  0x19   : > { %v6239_v37 = vld [vmem:[%s12861_s1 + $0x128] sm:$0xff]  ;;  %v6238_v38 = vld [vmem:[%s12861_s1 + $0x120] sm:$0xff]  ;;  %v6241_v39 = vld [vmem:[%s12861_s1 + $0x138] sm:$0xff] }
  0x1a   : > { %v6240_v40 = vld [vmem:[%s12861_s1 + $0x130] sm:$0xff]  ;;  %v6243_v41 = vld [vmem:[%s12861_s1 + $0x148] sm:$0xff]  ;;  %v6242_v42 = vld [vmem:[%s12861_s1 + $0x140] sm:$0xff] }
  0x1b   : > { %528 = vperm.xlu1 %6875, %v466_v7   ;;  %523 = vperm.xlu0 %6874, %v465_v8   ;;  %v6245_v43 = vld [vmem:[%s12861_s1 + $0x158] sm:$0xff]  ;;  %v6244_v44 = vld [vmem:[%s12861_s1 + $0x150] sm:$0xff]  ;;  %v6247_v45 = vld [vmem:[%s12861_s1 + $0x168] sm:$0xff] }
  0x1c   : > { %v6246_v46 = vld [vmem:[%s12861_s1 + $0x160] sm:$0xff]  ;;  %v6249_v47 = vld [vmem:[%s12861_s1 + $0x178] sm:$0xff]  ;;  %v6248_v48 = vld [vmem:[%s12861_s1 + $0x170] sm:$0xff] }
  0x1d   : > { %v6251_v49 = vld [vmem:[%s12861_s1 + $0x188] sm:$0xff]  ;;  %v6250_v50 = vld [vmem:[%s12861_s1 + $0x180] sm:$0xff]  ;;  %v6253_v51 = vld [vmem:[%s12861_s1 + $0x198] sm:$0xff] }
  0x1e   : > { %v6252_v52 = vld [vmem:[%s12861_s1 + $0x190] sm:$0xff]  ;;  %v6255_v53 = vld [vmem:[%s12861_s1 + $0x1a8] sm:$0xff]  ;;  %v6254_v54 = vld [vmem:[%s12861_s1 + $0x1a0] sm:$0xff] }
  0x1f   : > { %538 = vperm.xlu1 %6875, %v468_v9   ;;  %533 = vperm.xlu0 %6874, %v467_v10   ;;  %v6257_v55 = vld [vmem:[%s12861_s1 + $0x1b8] sm:$0xff]  ;;  %v6256_v56 = vld [vmem:[%s12861_s1 + $0x1b0] sm:$0xff]  ;;  %v6259_v57 = vld [vmem:[%s12861_s1 + $0x1c8] sm:$0xff] }
  0x20   : > { %v6258_v58 = vld [vmem:[%s12861_s1 + $0x1c0] sm:$0xff]  ;;  %v6261_v59 = vld [vmem:[%s12861_s1 + $0x1d8] sm:$0xff]  ;;  %v6260_v60 = vld [vmem:[%s12861_s1 + $0x1d0] sm:$0xff] }
  0x21   : > { %v6263_v61 = vld [vmem:[%s12861_s1 + $0x1e8] sm:$0xff]  ;;  %v6262_v62 = vld [vmem:[%s12861_s1 + $0x1e0] sm:$0xff]  ;;  %v6265_v63 = vld [vmem:[%s12861_s1 + $0x1f8] sm:$0xff] }
  0x22   : > { %v6264_v0 = vld [vmem:[%s12861_s1 + $0x1f0] sm:$0xff]  ;;  %v6267_v1 = vld [vmem:[%s12861_s1 + $0x208] sm:$0xff]  ;;  %v6266_v2 = vld [vmem:[%s12861_s1 + $0x200] sm:$0xff] }
  0x23   : > { %548 = vperm.xlu1 %6875, %v470_v11   ;;  %543 = vperm.xlu0 %6874, %v469_v12   ;;  %v6269_v5 = vld [vmem:[%s12861_s1 + $0x218] sm:$0xff]  ;;  %v6268_v6 = vld [vmem:[%s12861_s1 + $0x210] sm:$0xff]  ;;  %v6271_v9 = vld [vmem:[%s12861_s1 + $0x228] sm:$0xff] }
  0x24   : > { %v6270_v10 = vld [vmem:[%s12861_s1 + $0x220] sm:$0xff] }
  0x27   : > { %558 = vperm.xlu1 %6875, %v472_v13   ;;  %553 = vperm.xlu0 %6874, %v471_v14   ;;  %v6273_v13 = vld [vmem:[%s12861_s1 + $0x238] sm:$0xff]  ;;  %v6272_v14 = vld [vmem:[%s12861_s1 + $0x230] sm:$0xff] }
  0x2b   : > { %568 = vperm.xlu1 %6875, %v474_v15   ;;  %563 = vperm.xlu0 %6874, %v473_v16  }
  0x2f   : > { %578 = vperm.xlu1 %6875, %v476_v17   ;;  %573 = vperm.xlu0 %6874, %v475_v18   ;;  %v6275_v17 = vld [vmem:[%s12861_s1 + $0x248] sm:$0xff]  ;;  %v6274_v18 = vld [vmem:[%s12861_s1 + $0x240] sm:$0xff] }
  0x33   : > { %588 = vperm.xlu1 %6875, %v478_v19   ;;  %583 = vperm.xlu0 %6874, %v477_v20  }
  0x37   : > { %598 = vperm.xlu1 %6875, %v480_v21   ;;  %593 = vperm.xlu0 %6874, %v479_v22   ;;  %v6277_v21 = vld [vmem:[%s12861_s1 + $0x258] sm:$0xff]  ;;  %v6276_v22 = vld [vmem:[%s12861_s1 + $0x250] sm:$0xff] }
  0x3b   : > { %608 = vperm.xlu1 %6875, %v482_v23   ;;  %603 = vperm.xlu0 %6874, %v481_v24  }
  0x3f   : > { %618 = vperm.xlu1 %6875, %v484_v25   ;;  %613 = vperm.xlu0 %6874, %v483_v26   ;;  %v6279_v25 = vld [vmem:[%s12861_s1 + $0x268] sm:$0xff]  ;;  %v6278_v26 = vld [vmem:[%s12861_s1 + $0x260] sm:$0xff] }
  0x43   : > { %628 = vperm.xlu1 %6875, %v486_v27   ;;  %623 = vperm.xlu0 %6874, %v485_v28  }
  0x47   : > { %638 = vperm.xlu1 %6875, %v488_v29   ;;  %633 = vperm.xlu0 %6874, %v487_v30   ;;  %v6281_v29 = vld [vmem:[%s12861_s1 + $0x278] sm:$0xff]  ;;  %v6280_v30 = vld [vmem:[%s12861_s1 + $0x270] sm:$0xff] }
  0x4b   : > { %648 = vperm.xlu1 %6875, %v490_v31   ;;  %643 = vperm.xlu0 %6874, %v489_v32  }
  0x4f   : > { %723 = vperm.xlu1 %6875, %v6235_v33   ;;  %718 = vperm.xlu0 %6874, %v6234_v34   ;;  %v6283_v33 = vld [vmem:[%s12861_s1 + $0x288] sm:$0xff]  ;;  %v6282_v34 = vld [vmem:[%s12861_s1 + $0x280] sm:$0xff] }
  0x53   : > { %733 = vperm.xlu1 %6875, %v6237_v35   ;;  %728 = vperm.xlu0 %6874, %v6236_v36  }
  0x57   : > { %743 = vperm.xlu1 %6875, %v6239_v37   ;;  %738 = vperm.xlu0 %6874, %v6238_v38   ;;  %v6285_v37 = vld [vmem:[%s12861_s1 + $0x298] sm:$0xff]  ;;  %v6284_v38 = vld [vmem:[%s12861_s1 + $0x290] sm:$0xff] }
  0x5b   : > { %753 = vperm.xlu1 %6875, %v6241_v39   ;;  %748 = vperm.xlu0 %6874, %v6240_v40  }
  0x5f   : > { %763 = vperm.xlu1 %6875, %v6243_v41   ;;  %758 = vperm.xlu0 %6874, %v6242_v42   ;;  %v6287_v41 = vld [vmem:[%s12861_s1 + $0x2a8] sm:$0xff]  ;;  %v6286_v42 = vld [vmem:[%s12861_s1 + $0x2a0] sm:$0xff] }
  0x63   : > { %773 = vperm.xlu1 %6875, %v6245_v43   ;;  %768 = vperm.xlu0 %6874, %v6244_v44  }
  0x67   : > { %783 = vperm.xlu1 %6875, %v6247_v45   ;;  %778 = vperm.xlu0 %6874, %v6246_v46   ;;  %v6289_v45 = vld [vmem:[%s12861_s1 + $0x2b8] sm:$0xff]  ;;  %v6288_v46 = vld [vmem:[%s12861_s1 + $0x2b0] sm:$0xff] }
  0x6b   : > { %793 = vperm.xlu1 %6875, %v6249_v47   ;;  %788 = vperm.xlu0 %6874, %v6248_v48  }
  0x6f   : > { %803 = vperm.xlu1 %6875, %v6251_v49   ;;  %798 = vperm.xlu0 %6874, %v6250_v50   ;;  %v6291_v49 = vld [vmem:[%s12861_s1 + $0x2c8] sm:$0xff]  ;;  %v6290_v50 = vld [vmem:[%s12861_s1 + $0x2c0] sm:$0xff] }
  0x73   : > { %813 = vperm.xlu1 %6875, %v6253_v51   ;;  %808 = vperm.xlu0 %6874, %v6252_v52  }
  0x77   : > { %823 = vperm.xlu1 %6875, %v6255_v53   ;;  %818 = vperm.xlu0 %6874, %v6254_v54   ;;  %v6293_v53 = vld [vmem:[%s12861_s1 + $0x2d8] sm:$0xff]  ;;  %v6292_v54 = vld [vmem:[%s12861_s1 + $0x2d0] sm:$0xff] }
  0x7b   : > { %833 = vperm.xlu1 %6875, %v6257_v55   ;;  %828 = vperm.xlu0 %6874, %v6256_v56  }
  0x7f   : > { %843 = vperm.xlu1 %6875, %v6259_v57   ;;  %838 = vperm.xlu0 %6874, %v6258_v58   ;;  %v6295_v57 = vld [vmem:[%s12861_s1 + $0x2e8] sm:$0xff]  ;;  %v6294_v58 = vld [vmem:[%s12861_s1 + $0x2e0] sm:$0xff] }
  0x83   : > { %853 = vperm.xlu1 %6875, %v6261_v59   ;;  %848 = vperm.xlu0 %6874, %v6260_v60  }
  0x87   : > { %863 = vperm.xlu1 %6875, %v6263_v61   ;;  %858 = vperm.xlu0 %6874, %v6262_v62   ;;  %v6297_v61 = vld [vmem:[%s12861_s1 + $0x2f8] sm:$0xff]  ;;  %v6296_v62 = vld [vmem:[%s12861_s1 + $0x2f0] sm:$0xff] }
  0x8b   : > { %873 = vperm.xlu1 %6875, %v6265_v63   ;;  %868 = vperm.xlu0 %6874, %v6264_v0  }
  0x8e   : > { %v8174_v3 = vpop.permute.xlu1 %503  ;;  %v8176_v4 = vpop.permute.xlu0 %493 }
  0x8f   : > { %13238 = vst [vmem:[#allocation2_spill] sm:$0xff] %v8174_v3  ;;  %13239 = vst [vmem:[#allocation3_spill] sm:$0xff] %v8176_v4  ;;  %1013 = vperm.xlu1 %6875, %v6267_v1   ;;  %1008 = vperm.xlu0 %6874, %v6266_v2   ;;  %v6299_v1 = vld [vmem:[%s12861_s1 + $0x308] sm:$0xff]  ;;  %v6298_v2 = vld [vmem:[%s12861_s1 + $0x300] sm:$0xff] }
  0x92   : > { %v8184_v7 = vpop.permute.xlu1 %508  ;;  %v8186_v8 = vpop.permute.xlu0 %498 }
  0x93   : > { %13240 = vst [vmem:[#allocation4_spill] sm:$0xff] %v8184_v7  ;;  %13241 = vst [vmem:[#allocation5_spill] sm:$0xff] %v8186_v8  ;;  %1023 = vperm.xlu1 %6875, %v6269_v5   ;;  %1018 = vperm.xlu0 %6874, %v6268_v6  }
  0x96   : > { %v8194_v11 = vpop.permute.xlu1 %518  ;;  %v8196_v12 = vpop.permute.xlu0 %513 }
  0x97   : > { %13242 = vst [vmem:[#allocation6_spill] sm:$0xff] %v8194_v11  ;;  %13243 = vst [vmem:[#allocation7_spill] sm:$0xff] %v8196_v12  ;;  %1033 = vperm.xlu1 %6875, %v6271_v9   ;;  %1028 = vperm.xlu0 %6874, %v6270_v10   ;;  %v6301_v9 = vld [vmem:[%s12861_s1 + $0x318] sm:$0xff]  ;;  %v6300_v10 = vld [vmem:[%s12861_s1 + $0x310] sm:$0xff] }
  0x98   : > { %v8850_v11 = vld [vmem:[%s8792_s28 + $0x18] sm:$0xff] }
  0x99   : > { %13351 = vst [vmem:[#allocation114_spill] sm:$0xff] %v8850_v11 }
  0x9a   : > { %v8204_v15 = vpop.permute.xlu1 %528  ;;  %v8206_v16 = vpop.permute.xlu0 %523 }
  0x9b   : > { %13244 = vst [vmem:[#allocation8_spill] sm:$0xff] %v8204_v15  ;;  %13245 = vst [vmem:[#allocation9_spill] sm:$0xff] %v8206_v16  ;;  %1043 = vperm.xlu1 %6875, %v6273_v13   ;;  %1038 = vperm.xlu0 %6874, %v6272_v14   ;;  %v8824_v15 = vld [vmem:[%s8792_s28 + $0xf0] sm:$0xff] }
  0x9c   : > { %13347 = vst [vmem:[#allocation110_spill] sm:$0xff] %v8824_v15 }
  0x9e   : > { %v8214_v19 = vpop.permute.xlu1 %538  ;;  %v8216_v20 = vpop.permute.xlu0 %533 }
  0x9f   : > { %13246 = vst [vmem:[#allocation10_spill] sm:$0xff] %v8214_v19  ;;  %13247 = vst [vmem:[#allocation11_spill] sm:$0xff] %v8216_v20  ;;  %1053 = vperm.xlu1 %6875, %v6275_v17   ;;  %1048 = vperm.xlu0 %6874, %v6274_v18   ;;  %v6303_v17 = vld [vmem:[%s12861_s1 + $0x328] sm:$0xff]  ;;  %v6302_v18 = vld [vmem:[%s12861_s1 + $0x320] sm:$0xff] }
  0xa0   : > { %v8807_v19 = vld [vmem:[%s8792_s28 + $0x10] sm:$0xff] }
  0xa1   : > { %13344 = vst [vmem:[#allocation107_spill] sm:$0xff] %v8807_v19  ;;  %v394_v16 = vrot.slane %v8807_v19, 7 }
  0xa2   : > { %v8224_v23 = vpop.permute.xlu1 %548  ;;  %v8226_v24 = vpop.permute.xlu0 %543 }
  0xa3   : > { %13248 = vst [vmem:[#allocation12_spill] sm:$0xff] %v8224_v23  ;;  %13249 = vst [vmem:[#allocation13_spill] sm:$0xff] %v8226_v24  ;;  %1063 = vperm.xlu1 %6875, %v6277_v21   ;;  %1058 = vperm.xlu0 %6874, %v6276_v22   ;;  %v3296_v23 = vld [vmem:[%s12862_s2 + $0x50] sm:$0xff] }
  0xa4   : > { %v6344_v24 = vld [vmem:[%s12861_s1 + $0x570] sm:$0xff] }
  0xa6   : > { %v8234_v27 = vpop.permute.xlu1 %558  ;;  %v8236_v28 = vpop.permute.xlu0 %553 }
  0xa7   : > { %13250 = vst [vmem:[#allocation14_spill] sm:$0xff] %v8234_v27  ;;  %13251 = vst [vmem:[#allocation15_spill] sm:$0xff] %v8236_v28  ;;  %1073 = vperm.xlu1 %6875, %v6279_v25   ;;  %1068 = vperm.xlu0 %6874, %v6278_v26   ;;  %v6305_v25 = vld [vmem:[%s12861_s1 + $0x338] sm:$0xff]  ;;  %v6304_v26 = vld [vmem:[%s12861_s1 + $0x330] sm:$0xff] }
  0xa8   : > { %v6406_v27 = vld [vmem:[%s12861_s1 + $0x760] sm:$0xff] }
  0xaa   : > { %v8244_v31 = vpop.permute.xlu1 %568  ;;  %v8246_v32 = vpop.permute.xlu0 %563 }
  0xab   : > { %13252 = vst [vmem:[#allocation16_spill] sm:$0xff] %v8244_v31  ;;  %13253 = vst [vmem:[#allocation17_spill] sm:$0xff] %v8246_v32  ;;  %1083 = vperm.xlu1 %6875, %v6281_v29   ;;  %1078 = vperm.xlu0 %6874, %v6280_v30   ;;  %v6405_v32 = vld [vmem:[%s12861_s1 + $0x758] sm:$0xff] }
  0xae   : > { %v8254_v35 = vpop.permute.xlu1 %578  ;;  %v8256_v36 = vpop.permute.xlu0 %573 }
  0xaf   : > { %13254 = vst [vmem:[#allocation18_spill] sm:$0xff] %v8254_v35  ;;  %13255 = vst [vmem:[#allocation19_spill] sm:$0xff] %v8256_v36  ;;  %1093 = vperm.xlu1 %6875, %v6283_v33   ;;  %1088 = vperm.xlu0 %6874, %v6282_v34   ;;  %v6307_v33 = vld [vmem:[%s12861_s1 + $0x348] sm:$0xff]  ;;  %v6306_v34 = vld [vmem:[%s12861_s1 + $0x340] sm:$0xff] }
  0xb0   : > { %v6308_v35 = vld [vmem:[%s12861_s1 + $0x350] sm:$0xff]  ;;  %v3287_v36 = vld [vmem:[%s12862_s2 + $0x8] sm:$0xff] }
  0xb2   : > { %v8264_v39 = vpop.permute.xlu1 %588  ;;  %v8266_v40 = vpop.permute.xlu0 %583 }
  0xb3   : > { %13256 = vst [vmem:[#allocation20_spill] sm:$0xff] %v8264_v39  ;;  %13257 = vst [vmem:[#allocation21_spill] sm:$0xff] %v8266_v40  ;;  %1103 = vperm.xlu1 %6875, %v6285_v37   ;;  %1098 = vperm.xlu0 %6874, %v6284_v38   ;;  %v6372_v39 = vld [vmem:[%s12861_s1 + $0x650] sm:$0xff] }
  0xb6   : > { %v8274_v43 = vpop.permute.xlu1 %598  ;;  %v8276_v44 = vpop.permute.xlu0 %593 }
  0xb7   : > { %13258 = vst [vmem:[#allocation22_spill] sm:$0xff] %v8274_v43  ;;  %13259 = vst [vmem:[#allocation23_spill] sm:$0xff] %v8276_v44  ;;  %1113 = vperm.xlu1 %6875, %v6287_v41   ;;  %1108 = vperm.xlu0 %6874, %v6286_v42   ;;  %v6362_v41 = vld [vmem:[%s12861_s1 + $0x600] sm:$0xff]  ;;  %v6403_v43 = vld [vmem:[%s12861_s1 + $0x748] sm:$0xff] }
  0xb8   : > { %v6330_v42 = vld [vmem:[%s12861_s1 + $0x500] sm:$0xff] }
  0xba   : > { %v8284_v47 = vpop.permute.xlu1 %608  ;;  %v8286_v48 = vpop.permute.xlu0 %603 }
  0xbb   : > { %13260 = vst [vmem:[#allocation24_spill] sm:$0xff] %v8284_v47  ;;  %13261 = vst [vmem:[#allocation25_spill] sm:$0xff] %v8286_v48  ;;  %1123 = vperm.xlu1 %6875, %v6289_v45   ;;  %1118 = vperm.xlu0 %6874, %v6288_v46   ;;  %v6339_v47 = vld [vmem:[%s12861_s1 + $0x548] sm:$0xff] }
  0xbe   : > { %v8294_v51 = vpop.permute.xlu1 %618  ;;  %v8296_v52 = vpop.permute.xlu0 %613 }
  0xbf   : > { %13262 = vst [vmem:[#allocation26_spill] sm:$0xff] %v8294_v51  ;;  %13263 = vst [vmem:[#allocation27_spill] sm:$0xff] %v8296_v52  ;;  %1133 = vperm.xlu1 %6875, %v6291_v49   ;;  %1128 = vperm.xlu0 %6874, %v6290_v50   ;;  %v6331_v49 = vld [vmem:[%s12861_s1 + $0x508] sm:$0xff]  ;;  %v6394_v50 = vld [vmem:[%s12861_s1 + $0x700] sm:$0xff] }
  0xc0   : > { %v6370_v51 = vld [vmem:[%s12861_s1 + $0x640] sm:$0xff] }
  0xc2   : > { %v8304_v55 = vpop.permute.xlu1 %628  ;;  %v8306_v56 = vpop.permute.xlu0 %623 }
  0xc3   : > { %13264 = vst [vmem:[#allocation28_spill] sm:$0xff] %v8304_v55  ;;  %13265 = vst [vmem:[#allocation29_spill] sm:$0xff] %v8306_v56  ;;  %1143 = vperm.xlu1 %6875, %v6293_v53   ;;  %1138 = vperm.xlu0 %6874, %v6292_v54   ;;  %v6401_v55 = vld [vmem:[%s12861_s1 + $0x738] sm:$0xff] }
  0xc6   : > { %v8314_v59 = vpop.permute.xlu1 %638  ;;  %v8316_v60 = vpop.permute.xlu0 %633 }
  0xc7   : > { %13266 = vst [vmem:[#allocation30_spill] sm:$0xff] %v8314_v59  ;;  %13267 = vst [vmem:[#allocation31_spill] sm:$0xff] %v8316_v60  ;;  %1153 = vperm.xlu1 %6875, %v6295_v57   ;;  %1148 = vperm.xlu0 %6874, %v6294_v58   ;;  %v6395_v57 = vld [vmem:[%s12861_s1 + $0x708] sm:$0xff]  ;;  %v6337_v59 = vld [vmem:[%s12861_s1 + $0x538] sm:$0xff] }
  0xc8   : > { %v6363_v58 = vld [vmem:[%s12861_s1 + $0x608] sm:$0xff] }
  0xca   : > { %v8324_v63 = vpop.permute.xlu1 %648  ;;  %v8326_v0 = vpop.permute.xlu0 %643 }
  0xcb   : > { %13268 = vst [vmem:[#allocation32_spill] sm:$0xff] %v8324_v63  ;;  %13269 = vst [vmem:[#allocation33_spill] sm:$0xff] %v8326_v0  ;;  %1163 = vperm.xlu1 %6875, %v6297_v61   ;;  %1158 = vperm.xlu0 %6874, %v6296_v62   ;;  %v6368_v63 = vld [vmem:[%s12861_s1 + $0x630] sm:$0xff] }
  0xce   : > { %v8334_v5 = vpop.permute.xlu1 %723  ;;  %v8336_v6 = vpop.permute.xlu0 %718 }
  0xcf   : > { %13270 = vst [vmem:[#allocation34_spill] sm:$0xff] %v8334_v5  ;;  %13271 = vst [vmem:[#allocation35_spill] sm:$0xff] %v8336_v6  ;;  %1238 = vperm.xlu1 %6875, %v6299_v1   ;;  %1233 = vperm.xlu0 %6874, %v6298_v2   ;;  %v6364_v1 = vld [vmem:[%s12861_s1 + $0x610] sm:$0xff] }
  0xd0   : > { %v6332_v2 = vld [vmem:[%s12861_s1 + $0x510] sm:$0xff] }
  0xd2   : > { %v8344_v13 = vpop.permute.xlu1 %733  ;;  %v8346_v14 = vpop.permute.xlu0 %728 }
  0xd3   : > { %13272 = vst [vmem:[#allocation36_spill] sm:$0xff] %v8344_v13  ;;  %13273 = vst [vmem:[#allocation37_spill] sm:$0xff] %v8346_v14  ;;  %1248 = vperm.xlu1 %6875, %v6301_v9   ;;  %1243 = vperm.xlu0 %6874, %v6300_v10  }
  0xd6   : > { %v8354_v21 = vpop.permute.xlu1 %743  ;;  %v8356_v22 = vpop.permute.xlu0 %738 }
  0xd7   : > { %13274 = vst [vmem:[#allocation38_spill] sm:$0xff] %v8354_v21  ;;  %13275 = vst [vmem:[#allocation39_spill] sm:$0xff] %v8356_v22  ;;  %1258 = vperm.xlu1 %6875, %v6303_v17   ;;  %1253 = vperm.xlu0 %6874, %v6302_v18   ;;  %v6333_v17 = vld [vmem:[%s12861_s1 + $0x518] sm:$0xff]  ;;  %v6396_v18 = vld [vmem:[%s12861_s1 + $0x710] sm:$0xff] }
  0xda   : > { %v8364_v29 = vpop.permute.xlu1 %753  ;;  %v8366_v30 = vpop.permute.xlu0 %748 }
  0xdb   : > { %13276 = vst [vmem:[#allocation40_spill] sm:$0xff] %v8364_v29  ;;  %13277 = vst [vmem:[#allocation41_spill] sm:$0xff] %v8366_v30  ;;  %1268 = vperm.xlu1 %6875, %v6305_v25   ;;  %1263 = vperm.xlu0 %6874, %v6304_v26  }
  0xde   : > { %v8374_v37 = vpop.permute.xlu1 %763  ;;  %v8376_v38 = vpop.permute.xlu0 %758 }
  0xdf   : > { %13278 = vst [vmem:[#allocation42_spill] sm:$0xff] %v8374_v37  ;;  %13279 = vst [vmem:[#allocation43_spill] sm:$0xff] %v8376_v38  ;;  %1278 = vperm.xlu1 %6875, %v6307_v33   ;;  %1273 = vperm.xlu0 %6874, %v6306_v34   ;;  %v6397_v33 = vld [vmem:[%s12861_s1 + $0x718] sm:$0xff] }
  0xe0   : > { %v6365_v34 = vld [vmem:[%s12861_s1 + $0x618] sm:$0xff] }
  0xe2   : > { %v8384_v45 = vpop.permute.xlu1 %773  ;;  %v8386_v46 = vpop.permute.xlu0 %768 }
  0xe3   : > { %13280 = vst [vmem:[#allocation44_spill] sm:$0xff] %v8384_v45  ;;  %13281 = vst [vmem:[#allocation45_spill] sm:$0xff] %v8386_v46  ;;  %1683 = vperm.xlu1 %6875, %v6362_v41   ;;  %1458 = vperm.xlu0 %6874, %v6330_v42  }
  0xe6   : > { %v8394_v53 = vpop.permute.xlu1 %783  ;;  %v8396_v54 = vpop.permute.xlu0 %778 }
  0xe7   : > { %13282 = vst [vmem:[#allocation46_spill] sm:$0xff] %v8394_v53  ;;  %13283 = vst [vmem:[#allocation47_spill] sm:$0xff] %v8396_v54  ;;  %1463 = vperm.xlu1 %6875, %v6331_v49   ;;  %1908 = vperm.xlu0 %6874, %v6394_v50   ;;  %v6366_v49 = vld [vmem:[%s12861_s1 + $0x620] sm:$0xff] }
  0xe8   : > { %v6334_v50 = vld [vmem:[%s12861_s1 + $0x520] sm:$0xff] }
  0xea   : > { %v8404_v61 = vpop.permute.xlu1 %793  ;;  %v8406_v62 = vpop.permute.xlu0 %788 }
  0xeb   : > { %13284 = vst [vmem:[#allocation48_spill] sm:$0xff] %v8404_v61  ;;  %13285 = vst [vmem:[#allocation49_spill] sm:$0xff] %v8406_v62  ;;  %1913 = vperm.xlu1 %6875, %v6395_v57   ;;  %1688 = vperm.xlu0 %6874, %v6363_v58   ;;  %v13353_v61 = vrot.slane %v8824_v15, 1 }
  0xee   : > { %v8414_v9 = vpop.permute.xlu1 %803  ;;  %v8416_v10 = vpop.permute.xlu0 %798 }
  0xef   : > { %13286 = vst [vmem:[#allocation50_spill] sm:$0xff] %v8414_v9  ;;  %13287 = vst [vmem:[#allocation51_spill] sm:$0xff] %v8416_v10  ;;  %1693 = vperm.xlu1 %6875, %v6364_v1   ;;  %1468 = vperm.xlu0 %6874, %v6332_v2   ;;  %v6335_v1 = vld [vmem:[%s12861_s1 + $0x528] sm:$0xff]  ;;  %v6398_v2 = vld [vmem:[%s12861_s1 + $0x720] sm:$0xff] }
  0xf2   : > { %v8424_v25 = vpop.permute.xlu1 %813  ;;  %v8426_v26 = vpop.permute.xlu0 %808 }
  0xf3   : > { %13288 = vst [vmem:[#allocation52_spill] sm:$0xff] %v8424_v25  ;;  %13289 = vst [vmem:[#allocation53_spill] sm:$0xff] %v8426_v26  ;;  %1473 = vperm.xlu1 %6875, %v6333_v17   ;;  %1918 = vperm.xlu0 %6874, %v6396_v18  }
  0xf6   : > { %v8434_v41 = vpop.permute.xlu1 %823  ;;  %v8436_v42 = vpop.permute.xlu0 %818 }
  0xf7   : > { %13290 = vst [vmem:[#allocation54_spill] sm:$0xff] %v8434_v41  ;;  %13291 = vst [vmem:[#allocation55_spill] sm:$0xff] %v8436_v42  ;;  %1923 = vperm.xlu1 %6875, %v6397_v33   ;;  %1698 = vperm.xlu0 %6874, %v6365_v34   ;;  %v6399_v33 = vld [vmem:[%s12861_s1 + $0x728] sm:$0xff]  ;;  %v3310_v42 = vld [vmem:[%s12862_s2 + $0xc0] sm:$0xff] }
  0xf8   : > { %v6367_v34 = vld [vmem:[%s12861_s1 + $0x628] sm:$0xff] }
  0xf9   : > { %v3311_v41 = vld [vmem:[%s12862_s2 + $0xc8] sm:$0xff] }
  0xfa   : > { %v8444_v57 = vpop.permute.xlu1 %833  ;;  %v8446_v58 = vpop.permute.xlu0 %828 }
  0xfb   : > { %13292 = vst [vmem:[#allocation56_spill] sm:$0xff] %v8444_v57  ;;  %13293 = vst [vmem:[#allocation57_spill] sm:$0xff] %v8446_v58  ;;  %1703 = vperm.xlu1 %6875, %v6366_v49   ;;  %1478 = vperm.xlu0 %6874, %v6334_v50   ;;  %v3294_v58 = vld [vmem:[%s12862_s2 + $0x40] sm:$0xff]  ;;  %v6407_v57 = vld [vmem:[%s12861_s1 + $0x768] sm:$0xff] }
  0xfe   : > { %v8454_v17 = vpop.permute.xlu1 %843  ;;  %v8456_v18 = vpop.permute.xlu0 %838 }
  0xff   : > { %13294 = vst [vmem:[#allocation58_spill] sm:$0xff] %v8454_v17  ;;  %13295 = vst [vmem:[#allocation59_spill] sm:$0xff] %v8456_v18  ;;  %1483 = vperm.xlu1 %6875, %v6335_v1   ;;  %1928 = vperm.xlu0 %6874, %v6398_v2   ;;  %v6336_v1 = vld [vmem:[%s12861_s1 + $0x530] sm:$0xff]  ;;  %v6343_v17 = vld [vmem:[%s12861_s1 + $0x568] sm:$0xff] }
 0x100   : > { %v3292_v18 = vld [vmem:[%s12862_s2 + $0x30] sm:$0xff] }
 0x102   : > { %v8464_v49 = vpop.permute.xlu1 %853  ;;  %v8466_v50 = vpop.permute.xlu0 %848 }
 0x103   : > { %13296 = vst [vmem:[#allocation60_spill] sm:$0xff] %v8464_v49  ;;  %13297 = vst [vmem:[#allocation61_spill] sm:$0xff] %v8466_v50  ;;  %1933 = vperm.xlu1 %6875, %v6399_v33   ;;  %1708 = vperm.xlu0 %6874, %v6367_v34   ;;  %v6400_v33 = vld [vmem:[%s12861_s1 + $0x730] sm:$0xff]  ;;  %v6342_v49 = vld [vmem:[%s12861_s1 + $0x560] sm:$0xff] }
 0x106   : > { %v8474_v2 = vpop.permute.xlu1 %863  ;;  %v8476_v0 = vpop.permute.xlu0 %858 }
 0x107   : > { %13298 = vst [vmem:[#allocation62_spill] sm:$0xff] %v8474_v2  ;;  %13299 = vst [vmem:[#allocation63_spill] sm:$0xff] %v8476_v0  ;;  %1713 = vperm.xlu1 %6875, %v6368_v63   ;;  %1488 = vperm.xlu0 %6874, %v6336_v1   ;;  %v6369_v63 = vld [vmem:[%s12861_s1 + $0x638] sm:$0xff] }
 0x108   : > { %v6309_v2 = vld [vmem:[%s12861_s1 + $0x358] sm:$0xff] }
 0x10a   : > { %v8484_v34 = vpop.permute.xlu1 %873  ;;  %v8486_v60 = vpop.permute.xlu0 %868 }
 0x10b   : > { %13300 = vst [vmem:[#allocation64_spill] sm:$0xff] %v8484_v34  ;;  %13301 = vst [vmem:[#allocation65_spill] sm:$0xff] %v8486_v60  ;;  %1493 = vperm.xlu1 %6875, %v6337_v59   ;;  %1938 = vperm.xlu0 %6874, %v6400_v33   ;;  %v6338_v59 = vld [vmem:[%s12861_s1 + $0x540] sm:$0xff]  ;;  %v6373_v34 = vld [vmem:[%s12861_s1 + $0x658] sm:$0xff] }
 0x10e   : > { %v8494_v1 = vpop.permute.xlu1 %1013  ;;  %v8496_v56 = vpop.permute.xlu0 %1008 }
 0x10f   : > { %13302 = vst [vmem:[#allocation66_spill] sm:$0xff] %v8494_v1  ;;  %13303 = vst [vmem:[#allocation67_spill] sm:$0xff] %v8496_v56  ;;  %1943 = vperm.xlu1 %6875, %v6401_v55   ;;  %1718 = vperm.xlu0 %6874, %v6369_v63   ;;  %v6402_v55 = vld [vmem:[%s12861_s1 + $0x740] sm:$0xff] }
 0x112   : > { %v8504_v33 = vpop.permute.xlu1 %1023  ;;  %v8506_v52 = vpop.permute.xlu0 %1018 }
 0x113   : > { %13304 = vst [vmem:[#allocation68_spill] sm:$0xff] %v8504_v33  ;;  %13305 = vst [vmem:[#allocation69_spill] sm:$0xff] %v8506_v52  ;;  %1723 = vperm.xlu1 %6875, %v6370_v51   ;;  %1498 = vperm.xlu0 %6874, %v6338_v59   ;;  %v6371_v51 = vld [vmem:[%s12861_s1 + $0x648] sm:$0xff] }
 0x116   : > { %v8514_v63 = vpop.permute.xlu1 %1033  ;;  %v8516_v48 = vpop.permute.xlu0 %1028 }
 0x117   : > { %13306 = vst [vmem:[#allocation70_spill] sm:$0xff] %v8514_v63  ;;  %13307 = vst [vmem:[#allocation71_spill] sm:$0xff] %v8516_v48  ;;  %1503 = vperm.xlu1 %6875, %v6339_v47   ;;  %1948 = vperm.xlu0 %6874, %v6402_v55   ;;  %v6340_v47 = vld [vmem:[%s12861_s1 + $0x550] sm:$0xff] }
 0x11a   : > { %v8524_v59 = vpop.permute.xlu1 %1043  ;;  %v8526_v44 = vpop.permute.xlu0 %1038 }
 0x11b   : > { %13308 = vst [vmem:[#allocation72_spill] sm:$0xff] %v8524_v59  ;;  %13309 = vst [vmem:[#allocation73_spill] sm:$0xff] %v8526_v44  ;;  %1953 = vperm.xlu1 %6875, %v6403_v43   ;;  %1728 = vperm.xlu0 %6874, %v6371_v51   ;;  %v6404_v43 = vld [vmem:[%s12861_s1 + $0x750] sm:$0xff] }
 0x11e   : > { %v8534_v55 = vpop.permute.xlu1 %1053  ;;  %v8536_v40 = vpop.permute.xlu0 %1048 }
 0x11f   : > { %13310 = vst [vmem:[#allocation74_spill] sm:$0xff] %v8534_v55  ;;  %13311 = vst [vmem:[#allocation75_spill] sm:$0xff] %v8536_v40  ;;  %1733 = vperm.xlu1 %6875, %v6372_v39   ;;  %1508 = vperm.xlu0 %6874, %v6340_v47   ;;  %v6341_v39 = vld [vmem:[%s12861_s1 + $0x558] sm:$0xff]  ;;  %v3286_v47 = vld [vmem:[%s12862_s2] sm:$0xff] }
 0x120   : > { %v6738_v31 = vpack.c.bf16 %v3287_v36, %v3286_v47  ;;  %v3288_v36 = vld [vmem:[%s12862_s2 + $0x10] sm:$0xff]  ;;  %v3289_v47 = vld [vmem:[%s12862_s2 + $0x18] sm:$0xff] }
 0x122   : > { %v8544_v51 = vpop.permute.xlu1 %1063  ;;  %v8546_v60 = vpop.permute.xlu0 %1058 }
 0x123   : > { %13312 = vst [vmem:[#allocation76_spill] sm:$0xff] %v8544_v51  ;;  %13313 = vst [vmem:[#allocation77_spill] sm:$0xff] %v8546_v60  ;;  %1283 = vperm.xlu1 %6875, %v6308_v35   ;;  %1958 = vperm.xlu0 %6874, %v6404_v43   ;;  %v12895_v43 = vmov 0.0|0.0  }
 0x124   : > { %6737 = vmatprep.subr.bf16.mxu0 %v12895_v43 }
 0x125   : > { %6739 = vmatpush1.bf16.msra.mxu0 %v6738_v31  ;;  %v6374_v31 = vld [vmem:[%s12861_s1 + $0x660] sm:$0xff] }
 0x126   : > { %v8560_v0 = vpop.permute.xlu1 %1073  ;;  %v8562_v35 = vpop.permute.xlu0 %1068  ;;  %6740 = vmatprep.subr.bf16.mxu0 %v12895_v43  ;;  %v3290_v43 = vld [vmem:[%s12862_s2 + $0x20] sm:$0xff] }
 0x127   : > { %13314 = vst [vmem:[#allocation78_spill] sm:$0xff] %v8560_v0  ;;  %13315 = vst [vmem:[#allocation79_spill] sm:$0xff] %v8562_v35  ;;  %1738 = vperm.xlu1 %6875, %v6373_v34   ;;  %1513 = vperm.xlu0 %6874, %v6341_v39   ;;  %v6741_v34 = vpack.c.bf16 %v3289_v47, %v3288_v36  ;;  %v3291_v36 = vld [vmem:[%s12862_s2 + $0x28] sm:$0xff]  ;;  %v13318_v47 = vmov 0.0|0.0   ;;  %v13355_v35 = vrot.slane %v8807_v19, 1 }
 0x129   : > { %6742 = vmatpush1.bf16.msra.mxu0 %v6741_v34  ;;  %v6310_v34 = vld [vmem:[%s12861_s1 + $0x360] sm:$0xff] }
 0x12a   : > { %v8578_v39 = vpop.permute.xlu1 %1083  ;;  %v8580_v50 = vpop.permute.xlu0 %1078  ;;  %6743 = vmatprep.subr.bf16.mxu0 %v13318_v47 }
 0x12b   : > { %13316 = vst [vmem:[#allocation80_spill] sm:$0xff] %v8578_v39  ;;  %13317 = vst [vmem:[#allocation81_spill] sm:$0xff] %v8580_v50  ;;  %1288 = vperm.xlu1 %6875, %v6309_v2   ;;  %1963 = vperm.xlu0 %6874, %v6405_v32   ;;  %v6744_v32 = vpack.c.bf16 %v3291_v36, %v3290_v43  ;;  %v3293_v43 = vld [vmem:[%s12862_s2 + $0x38] sm:$0xff] }
 0x12d   : > { %6745 = vmatpush1.bf16.msra.mxu0 %v6744_v32  ;;  %v6375_v32 = vld [vmem:[%s12861_s1 + $0x668] sm:$0xff] }
 0x12e   : > { %v8595_v2 = vpop.permute.xlu1 %1093  ;;  %v8597_v28 = vpop.permute.xlu0 %1088  ;;  %6746 = vmatprep.subr.bf16.mxu0 %v13318_v47 }
 0x12f   : > { %13319 = vst [vmem:[#allocation82_spill] sm:$0xff] %v8595_v2  ;;  %13320 = vst [vmem:[#allocation83_spill] sm:$0xff] %v8597_v28  ;;  %1743 = vperm.xlu1 %6875, %v6374_v31   ;;  %1518 = vperm.xlu0 %6874, %v6342_v49   ;;  %v6747_v49 = vpack.c.bf16 %v3293_v43, %v3292_v18  ;;  %v3295_v18 = vld [vmem:[%s12862_s2 + $0x48] sm:$0xff]  ;;  %v8819_v2 = vld [vmem:[%s8792_s28 + $0xf8] sm:$0xff] }
 0x130   : > { %v3316_v28 = vld [vmem:[%s12862_s2 + $0xf0] sm:$0xff] }
 0x131   : > { %6748 = vmatpush1.bf16.msra.mxu0 %v6747_v49  ;;  %v6311_v49 = vld [vmem:[%s12861_s1 + $0x368] sm:$0xff] }
 0x132   : > { %v8612_v31 = vpop.permute.xlu1 %1103  ;;  %v8614_v36 = vpop.permute.xlu0 %1098  ;;  %6749 = vmatprep.subr.bf16.mxu0 %v13318_v47 }
 0x133   : > { %13321 = vst [vmem:[#allocation84_spill] sm:$0xff] %v8612_v31  ;;  %13322 = vst [vmem:[#allocation85_spill] sm:$0xff] %v8614_v36  ;;  %1293 = vperm.xlu1 %6875, %v6310_v34   ;;  %1968 = vperm.xlu0 %6874, %v6406_v27   ;;  %v6750_v27 = vpack.c.bf16 %v3295_v18, %v3294_v58  ;;  %v3297_v58 = vld [vmem:[%s12862_s2 + $0x58] sm:$0xff]  ;;  %v424_v31 = vlaneseq  ;;  %v8816_v36 = vld [vmem:[%s8792_s28] sm:$0xff] }
 0x135   : > { %6751 = vmatpush1.bf16.msra.mxu0 %v6750_v27  ;;  %v6376_v27 = vld [vmem:[%s12861_s1 + $0x670] sm:$0xff]  ;;  %v8821_v9 = vshrl.u32 %v424_v31, 7  ;;  %v3317_v31 = vld [vmem:[%s12862_s2 + $0xf8] sm:$0xff] }
 0x136   : > { %v8629_v34 = vpop.permute.xlu1 %1113  ;;  %v8631_v43 = vpop.permute.xlu0 %1108  ;;  %6752 = vmatprep.subr.bf16.mxu0 %v13318_v47 }
 0x137   : > { %13323 = vst [vmem:[#allocation86_spill] sm:$0xff] %v8629_v34  ;;  %13324 = vst [vmem:[#allocation87_spill] sm:$0xff] %v8631_v43  ;;  %1748 = vperm.xlu1 %6875, %v6375_v32   ;;  %1523 = vperm.xlu0 %6874, %v6343_v17   ;;  %v6753_v17 = vpack.c.bf16 %v3297_v58, %v3296_v23  ;;  %v3298_v34 = vld [vmem:[%s12862_s2 + $0x60] sm:$0xff]  ;;  %v3299_v23 = vld [vmem:[%s12862_s2 + $0x68] sm:$0xff]  ;;  %vm940_vm0 = vcmp.lt.s32.totalorder %v8821_v9, 7  ;;  %vm426_vm1 = vcmp.lt.s32.totalorder %v8821_v9, 1 }
 0x138   : > { %v3313_v43 = vld [vmem:[%s12862_s2 + $0xd8] sm:$0xff] }
 0x139   : > { %6754 = vmatpush1.bf16.msra.mxu0 %v6753_v17  ;;  %v6312_v17 = vld [vmem:[%s12861_s1 + $0x370] sm:$0xff] }
 0x13a   : > { %v8646_v32 = vpop.permute.xlu1 %1123  ;;  %v8648_v18 = vpop.permute.xlu0 %1118  ;;  %6755 = vmatprep.subr.bf16.mxu0 %v13318_v47 }
 0x13b   : > { %13325 = vst [vmem:[#allocation88_spill] sm:$0xff] %v8646_v32  ;;  %13326 = vst [vmem:[#allocation89_spill] sm:$0xff] %v8648_v18  ;;  %1298 = vperm.xlu1 %6875, %v6311_v49   ;;  %1973 = vperm.xlu0 %6874, %v6407_v57   ;;  %v6756_v57 = vpack.c.bf16 %v3299_v23, %v3298_v34  ;;  %v6408_v32 = vld [vmem:[%s12861_s1 + $0x770] sm:$0xff]  ;;  %v3301_v34 = vld [vmem:[%s12862_s2 + $0x78] sm:$0xff] }
 0x13c   : > { %v3300_v18 = vld [vmem:[%s12862_s2 + $0x70] sm:$0xff] }
 0x13d   : > { %6757 = vmatpush1.bf16.msra.mxu0 %v6756_v57  ;;  %v6377_v57 = vld [vmem:[%s12861_s1 + $0x678] sm:$0xff] }
 0x13e   : > { %v8663_v49 = vpop.permute.xlu1 %1133  ;;  %v8665_v58 = vpop.permute.xlu0 %1128  ;;  %6758 = vmatprep.subr.bf16.mxu0 %v13318_v47 }
 0x13f   : > { %13327 = vst [vmem:[#allocation90_spill] sm:$0xff] %v8663_v49  ;;  %13328 = vst [vmem:[#allocation91_spill] sm:$0xff] %v8665_v58  ;;  %1753 = vperm.xlu1 %6875, %v6376_v27   ;;  %1528 = vperm.xlu0 %6874, %v6344_v24   ;;  %v6759_v24 = vpack.c.bf16 %v3301_v34, %v3300_v18  ;;  %v6345_v49 = vld [vmem:[%s12861_s1 + $0x578] sm:$0xff]  ;;  %v3302_v58 = vld [vmem:[%s12862_s2 + $0x80] sm:$0xff] }
 0x140   : > { %v3303_v18 = vld [vmem:[%s12862_s2 + $0x88] sm:$0xff] }
 0x141   : > { %6760 = vmatpush1.bf16.msra.mxu0 %v6759_v24  ;;  %v6313_v24 = vld [vmem:[%s12861_s1 + $0x378] sm:$0xff] }
 0x142   : > { %v8680_v27 = vpop.permute.xlu1 %1143  ;;  %v8682_v23 = vpop.permute.xlu0 %1138  ;;  %6761 = vmatprep.subr.bf16.mxu0 %v13318_v47 }
 0x143   : > { %13329 = vst [vmem:[#allocation92_spill] sm:$0xff] %v8680_v27  ;;  %13330 = vst [vmem:[#allocation93_spill] sm:$0xff] %v8682_v23  ;;  %1303 = vperm.xlu1 %6875, %v6312_v17   ;;  %1978 = vperm.xlu0 %6874, %v6408_v32   ;;  %v6762_v32 = vpack.c.bf16 %v3303_v18, %v3302_v58  ;;  %v6409_v27 = vld [vmem:[%s12861_s1 + $0x778] sm:$0xff]  ;;  %v3304_v23 = vld [vmem:[%s12862_s2 + $0x90] sm:$0xff] }
 0x144   : > { %v3305_v58 = vld [vmem:[%s12862_s2 + $0x98] sm:$0xff] }
 0x145   : > { %6763 = vmatpush1.bf16.msra.mxu0 %v6762_v32  ;;  %v6378_v32 = vld [vmem:[%s12861_s1 + $0x680] sm:$0xff] }
 0x146   : > { %v8697_v17 = vpop.permute.xlu1 %1153  ;;  %v8699_v34 = vpop.permute.xlu0 %1148  ;;  %6764 = vmatprep.subr.bf16.mxu0 %v13318_v47 }
 0x147   : > { %13331 = vst [vmem:[#allocation94_spill] sm:$0xff] %v8697_v17  ;;  %13332 = vst [vmem:[#allocation95_spill] sm:$0xff] %v8699_v34  ;;  %1758 = vperm.xlu1 %6875, %v6377_v57   ;;  %1533 = vperm.xlu0 %6874, %v6345_v49   ;;  %v6765_v49 = vpack.c.bf16 %v3305_v58, %v3304_v23  ;;  %v6346_v17 = vld [vmem:[%s12861_s1 + $0x580] sm:$0xff]  ;;  %v3307_v58 = vld [vmem:[%s12862_s2 + $0xa8] sm:$0xff] }
 0x148   : > { %v3306_v23 = vld [vmem:[%s12862_s2 + $0xa0] sm:$0xff] }
 0x149   : > { %6766 = vmatpush1.bf16.msra.mxu0 %v6765_v49  ;;  %v6314_v49 = vld [vmem:[%s12861_s1 + $0x380] sm:$0xff] }
 0x14a   : > { %v8714_v57 = vpop.permute.xlu1 %1163  ;;  %v8716_v18 = vpop.permute.xlu0 %1158  ;;  %6767 = vmatprep.subr.bf16.mxu0 %v13318_v47 }
 0x14b   : > { %13333 = vst [vmem:[#allocation96_spill] sm:$0xff] %v8714_v57  ;;  %13334 = vst [vmem:[#allocation97_spill] sm:$0xff] %v8716_v18  ;;  %1308 = vperm.xlu1 %6875, %v6313_v24   ;;  %1983 = vperm.xlu0 %6874, %v6409_v27   ;;  %v6768_v27 = vpack.c.bf16 %v3307_v58, %v3306_v23  ;;  %v6410_v18 = vld [vmem:[%s12861_s1 + $0x780] sm:$0xff]  ;;  %v3308_v23 = vld [vmem:[%s12862_s2 + $0xb0] sm:$0xff] }
 0x14c   : > { %v3309_v58 = vld [vmem:[%s12862_s2 + $0xb8] sm:$0xff] }
 0x14d   : > { %6769 = vmatpush1.bf16.msra.mxu0 %v6768_v27  ;;  %v6347_v27 = vld [vmem:[%s12861_s1 + $0x588] sm:$0xff] }
 0x14e   : > { %v8731_v24 = vpop.permute.xlu1 %1238  ;;  %v8733_v57 = vpop.permute.xlu0 %1233  ;;  %6770 = vmatprep.subr.bf16.mxu0 %v13318_v47 }
 0x14f   : > { %13335 = vst [vmem:[#allocation98_spill] sm:$0xff] %v8731_v24  ;;  %13336 = vst [vmem:[#allocation99_spill] sm:$0xff] %v8733_v57  ;;  %1763 = vperm.xlu1 %6875, %v6378_v32   ;;  %1538 = vperm.xlu0 %6874, %v6346_v17   ;;  %v6771_v17 = vpack.c.bf16 %v3309_v58, %v3308_v23  ;;  %v6379_v58 = vld [vmem:[%s12861_s1 + $0x688] sm:$0xff] }
 0x151   : > { %6772 = vmatpush1.bf16.msra.mxu0 %v6771_v17  ;;  %v3312_v17 = vld [vmem:[%s12862_s2 + $0xd0] sm:$0xff] }
 0x152   : > { %v8750_v32 = vpop.permute.xlu1 %1248  ;;  %v8752_v34 = vpop.permute.xlu0 %1243  ;;  %6773 = vmatprep.subr.bf16.mxu0 %v13318_v47 }
 0x153   : > { %13337 = vst [vmem:[#allocation100_spill] sm:$0xff] %v8750_v32  ;;  %13338 = vst [vmem:[#allocation101_spill] sm:$0xff] %v8752_v34  ;;  %1313 = vperm.xlu1 %6875, %v6314_v49   ;;  %1988 = vperm.xlu0 %6874, %v6410_v18   ;;  %v6774_v18 = vpack.c.bf16 %v3311_v41, %v3310_v42  ;;  %v6777_v41 = vpack.c.bf16 %v3313_v43, %v3312_v17  ;;  %v6411_v43 = vld [vmem:[%s12861_s1 + $0x788] sm:$0xff] }
 0x154   : > { %v8804_v17 = vld [vmem:[%s8792_s28 + $0x8] sm:$0xff] }
 0x155   : > { %6775 = vmatpush1.bf16.msra.mxu0 %v6774_v18  ;;  %v3314_v18 = vld [vmem:[%s12862_s2 + $0xe0] sm:$0xff]  ;;  %13343 = vst [vmem:[#allocation106_spill] sm:$0xff] %v8804_v17  ;;  %v909_v26 = vrot.slane %v8804_v17, 1  ;;  %v393_v39 = vrot.slane %v8804_v17, 7  ;;  %v879_v45 = vmul.f32 %v8344_v13, %v8804_v17  ;;  %v881_v17 = vmul.f32 %v8354_v21, %v8850_v11 }
 0x156   : > { %v8768_v49 = vpop.permute.xlu1 %1258  ;;  %v8770_v23 = vpop.permute.xlu0 %1253  ;;  %6776 = vmatprep.subr.bf16.mxu0 %v13318_v47 }
 0x157   : > { %13339 = vst [vmem:[#allocation102_spill] sm:$0xff] %v8768_v49  ;;  %13340 = vst [vmem:[#allocation103_spill] sm:$0xff] %v8770_v23  ;;  %1543 = vperm.xlu1 %6875, %v6347_v27   ;;  %v8875_v54 = vsel %vm940_vm0, %v909_v26, %v13355_v35 }
 0x158   : > { %13356 = vst [vmem:[#allocation117_spill] sm:$0xff] %v8875_v54 }
 0x159   : > { %6778 = vmatpush1.bf16.msra.mxu0 %v6777_v41 }
 0x15a   : > { %v8783_v42 = vpop.permute.xlu1 %1268  ;;  %v8785_v27 = vpop.permute.xlu0 %1263  ;;  %6779 = vmatprep.subr.bf16.mxu0 %v13318_v47 }
 0x15b   : > { %13341 = vst [vmem:[#allocation104_spill] sm:$0xff] %v8783_v42  ;;  %13342 = vst [vmem:[#allocation105_spill] sm:$0xff] %v8785_v27  ;;  %1768 = vperm.xlu1 %6875, %v6379_v58   ;;  %v3315_v58 = vld [vmem:[%s12862_s2 + $0xe8] sm:$0xff] }
 0x15c   : > { %v6780_v20 = vpack.c.bf16 %v3315_v58, %v3314_v18  ;;  %v908_v18 = vrot.slane %v8816_v36, 1  ;;  %v939_v58 = vrot.slane %v8819_v2, 1 }
 0x15e   : > { %v8811_v25 = vpop.permute.xlu1 %1278  ;;  %v8813_v41 = vpop.permute.xlu0 %1273  ;;  %6781 = vmatpush1.bf16.msra.mxu0 %v6780_v20  ;;  %v8842_v20 = vsel %vm940_vm0, %v908_v18, %v909_v26  ;;  %v8864_v62 = vsel %vm940_vm0, %v13353_v61, %v939_v58  ;;  %v8890_v26 = vsel %vm940_vm0, %v939_v58, %v908_v18 }
 0x15f   : > { %13345 = vst [vmem:[#allocation108_spill] sm:$0xff] %v8811_v25  ;;  %13346 = vst [vmem:[#allocation109_spill] sm:$0xff] %v8813_v41  ;;  %1993 = vperm.xlu1 %6875, %v6411_v43   ;;  %6782 = vmatprep.subr.bf16.mxu0 %v13318_v47  ;;  %v6783_v43 = vpack.c.bf16 %v3317_v31, %v3316_v28  ;;  %v876_v47 = vmul.f32 %v8336_v6, %v8824_v15  ;;  %v392_v6 = vrot.slane %v8816_v36, 7 }
 0x160   : > { %13348 = vst [vmem:[#allocation111_spill] sm:$0xff] %v8842_v20  ;;  %v8858_v31 = vsel %vm426_vm1, %v393_v39, %v394_v16  ;;  %13354 = vst [vmem:[#allocation116_spill] sm:$0xff] %v8864_v62 }
 0x161   : > { %13352 = vst [vmem:[#allocation115_spill] sm:$0xff] %v8858_v31  ;;  %13359 = vst [vmem:[#allocation120_spill] sm:$0xff] %v8890_v26 }
 0x162   : > { %v8844_v10 = vpop.permute.xlu1 %1683  ;;  %v8846_v50 = vpop.permute.xlu0 %1458  ;;  %6784 = vmatpush1.bf16.msra.mxu0 %v6783_v43  ;;  %v877_v43 = vmul.f32 %v8334_v5, %v8819_v2  ;;  %v13360_v5 = vrot.slane %v8819_v2, 7 }
 0x163   : > { %13349 = vst [vmem:[#allocation112_spill] sm:$0xff] %v8844_v10  ;;  %13350 = vst [vmem:[#allocation113_spill] sm:$0xff] %v8846_v50  ;;  %v1616_v28 = vmul.f32 %v8846_v50, %v8842_v20  ;;  %v1841_v12 = vmul.f32 %v8844_v10, %v8858_v31 }
 0x164   : > { %v8898_v10 = vsel %vm426_vm1, %v13360_v5, %v392_v6 }
 0x165   : > { %v6876_v0 = vpack.i.bf16 %v876_v47, %v1616_v28  ;;  %v1166_v47 = vmul.f32 %v8496_v56, %v8864_v62  ;;  %13361 = vst [vmem:[#allocation121_spill] sm:$0xff] %v8898_v10  ;;  %v1391_v58 = vmul.f32 %v8733_v57, %v8898_v10  ;;  %v6381_v57 = vld [vmem:[%s12861_s1 + $0x698] sm:$0xff] }
 0x166   : > { %v8877_v7 = vpop.permute.xlu1 %1463  ;;  %v8879_v61 = vpop.permute.xlu0 %1908 }
 0x167   : > { %13357 = vst [vmem:[#allocation118_spill] sm:$0xff] %v8877_v7  ;;  %13358 = vst [vmem:[#allocation119_spill] sm:$0xff] %v8879_v61  ;;  %v1617_v28 = vmul.f32 %v8877_v7, %v8875_v54  ;;  %6877 = vrot.lane.b32.xlu0 %v6876_v0, %s7908_s21  ;;  %v6881_v35 = vpack.i.bf16 %v1166_v47, %v1841_v12  ;;  %v2066_v53 = vmul.f32 %v8879_v61, %v8807_v19  ;;  %v6412_v61 = vld [vmem:[%s12861_s1 + $0x790] sm:$0xff] }
 0x168   : > { %v13362_v7 = vrot.slane %v8850_v11, 7  ;;  %v1167_v12 = vmul.f32 %v8494_v1, %v8890_v26  ;;  %v8922_v47 = vsel %vm426_vm1, %v392_v6, %v393_v39 }
 0x169   : > { %v6891_v50 = vpack.i.bf16 %v877_v43, %v1617_v28  ;;  %13366 = vst [vmem:[#allocation125_spill] sm:$0xff] %v8922_v47 }
 0x16a   : > { %v8904_v0 = vsel %vm426_vm1, %v394_v16, %v13362_v7  ;;  %v8906_v56 = vpop.permute.xlu1 %1913  ;;  %v8908_v18 = vpop.permute.xlu0 %1688  ;;  %v6886_v7 = vpack.i.bf16 %v1391_v58, %v2066_v53  ;;  %v6315_v53 = vld [vmem:[%s12861_s1 + $0x388] sm:$0xff] }
 0x16b   : > { %13363 = vst [vmem:[#allocation122_spill] sm:$0xff] %v8904_v0  ;;  %13364 = vst [vmem:[#allocation123_spill] sm:$0xff] %v8906_v56  ;;  %v1842_v5 = vmul.f32 %v8908_v18, %v8904_v0  ;;  %6892 = vrot.lane.b32.xlu1 %v6891_v50, %s7908_s21  ;;  %6882 = vrot.lane.b32.xlu0 %v6881_v35, %s7909_s22  ;;  %v2067_v16 = vmul.f32 %v8906_v56, %v8850_v11  ;;  %v6348_v35 = vld [vmem:[%s12861_s1 + $0x590] sm:$0xff] }
 0x16c   : > { %13365 = vst [vmem:[#allocation124_spill] sm:$0xff] %v8908_v18  ;;  %v1392_v18 = vmul.f32 %v8731_v24, %v8922_v47  ;;  %v13376_v24 = vrot.slane %v8807_v19, 1  ;;  %v13381_v47 = vrot.slane %v8850_v11, 7 }
 0x16d   : > { %v6896_v43 = vpack.i.bf16 %v1167_v12, %v1842_v5  ;;  %v6316_v12 = vld [vmem:[%s12861_s1 + $0x390] sm:$0xff] }
 0x16e   : > { %v8924_v28 = vpop.permute.xlu1 %1693  ;;  %v8926_v1 = vpop.permute.xlu0 %1468  ;;  %v6901_v50 = vpack.i.bf16 %v1392_v18, %v2067_v16  ;;  %v911_v18 = vrot.slane %v8850_v11, 1  ;;  %v6349_v16 = vld [vmem:[%s12861_s1 + $0x598] sm:$0xff] }
 0x16f   : > { %13367 = vst [vmem:[#allocation126_spill] sm:$0xff] %v8924_v28  ;;  %13368 = vst [vmem:[#allocation127_spill] sm:$0xff] %v8926_v1  ;;  %6897 = vrot.lane.b32.xlu1 %v6896_v43, %s7909_s22  ;;  %6887 = vrot.lane.b32.xlu0 %v6886_v7, %s7910_s23  ;;  %v6380_v7 = vld [vmem:[%s12861_s1 + $0x690] sm:$0xff]  ;;  %v8958_v43 = vld [vmem:[%s8792_s28 + $0x20] sm:$0xff] }
 0x170   : > { %13373 = vst [vmem:[#allocation132_spill] sm:$0xff] %v8958_v43  ;;  %v8970_v56 = vsel %vm940_vm0, %v13376_v24, %v911_v18  ;;  %v878_v24 = vmul.f32 %v8346_v14, %v8816_v36  ;;  %v13383_v10 = vrot.slane %v8958_v43, 1  ;;  %v6413_v14 = vld [vmem:[%s12861_s1 + $0x798] sm:$0xff] }
 0x171   : > { %13377 = vst [vmem:[#allocation135_spill] sm:$0xff] %v8970_v56 }
 0x172   : > { %v8935_v6 = vpop.permute.xlu1 %1473  ;;  %v8937_v39 = vpop.permute.xlu0 %1918 }
 0x173   : > { %13369 = vst [vmem:[#allocation128_spill] sm:$0xff] %v8935_v6  ;;  %13370 = vst [vmem:[#allocation129_spill] sm:$0xff] %v8937_v39  ;;  %1318 = vperm.xlu0 %6874, %v6315_v53   ;;  %6902 = vrot.lane.b32.xlu1 %v6901_v50, %s7910_s23 }
 0x176   : > { %v8946_v58 = vpop.permute.xlu1 %1923  ;;  %v8948_v5 = vpop.permute.xlu0 %1698 }
 0x177   : > { %13371 = vst [vmem:[#allocation130_spill] sm:$0xff] %v8946_v58  ;;  %13372 = vst [vmem:[#allocation131_spill] sm:$0xff] %v8948_v5  ;;  %1548 = vperm.xlu0 %6874, %v6348_v35   ;;  %1323 = vperm.xlu1 %6875, %v6316_v12   ;;  %v396_v35 = vrot.slane %v8958_v43, 7 }
 0x179   : > { %v8994_v3 = vsel %vm426_vm1, %v13381_v47, %v396_v35 }
 0x17a   : > { %v8960_v53 = vpop.permute.xlu1 %1703  ;;  %v8962_v50 = vpop.permute.xlu0 %1478  ;;  %13382 = vst [vmem:[#allocation139_spill] sm:$0xff] %v8994_v3 }
 0x17b   : > { %13374 = vst [vmem:[#allocation133_spill] sm:$0xff] %v8960_v53  ;;  %13375 = vst [vmem:[#allocation134_spill] sm:$0xff] %v8962_v50  ;;  %1773 = vperm.xlu0 %6874, %v6380_v7   ;;  %1553 = vperm.xlu1 %6875, %v6349_v16   ;;  %v8979_v7 = vld [vmem:[%s8792_s28 + $0x28] sm:$0xff]  ;;  %v1618_v16 = vmul.f32 %v8926_v1, %v8970_v56  ;;  %v9000_v1 = vsel %vm940_vm0, %v911_v18, %v13383_v10 }
 0x17c   : > { %13378 = vst [vmem:[#allocation136_spill] sm:$0xff] %v8979_v7  ;;  %13384 = vst [vmem:[#allocation140_spill] sm:$0xff] %v9000_v1  ;;  %v1619_v26 = vmul.f32 %v8935_v6, %v9000_v1  ;;  %v1168_v10 = vmul.f32 %v8506_v52, %v8842_v20  ;;  %v13387_v18 = vrot.slane %v8979_v7, 7 }
 0x17e   : > { %v8983_v12 = vpop.permute.xlu1 %1483  ;;  %v8985_v62 = vpop.permute.xlu0 %1928  ;;  %v6921_v6 = vpack.i.bf16 %v879_v45, %v1619_v26  ;;  %v2069_v26 = vmul.f32 %v8946_v58, %v8979_v7 }
 0x17f   : > { %13379 = vst [vmem:[#allocation137_spill] sm:$0xff] %v8983_v12  ;;  %13380 = vst [vmem:[#allocation138_spill] sm:$0xff] %v8985_v62  ;;  %1998 = vperm.xlu0 %6874, %v6412_v61   ;;  %1778 = vperm.xlu1 %6875, %v6381_v57   ;;  %v1843_v57 = vmul.f32 %v8924_v28, %v8994_v3  ;;  %v6906_v61 = vpack.i.bf16 %v878_v24, %v1618_v16 }
 0x180   : > { %v9022_v16 = vsel %vm426_vm1, %v396_v35, %v13387_v18  ;;  %v2068_v28 = vmul.f32 %v8937_v39, %v8958_v43  ;;  %v1394_v18 = vmul.f32 %v8750_v32, %v8904_v0  ;;  %v6383_v39 = vld [vmem:[%s12861_s1 + $0x6a8] sm:$0xff]  ;;  %v13403_v0 = vrot.slane %v8979_v7, 7 }
 0x181   : > { %13388 = vst [vmem:[#allocation143_spill] sm:$0xff] %v9022_v16  ;;  %v6911_v24 = vpack.i.bf16 %v1168_v10, %v1843_v57  ;;  %v1844_v13 = vmul.f32 %v8948_v5, %v9022_v16 }
 0x182   : > { %v9009_v51 = vpop.permute.xlu1 %1933  ;;  %v9011_v47 = vpop.permute.xlu0 %1708 }
 0x183   : > { %13385 = vst [vmem:[#allocation141_spill] sm:$0xff] %v9009_v51  ;;  %13386 = vst [vmem:[#allocation142_spill] sm:$0xff] %v9011_v47  ;;  %6907 = vrot.lane.b32.xlu0 %v6906_v61, %s7908_s21  ;;  %2003 = vperm.xlu1 %6875, %v6413_v14   ;;  %v1169_v14 = vmul.f32 %v8504_v33, %v8875_v54  ;;  %v1393_v61 = vmul.f32 %v8752_v34, %v8858_v31  ;;  %v13399_v33 = vrot.slane %v8958_v43, 1  ;;  %v6414_v34 = vld [vmem:[%s12861_s1 + $0x7a0] sm:$0xff] }
 0x185   : > { %v6916_v45 = vpack.i.bf16 %v1393_v61, %v2068_v28  ;;  %v6926_v35 = vpack.i.bf16 %v1169_v14, %v1844_v13  ;;  %v6317_v28 = vld [vmem:[%s12861_s1 + $0x398] sm:$0xff]  ;;  %v6350_v14 = vld [vmem:[%s12861_s1 + $0x5a0] sm:$0xff] }
 0x186   : > { %v9028_v60 = vpop.permute.xlu1 %1713  ;;  %v9030_v52 = vpop.permute.xlu0 %1488  ;;  %v6318_v61 = vld [vmem:[%s12861_s1 + $0x3a0] sm:$0xff] }
 0x187   : > { %13389 = vst [vmem:[#allocation144_spill] sm:$0xff] %v9028_v60  ;;  %13390 = vst [vmem:[#allocation145_spill] sm:$0xff] %v9030_v52  ;;  %6912 = vrot.lane.b32.xlu0 %v6911_v24, %s7909_s22  ;;  %6922 = vrot.lane.b32.xlu1 %v6921_v6, %s7908_s21  ;;  %v6931_v6 = vpack.i.bf16 %v1394_v18, %v2069_v26  ;;  %v913_v26 = vrot.slane %v8979_v7, 1  ;;  %v6382_v18 = vld [vmem:[%s12861_s1 + $0x6a0] sm:$0xff] }
 0x189   : > { %v9086_v5 = vsel %vm940_vm0, %v13399_v33, %v913_v26  ;;  %v880_v33 = vmul.f32 %v8356_v22, %v8807_v19  ;;  %v6415_v22 = vld [vmem:[%s12861_s1 + $0x7a8] sm:$0xff] }
 0x18a   : > { %v9040_v57 = vpop.permute.xlu1 %1493  ;;  %v9042_v10 = vpop.permute.xlu0 %1938  ;;  %13400 = vst [vmem:[#allocation154_spill] sm:$0xff] %v9086_v5 }
 0x18b   : > { %13391 = vst [vmem:[#allocation146_spill] sm:$0xff] %v9040_v57  ;;  %13392 = vst [vmem:[#allocation147_spill] sm:$0xff] %v9042_v10  ;;  %6917 = vrot.lane.b32.xlu0 %v6916_v45, %s7910_s23  ;;  %6927 = vrot.lane.b32.xlu1 %v6926_v35, %s7909_s22 }
 0x18e   : > { %v9051_v24 = vpop.permute.xlu1 %1943  ;;  %v9053_v13 = vpop.permute.xlu0 %1718 }
 0x18f   : > { %13393 = vst [vmem:[#allocation148_spill] sm:$0xff] %v9051_v24  ;;  %13394 = vst [vmem:[#allocation149_spill] sm:$0xff] %v9053_v13  ;;  %1328 = vperm.xlu0 %6874, %v6317_v28   ;;  %6932 = vrot.lane.b32.xlu1 %v6931_v6, %s7910_s23  ;;  %v6351_v28 = vld [vmem:[%s12861_s1 + $0x5a8] sm:$0xff]  ;;  %v9074_v6 = vld [vmem:[%s8792_s28 + $0x30] sm:$0xff] }
 0x190   : > { %v13405_v46 = vrot.slane %v9074_v6, 1 }
 0x192   : > { %v9062_v45 = vpop.permute.xlu1 %1723  ;;  %v9064_v35 = vpop.permute.xlu0 %1498 }
 0x193   : > { %13395 = vst [vmem:[#allocation150_spill] sm:$0xff] %v9062_v45  ;;  %13396 = vst [vmem:[#allocation151_spill] sm:$0xff] %v9064_v35  ;;  %1558 = vperm.xlu0 %6874, %v6350_v14   ;;  %1333 = vperm.xlu1 %6875, %v6318_v61   ;;  %v398_v14 = vrot.slane %v9074_v6, 7 }
 0x195   : > { %v9110_v31 = vsel %vm426_vm1, %v13403_v0, %v398_v14 }
 0x196   : > { %v9076_v32 = vpop.permute.xlu1 %1503  ;;  %v9078_v58 = vpop.permute.xlu0 %1948  ;;  %13404 = vst [vmem:[#allocation157_spill] sm:$0xff] %v9110_v31 }
 0x197   : > { %13397 = vst [vmem:[#allocation152_spill] sm:$0xff] %v9076_v32  ;;  %13398 = vst [vmem:[#allocation153_spill] sm:$0xff] %v9078_v58  ;;  %1783 = vperm.xlu0 %6874, %v6382_v18   ;;  %1563 = vperm.xlu1 %6875, %v6351_v28   ;;  %v9095_v18 = vld [vmem:[%s8792_s28 + $0x38] sm:$0xff]  ;;  %v1620_v28 = vmul.f32 %v8962_v50, %v9086_v5  ;;  %v9116_v50 = vsel %vm940_vm0, %v913_v26, %v13405_v46 }
 0x198   : > { %13406 = vst [vmem:[#allocation158_spill] sm:$0xff] %v9116_v50  ;;  %v1621_v20 = vmul.f32 %v8983_v12, %v9116_v50  ;;  %v1170_v46 = vmul.f32 %v8516_v48, %v8970_v56  ;;  %v13409_v26 = vrot.slane %v9095_v18, 7 }
 0x19a   : > { %v9099_v61 = vpop.permute.xlu1 %1953  ;;  %v9101_v54 = vpop.permute.xlu0 %1728  ;;  %v6951_v12 = vpack.i.bf16 %v881_v17, %v1621_v20  ;;  %v2071_v20 = vmul.f32 %v9009_v51, %v9095_v18 }
 0x19b   : > { %13401 = vst [vmem:[#allocation155_spill] sm:$0xff] %v9099_v61  ;;  %13402 = vst [vmem:[#allocation156_spill] sm:$0xff] %v9101_v54  ;;  %2008 = vperm.xlu0 %6874, %v6414_v34   ;;  %1788 = vperm.xlu1 %6875, %v6383_v39   ;;  %v1845_v34 = vmul.f32 %v8960_v53, %v9110_v31  ;;  %v6936_v39 = vpack.i.bf16 %v880_v33, %v1620_v28 }
 0x19c   : > { %v9138_v28 = vsel %vm426_vm1, %v398_v14, %v13409_v26  ;;  %v2070_v53 = vmul.f32 %v8985_v62, %v9074_v6  ;;  %v1396_v26 = vmul.f32 %v8768_v49, %v9022_v16  ;;  %v6385_v62 = vld [vmem:[%s12861_s1 + $0x6b8] sm:$0xff]  ;;  %v13425_v16 = vrot.slane %v9095_v18, 7 }
 0x19d   : > { %13410 = vst [vmem:[#allocation161_spill] sm:$0xff] %v9138_v28  ;;  %v6941_v33 = vpack.i.bf16 %v1170_v46, %v1845_v34  ;;  %v1846_v21 = vmul.f32 %v9011_v47, %v9138_v28 }
 0x19e   : > { %v9125_v19 = vpop.permute.xlu1 %1733  ;;  %v9127_v0 = vpop.permute.xlu0 %1508 }
 0x19f   : > { %13407 = vst [vmem:[#allocation159_spill] sm:$0xff] %v9125_v19  ;;  %13408 = vst [vmem:[#allocation160_spill] sm:$0xff] %v9127_v0  ;;  %6937 = vrot.lane.b32.xlu0 %v6936_v39, %s7908_s21  ;;  %2013 = vperm.xlu1 %6875, %v6415_v22   ;;  %v1171_v22 = vmul.f32 %v8514_v63, %v9000_v1  ;;  %v1395_v39 = vmul.f32 %v8770_v23, %v8994_v3  ;;  %v13421_v63 = vrot.slane %v9074_v6, 1  ;;  %v6416_v23 = vld [vmem:[%s12861_s1 + $0x7b0] sm:$0xff] }
 0x1a1   : > { %v6946_v17 = vpack.i.bf16 %v1395_v39, %v2070_v53  ;;  %v6956_v14 = vpack.i.bf16 %v1171_v22, %v1846_v21  ;;  %v6319_v53 = vld [vmem:[%s12861_s1 + $0x3a8] sm:$0xff]  ;;  %v6352_v22 = vld [vmem:[%s12861_s1 + $0x5b0] sm:$0xff] }
 0x1a2   : > { %v9144_v11 = vpop.permute.xlu1 %1283  ;;  %v9146_v48 = vpop.permute.xlu0 %1958  ;;  %v6320_v39 = vld [vmem:[%s12861_s1 + $0x3b0] sm:$0xff] }
 0x1a3   : > { %13411 = vst [vmem:[#allocation162_spill] sm:$0xff] %v9144_v11  ;;  %13412 = vst [vmem:[#allocation163_spill] sm:$0xff] %v9146_v48  ;;  %6942 = vrot.lane.b32.xlu0 %v6941_v33, %s7909_s22  ;;  %6952 = vrot.lane.b32.xlu1 %v6951_v12, %s7908_s21  ;;  %v6961_v12 = vpack.i.bf16 %v1396_v26, %v2071_v20  ;;  %v915_v20 = vrot.slane %v9095_v18, 1  ;;  %v6384_v26 = vld [vmem:[%s12861_s1 + $0x6b0] sm:$0xff] }
 0x1a5   : > { %v9202_v47 = vsel %vm940_vm0, %v13421_v63, %v915_v20  ;;  %v882_v63 = vmul.f32 %v8366_v30, %v8958_v43  ;;  %v6417_v30 = vld [vmem:[%s12861_s1 + $0x7b8] sm:$0xff] }
 0x1a6   : > { %v9156_v34 = vpop.permute.xlu1 %1738  ;;  %v9158_v46 = vpop.permute.xlu0 %1513  ;;  %13422 = vst [vmem:[#allocation172_spill] sm:$0xff] %v9202_v47 }
 0x1a7   : > { %13413 = vst [vmem:[#allocation164_spill] sm:$0xff] %v9156_v34  ;;  %13414 = vst [vmem:[#allocation165_spill] sm:$0xff] %v9158_v46  ;;  %6947 = vrot.lane.b32.xlu0 %v6946_v17, %s7910_s23  ;;  %6957 = vrot.lane.b32.xlu1 %v6956_v14, %s7909_s22 }
 0x1aa   : > { %v9167_v33 = vpop.permute.xlu1 %1288  ;;  %v9169_v21 = vpop.permute.xlu0 %1963 }
 0x1ab   : > { %13415 = vst [vmem:[#allocation166_spill] sm:$0xff] %v9167_v33  ;;  %13416 = vst [vmem:[#allocation167_spill] sm:$0xff] %v9169_v21  ;;  %1338 = vperm.xlu0 %6874, %v6319_v53   ;;  %6962 = vrot.lane.b32.xlu1 %v6961_v12, %s7910_s23  ;;  %v6353_v53 = vld [vmem:[%s12861_s1 + $0x5b8] sm:$0xff]  ;;  %v9190_v12 = vld [vmem:[%s8792_s28 + $0x40] sm:$0xff] }
 0x1ae   : > { %v9178_v17 = vpop.permute.xlu1 %1743  ;;  %v9180_v14 = vpop.permute.xlu0 %1518 }
 0x1af   : > { %13417 = vst [vmem:[#allocation168_spill] sm:$0xff] %v9178_v17  ;;  %13418 = vst [vmem:[#allocation169_spill] sm:$0xff] %v9180_v14  ;;  %1568 = vperm.xlu0 %6874, %v6352_v22   ;;  %1343 = vperm.xlu1 %6875, %v6320_v39   ;;  %v400_v22 = vrot.slane %v9190_v12, 7 }
 0x1b1   : > { %v9226_v3 = vsel %vm426_vm1, %v13425_v16, %v400_v22 }
 0x1b2   : > { %v9192_v49 = vpop.permute.xlu1 %1293  ;;  %v9194_v51 = vpop.permute.xlu0 %1968  ;;  %13426 = vst [vmem:[#allocation175_spill] sm:$0xff] %v9226_v3 }
 0x1b3   : > { %13419 = vst [vmem:[#allocation170_spill] sm:$0xff] %v9192_v49  ;;  %13420 = vst [vmem:[#allocation171_spill] sm:$0xff] %v9194_v51  ;;  %1793 = vperm.xlu0 %6874, %v6384_v26   ;;  %1573 = vperm.xlu1 %6875, %v6353_v53   ;;  %v9211_v26 = vld [vmem:[%s8792_s28 + $0x48] sm:$0xff]  ;;  %v1622_v53 = vmul.f32 %v9030_v52, %v9202_v47  ;;  %v13427_v51 = vrot.slane %v9190_v12, 1 }
 0x1b5   : > { %v9232_v52 = vsel %vm940_vm0, %v915_v20, %v13427_v51  ;;  %v1172_v51 = vmul.f32 %v8526_v44, %v9086_v5  ;;  %v13431_v20 = vrot.slane %v9211_v26, 7  ;;  %v13446_v5 = vrot.slane %v9211_v26, 7 }
 0x1b6   : > { %v9215_v39 = vpop.permute.xlu1 %1748  ;;  %v9217_v1 = vpop.permute.xlu0 %1523  ;;  %13428 = vst [vmem:[#allocation176_spill] sm:$0xff] %v9232_v52  ;;  %v1623_v56 = vmul.f32 %v9040_v57, %v9232_v52 }
 0x1b7   : > { %13423 = vst [vmem:[#allocation173_spill] sm:$0xff] %v9215_v39  ;;  %13424 = vst [vmem:[#allocation174_spill] sm:$0xff] %v9217_v1  ;;  %2018 = vperm.xlu0 %6874, %v6416_v23   ;;  %1798 = vperm.xlu1 %6875, %v6385_v62   ;;  %v1847_v62 = vmul.f32 %v9028_v60, %v9226_v3  ;;  %v6966_v23 = vpack.i.bf16 %v882_v63, %v1622_v53 }
 0x1b8   : > { %v883_v39 = vmul.f32 %v8364_v29, %v8979_v7  ;;  %v9254_v53 = vsel %vm426_vm1, %v400_v22, %v13431_v20  ;;  %v2072_v60 = vmul.f32 %v9042_v10, %v9190_v12  ;;  %v2073_v22 = vmul.f32 %v9051_v24, %v9211_v26 }
 0x1b9   : > { %13432 = vst [vmem:[#allocation179_spill] sm:$0xff] %v9254_v53  ;;  %v6971_v63 = vpack.i.bf16 %v1172_v51, %v1847_v62  ;;  %v1848_v29 = vmul.f32 %v9053_v13, %v9254_v53  ;;  %v1398_v20 = vmul.f32 %v8783_v42, %v9138_v28 }
 0x1ba   : > { %v9241_v43 = vpop.permute.xlu1 %1298  ;;  %v9243_v16 = vpop.permute.xlu0 %1973  ;;  %v6981_v57 = vpack.i.bf16 %v883_v39, %v1623_v56 }
 0x1bb   : > { %13429 = vst [vmem:[#allocation177_spill] sm:$0xff] %v9241_v43  ;;  %13430 = vst [vmem:[#allocation178_spill] sm:$0xff] %v9243_v16  ;;  %6967 = vrot.lane.b32.xlu0 %v6966_v23, %s7908_s21  ;;  %2023 = vperm.xlu1 %6875, %v6417_v30   ;;  %v1173_v30 = vmul.f32 %v8524_v59, %v9116_v50  ;;  %v1397_v23 = vmul.f32 %v8785_v27, %v9110_v31  ;;  %v13443_v59 = vrot.slane %v9190_v12, 1  ;;  %v6418_v27 = vld [vmem:[%s12861_s1 + $0x7c0] sm:$0xff] }
 0x1bc   : > { %v884_v50 = vmul.f32 %v8376_v38, %v9074_v6  ;;  %v6419_v6 = vld [vmem:[%s12861_s1 + $0x7c8] sm:$0xff] }
 0x1bd   : > { %v6976_v56 = vpack.i.bf16 %v1397_v23, %v2072_v60  ;;  %v6986_v39 = vpack.i.bf16 %v1173_v30, %v1848_v29  ;;  %v6321_v60 = vld [vmem:[%s12861_s1 + $0x3b8] sm:$0xff]  ;;  %v6354_v30 = vld [vmem:[%s12861_s1 + $0x5c0] sm:$0xff] }
 0x1be   : > { %v9260_v7 = vpop.permute.xlu1 %1753  ;;  %v9262_v44 = vpop.permute.xlu0 %1528  ;;  %v6322_v23 = vld [vmem:[%s12861_s1 + $0x3c0] sm:$0xff] }
 0x1bf   : > { %13433 = vst [vmem:[#allocation180_spill] sm:$0xff] %v9260_v7  ;;  %13434 = vst [vmem:[#allocation181_spill] sm:$0xff] %v9262_v44  ;;  %6972 = vrot.lane.b32.xlu0 %v6971_v63, %s7909_s22  ;;  %6982 = vrot.lane.b32.xlu1 %v6981_v57, %s7908_s21  ;;  %v6991_v57 = vpack.i.bf16 %v1398_v20, %v2073_v22  ;;  %v917_v22 = vrot.slane %v9211_v26, 1  ;;  %v6386_v20 = vld [vmem:[%s12861_s1 + $0x6c0] sm:$0xff] }
 0x1c1   : > { %v9318_v13 = vsel %vm940_vm0, %v13443_v59, %v917_v22 }
 0x1c2   : > { %v9272_v62 = vpop.permute.xlu1 %1303  ;;  %v9274_v51 = vpop.permute.xlu0 %1978  ;;  %13444 = vst [vmem:[#allocation190_spill] sm:$0xff] %v9318_v13  ;;  %v1624_v10 = vmul.f32 %v9064_v35, %v9318_v13 }
 0x1c3   : > { %13435 = vst [vmem:[#allocation182_spill] sm:$0xff] %v9272_v62  ;;  %13436 = vst [vmem:[#allocation183_spill] sm:$0xff] %v9274_v51  ;;  %6977 = vrot.lane.b32.xlu0 %v6976_v56, %s7910_s23  ;;  %6987 = vrot.lane.b32.xlu1 %v6986_v39, %s7909_s22 }
 0x1c4   : > { %v6996_v59 = vpack.i.bf16 %v884_v50, %v1624_v10  ;;  %v422_v50 = vrot.slane %v8824_v15, 7  ;;  %v13490_v15 = vld [vmem:[#allocation79_spill] sm:$0xff] }
 0x1c6   : > { %v9283_v63 = vpop.permute.xlu1 %1758  ;;  %v9285_v29 = vpop.permute.xlu0 %1533 }
 0x1c7   : > { %13437 = vst [vmem:[#allocation184_spill] sm:$0xff] %v9283_v63  ;;  %13438 = vst [vmem:[#allocation185_spill] sm:$0xff] %v9285_v29  ;;  %1348 = vperm.xlu0 %6874, %v6321_v60   ;;  %6992 = vrot.lane.b32.xlu1 %v6991_v57, %s7910_s23  ;;  %v6355_v60 = vld [vmem:[%s12861_s1 + $0x5c8] sm:$0xff]  ;;  %v9306_v57 = vld [vmem:[%s8792_s28 + $0x50] sm:$0xff] }
 0x1c8   : > { %v13448_v31 = vrot.slane %v9306_v57, 1 }
 0x1ca   : > { %v9294_v56 = vpop.permute.xlu1 %1308  ;;  %v9296_v39 = vpop.permute.xlu0 %1983  ;;  %v9346_v35 = vsel %vm940_vm0, %v917_v22, %v13448_v31  ;;  %v885_v31 = vmul.f32 %v8374_v37, %v9095_v18  ;;  %v1174_v22 = vmul.f32 %v8536_v40, %v9202_v47  ;;  %v2074_v18 = vmul.f32 %v9078_v58, %v9306_v57 }
 0x1cb   : > { %13439 = vst [vmem:[#allocation186_spill] sm:$0xff] %v9294_v56  ;;  %13440 = vst [vmem:[#allocation187_spill] sm:$0xff] %v9296_v39  ;;  %1578 = vperm.xlu0 %6874, %v6354_v30   ;;  %1353 = vperm.xlu1 %6875, %v6322_v23   ;;  %v402_v30 = vrot.slane %v9306_v57, 7  ;;  %v1399_v40 = vmul.f32 %v8813_v41, %v9226_v3 }
 0x1cc   : > { %13449 = vst [vmem:[#allocation193_spill] sm:$0xff] %v9346_v35 }
 0x1cd   : > { %v9340_v28 = vsel %vm426_vm1, %v13446_v5, %v402_v30  ;;  %v1625_v5 = vmul.f32 %v9076_v32, %v9346_v35 }
 0x1ce   : > { %v9308_v42 = vpop.permute.xlu1 %1763  ;;  %v9310_v24 = vpop.permute.xlu0 %1538  ;;  %13447 = vst [vmem:[#allocation192_spill] sm:$0xff] %v9340_v28 }
 0x1cf   : > { %13441 = vst [vmem:[#allocation188_spill] sm:$0xff] %v9308_v42  ;;  %13442 = vst [vmem:[#allocation189_spill] sm:$0xff] %v9310_v24  ;;  %1803 = vperm.xlu0 %6874, %v6386_v20   ;;  %1583 = vperm.xlu1 %6875, %v6355_v60   ;;  %v6387_v20 = vld [vmem:[%s12861_s1 + $0x6c8] sm:$0xff]  ;;  %v9327_v60 = vld [vmem:[%s8792_s28 + $0x58] sm:$0xff]  ;;  %v1175_v24 = vmul.f32 %v8534_v55, %v9232_v52 }
 0x1d0   : > { %v13453_v10 = vrot.slane %v9327_v60, 7 }
 0x1d2   : > { %v9331_v23 = vpop.permute.xlu1 %1313  ;;  %v9358_v38 = vpop.permute.xlu0 %1988  ;;  %v9373_v32 = vsel %vm426_vm1, %v402_v30, %v13453_v10 }
 0x1d3   : > { %13445 = vst [vmem:[#allocation191_spill] sm:$0xff] %v9331_v23  ;;  %2028 = vperm.xlu0 %6874, %v6418_v27   ;;  %1808 = vperm.xlu1 %6875, %v6387_v20   ;;  %v9352_v27 = vld [vmem:[%s8792_s28 + $0xe8] sm:$0xff]  ;;  %v1849_v20 = vmul.f32 %v9062_v45, %v9340_v28  ;;  %13451 = vst [vmem:[#allocation195_spill] sm:$0xff] %v9358_v38  ;;  %v7011_v38 = vpack.i.bf16 %v885_v31, %v1625_v5 }
 0x1d4   : > { %13450 = vst [vmem:[#allocation194_spill] sm:$0xff] %v9352_v27  ;;  %13454 = vst [vmem:[#allocation197_spill] sm:$0xff] %v9373_v32  ;;  %v1850_v37 = vmul.f32 %v9101_v54, %v9373_v32  ;;  %v13456_v30 = vrot.slane %v9352_v27, 7  ;;  %v7006_v5 = vpack.i.bf16 %v1399_v40, %v2074_v18  ;;  %v2075_v31 = vmul.f32 %v9099_v61, %v9327_v60  ;;  %v13482_v61 = vld [vmem:[#allocation2_spill] sm:$0xff] }
 0x1d5   : > { %v7001_v45 = vpack.i.bf16 %v1174_v22, %v1849_v20 }
 0x1d6   : > { %v9360_v23 = vpop.permute.xlu1 %1543  ;;  %v9391_v20 = vsel %vm426_vm1, %v13456_v30, %v422_v50  ;;  %v7016_v22 = vpack.i.bf16 %v1175_v24, %v1850_v37  ;;  %v6323_v37 = vld [vmem:[%s12861_s1 + $0x3c8] sm:$0xff] }
 0x1d7   : > { %13452 = vst [vmem:[#allocation196_spill] sm:$0xff] %v9360_v23  ;;  %6997 = vrot.lane.b32.xlu0 %v6996_v59, %s7908_s21  ;;  %2033 = vperm.xlu1 %6875, %v6419_v6   ;;  %13457 = vst [vmem:[#allocation199_spill] sm:$0xff] %v9391_v20  ;;  %v651_v40 = vmul.f32 %v8176_v4, %v9391_v20 }
 0x1d9   : > { %v6878_v59 = vpop.permute.xlu0 %6877 }
 0x1da   : > { %v9379_v6 = vpop.permute.xlu1 %1768  ;;  %v6880_v55 = vunpack.i.h.bf16 %v6878_v59  ;;  %v6879_v54 = vunpack.i.l.bf16 %v6878_v59 }
 0x1db   : > { %13455 = vst [vmem:[#allocation198_spill] sm:$0xff] %v9379_v6  ;;  %7002 = vrot.lane.b32.xlu0 %v7001_v45, %s7909_s22  ;;  %7012 = vrot.lane.b32.xlu1 %v7011_v38, %s7908_s21  ;;  %v1400_v45 = vmul.f32 %v8811_v25, %v9254_v53 }
 0x1dd   : > { %v6883_v10 = vpop.permute.xlu0 %6882  ;;  %v7021_v24 = vpack.i.bf16 %v1400_v45, %v2075_v31 }
 0x1de   : > { %v9395_v58 = vpop.permute.xlu1 %1993  ;;  %v6885_v38 = vunpack.i.h.bf16 %v6883_v10  ;;  %v6884_v41 = vunpack.i.l.bf16 %v6883_v10 }
 0x1df   : > { %13458 = vst [vmem:[#allocation200_spill] sm:$0xff] %v9395_v58  ;;  %7007 = vrot.lane.b32.xlu0 %v7006_v5, %s7910_s23  ;;  %7017 = vrot.lane.b32.xlu1 %v7016_v22, %s7909_s22  ;;  %v3190_v5 = vsel %vm3091_vm2, %v8816_v36, %v6879_v54  ;;  %v3092_v22 = vsel %vm3091_vm2, %v651_v40, %v6880_v55  ;;  %v6324_v54 = vld [vmem:[%s12861_s1 + $0x3d0] sm:$0xff]  ;;  %v13459_v55 = vrot.slane %v8819_v2, 7  ;;  %v919_v40 = vrot.slane %v9327_v60, 1 }
 0x1e0   : > { %v3222_v4 = vsel %vm3124_vm3, %v3190_v5, %v6884_v41  ;;  %v3125_v25 = vsel %vm3124_vm3, %v3092_v22, %v6885_v38  ;;  %v6388_v2 = vld [vmem:[%s12861_s1 + $0x6d0] sm:$0xff] }
 0x1e1   : > { %v6888_v18 = vpop.permute.xlu0 %6887  ;;  %v9424_v36 = vsel %vm426_vm1, %v422_v50, %v13459_v55  ;;  %v6357_v50 = vld [vmem:[%s12861_s1 + $0x5d8] sm:$0xff]  ;;  %v13462_v55 = vrot.slane %v9306_v57, 1 }
 0x1e2   : > { %v6890_v59 = vunpack.i.h.bf16 %v6888_v18  ;;  %v6889_v30 = vunpack.i.l.bf16 %v6888_v18  ;;  %v6893_v10 = vpop.permute.xlu1 %6892  ;;  %v6356_v18 = vld [vmem:[%s12861_s1 + $0x5d0] sm:$0xff]  ;;  %13460 = vst [vmem:[#allocation201_spill] sm:$0xff] %v9424_v36 }
 0x1e3   : > { %1358 = vperm.xlu0 %6874, %v6323_v37   ;;  %7022 = vrot.lane.b32.xlu1 %v7021_v24, %s7910_s23  ;;  %v6894_v38 = vunpack.i.l.bf16 %v6893_v10 }
 0x1e4   : > { %v3254_v31 = vsel %vm3157_vm4, %v3222_v4, %v6889_v30  ;;  %v3158_v45 = vsel %vm3157_vm4, %v3125_v25, %v6890_v59  ;;  %v9427_v4 = vld [vmem:[%s8792_s28 + $0x60] sm:$0xff]  ;;  %v6895_v25 = vunpack.i.h.bf16 %v6893_v10  ;;  %v652_v59 = vmul.f32 %v8186_v8, %v9424_v36 }
 0x1e5   : > { %3489 = vmatprep.mubr.f32.mxu0 %v3254_v31  ;;  %v404_v30 = vrot.slane %v9427_v4, 7  ;;  %v13461_v31 = vld [vmem:[#allocation106_spill] sm:$0xff] }
 0x1e6   : > { %v6898_v41 = vpop.permute.xlu1 %6897  ;;  %3490 = vmatmul.mubr.f32.vlgmr.msra.gmra.mrb[0].mxu0 %v3158_v45  ;;  %v3191_v45 = vsel %vm3091_vm2, %v13461_v31, %v6894_v38  ;;  %v6389_v38 = vld [vmem:[%s12861_s1 + $0x6d8] sm:$0xff] }
 0x1e7   : > { %1588 = vperm.xlu0 %6874, %v6356_v18   ;;  %1363 = vperm.xlu1 %6875, %v6324_v54   ;;  %v6900_v37 = vunpack.i.h.bf16 %v6898_v41  ;;  %v6899_v24 = vunpack.i.l.bf16 %v6898_v41  ;;  %v3093_v18 = vsel %vm3091_vm2, %v652_v59, %v6895_v25  ;;  %v9447_v41 = vsel %vm940_vm0, %v13462_v55, %v919_v40  ;;  %v13465_v55 = vld [vmem:[#allocation45_spill] sm:$0xff] }
 0x1e8   : > { %13463 = vst [vmem:[#allocation106_spill] sm:$0xff] %v9447_v41  ;;  %v1626_v59 = vmul.f32 %v9127_v0, %v9447_v41  ;;  %v886_v54 = vmul.f32 %v13465_v55, %v9190_v12  ;;  %v13481_v0 = vld [vmem:[#allocation121_spill] sm:$0xff]  ;;  %v1178_v20 = vmul.f32 %v13490_v15, %v9447_v41 }
 0x1e9   : > { %v3223_v8 = vsel %vm3124_vm3, %v3191_v45, %v6899_v24  ;;  %v3126_v25 = vsel %vm3124_vm3, %v3093_v18, %v6900_v37  ;;  %v13464_v24 = vrot.slane %v9327_v60, 7  ;;  %v13466_v18 = vrot.slane %v9427_v4, 1 }
 0x1ea   : > { %v6903_v10 = vpop.permute.xlu1 %6902 }
 0x1eb   : > { %v6905_v5 = vunpack.i.h.bf16 %v6903_v10  ;;  %v6904_v22 = vunpack.i.l.bf16 %v6903_v10  ;;  %1813 = vperm.xlu0 %6874, %v6388_v2   ;;  %1593 = vperm.xlu1 %6875, %v6357_v50   ;;  %v6420_v2 = vld [vmem:[%s12861_s1 + $0x7d0] sm:$0xff]  ;;  %v9458_v50 = vld [vmem:[%s8792_s28 + $0x68] sm:$0xff]  ;;  %v9468_v45 = vsel %vm426_vm1, %v13464_v24, %v404_v30 }
 0x1ec   : > { %v405_v37 = vrot.slane %v9458_v50, 7 }
 0x1ed   : > { %v3255_v10 = vsel %vm3157_vm4, %v3223_v8, %v6904_v22  ;;  %v3159_v31 = vsel %vm3157_vm4, %v3126_v25, %v6905_v5  ;;  %v9477_v8 = vsel %vm940_vm0, %v919_v40, %v13466_v18  ;;  %v1851_v5 = vmul.f32 %v9125_v19, %v9468_v45  ;;  %v6421_v22 = vld [vmem:[%s12861_s1 + $0x7d8] sm:$0xff]  ;;  %v13470_v40 = vld [vmem:[#allocation44_spill] sm:$0xff] }
 0x1ee   : > { %3494 = vmatprep.mubr.f32.mxu0 %v3255_v10  ;;  %13467 = vst [vmem:[#allocation202_spill] sm:$0xff] %v9477_v8  ;;  %v7026_v25 = vpack.i.bf16 %v886_v54, %v1626_v59  ;;  %v1627_v12 = vmul.f32 %v9158_v46, %v9477_v8  ;;  %v887_v24 = vmul.f32 %v13470_v40, %v9211_v26 }
 0x1ef   : > { %2038 = vperm.xlu0 %6874, %v6420_v2   ;;  %1818 = vperm.xlu1 %6875, %v6389_v38   ;;  %v13468_v2 = vld [vmem:[#allocation77_spill] sm:$0xff]  ;;  %v1401_v54 = vmul.f32 %v9144_v11, %v9340_v28  ;;  %v2076_v59 = vmul.f32 %v9146_v48, %v9427_v4 }
 0x1f0   : > { %3495 = vmatmul.mubr.f32.gmra.mrb[2].mxu0 %v3159_v31  ;;  %v1176_v38 = vmul.f32 %v13468_v2, %v9318_v13  ;;  %v9495_v31 = vsel %vm426_vm1, %v404_v30, %v405_v37  ;;  %v7041_v2 = vpack.i.bf16 %v887_v24, %v1627_v12  ;;  %v2077_v12 = vmul.f32 %v9169_v21, %v9458_v50  ;;  %v6359_v21 = vld [vmem:[%s12861_s1 + $0x5e8] sm:$0xff] }
 0x1f1   : > { %13471 = vst [vmem:[#allocation204_spill] sm:$0xff] %v9495_v31  ;;  %v1852_v46 = vmul.f32 %v9156_v34, %v9495_v31  ;;  %v7036_v30 = vpack.i.bf16 %v1401_v54, %v2076_v59  ;;  %v9530_v59 = vld [vmem:[%s8792_s28 + $0x70] sm:$0xff]  ;;  %v13483_v13 = vrot.slane %v9427_v4, 1 }
 0x1f2   : > { %v9488_v10 = vpop.permute.xlu0 %1318  ;;  %v7031_v18 = vpack.i.bf16 %v1176_v38, %v1851_v5  ;;  %v1402_v38 = vmul.f32 %v9167_v33, %v9373_v32  ;;  %v13488_v36 = vrot.slane %v9530_v59, 1 }
 0x1f3   : > { %13469 = vst [vmem:[#allocation203_spill] sm:$0xff] %v9488_v10  ;;  %7027 = vrot.lane.b32.xlu0 %v7026_v25, %s7908_s21  ;;  %2043 = vperm.xlu1 %6875, %v6421_v22   ;;  %v13474_v22 = vld [vmem:[#allocation76_spill] sm:$0xff] }
 0x1f4   : > { %v1177_v25 = vmul.f32 %v13474_v22, %v9346_v35  ;;  %v653_v35 = vmul.f32 %v13482_v61, %v13481_v0  ;;  %v13487_v61 = vld [vmem:[#allocation47_spill] sm:$0xff] }
 0x1f5   : > { %v888_v0 = vmul.f32 %v13487_v61, %v9306_v57 }
 0x1f6   : > { %v9503_v19 = vpop.permute.xlu0 %1548  ;;  %v9505_v26 = vpop.permute.xlu1 %1323  ;;  %v7046_v5 = vpack.i.bf16 %v1177_v25, %v1852_v46  ;;  %v7051_v46 = vpack.i.bf16 %v1402_v38, %v2077_v12  ;;  %v6358_v25 = vld [vmem:[%s12861_s1 + $0x5e0] sm:$0xff]  ;;  %v406_v38 = vrot.slane %v9530_v59, 7  ;;  %v9542_v12 = vld [vmem:[%s8792_s28 + $0x78] sm:$0xff] }
 0x1f7   : > { %13472 = vst [vmem:[#allocation205_spill] sm:$0xff] %v9503_v19  ;;  %13473 = vst [vmem:[#allocation206_spill] sm:$0xff] %v9505_v26  ;;  %7032 = vrot.lane.b32.xlu0 %v7031_v18, %s7909_s22  ;;  %7042 = vrot.lane.b32.xlu1 %v7041_v2, %s7908_s21  ;;  %v6325_v2 = vld [vmem:[%s12861_s1 + $0x3d8] sm:$0xff] }
 0x1fa   : > { %v9515_v24 = vpop.permute.xlu0 %1773  ;;  %v9517_v40 = vpop.permute.xlu1 %1553 }
 0x1fb   : > { %13475 = vst [vmem:[#allocation207_spill] sm:$0xff] %v9515_v24  ;;  %13476 = vst [vmem:[#allocation208_spill] sm:$0xff] %v9517_v40  ;;  %7037 = vrot.lane.b32.xlu0 %v7036_v30, %s7910_s23  ;;  %7047 = vrot.lane.b32.xlu1 %v7046_v5, %s7909_s22  ;;  %v6326_v30 = vld [vmem:[%s12861_s1 + $0x3e0] sm:$0xff] }
 0x1fe   : > { %v9524_v18 = vpop.permute.xlu0 %1998  ;;  %v9526_v54 = vpop.permute.xlu1 %1778 }
 0x1ff   : > { %13477 = vst [vmem:[#allocation209_spill] sm:$0xff] %v9524_v18  ;;  %13478 = vst [vmem:[#allocation210_spill] sm:$0xff] %v9526_v54  ;;  %1368 = vperm.xlu0 %6874, %v6325_v2   ;;  %7052 = vrot.lane.b32.xlu1 %v7051_v46, %s7910_s23  ;;  %v921_v2 = vrot.slane %v9458_v50, 1  ;;  %v6390_v46 = vld [vmem:[%s12861_s1 + $0x6e0] sm:$0xff] }
 0x201   : > { %v9563_v22 = vsel %vm940_vm0, %v13483_v13, %v921_v2  ;;  %v9579_v13 = vsel %vm940_vm0, %v921_v2, %v13488_v36 }
 0x202   : > { %v6908_v5 = vpop.permute.xlu0 %6907  ;;  %v9538_v33 = vpop.permute.xlu1 %2003  ;;  %13484 = vst [vmem:[#allocation213_spill] sm:$0xff] %v9563_v22  ;;  %13489 = vst [vmem:[#allocation214_spill] sm:$0xff] %v9579_v13 }
 0x203   : > { %13479 = vst [vmem:[#allocation211_spill] sm:$0xff] %v9538_v33  ;;  %1598 = vperm.xlu0 %6874, %v6358_v25   ;;  %1373 = vperm.xlu1 %6875, %v6326_v30   ;;  %v6910_v34 = vunpack.i.h.bf16 %v6908_v5  ;;  %v6909_v11 = vunpack.i.l.bf16 %v6908_v5  ;;  %v9555_v30 = vsel %vm426_vm1, %v405_v37, %v406_v38  ;;  %v6422_v25 = vld [vmem:[%s12861_s1 + $0x7e0] sm:$0xff]  ;;  %v6391_v37 = vld [vmem:[%s12861_s1 + $0x6e8] sm:$0xff] }
 0x204   : > { %13480 = vst [vmem:[#allocation212_spill] sm:$0xff] %v9555_v30  ;;  %v1853_v27 = vmul.f32 %v9178_v17, %v9555_v30  ;;  %v6423_v17 = vld [vmem:[%s12861_s1 + $0x7e8] sm:$0xff] }
 0x205   : > { %v3094_v61 = vsel %vm3091_vm2, %v653_v35, %v6910_v34  ;;  %v13492_v34 = vrot.slane %v9542_v12, 7 }
 0x206   : > { %v6913_v48 = vpop.permute.xlu0 %6912  ;;  %v6923_v55 = vpop.permute.xlu1 %6922 }
 0x207   : > { %1823 = vperm.xlu0 %6874, %v6390_v46   ;;  %1603 = vperm.xlu1 %6875, %v6359_v21   ;;  %v6915_v5 = vunpack.i.h.bf16 %v6913_v48  ;;  %v6914_v52 = vunpack.i.l.bf16 %v6913_v48  ;;  %v13485_v21 = vld [vmem:[#allocation125_spill] sm:$0xff]  ;;  %v13486_v46 = vld [vmem:[#allocation4_spill] sm:$0xff]  ;;  %v1628_v48 = vmul.f32 %v9180_v14, %v9563_v22  ;;  %v6925_v32 = vunpack.i.h.bf16 %v6923_v55 }
 0x208   : > { %v654_v47 = vmul.f32 %v13486_v46, %v13485_v21  ;;  %v13491_v21 = vld [vmem:[#allocation107_spill] sm:$0xff]  ;;  %v6924_v53 = vunpack.i.l.bf16 %v6923_v55  ;;  %v9603_v55 = vsel %vm426_vm1, %v406_v38, %v13492_v34  ;;  %v1403_v38 = vmul.f32 %v9192_v49, %v9468_v45 }
 0x209   : > { %v3192_v57 = vsel %vm3091_vm2, %v13491_v21, %v6909_v11  ;;  %v3127_v41 = vsel %vm3124_vm3, %v3094_v61, %v6915_v5  ;;  %v7056_v54 = vpack.i.bf16 %v888_v0, %v1628_v48  ;;  %v1629_v11 = vmul.f32 %v9217_v1, %v9579_v13  ;;  %13493 = vst [vmem:[#allocation107_spill] sm:$0xff] %v9603_v55 }
 0x20a   : > { %v6918_v28 = vpop.permute.xlu0 %6917  ;;  %v6928_v46 = vpop.permute.xlu1 %6927  ;;  %v3224_v15 = vsel %vm3124_vm3, %v3192_v57, %v6914_v52  ;;  %v13494_v52 = vld [vmem:[#allocation46_spill] sm:$0xff]  ;;  %v13498_v57 = vld [vmem:[#allocation173_spill] sm:$0xff] }
 0x20b   : > { %v6920_v36 = vunpack.i.h.bf16 %v6918_v28  ;;  %v6919_v2 = vunpack.i.l.bf16 %v6918_v28  ;;  %2048 = vperm.xlu0 %6874, %v6422_v25   ;;  %1828 = vperm.xlu1 %6875, %v6391_v37   ;;  %v6930_v14 = vunpack.i.h.bf16 %v6928_v46  ;;  %v6929_v3 = vunpack.i.l.bf16 %v6928_v46 }
 0x20c   : > { %v889_v25 = vmul.f32 %v13494_v52, %v9327_v60  ;;  %v7061_v37 = vpack.i.bf16 %v1178_v20, %v1853_v27  ;;  %v3095_v46 = vsel %vm3091_vm2, %v654_v47, %v6925_v32  ;;  %v13497_v60 = vld [vmem:[#allocation171_spill] sm:$0xff] }
 0x20d   : > { %v3256_v35 = vsel %vm3157_vm4, %v3224_v15, %v6919_v2  ;;  %v3160_v28 = vsel %vm3157_vm4, %v3127_v41, %v6920_v36  ;;  %v13496_v15 = vld [vmem:[#allocation114_spill] sm:$0xff]  ;;  %v2078_v27 = vmul.f32 %v13497_v60, %v9530_v59  ;;  %v3128_v48 = vsel %vm3124_vm3, %v3095_v46, %v6930_v14 }
 0x20e   : > { %v9607_v21 = vpop.permute.xlu0 %1328  ;;  %v6933_v61 = vpop.permute.xlu1 %6932  ;;  %3499 = vmatprep.mubr.f32.mxu0 %v3256_v35  ;;  %v3193_v41 = vsel %vm3091_vm2, %v13496_v15, %v6924_v53  ;;  %v13501_v2 = vld [vmem:[#allocation78_spill] sm:$0xff]  ;;  %v6360_v15 = vld [vmem:[%s12861_s1 + $0x5f0] sm:$0xff] }
 0x20f   : > { %13495 = vst [vmem:[#allocation215_spill] sm:$0xff] %v9607_v21  ;;  %v6935_v0 = vunpack.i.h.bf16 %v6933_v61  ;;  %v6934_v5 = vunpack.i.l.bf16 %v6933_v61  ;;  %7057 = vrot.lane.b32.xlu0 %v7056_v54, %s7908_s21  ;;  %2053 = vperm.xlu1 %6875, %v6423_v17   ;;  %v3225_v20 = vsel %vm3124_vm3, %v3193_v41, %v6929_v3  ;;  %v1854_v54 = vmul.f32 %v13498_v57, %v9603_v55  ;;  %v6328_v41 = vld [vmem:[%s12861_s1 + $0x3f0] sm:$0xff]  ;;  %v9656_v46 = vld [vmem:[%s8792_s28 + $0x80] sm:$0xff] }
 0x210   : > { %3500 = vmatmul.mubr.f32.gmra.mrb[4].mxu0 %v3160_v28  ;;  %v7071_v17 = vpack.i.bf16 %v889_v25, %v1629_v11  ;;  %v1179_v35 = vmul.f32 %v13501_v2, %v9477_v8  ;;  %v7066_v3 = vpack.i.bf16 %v1403_v38, %v2078_v27  ;;  %v1404_v11 = vmul.f32 %v9241_v43, %v9495_v31  ;;  %v13515_v57 = vld [vmem:[#allocation132_spill] sm:$0xff]  ;;  %v13516_v31 = vld [vmem:[#allocation122_spill] sm:$0xff] }
 0x211   : > { %v3257_v36 = vsel %vm3157_vm4, %v3225_v20, %v6934_v5  ;;  %v3161_v53 = vsel %vm3157_vm4, %v3128_v48, %v6935_v0  ;;  %v2079_v28 = vmul.f32 %v9243_v16, %v9542_v12  ;;  %v923_v20 = vrot.slane %v9542_v12, 1  ;;  %v6392_v48 = vld [vmem:[%s12861_s1 + $0x6f0] sm:$0xff] }
 0x212   : > { %v9623_v32 = vpop.permute.xlu0 %1558  ;;  %v9625_v47 = vpop.permute.xlu1 %1333  ;;  %3504 = vmatprep.mubr.f32.mxu0 %v3257_v36  ;;  %v7076_v14 = vpack.i.bf16 %v1179_v35, %v1854_v54  ;;  %v6361_v54 = vld [vmem:[%s12861_s1 + $0x5f8] sm:$0xff] }
 0x213   : > { %13499 = vst [vmem:[#allocation114_spill] sm:$0xff] %v9623_v32  ;;  %13500 = vst [vmem:[#allocation216_spill] sm:$0xff] %v9625_v47  ;;  %7062 = vrot.lane.b32.xlu0 %v7061_v37, %s7909_s22  ;;  %7072 = vrot.lane.b32.xlu1 %v7071_v17, %s7908_s21  ;;  %v6327_v37 = vld [vmem:[%s12861_s1 + $0x3e8] sm:$0xff]  ;;  %v7081_v61 = vpack.i.bf16 %v1404_v11, %v2079_v28  ;;  %v6424_v17 = vld [vmem:[%s12861_s1 + $0x7f0] sm:$0xff] }
 0x214   : > { %3505 = vmatmul.mubr.f32.gmra.mrb[6].mxu0 %v3161_v53  ;;  %v13508_v11 = vld [vmem:[#allocation7_spill] sm:$0xff] }
 0x216   : > { %v9635_v34 = vpop.permute.xlu0 %1783  ;;  %v9637_v25 = vpop.permute.xlu1 %1563 }
 0x217   : > { %13502 = vst [vmem:[#allocation217_spill] sm:$0xff] %v9635_v34  ;;  %13503 = vst [vmem:[#allocation218_spill] sm:$0xff] %v9637_v25  ;;  %7067 = vrot.lane.b32.xlu0 %v7066_v3, %s7910_s23  ;;  %7077 = vrot.lane.b32.xlu1 %v7076_v14, %s7909_s22  ;;  %v13507_v14 = vld [vmem:[#allocation115_spill] sm:$0xff] }
 0x218   : > { %v655_v28 = vmul.f32 %v13508_v11, %v13507_v14  ;;  %v13514_v11 = vld [vmem:[#allocation49_spill] sm:$0xff] }
 0x219   : > { %v890_v43 = vmul.f32 %v13514_v11, %v9427_v4 }
 0x21a   : > { %v9644_v0 = vpop.permute.xlu0 %2008  ;;  %v9646_v5 = vpop.permute.xlu1 %1788 }
 0x21b   : > { %13504 = vst [vmem:[#allocation219_spill] sm:$0xff] %v9644_v0  ;;  %13505 = vst [vmem:[#allocation220_spill] sm:$0xff] %v9646_v5  ;;  %1378 = vperm.xlu0 %6874, %v6327_v37   ;;  %7082 = vrot.lane.b32.xlu1 %v7081_v61, %s7910_s23  ;;  %v13509_v37 = vrot.slane %v9530_v59, 1 }
 0x21d   : > { %v9674_v61 = vsel %vm940_vm0, %v13509_v37, %v923_v20 }
 0x21e   : > { %v6938_v38 = vpop.permute.xlu0 %6937  ;;  %v9658_v27 = vpop.permute.xlu1 %2013  ;;  %13510 = vst [vmem:[#allocation115_spill] sm:$0xff] %v9674_v61 }
 0x21f   : > { %13506 = vst [vmem:[#allocation221_spill] sm:$0xff] %v9658_v27  ;;  %1608 = vperm.xlu0 %6874, %v6360_v15   ;;  %1383 = vperm.xlu1 %6875, %v6328_v41   ;;  %v6940_v36 = vunpack.i.h.bf16 %v6938_v38  ;;  %v6939_v53 = vunpack.i.l.bf16 %v6938_v38  ;;  %v6393_v38 = vld [vmem:[%s12861_s1 + $0x6f8] sm:$0xff] }
 0x221   : > { %v3194_v1 = vsel %vm3091_vm2, %v13515_v57, %v6939_v53  ;;  %v3096_v49 = vsel %vm3091_vm2, %v655_v28, %v6940_v36  ;;  %v13517_v57 = vld [vmem:[#allocation6_spill] sm:$0xff] }
 0x222   : > { %v6943_v35 = vpop.permute.xlu0 %6942  ;;  %v6953_v3 = vpop.permute.xlu1 %6952  ;;  %v656_v53 = vmul.f32 %v13517_v57, %v13516_v31  ;;  %v13532_v57 = vld [vmem:[#allocation83_spill] sm:$0xff] }
 0x223   : > { %1833 = vperm.xlu0 %6874, %v6392_v48   ;;  %1613 = vperm.xlu1 %6875, %v6361_v54   ;;  %v6945_v15 = vunpack.i.h.bf16 %v6943_v35  ;;  %v6944_v41 = vunpack.i.l.bf16 %v6943_v35  ;;  %v13511_v48 = vrot.slane %v9656_v46, 7  ;;  %v13512_v54 = vrot.slane %v9542_v12, 7 }
 0x224   : > { %v1630_v35 = vmul.f32 %v9262_v44, %v9674_v61 }
 0x225   : > { %v9688_v14 = vsel %vm426_vm1, %v13512_v54, %v13511_v48  ;;  %v6955_v48 = vunpack.i.h.bf16 %v6953_v3  ;;  %v6954_v54 = vunpack.i.l.bf16 %v6953_v3  ;;  %v3226_v4 = vsel %vm3124_vm3, %v3194_v1, %v6944_v41 }
 0x226   : > { %13513 = vst [vmem:[#allocation222_spill] sm:$0xff] %v9688_v14  ;;  %v1855_v16 = vmul.f32 %v9260_v7, %v9688_v14  ;;  %v6948_v2 = vpop.permute.xlu0 %6947  ;;  %v6958_v52 = vpop.permute.xlu1 %6957  ;;  %v6425_v7 = vld [vmem:[%s12861_s1 + $0x7f8] sm:$0xff]  ;;  %v3129_v11 = vsel %vm3124_vm3, %v3096_v49, %v6945_v15  ;;  %v7086_v36 = vpack.i.bf16 %v890_v43, %v1630_v35  ;;  %v13521_v43 = vld [vmem:[#allocation136_spill] sm:$0xff] }
 0x227   : > { %v6950_v60 = vunpack.i.h.bf16 %v6948_v2  ;;  %v6949_v37 = vunpack.i.l.bf16 %v6948_v2  ;;  %2058 = vperm.xlu0 %6874, %v6424_v17   ;;  %1838 = vperm.xlu1 %6875, %v6393_v38   ;;  %v6960_v44 = vunpack.i.h.bf16 %v6958_v52  ;;  %v6959_v8 = vunpack.i.l.bf16 %v6958_v52  ;;  %v13518_v17 = vld [vmem:[#allocation81_spill] sm:$0xff] }
 0x228   : > { %v1180_v28 = vmul.f32 %v13518_v17, %v9563_v22  ;;  %v13519_v52 = vrot.slane %v9656_v46, 1  ;;  %v6329_v35 = vld [vmem:[%s12861_s1 + $0x3f8] sm:$0xff]  ;;  %v7838_v22 = vld [vmem:[%s8792_s28 + $0x30] sm:$0xff] }
 0x229   : > { %v3258_v3 = vsel %vm3157_vm4, %v3226_v4, %v6949_v37  ;;  %v3162_v2 = vsel %vm3157_vm4, %v3129_v11, %v6950_v60  ;;  %v3195_v60 = vsel %vm3091_vm2, %v13521_v43, %v6954_v54  ;;  %v3097_v11 = vsel %vm3091_vm2, %v656_v53, %v6955_v48 }
 0x22a   : > { %v9715_v1 = vsel %vm940_vm0, %v923_v20, %v13519_v52  ;;  %v9717_v41 = vpop.permute.xlu0 %1338  ;;  %v6963_v49 = vpop.permute.xlu1 %6962  ;;  %3509 = vmatprep.mubr.f32.mxu0 %v3258_v3  ;;  %v7091_v38 = vpack.i.bf16 %v1180_v28, %v1855_v16  ;;  %v1405_v20 = vmul.f32 %v9272_v62, %v9555_v30  ;;  %v3227_v37 = vsel %vm3124_vm3, %v3195_v60, %v6959_v8  ;;  %v13524_v8 = vld [vmem:[#allocation48_spill] sm:$0xff]  ;;  %v9857_v30 = vld [vmem:[%s8792_s28 + $0xa0] sm:$0xff] }
 0x22b   : > { %13520 = vst [vmem:[#allocation132_spill] sm:$0xff] %v9717_v41  ;;  %v6965_v15 = vunpack.i.h.bf16 %v6963_v49  ;;  %v6964_v31 = vunpack.i.l.bf16 %v6963_v49  ;;  %7087 = vrot.lane.b32.xlu0 %v7086_v36, %s7908_s21  ;;  %2063 = vperm.xlu1 %6875, %v6425_v7   ;;  %v3130_v7 = vsel %vm3124_vm3, %v3097_v11, %v6960_v44  ;;  %v2080_v54 = vmul.f32 %v9274_v51, %v9656_v46  ;;  %v9744_v44 = vld [vmem:[%s8792_s28 + $0x88] sm:$0xff]  ;;  %v6426_v11 = vld [vmem:[%s12861_s1 + $0x800] sm:$0xff] }
 0x22c   : > { %3510 = vmatmul.mubr.f32.gmra.mrb[8].mxu0 %v3162_v2  ;;  %v1631_v16 = vmul.f32 %v9285_v29, %v9715_v1  ;;  %v891_v3 = vmul.f32 %v13524_v8, %v9458_v50  ;;  %v9747_v2 = vld [vmem:[%s8792_s28 + $0x90] sm:$0xff]  ;;  %v1406_v49 = vmul.f32 %v9294_v56, %v9603_v55  ;;  %v409_v50 = vrot.slane %v9744_v44, 7  ;;  %v13535_v8 = vld [vmem:[#allocation189_spill] sm:$0xff]  ;;  %v13545_v51 = vld [vmem:[#allocation195_spill] sm:$0xff] }
 0x22d   : > { %v3259_v48 = vsel %vm3157_vm4, %v3227_v37, %v6964_v31  ;;  %v3163_v4 = vsel %vm3157_vm4, %v3130_v7, %v6965_v15  ;;  %v7096_v28 = vpack.i.bf16 %v1405_v20, %v2080_v54  ;;  %v2081_v15 = vmul.f32 %v9296_v39, %v9744_v44  ;;  %v3319_v20 = vld [vmem:[%s12862_s2 + $0x108] sm:$0xff]  ;;  %v9854_v55 = vld [vmem:[%s8792_s28 + $0x98] sm:$0xff] }
 0x22e   : > { %v9736_v53 = vpop.permute.xlu0 %1568  ;;  %v9738_v36 = vpop.permute.xlu1 %1343  ;;  %3514 = vmatprep.mubr.f32.mxu0 %v3259_v48  ;;  %v7101_v52 = vpack.i.bf16 %v891_v3, %v1631_v16  ;;  %v13074_v60 = vrot.slane %v9747_v2, 7  ;;  %v3320_v16 = vld [vmem:[%s12862_s2 + $0x110] sm:$0xff]  ;;  %v3321_v48 = vld [vmem:[%s12862_s2 + $0x118] sm:$0xff]  ;;  %v1182_v56 = vmul.f32 %v13532_v57, %v9674_v61 }
 0x22f   : > { %13522 = vst [vmem:[#allocation122_spill] sm:$0xff] %v9736_v53  ;;  %13523 = vst [vmem:[#allocation136_spill] sm:$0xff] %v9738_v36  ;;  %7092 = vrot.lane.b32.xlu0 %v7091_v38, %s7909_s22  ;;  %1388 = vperm.xlu1 %6875, %v6329_v35   ;;  %v3318_v38 = vld [vmem:[%s12862_s2 + $0x100] sm:$0xff]  ;;  %v7111_v37 = vpack.i.bf16 %v1406_v49, %v2081_v15  ;;  %v6427_v49 = vld [vmem:[%s12861_s1 + $0x808] sm:$0xff] }
 0x230   : > { %3515 = vmatmul.mubr.f32.gmra.mrb[10].mxu0 %v3163_v4  ;;  %v6785_v35 = vpack.c.bf16 %v3319_v20, %v3318_v38  ;;  %v13529_v4 = vrot.slane %v9656_v46, 7  ;;  %v6429_v15 = vld [vmem:[%s12861_s1 + $0x818] sm:$0xff] }
 0x232   : > { %v9753_v31 = vpop.permute.xlu0 %1793  ;;  %v9755_v43 = vpop.permute.xlu1 %1573  ;;  %v9785_v3 = vsel %vm426_vm1, %v13529_v4, %v409_v50  ;;  %6786 = vmatprep.subr.bf16.mxu1 %v6785_v35  ;;  %v13531_v4 = vld [vmem:[#allocation80_spill] sm:$0xff] }
 0x233   : > { %13525 = vst [vmem:[#allocation223_spill] sm:$0xff] %v9753_v31  ;;  %13526 = vst [vmem:[#allocation224_spill] sm:$0xff] %v9755_v43  ;;  %7097 = vrot.lane.b32.xlu0 %v7096_v28, %s7910_s23  ;;  %7102 = vrot.lane.b32.xlu1 %v7101_v52, %s7908_s21  ;;  %v9791_v28 = vsel %vm426_vm1, %v409_v50, %v13074_v60  ;;  %v925_v52 = vrot.slane %v9744_v44, 1  ;;  %v1856_v38 = vmul.f32 %v9283_v63, %v9785_v3 }
 0x234   : > { %v1857_v20 = vmul.f32 %v9308_v42, %v9791_v28  ;;  %6788 = vmatpush3.bf16.msra.mxu1 %v6785_v35  ;;  %v1181_v60 = vmul.f32 %v13531_v4, %v9579_v13 }
 0x236   : > { %v9770_v7 = vpop.permute.xlu0 %2018  ;;  %v9772_v54 = vpop.permute.xlu1 %1798  ;;  %v7106_v35 = vpack.i.bf16 %v1181_v60, %v1856_v38  ;;  %v7121_v39 = vpack.i.bf16 %v1182_v56, %v1857_v20  ;;  %v13538_v60 = vld [vmem:[#allocation139_spill] sm:$0xff]  ;;  %v13539_v56 = vld [vmem:[#allocation9_spill] sm:$0xff]  ;;  %v13540_v20 = vrot.slane %v9747_v2, 1 }
 0x237   : > { %13527 = vst [vmem:[#allocation225_spill] sm:$0xff] %v9770_v7  ;;  %13528 = vst [vmem:[#allocation226_spill] sm:$0xff] %v9772_v54  ;;  %2133 = vperm.xlu0 %6874, %v6426_v11   ;;  %7112 = vrot.lane.b32.xlu1 %v7111_v37, %s7910_s23  ;;  %v6789_v11 = vpack.c.bf16 %v3321_v48, %v3320_v16  ;;  %v13533_v48 = vrot.slane %v9656_v46, 1  ;;  %v657_v38 = vmul.f32 %v13539_v56, %v13538_v60  ;;  %v13543_v60 = vld [vmem:[#allocation50_spill] sm:$0xff] }
 0x238   : > { %v893_v56 = vmul.f32 %v13543_v60, %v9542_v12 }
 0x239   : > { %6790 = vmatprep.subr.bf16.mxu1 %v6789_v11  ;;  %v9815_v42 = vsel %vm940_vm0, %v13533_v48, %v925_v52 }
 0x23a   : > { %v6968_v50 = vpop.permute.xlu0 %6967  ;;  %v9804_v37 = vpop.permute.xlu1 %2023  ;;  %13534 = vst [vmem:[#allocation228_spill] sm:$0xff] %v9815_v42  ;;  %v1632_v63 = vmul.f32 %v13535_v8, %v9815_v42  ;;  %6792 = vmatpush3.bf16.msra.mxu1 %v6789_v11  ;;  %v9830_v11 = vsel %vm940_vm0, %v925_v52, %v13540_v20 }
 0x23b   : > { %13530 = vst [vmem:[#allocation227_spill] sm:$0xff] %v9804_v37  ;;  %2138 = vperm.xlu0 %6874, %v6427_v49   ;;  %2148 = vperm.xlu1 %6875, %v6429_v15   ;;  %v6970_v4 = vunpack.i.h.bf16 %v6968_v50  ;;  %v6969_v29 = vunpack.i.l.bf16 %v6968_v50  ;;  %v13536_v49 = vmov 0.0|0.0   ;;  %v13537_v15 = vld [vmem:[#allocation51_spill] sm:$0xff]  ;;  %v1633_v52 = vmul.f32 %v9360_v23, %v9830_v11 }
 0x23c   : > { %6793 = vmatprep.subr.bf16.mxu1 %v13536_v49  ;;  %v892_v16 = vmul.f32 %v13537_v15, %v9530_v59  ;;  %v6428_v59 = vld [vmem:[%s12861_s1 + $0x810] sm:$0xff]  ;;  %v2082_v49 = vmul.f32 %v13545_v51, %v9747_v2 }
 0x23d   : > { %v13542_v15 = vld [vmem:[#allocation8_spill] sm:$0xff] }
 0x23e   : > { %v6973_v62 = vpop.permute.xlu0 %6972  ;;  %v6983_v57 = vpop.permute.xlu1 %6982  ;;  %v7116_v17 = vpack.i.bf16 %v892_v16, %v1632_v63 }
 0x23f   : > { %7107 = vrot.lane.b32.xlu0 %v7106_v35, %s7909_s22  ;;  %7122 = vrot.lane.b32.xlu1 %v7121_v39, %s7909_s22  ;;  %v6975_v50 = vunpack.i.h.bf16 %v6973_v62  ;;  %v6974_v48 = vunpack.i.l.bf16 %v6973_v62  ;;  %v6430_v35 = vld [vmem:[%s12861_s1 + $0x820] sm:$0xff]  ;;  %v13541_v39 = vld [vmem:[#allocation143_spill] sm:$0xff]  ;;  %v6985_v12 = vunpack.i.h.bf16 %v6983_v57  ;;  %v6984_v63 = vunpack.i.l.bf16 %v6983_v57 }
 0x240   : > { %v658_v8 = vmul.f32 %v13542_v15, %v13541_v39  ;;  %v13544_v62 = vld [vmem:[#allocation191_spill] sm:$0xff]  ;;  %v3196_v39 = vsel %vm3091_vm2, %v7838_v22, %v6969_v29  ;;  %v3098_v15 = vsel %vm3091_vm2, %v657_v38, %v6970_v4  ;;  %v7131_v29 = vpack.i.bf16 %v893_v56, %v1633_v52  ;;  %v7839_v56 = vld [vmem:[%s8792_s28 + $0x38] sm:$0xff] }
 0x241   : > { %v1407_v20 = vmul.f32 %v13544_v62, %v9688_v14  ;;  %v3228_v14 = vsel %vm3124_vm3, %v3196_v39, %v6974_v48  ;;  %v3131_v51 = vsel %vm3124_vm3, %v3098_v15, %v6975_v50  ;;  %v1408_v22 = vmul.f32 %v9488_v10, %v9785_v3 }
 0x242   : > { %v6978_v61 = vpop.permute.xlu0 %6977  ;;  %v6988_v13 = vpop.permute.xlu1 %6987  ;;  %v3197_v48 = vsel %vm3091_vm2, %v7839_v56, %v6984_v63  ;;  %v927_v56 = vrot.slane %v9854_v55, 1 }
 0x243   : > { %v6980_v16 = vunpack.i.h.bf16 %v6978_v61  ;;  %v6979_v60 = vunpack.i.l.bf16 %v6978_v61  ;;  %2143 = vperm.xlu0 %6874, %v6428_v59   ;;  %2153 = vperm.xlu1 %6875, %v6430_v35   ;;  %v6990_v23 = vunpack.i.h.bf16 %v6988_v13  ;;  %v6989_v62 = vunpack.i.l.bf16 %v6988_v13 }
 0x244   : > { %v2083_v13 = vmul.f32 %v9395_v58, %v9854_v55  ;;  %v13090_v59 = vrot.slane %v9857_v30, 7  ;;  %v7126_v52 = vpack.i.bf16 %v1407_v20, %v2082_v49  ;;  %v6433_v20 = vld [vmem:[%s12861_s1 + $0x838] sm:$0xff] }
 0x245   : > { %v3260_v57 = vsel %vm3157_vm4, %v3228_v14, %v6979_v60  ;;  %v3164_v61 = vsel %vm3157_vm4, %v3131_v51, %v6980_v16  ;;  %v3099_v14 = vsel %vm3091_vm2, %v658_v8, %v6985_v12  ;;  %v411_v51 = vrot.slane %v9854_v55, 7 }
 0x246   : > { %v9865_v4 = vpop.permute.xlu0 %1348  ;;  %v6993_v38 = vpop.permute.xlu1 %6992  ;;  %3519 = vmatprep.mubr.f32.mxu0 %v3260_v57  ;;  %v3229_v35 = vsel %vm3124_vm3, %v3197_v48, %v6989_v62  ;;  %v3132_v60 = vsel %vm3124_vm3, %v3099_v14, %v6990_v23  ;;  %v7141_v39 = vpack.i.bf16 %v1408_v22, %v2083_v13  ;;  %v13549_v8 = vrot.slane %v9747_v2, 7  ;;  %v6431_v62 = vld [vmem:[%s12861_s1 + $0x828] sm:$0xff]  ;;  %v13553_v13 = vld [vmem:[#allocation82_spill] sm:$0xff] }
 0x247   : > { %13546 = vst [vmem:[#allocation139_spill] sm:$0xff] %v9865_v4  ;;  %v6995_v15 = vunpack.i.h.bf16 %v6993_v38  ;;  %v6994_v50 = vunpack.i.l.bf16 %v6993_v38  ;;  %7117 = vrot.lane.b32.xlu0 %v7116_v17, %s7908_s21  ;;  %7132 = vrot.lane.b32.xlu1 %v7131_v29, %s7908_s21  ;;  %v9894_v49 = vsel %vm426_vm1, %v411_v51, %v13090_v59  ;;  %v1183_v38 = vmul.f32 %v13553_v13, %v9715_v1 }
 0x248   : > { %3520 = vmatmul.mubr.f32.gmra.mrb[12].mxu0 %v3164_v61  ;;  %v9888_v23 = vsel %vm426_vm1, %v13549_v8, %v411_v51  ;;  %13550 = vst [vmem:[#allocation230_spill] sm:$0xff] %v9894_v49  ;;  %v1859_v22 = vmul.f32 %v9515_v24, %v9894_v49  ;;  %v13089_v48 = vrot.slane %v9857_v30, 1  ;;  %v6434_v8 = vld [vmem:[%s12861_s1 + $0x840] sm:$0xff] }
 0x249   : > { %v3261_v17 = vsel %vm3157_vm4, %v3229_v35, %v6994_v50  ;;  %v3165_v16 = vsel %vm3157_vm4, %v3132_v60, %v6995_v15  ;;  %v1858_v12 = vmul.f32 %v9379_v6, %v9888_v23  ;;  %v13554_v15 = vld [vmem:[#allocation85_spill] sm:$0xff]  ;;  %v1410_v24 = vmul.f32 %v9607_v21, %v9888_v23 }
 0x24a   : > { %v9878_v29 = vpop.permute.xlu0 %1578  ;;  %v9880_v63 = vpop.permute.xlu1 %1353  ;;  %3524 = vmatprep.mubr.f32.mxu0 %v3261_v17  ;;  %v1184_v50 = vmul.f32 %v13554_v15, %v9815_v42 }
 0x24b   : > { %13547 = vst [vmem:[#allocation143_spill] sm:$0xff] %v9878_v29  ;;  %13548 = vst [vmem:[#allocation229_spill] sm:$0xff] %v9880_v63  ;;  %7127 = vrot.lane.b32.xlu0 %v7126_v52, %s7910_s23  ;;  %7142 = vrot.lane.b32.xlu1 %v7141_v39, %s7910_s23  ;;  %v7136_v14 = vpack.i.bf16 %v1183_v38, %v1858_v12  ;;  %v9926_v52 = vsel %vm940_vm0, %v927_v56, %v13089_v48  ;;  %v13558_v39 = vrot.slane %v9747_v2, 1 }
 0x24c   : > { %3525 = vmatmul.mubr.f32.gmra.mrb[14].mxu0 %v3165_v16  ;;  %v7151_v51 = vpack.i.bf16 %v1184_v50, %v1859_v22  ;;  %13557 = vst [vmem:[#allocation235_spill] sm:$0xff] %v9926_v52  ;;  %v6432_v16 = vld [vmem:[%s12861_s1 + $0x830] sm:$0xff]  ;;  %v1635_v12 = vmul.f32 %v9517_v40, %v9926_v52  ;;  %v2084_v40 = vmul.f32 %v9524_v18, %v9857_v30  ;;  %v13567_v18 = vld [vmem:[#allocation161_spill] sm:$0xff] }
 0x24d   : > { %v9932_v17 = vsel %vm940_vm0, %v13558_v39, %v927_v56  ;;  %v9950_v50 = vld [vmem:[%s8792_s28 + $0xb0] sm:$0xff] }
 0x24e   : > { %v9906_v57 = vpop.permute.xlu0 %1803  ;;  %v9908_v61 = vpop.permute.xlu1 %1583  ;;  %13559 = vst [vmem:[#allocation236_spill] sm:$0xff] %v9932_v17  ;;  %v13561_v56 = vld [vmem:[#allocation52_spill] sm:$0xff] }
 0x24f   : > { %13551 = vst [vmem:[#allocation231_spill] sm:$0xff] %v9906_v57  ;;  %13552 = vst [vmem:[#allocation232_spill] sm:$0xff] %v9908_v61  ;;  %2158 = vperm.xlu0 %6874, %v6431_v62   ;;  %2168 = vperm.xlu1 %6875, %v6433_v20   ;;  %v9941_v62 = vld [vmem:[%s8792_s28 + $0xa8] sm:$0xff]  ;;  %v1634_v20 = vmul.f32 %v9503_v19, %v9932_v17 }
 0x250   : > { %v413_v48 = vrot.slane %v9941_v62, 7 }
 0x252   : > { %v9916_v35 = vpop.permute.xlu0 %2028  ;;  %v9918_v60 = vpop.permute.xlu1 %1808 }
 0x253   : > { %13555 = vst [vmem:[#allocation233_spill] sm:$0xff] %v9916_v35  ;;  %13556 = vst [vmem:[#allocation234_spill] sm:$0xff] %v9918_v60  ;;  %7137 = vrot.lane.b32.xlu0 %v7136_v14, %s7909_s22  ;;  %7152 = vrot.lane.b32.xlu1 %v7151_v51, %s7909_s22  ;;  %v895_v14 = vmul.f32 %v13561_v56, %v9744_v44  ;;  %v13562_v51 = vld [vmem:[#allocation53_spill] sm:$0xff] }
 0x254   : > { %v894_v39 = vmul.f32 %v13562_v51, %v9656_v46  ;;  %v1409_v46 = vmul.f32 %v9505_v26, %v9791_v28  ;;  %v13568_v51 = vld [vmem:[#allocation10_spill] sm:$0xff] }
 0x255   : > { %v7161_v15 = vpack.i.bf16 %v895_v14, %v1635_v12 }
 0x256   : > { %v6998_v22 = vpop.permute.xlu0 %6997  ;;  %v9947_v38 = vpop.permute.xlu1 %2033  ;;  %v7146_v59 = vpack.i.bf16 %v894_v39, %v1634_v20  ;;  %v13564_v20 = vld [vmem:[#allocation11_spill] sm:$0xff]  ;;  %v7156_v21 = vpack.i.bf16 %v1409_v46, %v2084_v40 }
 0x257   : > { %13560 = vst [vmem:[#allocation237_spill] sm:$0xff] %v9947_v38  ;;  %2163 = vperm.xlu0 %6874, %v6432_v16   ;;  %2173 = vperm.xlu1 %6875, %v6434_v8   ;;  %v7000_v19 = vunpack.i.h.bf16 %v6998_v22  ;;  %v6999_v58 = vunpack.i.l.bf16 %v6998_v22  ;;  %v2085_v16 = vmul.f32 %v9538_v33, %v9941_v62  ;;  %v13563_v8 = vld [vmem:[#allocation157_spill] sm:$0xff]  ;;  %v13565_v22 = vrot.slane %v9857_v30, 7 }
 0x258   : > { %v659_v12 = vmul.f32 %v13564_v20, %v13563_v8  ;;  %v660_v33 = vmul.f32 %v13568_v51, %v13567_v18 }
 0x259   : > { %v9974_v10 = vsel %vm426_vm1, %v13565_v22, %v413_v48  ;;  %v7171_v26 = vpack.i.bf16 %v1410_v24, %v2085_v16  ;;  %v6435_v16 = vld [vmem:[%s12861_s1 + $0x848] sm:$0xff] }
 0x25a   : > { %v7003_v44 = vpop.permute.xlu0 %7002  ;;  %v7013_v56 = vpop.permute.xlu1 %7012  ;;  %13566 = vst [vmem:[#allocation157_spill] sm:$0xff] %v9974_v10  ;;  %v3100_v6 = vsel %vm3091_vm2, %v659_v12, %v7000_v19  ;;  %v6437_v19 = vld [vmem:[%s12861_s1 + $0x858] sm:$0xff]  ;;  %v13572_v12 = vld [vmem:[#allocation84_spill] sm:$0xff] }
 0x25b   : > { %7147 = vrot.lane.b32.xlu0 %v7146_v59, %s7908_s21  ;;  %7162 = vrot.lane.b32.xlu1 %v7161_v15, %s7908_s21  ;;  %v7005_v14 = vunpack.i.h.bf16 %v7003_v44  ;;  %v7004_v39 = vunpack.i.l.bf16 %v7003_v44  ;;  %v13569_v59 = vrot.slane %v9950_v50, 7  ;;  %v7840_v44 = vld [vmem:[%s8792_s28 + $0x40] sm:$0xff]  ;;  %v7015_v22 = vunpack.i.h.bf16 %v7013_v56 }
 0x25c   : > { %v3198_v13 = vsel %vm3091_vm2, %v7840_v44, %v6999_v58  ;;  %v7014_v42 = vunpack.i.l.bf16 %v7013_v56  ;;  %v13571_v56 = vld [vmem:[#allocation210_spill] sm:$0xff] }
 0x25d   : > { %v9982_v15 = vsel %vm426_vm1, %v413_v48, %v13569_v59  ;;  %v3230_v48 = vsel %vm3124_vm3, %v3198_v13, %v7004_v39  ;;  %v3133_v58 = vsel %vm3124_vm3, %v3100_v6, %v7005_v14  ;;  %v1185_v39 = vmul.f32 %v13572_v12, %v9830_v11  ;;  %v13573_v59 = vld [vmem:[#allocation87_spill] sm:$0xff] }
 0x25e   : > { %13570 = vst [vmem:[#allocation161_spill] sm:$0xff] %v9982_v15  ;;  %v7008_v8 = vpop.permute.xlu0 %7007  ;;  %v7018_v20 = vpop.permute.xlu1 %7017 }
 0x25f   : > { %v7010_v40 = vunpack.i.h.bf16 %v7008_v8  ;;  %v7009_v24 = vunpack.i.l.bf16 %v7008_v8  ;;  %7157 = vrot.lane.b32.xlu0 %v7156_v21, %s7910_s23  ;;  %7172 = vrot.lane.b32.xlu1 %v7171_v26, %s7910_s23  ;;  %v7020_v18 = vunpack.i.h.bf16 %v7018_v20  ;;  %v7019_v46 = vunpack.i.l.bf16 %v7018_v20 }
 0x260   : > { %v1860_v21 = vmul.f32 %v13571_v56, %v9974_v10  ;;  %v1861_v26 = vmul.f32 %v9635_v34, %v9982_v15  ;;  %v1186_v8 = vmul.f32 %v13573_v59, %v9932_v17  ;;  %v7841_v56 = vld [vmem:[%s8792_s28 + $0x48] sm:$0xff] }
 0x261   : > { %v3262_v20 = vsel %vm3157_vm4, %v3230_v48, %v7009_v24  ;;  %v3166_v13 = vsel %vm3157_vm4, %v3133_v58, %v7010_v40  ;;  %v3199_v34 = vsel %vm3091_vm2, %v7841_v56, %v7014_v42  ;;  %v3101_v24 = vsel %vm3091_vm2, %v660_v33, %v7015_v22 }
 0x262   : > { %v10007_v44 = vpop.permute.xlu0 %1358  ;;  %v7023_v51 = vpop.permute.xlu1 %7022  ;;  %3529 = vmatprep.mubr.f32.mxu0 %v3262_v20  ;;  %v929_v40 = vrot.slane %v9941_v62, 1  ;;  %v13104_v48 = vrot.slane %v9950_v50, 1  ;;  %v3231_v58 = vsel %vm3124_vm3, %v3199_v34, %v7019_v46  ;;  %v3134_v59 = vsel %vm3124_vm3, %v3101_v24, %v7020_v18  ;;  %v6436_v18 = vld [vmem:[%s12861_s1 + $0x850] sm:$0xff]  ;;  %v6438_v46 = vld [vmem:[%s12861_s1 + $0x860] sm:$0xff] }
 0x263   : > { %13574 = vst [vmem:[#allocation238_spill] sm:$0xff] %v10007_v44  ;;  %v7025_v6 = vunpack.i.h.bf16 %v7023_v51  ;;  %v7024_v14 = vunpack.i.l.bf16 %v7023_v51  ;;  %2178 = vperm.xlu0 %6874, %v6435_v16   ;;  %2188 = vperm.xlu1 %6875, %v6437_v19   ;;  %v7166_v12 = vpack.i.bf16 %v1185_v39, %v1860_v21  ;;  %v7181_v20 = vpack.i.bf16 %v1186_v8, %v1861_v26 }
 0x264   : > { %3530 = vmatmul.mubr.f32.gmra.mrb[16].mxu0 %v3166_v13  ;;  %v10028_v33 = vsel %vm940_vm0, %v929_v40, %v13104_v48  ;;  %v13578_v34 = vrot.slane %v9857_v30, 1 }
 0x265   : > { %v3263_v51 = vsel %vm3157_vm4, %v3231_v58, %v7024_v14  ;;  %v3167_v16 = vsel %vm3157_vm4, %v3134_v59, %v7025_v6  ;;  %13577 = vst [vmem:[#allocation241_spill] sm:$0xff] %v10028_v33  ;;  %v1637_v21 = vmul.f32 %v9637_v25, %v10028_v33  ;;  %v13583_v59 = vld [vmem:[#allocation55_spill] sm:$0xff]  ;;  %v10055_v6 = vld [vmem:[%s8792_s28 + $0xb8] sm:$0xff]  ;;  %v10058_v14 = vld [vmem:[%s8792_s28 + $0xc0] sm:$0xff]  ;;  %v2086_v58 = vmul.f32 %v9644_v0, %v9950_v50 }
 0x266   : > { %v10018_v19 = vpop.permute.xlu0 %1588  ;;  %v10020_v42 = vpop.permute.xlu1 %1363  ;;  %3534 = vmatprep.mubr.f32.mxu0 %v3263_v51  ;;  %v10034_v22 = vsel %vm940_vm0, %v13578_v34, %v929_v40  ;;  %v896_v8 = vmul.f32 %v13583_v59, %v9747_v2  ;;  %v1411_v2 = vmul.f32 %v9625_v47, %v9894_v49  ;;  %v415_v34 = vrot.slane %v10055_v6, 7  ;;  %v13589_v25 = vld [vmem:[#allocation86_spill] sm:$0xff]  ;;  %v13590_v47 = vld [vmem:[#allocation89_spill] sm:$0xff] }
 0x267   : > { %13575 = vst [vmem:[#allocation239_spill] sm:$0xff] %v10018_v19  ;;  %13576 = vst [vmem:[#allocation240_spill] sm:$0xff] %v10020_v42  ;;  %7167 = vrot.lane.b32.xlu0 %v7166_v12, %s7909_s22  ;;  %7182 = vrot.lane.b32.xlu1 %v7181_v20, %s7909_s22  ;;  %v1636_v56 = vmul.f32 %v9623_v32, %v10034_v22  ;;  %v13582_v12 = vld [vmem:[#allocation54_spill] sm:$0xff]  ;;  %v1412_v20 = vmul.f32 %v9717_v41, %v9974_v10  ;;  %v13592_v0 = vld [vmem:[#allocation13_spill] sm:$0xff] }
 0x268   : > { %13579 = vst [vmem:[#allocation242_spill] sm:$0xff] %v10034_v22  ;;  %3535 = vmatmul.mubr.f32.gmra.mrb[18].mxu0 %v3167_v16  ;;  %v897_v39 = vmul.f32 %v13582_v12, %v9854_v55  ;;  %v2087_v16 = vmul.f32 %v9658_v27, %v10055_v6  ;;  %v1187_v41 = vmul.f32 %v13589_v25, %v9926_v52  ;;  %v13594_v12 = vrot.slane %v9950_v50, 1 }
 0x269   : > { %v7176_v24 = vpack.i.bf16 %v896_v8, %v1636_v56  ;;  %v13587_v8 = vrot.slane %v9950_v50, 7  ;;  %v1188_v27 = vmul.f32 %v13590_v47, %v10034_v22  ;;  %v7842_v22 = vld [vmem:[%s8792_s28 + $0x50] sm:$0xff] }
 0x26a   : > { %v10046_v26 = vpop.permute.xlu0 %1813  ;;  %v10048_v13 = vpop.permute.xlu1 %1593  ;;  %v7191_v40 = vpack.i.bf16 %v897_v39, %v1637_v21  ;;  %v7201_v56 = vpack.i.bf16 %v1412_v20, %v2087_v16  ;;  %v6441_v20 = vld [vmem:[%s12861_s1 + $0x878] sm:$0xff]  ;;  %v13591_v16 = vld [vmem:[#allocation175_spill] sm:$0xff] }
 0x26b   : > { %13580 = vst [vmem:[#allocation243_spill] sm:$0xff] %v10046_v26  ;;  %13581 = vst [vmem:[#allocation244_spill] sm:$0xff] %v10048_v13  ;;  %2183 = vperm.xlu0 %6874, %v6436_v18   ;;  %2193 = vperm.xlu1 %6875, %v6438_v46   ;;  %v13103_v18 = vrot.slane %v10058_v14, 7  ;;  %v7186_v46 = vpack.i.bf16 %v1411_v2, %v2086_v58  ;;  %v6439_v58 = vld [vmem:[%s12861_s1 + $0x868] sm:$0xff]  ;;  %v931_v2 = vrot.slane %v10055_v6, 1 }
 0x26c   : > { %v661_v32 = vmul.f32 %v13592_v0, %v13591_v16 }
 0x26d   : > { %v10120_v25 = vsel %vm940_vm0, %v13594_v12, %v931_v2 }
 0x26e   : > { %v10064_v51 = vpop.permute.xlu0 %2038  ;;  %v10066_v55 = vpop.permute.xlu1 %1818  ;;  %13595 = vst [vmem:[#allocation175_spill] sm:$0xff] %v10120_v25 }
 0x26f   : > { %13584 = vst [vmem:[#allocation245_spill] sm:$0xff] %v10064_v51  ;;  %13585 = vst [vmem:[#allocation246_spill] sm:$0xff] %v10066_v55  ;;  %7177 = vrot.lane.b32.xlu0 %v7176_v24, %s7908_s21  ;;  %7192 = vrot.lane.b32.xlu1 %v7191_v40, %s7908_s21  ;;  %v10084_v24 = vsel %vm426_vm1, %v13587_v8, %v415_v34  ;;  %v10090_v40 = vsel %vm426_vm1, %v415_v34, %v13103_v18 }
 0x270   : > { %13588 = vst [vmem:[#allocation248_spill] sm:$0xff] %v10084_v24 }
 0x272   : > { %v7028_v21 = vpop.permute.xlu0 %7027  ;;  %v10076_v39 = vpop.permute.xlu1 %2043 }
 0x273   : > { %13586 = vst [vmem:[#allocation247_spill] sm:$0xff] %v10076_v39  ;;  %7187 = vrot.lane.b32.xlu0 %v7186_v46, %s7910_s23  ;;  %7202 = vrot.lane.b32.xlu1 %v7201_v56, %s7910_s23  ;;  %v1862_v46 = vmul.f32 %v9646_v5, %v10084_v24  ;;  %v1863_v56 = vmul.f32 %v9753_v31, %v10090_v40  ;;  %v7030_v34 = vunpack.i.h.bf16 %v7028_v21  ;;  %v7029_v8 = vunpack.i.l.bf16 %v7028_v21 }
 0x274   : > { %v13593_v31 = vrot.slane %v10058_v14, 1 }
 0x275   : > { %v7196_v47 = vpack.i.bf16 %v1187_v41, %v1862_v46  ;;  %v3102_v10 = vsel %vm3091_vm2, %v661_v32, %v7030_v34  ;;  %v6440_v46 = vld [vmem:[%s12861_s1 + $0x870] sm:$0xff]  ;;  %v6442_v32 = vld [vmem:[%s12861_s1 + $0x880] sm:$0xff] }
 0x276   : > { %v7033_v18 = vpop.permute.xlu0 %7032  ;;  %v7043_v48 = vpop.permute.xlu1 %7042  ;;  %v10114_v21 = vsel %vm940_vm0, %v931_v2, %v13593_v31  ;;  %v3200_v31 = vsel %vm3091_vm2, %v7842_v22, %v7029_v8  ;;  %v13596_v22 = vld [vmem:[#allocation179_spill] sm:$0xff] }
 0x277   : > { %2198 = vperm.xlu0 %6874, %v6439_v58   ;;  %2208 = vperm.xlu1 %6875, %v6441_v20   ;;  %v7035_v5 = vunpack.i.h.bf16 %v7033_v18  ;;  %v7034_v59 = vunpack.i.l.bf16 %v7033_v18  ;;  %v7211_v58 = vpack.i.bf16 %v1188_v27, %v1863_v56  ;;  %v1638_v20 = vmul.f32 %v9736_v53, %v10120_v25  ;;  %v13597_v56 = vld [vmem:[#allocation12_spill] sm:$0xff] }
 0x278   : > { %v1639_v18 = vmul.f32 %v9755_v43, %v10114_v21  ;;  %v7045_v52 = vunpack.i.h.bf16 %v7043_v48  ;;  %v7044_v49 = vunpack.i.l.bf16 %v7043_v48  ;;  %v10158_v53 = vld [vmem:[%s8792_s28 + $0xd0] sm:$0xff] }
 0x279   : > { %v3232_v2 = vsel %vm3124_vm3, %v3200_v31, %v7034_v59  ;;  %v3135_v48 = vsel %vm3124_vm3, %v3102_v10, %v7035_v5  ;;  %v13598_v59 = vld [vmem:[#allocation56_spill] sm:$0xff] }
 0x27a   : > { %v7038_v16 = vpop.permute.xlu0 %7037  ;;  %v7048_v0 = vpop.permute.xlu1 %7047  ;;  %v899_v8 = vmul.f32 %v13598_v59, %v9941_v62 }
 0x27b   : > { %v7040_v17 = vunpack.i.h.bf16 %v7038_v16  ;;  %v7039_v12 = vunpack.i.l.bf16 %v7038_v16  ;;  %7197 = vrot.lane.b32.xlu0 %v7196_v47, %s7909_s22  ;;  %7212 = vrot.lane.b32.xlu1 %v7211_v58, %s7909_s22  ;;  %v7050_v27 = vunpack.i.h.bf16 %v7048_v0  ;;  %v7049_v41 = vunpack.i.l.bf16 %v7048_v0  ;;  %v13599_v58 = vld [vmem:[#allocation57_spill] sm:$0xff] }
 0x27c   : > { %v662_v47 = vmul.f32 %v13597_v56, %v13596_v22  ;;  %v898_v16 = vmul.f32 %v13599_v58, %v9857_v30  ;;  %v7843_v22 = vld [vmem:[%s8792_s28 + $0x58] sm:$0xff]  ;;  %v7221_v62 = vpack.i.bf16 %v899_v8, %v1639_v18  ;;  %v10155_v56 = vld [vmem:[%s8792_s28 + $0xc8] sm:$0xff]  ;;  %v13616_v58 = vld [vmem:[#allocation192_spill] sm:$0xff] }
 0x27d   : > { %v3264_v34 = vsel %vm3157_vm4, %v3232_v2, %v7039_v12  ;;  %v3168_v0 = vsel %vm3157_vm4, %v3135_v48, %v7040_v17  ;;  %v3201_v12 = vsel %vm3091_vm2, %v7843_v22, %v7044_v49 }
 0x27e   : > { %v10147_v31 = vpop.permute.xlu0 %1368  ;;  %v7053_v43 = vpop.permute.xlu1 %7052  ;;  %3539 = vmatprep.mubr.f32.mxu0 %v3264_v34  ;;  %v3103_v17 = vsel %vm3091_vm2, %v662_v47, %v7045_v52  ;;  %v7206_v2 = vpack.i.bf16 %v898_v16, %v1638_v20  ;;  %v3233_v30 = vsel %vm3124_vm3, %v3201_v12, %v7049_v41  ;;  %v2089_v41 = vmul.f32 %v9804_v37, %v10155_v56  ;;  %v6443_v12 = vld [vmem:[%s12861_s1 + $0x888] sm:$0xff] }
 0x27f   : > { %13600 = vst [vmem:[#allocation179_spill] sm:$0xff] %v10147_v31  ;;  %v7055_v10 = vunpack.i.h.bf16 %v7053_v43  ;;  %v7054_v5 = vunpack.i.l.bf16 %v7053_v43  ;;  %2203 = vperm.xlu0 %6874, %v6440_v46   ;;  %2213 = vperm.xlu1 %6875, %v6442_v32   ;;  %v3136_v48 = vsel %vm3124_vm3, %v3103_v17, %v7050_v27  ;;  %v2088_v43 = vmul.f32 %v9770_v7, %v10058_v14  ;;  %v6445_v17 = vld [vmem:[%s12861_s1 + $0x898] sm:$0xff]  ;;  %v13613_v7 = vld [vmem:[#allocation59_spill] sm:$0xff] }
 0x280   : > { %3540 = vmatmul.mubr.f32.gmra.mrb[20].mxu0 %v3168_v0  ;;  %v1414_v46 = vmul.f32 %v9865_v4, %v10084_v24  ;;  %v1413_v27 = vmul.f32 %v9738_v36, %v9982_v15  ;;  %v417_v32 = vrot.slane %v10155_v56, 7  ;;  %v13120_v47 = vrot.slane %v10158_v53, 7  ;;  %v13615_v36 = vld [vmem:[#allocation14_spill] sm:$0xff] }
 0x281   : > { %v3265_v49 = vsel %vm3157_vm4, %v3233_v30, %v7054_v5  ;;  %v3169_v52 = vsel %vm3157_vm4, %v3136_v48, %v7055_v10  ;;  %v13605_v10 = vrot.slane %v10058_v14, 7  ;;  %v900_v4 = vmul.f32 %v13613_v7, %v9950_v50 }
 0x282   : > { %v10166_v20 = vpop.permute.xlu0 %1598  ;;  %v10168_v18 = vpop.permute.xlu1 %1373  ;;  %3544 = vmatprep.mubr.f32.mxu0 %v3265_v49  ;;  %v7216_v34 = vpack.i.bf16 %v1413_v27, %v2088_v43  ;;  %v7231_v0 = vpack.i.bf16 %v1414_v46, %v2089_v41  ;;  %v10194_v22 = vsel %vm426_vm1, %v417_v32, %v13120_v47  ;;  %v13608_v43 = vld [vmem:[#allocation88_spill] sm:$0xff]  ;;  %v13609_v49 = vld [vmem:[#allocation91_spill] sm:$0xff]  ;;  %v933_v27 = vrot.slane %v10155_v56, 1  ;;  %v10219_v47 = vld [vmem:[%s8792_s28 + $0xd8] sm:$0xff] }
 0x283   : > { %13601 = vst [vmem:[#allocation249_spill] sm:$0xff] %v10166_v20  ;;  %13602 = vst [vmem:[#allocation250_spill] sm:$0xff] %v10168_v18  ;;  %7207 = vrot.lane.b32.xlu0 %v7206_v2, %s7908_s21  ;;  %7222 = vrot.lane.b32.xlu1 %v7221_v62, %s7908_s21  ;;  %v10188_v5 = vsel %vm426_vm1, %v13605_v10, %v417_v32  ;;  %v1865_v62 = vmul.f32 %v9906_v57, %v10194_v22  ;;  %v13122_v41 = vrot.slane %v10158_v53, 1  ;;  %v10224_v57 = vld [vmem:[%s8792_s28 + $0xe0] sm:$0xff] }
 0x284   : > { %3545 = vmatmul.mubr.f32.gmra.mrb[22].mxu0 %v3169_v52  ;;  %v1864_v2 = vmul.f32 %v9772_v54, %v10188_v5  ;;  %v1189_v46 = vmul.f32 %v13608_v43, %v10028_v33  ;;  %v1190_v52 = vmul.f32 %v13609_v49, %v10120_v25  ;;  %v13612_v54 = vld [vmem:[#allocation58_spill] sm:$0xff]  ;;  %v1415_v50 = vmul.f32 %v9880_v63, %v10090_v40 }
 0x285   : > { %v901_v37 = vmul.f32 %v13612_v54, %v10055_v6  ;;  %v1416_v6 = vmul.f32 %v10007_v44, %v10188_v5 }
 0x286   : > { %v10178_v8 = vpop.permute.xlu0 %1823  ;;  %v10180_v16 = vpop.permute.xlu1 %1603  ;;  %v7226_v32 = vpack.i.bf16 %v1189_v46, %v1864_v2  ;;  %v6446_v46 = vld [vmem:[%s12861_s1 + $0x8a0] sm:$0xff] }
 0x287   : > { %13603 = vst [vmem:[#allocation251_spill] sm:$0xff] %v10178_v8  ;;  %13604 = vst [vmem:[#allocation252_spill] sm:$0xff] %v10180_v16  ;;  %7217 = vrot.lane.b32.xlu0 %v7216_v34, %s7910_s23  ;;  %7232 = vrot.lane.b32.xlu1 %v7231_v0, %s7910_s23  ;;  %v7241_v34 = vpack.i.bf16 %v1190_v52, %v1865_v62  ;;  %v6444_v62 = vld [vmem:[%s12861_s1 + $0x890] sm:$0xff] }
 0x28a   : > { %v10206_v30 = vpop.permute.xlu0 %2048  ;;  %v10208_v48 = vpop.permute.xlu1 %1828 }
 0x28b   : > { %13606 = vst [vmem:[#allocation253_spill] sm:$0xff] %v10206_v30  ;;  %13607 = vst [vmem:[#allocation254_spill] sm:$0xff] %v10208_v48  ;;  %2218 = vperm.xlu0 %6874, %v6443_v12   ;;  %2228 = vperm.xlu1 %6875, %v6445_v17   ;;  %v10230_v12 = vsel %vm940_vm0, %v933_v27, %v13122_v41  ;;  %v13611_v17 = vrot.slane %v10058_v14, 1 }
 0x28d   : > { %v10236_v2 = vsel %vm940_vm0, %v13611_v17, %v933_v27  ;;  %v419_v27 = vrot.slane %v10219_v47, 7  ;;  %v2090_v17 = vmul.f32 %v9916_v35, %v10158_v53 }
 0x28e   : > { %v7058_v0 = vpop.permute.xlu0 %7057  ;;  %v10216_v10 = vpop.permute.xlu1 %2053  ;;  %v1640_v52 = vmul.f32 %v9878_v29, %v10236_v2  ;;  %v13614_v29 = vld [vmem:[#allocation197_spill] sm:$0xff] }
 0x28f   : > { %13610 = vst [vmem:[#allocation255_spill] sm:$0xff] %v10216_v10  ;;  %7227 = vrot.lane.b32.xlu0 %v7226_v32, %s7909_s22  ;;  %7242 = vrot.lane.b32.xlu1 %v7241_v34, %s7909_s22  ;;  %v1641_v32 = vmul.f32 %v9908_v61, %v10230_v12  ;;  %v7060_v34 = vunpack.i.h.bf16 %v7058_v0  ;;  %v7059_v41 = vunpack.i.l.bf16 %v7058_v0  ;;  %v664_v61 = vmul.f32 %v13615_v36, %v13614_v29  ;;  %v13617_v0 = vld [vmem:[#allocation15_spill] sm:$0xff]  ;;  %v7844_v36 = vld [vmem:[%s8792_s28 + $0x60] sm:$0xff] }
 0x290   : > { %v663_v59 = vmul.f32 %v13617_v0, %v13616_v58  ;;  %v7236_v25 = vpack.i.bf16 %v900_v4, %v1640_v52  ;;  %v7246_v35 = vpack.i.bf16 %v1415_v50, %v2090_v17  ;;  %v13619_v17 = vrot.slane %v10158_v53, 7 }
 0x291   : > { %v7251_v33 = vpack.i.bf16 %v901_v37, %v1641_v32  ;;  %v3202_v58 = vsel %vm3091_vm2, %v7844_v36, %v7059_v41 }
 0x292   : > { %v7063_v49 = vpop.permute.xlu0 %7062  ;;  %v7073_v43 = vpop.permute.xlu1 %7072  ;;  %v3104_v4 = vsel %vm3091_vm2, %v663_v59, %v7060_v34 }
 0x293   : > { %2223 = vperm.xlu0 %6874, %v6444_v62   ;;  %2233 = vperm.xlu1 %6875, %v6446_v46   ;;  %v7065_v24 = vunpack.i.h.bf16 %v7063_v49  ;;  %v7064_v15 = vunpack.i.l.bf16 %v7063_v49  ;;  %v2091_v62 = vmul.f32 %v9947_v38, %v10219_v47  ;;  %v7075_v37 = vunpack.i.h.bf16 %v7073_v43 }
 0x294   : > { %v7074_v49 = vunpack.i.l.bf16 %v7073_v43 }
 0x295   : > { %v3234_v38 = vsel %vm3124_vm3, %v3202_v58, %v7064_v15  ;;  %v3137_v54 = vsel %vm3124_vm3, %v3104_v4, %v7065_v24  ;;  %v7261_v63 = vpack.i.bf16 %v1416_v6, %v2091_v62  ;;  %v3105_v24 = vsel %vm3091_vm2, %v664_v61, %v7075_v37  ;;  %v6449_v61 = vld [vmem:[%s12861_s1 + $0x8b8] sm:$0xff]  ;;  %v13623_v4 = vld [vmem:[#allocation90_spill] sm:$0xff] }
 0x296   : > { %v7068_v29 = vpop.permute.xlu0 %7067  ;;  %v7078_v46 = vpop.permute.xlu1 %7077  ;;  %v1191_v37 = vmul.f32 %v13623_v4, %v10114_v21 }
 0x297   : > { %v7070_v52 = vunpack.i.h.bf16 %v7068_v29  ;;  %v7069_v32 = vunpack.i.l.bf16 %v7068_v29  ;;  %7237 = vrot.lane.b32.xlu0 %v7236_v25, %s7908_s21  ;;  %7252 = vrot.lane.b32.xlu1 %v7251_v33, %s7908_s21  ;;  %v7080_v0 = vunpack.i.h.bf16 %v7078_v46  ;;  %v7079_v44 = vunpack.i.l.bf16 %v7078_v46  ;;  %v7845_v33 = vld [vmem:[%s8792_s28 + $0x68] sm:$0xff] }
 0x298   : > { %v3203_v15 = vsel %vm3091_vm2, %v7845_v33, %v7074_v49  ;;  %v13627_v33 = vrot.slane %v10158_v53, 1 }
 0x299   : > { %v3266_v36 = vsel %vm3157_vm4, %v3234_v38, %v7069_v32  ;;  %v3170_v59 = vsel %vm3157_vm4, %v3137_v54, %v7070_v52  ;;  %v10286_v54 = vsel %vm426_vm1, %v13619_v17, %v419_v27  ;;  %v13620_v38 = vrot.slane %v10224_v57, 7  ;;  %v6450_v17 = vld [vmem:[%s12861_s1 + $0x8c0] sm:$0xff] }
 0x29a   : > { %v10275_v43 = vpop.permute.xlu0 %1378  ;;  %v7083_v41 = vpop.permute.xlu1 %7082  ;;  %3549 = vmatprep.mubr.f32.mxu0 %v3266_v36  ;;  %v3138_v50 = vsel %vm3124_vm3, %v3105_v24, %v7080_v0  ;;  %v1866_v62 = vmul.f32 %v9918_v60, %v10286_v54  ;;  %v13624_v0 = vld [vmem:[#allocation93_spill] sm:$0xff]  ;;  %v935_v52 = vrot.slane %v10219_v47, 1  ;;  %v13138_v32 = vrot.slane %v10224_v57, 1  ;;  %v6448_v24 = vld [vmem:[%s12861_s1 + $0x8b0] sm:$0xff] }
 0x29b   : > { %13618 = vst [vmem:[#allocation197_spill] sm:$0xff] %v10275_v43  ;;  %v7085_v25 = vunpack.i.h.bf16 %v7083_v41  ;;  %v7084_v34 = vunpack.i.l.bf16 %v7083_v41  ;;  %7247 = vrot.lane.b32.xlu0 %v7246_v35, %s7910_s23  ;;  %7262 = vrot.lane.b32.xlu1 %v7261_v63, %s7910_s23  ;;  %v10292_v6 = vsel %vm426_vm1, %v419_v27, %v13620_v38  ;;  %v3235_v63 = vsel %vm3124_vm3, %v3203_v15, %v7079_v44  ;;  %v6447_v35 = vld [vmem:[%s12861_s1 + $0x8a8] sm:$0xff]  ;;  %v13660_v60 = vld [vmem:[#allocation64_spill] sm:$0xff] }
 0x29c   : > { %3550 = vmatmul.mubr.f32.gmra.mrb[24].mxu0 %v3170_v59  ;;  %v1867_v27 = vmul.f32 %v10046_v26, %v10292_v6  ;;  %v1192_v49 = vmul.f32 %v13624_v0, %v10236_v2  ;;  %v7256_v36 = vpack.i.bf16 %v1191_v37, %v1866_v62  ;;  %v10334_v15 = vsel %vm940_vm0, %v13627_v33, %v935_v52  ;;  %v7847_v26 = vld [vmem:[%s8792_s28 + $0x70] sm:$0xff] }
 0x29d   : > { %v3267_v29 = vsel %vm3157_vm4, %v3235_v63, %v7084_v34  ;;  %v3171_v44 = vsel %vm3157_vm4, %v3138_v50, %v7085_v25  ;;  %v10328_v34 = vsel %vm940_vm0, %v935_v52, %v13138_v32  ;;  %v1642_v38 = vmul.f32 %v10018_v19, %v10334_v15  ;;  %v13630_v50 = vld [vmem:[#allocation60_spill] sm:$0xff]  ;;  %v13634_v32 = vld [vmem:[#allocation194_spill] sm:$0xff] }
 0x29e   : > { %v10308_v46 = vpop.permute.xlu0 %1608  ;;  %v10310_v58 = vpop.permute.xlu1 %1383  ;;  %3554 = vmatprep.mubr.f32.mxu0 %v3267_v29  ;;  %v7271_v59 = vpack.i.bf16 %v1192_v49, %v1867_v27  ;;  %v1643_v63 = vmul.f32 %v10048_v13, %v10328_v34  ;;  %v903_v62 = vmul.f32 %v13630_v50, %v10155_v56  ;;  %v13631_v27 = vld [vmem:[#allocation61_spill] sm:$0xff]  ;;  %v2092_v49 = vmul.f32 %v10064_v51, %v10224_v57  ;;  %v10363_v56 = vld [vmem:[%s8792_s28 + $0xe8] sm:$0xff] }
 0x29f   : > { %13621 = vst [vmem:[#allocation192_spill] sm:$0xff] %v10308_v46  ;;  %13622 = vst [vmem:[#allocation256_spill] sm:$0xff] %v10310_v58  ;;  %2238 = vperm.xlu0 %6874, %v6447_v35   ;;  %2248 = vperm.xlu1 %6875, %v6449_v61   ;;  %v902_v29 = vmul.f32 %v13631_v27, %v10058_v14  ;;  %v1418_v52 = vmul.f32 %v10147_v31, %v10286_v54  ;;  %v13635_v31 = vrot.slane %v13634_v32, 7 }
 0x2a0   : > { %3555 = vmatmul.mubr.f32.gmra.mrb[26].mxu0 %v3171_v44  ;;  %v7281_v37 = vpack.i.bf16 %v903_v62, %v1643_v63  ;;  %v1417_v33 = vmul.f32 %v10020_v42, %v10194_v22  ;;  %v2093_v14 = vmul.f32 %v10363_v56, %v10076_v39  ;;  %v13636_v50 = vrot.slane %v10224_v57, 7 }
 0x2a1   : > { %v7266_v44 = vpack.i.bf16 %v902_v29, %v1642_v38 }
 0x2a2   : > { %v10318_v41 = vpop.permute.xlu0 %1833  ;;  %v10320_v25 = vpop.permute.xlu1 %1613 }
 0x2a3   : > { %13625 = vst [vmem:[#allocation257_spill] sm:$0xff] %v10318_v41  ;;  %13626 = vst [vmem:[#allocation258_spill] sm:$0xff] %v10320_v25  ;;  %7257 = vrot.lane.b32.xlu0 %v7256_v36, %s7909_s22  ;;  %7272 = vrot.lane.b32.xlu1 %v7271_v59, %s7909_s22 }
 0x2a6   : > { %v10346_v35 = vpop.permute.xlu0 %2058  ;;  %v10348_v61 = vpop.permute.xlu1 %1838 }
 0x2a7   : > { %13628 = vst [vmem:[#allocation259_spill] sm:$0xff] %v10346_v35  ;;  %13629 = vst [vmem:[#allocation260_spill] sm:$0xff] %v10348_v61  ;;  %2243 = vperm.xlu0 %6874, %v6448_v24   ;;  %2253 = vperm.xlu1 %6875, %v6450_v17   ;;  %v7276_v24 = vpack.i.bf16 %v1417_v33, %v2092_v49  ;;  %v7291_v17 = vpack.i.bf16 %v1418_v52, %v2093_v14  ;;  %v6451_v52 = vld [vmem:[%s12861_s1 + $0x8c8] sm:$0xff]  ;;  %v13637_v33 = vld [vmem:[#allocation17_spill] sm:$0xff] }
 0x2a8   : > { %v665_v32 = vmul.f32 %v13637_v33, %v9468_v45 }
 0x2aa   : > { %v7088_v36 = vpop.permute.xlu0 %7087  ;;  %v10358_v59 = vpop.permute.xlu1 %2063 }
 0x2ab   : > { %13632 = vst [vmem:[#allocation261_spill] sm:$0xff] %v10358_v59  ;;  %7267 = vrot.lane.b32.xlu0 %v7266_v44, %s7908_s21  ;;  %7282 = vrot.lane.b32.xlu1 %v7281_v37, %s7908_s21  ;;  %v7090_v62 = vunpack.i.h.bf16 %v7088_v36  ;;  %v7089_v29 = vunpack.i.l.bf16 %v7088_v36  ;;  %v10379_v44 = vsel %vm426_vm1, %v13636_v50, %v13635_v31  ;;  %v6453_v36 = vld [vmem:[%s12861_s1 + $0x8d8] sm:$0xff]  ;;  %v13639_v50 = vld [vmem:[#allocation92_spill] sm:$0xff] }
 0x2ac   : > { %v1868_v14 = vmul.f32 %v10066_v55, %v10379_v44  ;;  %v937_v55 = vrot.slane %v10363_v56, 1 }
 0x2ad   : > { %v3204_v45 = vsel %vm3091_vm2, %v7847_v26, %v7089_v29  ;;  %v3106_v33 = vsel %vm3091_vm2, %v665_v32, %v7090_v62  ;;  %v13641_v26 = vld [vmem:[#allocation135_spill] sm:$0xff]  ;;  %v13642_v29 = vld [vmem:[#allocation110_spill] sm:$0xff] }
 0x2ae   : > { %v7093_v38 = vpop.permute.xlu0 %7092  ;;  %v10369_v63 = vpop.permute.xlu1 %1388 }
 0x2af   : > { %13633 = vst [vmem:[#allocation262_spill] sm:$0xff] %v10369_v63  ;;  %7277 = vrot.lane.b32.xlu0 %v7276_v24, %s7910_s23  ;;  %7292 = vrot.lane.b32.xlu1 %v7291_v17, %s7910_s23  ;;  %v7095_v37 = vunpack.i.h.bf16 %v7093_v38  ;;  %v7094_v49 = vunpack.i.l.bf16 %v7093_v38  ;;  %v13638_v24 = vld [vmem:[#allocation199_spill] sm:$0xff]  ;;  %v1193_v17 = vmul.f32 %v13639_v50, %v10230_v12 }
 0x2b0   : > { %v1869_v31 = vmul.f32 %v10178_v8, %v13638_v24  ;;  %v13640_v38 = vld [vmem:[#allocation95_spill] sm:$0xff] }
 0x2b1   : > { %v1194_v39 = vmul.f32 %v13640_v38, %v10334_v15  ;;  %v3236_v8 = vsel %vm3124_vm3, %v3204_v45, %v7094_v49  ;;  %v3139_v50 = vsel %vm3124_vm3, %v3106_v33, %v7095_v37  ;;  %v7286_v27 = vpack.i.bf16 %v1193_v17, %v1868_v14  ;;  %v13645_v33 = vld [vmem:[#allocation62_spill] sm:$0xff]  ;;  %v13646_v14 = vld [vmem:[#allocation63_spill] sm:$0xff] }
 0x2b2   : > { %v7098_v13 = vpop.permute.xlu0 %7097  ;;  %v7103_v42 = vpop.permute.xlu1 %7102  ;;  %v13643_v49 = vrot.slane %v13642_v29, 1  ;;  %v905_v32 = vmul.f32 %v13645_v33, %v10219_v47  ;;  %v7850_v33 = vld [vmem:[%s8792_s28 + $0x78] sm:$0xff] }
 0x2b3   : > { %v7100_v0 = vunpack.i.h.bf16 %v7098_v13  ;;  %v7099_v51 = vunpack.i.l.bf16 %v7098_v13  ;;  %2258 = vperm.xlu0 %6874, %v6451_v52   ;;  %2268 = vperm.xlu1 %6875, %v6453_v36   ;;  %v7301_v19 = vpack.i.bf16 %v1194_v39, %v1869_v31  ;;  %v904_v31 = vmul.f32 %v13646_v14, %v10158_v53 }
 0x2b4   : > { %v10415_v39 = vsel %vm940_vm0, %v937_v55, %v13643_v49  ;;  %v7105_v45 = vunpack.i.h.bf16 %v7103_v42  ;;  %v10447_v49 = vld [vmem:[%s8792_s28 + $0xf0] sm:$0xff]  ;;  %v1420_v53 = vmul.f32 %v10275_v43, %v10379_v44 }
 0x2b5   : > { %v3268_v38 = vsel %vm3157_vm4, %v3236_v8, %v7099_v51  ;;  %v3172_v4 = vsel %vm3157_vm4, %v3139_v50, %v7100_v0  ;;  %v13644_v51 = vrot.slane %v10224_v57, 1  ;;  %v6454_v0 = vld [vmem:[%s12861_s1 + $0x8e0] sm:$0xff]  ;;  %v1645_v37 = vmul.f32 %v10180_v16, %v10415_v39  ;;  %v13647_v50 = vld [vmem:[#allocation140_spill] sm:$0xff] }
 0x2b6   : > { %v10405_v13 = vpop.permute.xlu0 %2133  ;;  %v7113_v52 = vpop.permute.xlu1 %7112  ;;  %3559 = vmatprep.mubr.f32.mxu0 %v3268_v38  ;;  %v2094_v47 = vmul.f32 %v10447_v49, %v10206_v30 }
 0x2b7   : > { %7287 = vrot.lane.b32.xlu0 %v7286_v27, %s7909_s22  ;;  %7302 = vrot.lane.b32.xlu1 %v7301_v19, %s7909_s22  ;;  %v2291_v62 = vmul.f32 %v10405_v13, %v13641_v26  ;;  %v10421_v8 = vsel %vm940_vm0, %v13644_v51, %v937_v55  ;;  %v6452_v19 = vld [vmem:[%s12861_s1 + $0x8d0] sm:$0xff]  ;;  %v7104_v26 = vunpack.i.l.bf16 %v7103_v42  ;;  %v7311_v29 = vpack.i.bf16 %v905_v32, %v1645_v37 }
 0x2b8   : > { %3560 = vmatmul.mubr.f32.gmra.mrb[28].mxu0 %v3172_v4  ;;  %v1644_v27 = vmul.f32 %v10166_v20, %v10421_v8  ;;  %v13648_v51 = vld [vmem:[#allocation204_spill] sm:$0xff]  ;;  %v1419_v42 = vmul.f32 %v10168_v18, %v10292_v6  ;;  %v7114_v43 = vunpack.i.l.bf16 %v7113_v52 }
 0x2b9   : > { %v10433_v36 = vpop.f32.mrb[0].mxu0  ;;  %6617 = vmatprep.mubr.msk.f32.mxu1 %vm3091_vm2, %v2291_v62 }
 0x2ba   : > { %v10436_v55 = vpop.permute.xlu0 %2138  ;;  %v3493_v4 = vpop.f32.mrb[1].mxu0  ;;  %v7296_v62 = vpack.i.bf16 %v904_v31, %v1644_v27  ;;  %v7306_v16 = vpack.i.bf16 %v1419_v42, %v2094_v47  ;;  %v13652_v47 = vld [vmem:[#allocation158_spill] sm:$0xff]  ;;  %v13655_v42 = vld [vmem:[#allocation172_spill] sm:$0xff] }
 0x2bb   : > { %v2292_v17 = vmul.f32 %v10436_v55, %v13647_v50  ;;  %v10444_v38 = vpop.permute.xlu1 %2148  ;;  %2263 = vperm.xlu0 %6874, %v6452_v19   ;;  %2273 = vperm.xlu1 %6875, %v6454_v0   ;;  %v13649_v4 = vld [vmem:[#allocation16_spill] sm:$0xff]  ;;  %v10459_v0 = vld [vmem:[%s8792_s28 + $0xf8] sm:$0xff] }
 0x2bc   : > { %v666_v50 = vmul.f32 %v13649_v4, %v13648_v51  ;;  %v2095_v27 = vmul.f32 %v10459_v0, %v10216_v10  ;;  %v3205_v51 = vsel %vm3091_vm2, %v7850_v33, %v7104_v26 }
 0x2bd   : > { %6618 = vmatmul.mubr.msk.f32.vlgmr.msra.gmra.mrb[0].mxu1 %vm3091_vm2, %v2292_v17  ;;  %v7115_v17 = vunpack.i.h.bf16 %v7113_v52 }
 0x2be   : > { %v7108_v19 = vpop.permute.xlu0 %7107  ;;  %v3107_v4 = vsel %vm3091_vm2, %v666_v50, %v7105_v45  ;;  %v7321_v18 = vpack.i.bf16 %v1420_v53, %v2095_v27  ;;  %v13651_v45 = vld [vmem:[#allocation201_spill] sm:$0xff]  ;;  %v2294_v53 = vmul.f32 %v10444_v38, %v13652_v47 }
 0x2bf   : > { %v7110_v37 = vunpack.i.h.bf16 %v7108_v19  ;;  %v7109_v32 = vunpack.i.l.bf16 %v7108_v19  ;;  %v7123_v31 = vpop.permute.xlu1 %7122  ;;  %7297 = vrot.lane.b32.xlu0 %v7296_v62, %s7908_s21  ;;  %7312 = vrot.lane.b32.xlu1 %v7311_v29, %s7908_s21  ;;  %v13650_v29 = vld [vmem:[#allocation154_spill] sm:$0xff]  ;;  %v1870_v26 = vmul.f32 %v10208_v48, %v13651_v45 }
 0x2c0   : > { %v7124_v48 = vunpack.i.l.bf16 %v7123_v31 }
 0x2c1   : > { %v3237_v30 = vsel %vm3124_vm3, %v3205_v51, %v7109_v32  ;;  %v3140_v10 = vsel %vm3124_vm3, %v3107_v4, %v7110_v37  ;;  %v13653_v4 = vld [vmem:[#allocation121_spill] sm:$0xff]  ;;  %v13656_v32 = vld [vmem:[#allocation212_spill] sm:$0xff] }
 0x2c2   : > { %v10470_v14 = vpop.permute.xlu0 %2143  ;;  %v3269_v19 = vsel %vm3157_vm4, %v3237_v30, %v7114_v43  ;;  %v3173_v62 = vsel %vm3157_vm4, %v3140_v10, %v7115_v17  ;;  %v6455_v10 = vld [vmem:[%s12861_s1 + $0x8e8] sm:$0xff]  ;;  %v6457_v43 = vld [vmem:[%s12861_s1 + $0x8f8] sm:$0xff] }
 0x2c3   : > { %v2293_v52 = vmul.f32 %v10470_v14, %v13650_v29  ;;  %v10476_v20 = vpop.permute.xlu1 %2153  ;;  %v10478_v33 = vpop.f32.mrb[2].mxu0  ;;  %7307 = vrot.lane.b32.xlu0 %v7306_v16, %s7910_s23  ;;  %7322 = vrot.lane.b32.xlu1 %v7321_v18, %s7910_s23  ;;  %v1871_v16 = vmul.f32 %v10318_v41, %v13653_v4  ;;  %v13654_v18 = vld [vmem:[#allocation94_spill] sm:$0xff]  ;;  %v13657_v17 = vld [vmem:[#allocation19_spill] sm:$0xff]  ;;  %v13659_v41 = vld [vmem:[#allocation120_spill] sm:$0xff] }
 0x2c4   : > { %v3498_v30 = vpop.f32.mrb[3].mxu0  ;;  %3564 = vmatprep.mubr.f32.mxu0 %v3269_v19  ;;  %v1195_v50 = vmul.f32 %v13654_v18, %v10328_v34  ;;  %v2295_v27 = vmul.f32 %v10476_v20, %v13655_v42  ;;  %v667_v51 = vmul.f32 %v13657_v17, %v13656_v32  ;;  %v13658_v19 = vld [vmem:[#allocation97_spill] sm:$0xff]  ;;  %v1647_v42 = vmul.f32 %v10320_v25, %v13659_v41  ;;  %v7851_v18 = vld [vmem:[%s8792_s28 + $0x80] sm:$0xff] }
 0x2c5   : > { %3565 = vmatmul.mubr.f32.gmra.mrb[30].mxu0 %v3173_v62  ;;  %6620 = vmatprep.mubr.msk.f32.mxu1 %vm3091_vm2, %v2293_v52  ;;  %v1196_v29 = vmul.f32 %v13658_v19, %v10421_v8  ;;  %v7125_v17 = vunpack.i.h.bf16 %v7123_v31  ;;  %v6456_v31 = vld [vmem:[%s12861_s1 + $0x8f0] sm:$0xff] }
 0x2c6   : > { %v7118_v37 = vpop.permute.xlu0 %7117  ;;  %6621 = vmatmul.mubr.msk.f32.gmra.mrb[2].mxu1 %vm3091_vm2, %v2294_v53  ;;  %v7316_v52 = vpack.i.bf16 %v1195_v50, %v1870_v26 }
 0x2c7   : > { %v7120_v47 = vunpack.i.h.bf16 %v7118_v37  ;;  %v7119_v62 = vunpack.i.l.bf16 %v7118_v37  ;;  %v7133_v30 = vpop.permute.xlu1 %7132  ;;  %2278 = vperm.xlu0 %6874, %v6455_v10   ;;  %2288 = vperm.xlu1 %6875, %v6457_v43   ;;  %v7331_v4 = vpack.i.bf16 %v1196_v29, %v1871_v16  ;;  %v907_v37 = vmul.f32 %v10363_v56, %v13660_v60  ;;  %v13661_v16 = vld [vmem:[#allocation116_spill] sm:$0xff] }
 0x2c8   : > { %6623 = vmatprep.mubr.msk.f32.mxu1 %vm3091_vm2, %v2295_v27  ;;  %v1646_v50 = vmul.f32 %v10308_v46, %v13661_v16  ;;  %v13663_v60 = vld [vmem:[#allocation176_spill] sm:$0xff] }
 0x2c9   : > { %v3206_v53 = vsel %vm3091_vm2, %v7851_v18, %v7119_v62  ;;  %v3108_v32 = vsel %vm3091_vm2, %v667_v51, %v7120_v47  ;;  %v7341_v51 = vpack.i.bf16 %v907_v37, %v1647_v42 }
 0x2ca   : > { %v7128_v19 = vpop.permute.xlu0 %7127  ;;  %v3238_v18 = vsel %vm3124_vm3, %v3206_v53, %v7124_v48  ;;  %v3141_v27 = vsel %vm3124_vm3, %v3108_v32, %v7125_v17  ;;  %v13662_v48 = vld [vmem:[#allocation65_spill] sm:$0xff]  ;;  %v7134_v32 = vunpack.i.l.bf16 %v7133_v30 }
 0x2cb   : > { %v7130_v10 = vunpack.i.h.bf16 %v7128_v19  ;;  %v7129_v26 = vunpack.i.l.bf16 %v7128_v19  ;;  %v7143_v43 = vpop.permute.xlu1 %7142  ;;  %7317 = vrot.lane.b32.xlu0 %v7316_v52, %s7909_s22  ;;  %7332 = vrot.lane.b32.xlu1 %v7331_v4, %s7909_s22  ;;  %v1422_v19 = vmul.f32 %v10369_v63, %v13651_v45  ;;  %v906_v52 = vmul.f32 %v13662_v48, %v10224_v57  ;;  %v7852_v4 = vld [vmem:[%s8792_s28 + $0x8] sm:$0xff]  ;;  %v7856_v63 = vld [vmem:[%s8792_s28 + $0x98] sm:$0xff] }
 0x2cc   : > { %v2097_v53 = vmul.f32 %v7852_v4, %v10358_v59  ;;  %v7135_v45 = vunpack.i.h.bf16 %v7133_v30  ;;  %v7145_v30 = vunpack.i.h.bf16 %v7143_v43 }
 0x2cd   : > { %v3270_v29 = vsel %vm3157_vm4, %v3238_v18, %v7129_v26  ;;  %v3174_v47 = vsel %vm3157_vm4, %v3141_v27, %v7130_v10  ;;  %v7326_v37 = vpack.i.bf16 %v906_v52, %v1646_v50  ;;  %v7853_v10 = vld [vmem:[%s8792_s28] sm:$0xff]  ;;  %v13664_v18 = vld [vmem:[#allocation107_spill] sm:$0xff]  ;;  %v7144_v50 = vunpack.i.l.bf16 %v7143_v43  ;;  %v13667_v43 = vld [vmem:[#allocation96_spill] sm:$0xff] }
 0x2ce   : > { %v10525_v62 = vpop.permute.xlu0 %2158  ;;  %3569 = vmatprep.mubr.f32.mxu0 %v3270_v29  ;;  %v2096_v26 = vmul.f32 %v7853_v10, %v10346_v35  ;;  %v7351_v57 = vpack.i.bf16 %v1422_v19, %v2097_v53  ;;  %v13665_v27 = vld [vmem:[#allocation18_spill] sm:$0xff] }
 0x2cf   : > { %v2296_v17 = vmul.f32 %v10525_v62, %v13663_v60  ;;  %v10533_v42 = vpop.permute.xlu1 %2168  ;;  %2283 = vperm.xlu0 %6874, %v6456_v31   ;;  %7342 = vrot.lane.b32.xlu1 %v7341_v51, %s7908_s21  ;;  %v668_v29 = vmul.f32 %v13665_v27, %v13664_v18  ;;  %v1421_v31 = vmul.f32 %v10310_v58, %v13638_v24 }
 0x2d0   : > { %3570 = vmatmul.mubr.f32.gmra.mrb[32].mxu0 %v3174_v47  ;;  %v7854_v47 = vld [vmem:[%s8792_s28 + $0x88] sm:$0xff]  ;;  %v1197_v27 = vmul.f32 %v13667_v43, %v10415_v39 }
 0x2d1   : > { %6624 = vmatmul.mubr.msk.f32.gmra.mrb[4].mxu1 %vm3091_vm2, %v2296_v17  ;;  %v3207_v19 = vsel %vm3091_vm2, %v7854_v47, %v7134_v32  ;;  %v3109_v52 = vsel %vm3091_vm2, %v668_v29, %v7135_v45  ;;  %v7336_v53 = vpack.i.bf16 %v1421_v31, %v2096_v26  ;;  %v13666_v17 = vld [vmem:[#allocation125_spill] sm:$0xff]  ;;  %v13668_v32 = vld [vmem:[#allocation190_spill] sm:$0xff] }
 0x2d2   : > { %v7138_v60 = vpop.permute.xlu0 %7137  ;;  %v1872_v10 = vmul.f32 %v10348_v61, %v13666_v17  ;;  %v13669_v29 = vld [vmem:[#allocation193_spill] sm:$0xff]  ;;  %v13671_v47 = vld [vmem:[#allocation222_spill] sm:$0xff] }
 0x2d3   : > { %v7140_v4 = vunpack.i.h.bf16 %v7138_v60  ;;  %v7139_v51 = vunpack.i.l.bf16 %v7138_v60  ;;  %v7153_v59 = vpop.permute.xlu1 %7152  ;;  %7327 = vrot.lane.b32.xlu0 %v7326_v37, %s7908_s21  ;;  %7352 = vrot.lane.b32.xlu1 %v7351_v57, %s7910_s23  ;;  %v2298_v31 = vmul.f32 %v10533_v42, %v13669_v29 }
 0x2d5   : > { %v3239_v24 = vsel %vm3124_vm3, %v3207_v19, %v7139_v51  ;;  %v3142_v18 = vsel %vm3124_vm3, %v3109_v52, %v7140_v4  ;;  %v7346_v4 = vpack.i.bf16 %v1197_v27, %v1872_v10  ;;  %v13670_v51 = vld [vmem:[#allocation106_spill] sm:$0xff]  ;;  %v13672_v19 = vld [vmem:[#allocation21_spill] sm:$0xff] }
 0x2d6   : > { %v10552_v60 = vpop.permute.xlu0 %2163  ;;  %v3271_v37 = vsel %vm3157_vm4, %v3239_v24, %v7144_v50  ;;  %v3175_v57 = vsel %vm3157_vm4, %v3142_v18, %v7145_v30  ;;  %v669_v52 = vmul.f32 %v13672_v19, %v13671_v47  ;;  %v7855_v18 = vld [vmem:[%s8792_s28 + $0x90] sm:$0xff] }
 0x2d7   : > { %v2297_v45 = vmul.f32 %v10552_v60, %v13668_v32  ;;  %v10560_v26 = vpop.permute.xlu1 %2173  ;;  %7337 = vrot.lane.b32.xlu0 %v7336_v53, %s7910_s23  ;;  %3574 = vmatprep.mubr.f32.mxu0 %v3271_v37  ;;  %v7155_v37 = vunpack.i.h.bf16 %v7153_v59 }
 0x2d8   : > { %3575 = vmatmul.mubr.f32.gmra.mrb[34].mxu0 %v3175_v57  ;;  %v2299_v30 = vmul.f32 %v10560_v26, %v13670_v51  ;;  %v7154_v57 = vunpack.i.l.bf16 %v7153_v59 }
 0x2d9   : > { %6626 = vmatprep.mubr.msk.f32.mxu1 %vm3091_vm2, %v2297_v45 }
 0x2da   : > { %v7148_v50 = vpop.permute.xlu0 %7147  ;;  %6627 = vmatmul.mubr.msk.f32.gmra.mrb[6].mxu1 %vm3091_vm2, %v2298_v31 }
 0x2db   : > { %v7150_v17 = vunpack.i.h.bf16 %v7148_v50  ;;  %v7149_v24 = vunpack.i.l.bf16 %v7148_v50  ;;  %v7163_v53 = vpop.permute.xlu1 %7162  ;;  %7347 = vrot.lane.b32.xlu0 %v7346_v4, %s7909_s22  ;;  %6629 = vmatprep.mubr.msk.f32.mxu1 %vm3091_vm2, %v2299_v30 }
 0x2dd   : > { %v3208_v27 = vsel %vm3091_vm2, %v7855_v18, %v7149_v24  ;;  %v3110_v10 = vsel %vm3091_vm2, %v669_v52, %v7150_v17  ;;  %v13673_v24 = vld [vmem:[#allocation202_spill] sm:$0xff]  ;;  %v7165_v18 = vunpack.i.h.bf16 %v7163_v53 }
 0x2de   : > { %v7158_v32 = vpop.permute.xlu0 %7157  ;;  %v3240_v51 = vsel %vm3124_vm3, %v3208_v27, %v7154_v57  ;;  %v3143_v50 = vsel %vm3124_vm3, %v3110_v10, %v7155_v37  ;;  %v7164_v27 = vunpack.i.l.bf16 %v7163_v53  ;;  %v13674_v10 = vld [vmem:[#allocation20_spill] sm:$0xff] }
 0x2df   : > { %v7160_v45 = vunpack.i.h.bf16 %v7158_v32  ;;  %v7159_v29 = vunpack.i.l.bf16 %v7158_v32  ;;  %v7173_v31 = vpop.permute.xlu1 %7172  ;;  %v670_v37 = vmul.f32 %v13674_v10, %v9785_v3  ;;  %v13675_v10 = vld [vmem:[#allocation213_spill] sm:$0xff] }
 0x2e1   : > { %v3272_v47 = vsel %vm3157_vm4, %v3240_v51, %v7159_v29  ;;  %v3176_v4 = vsel %vm3157_vm4, %v3143_v50, %v7160_v45  ;;  %v3111_v53 = vsel %vm3091_vm2, %v670_v37, %v7165_v18 }
 0x2e2   : > { %v10580_v30 = vpop.permute.xlu0 %2178  ;;  %3579 = vmatprep.mubr.f32.mxu0 %v3272_v47  ;;  %v7175_v47 = vunpack.i.h.bf16 %v7173_v31 }
 0x2e3   : > { %v2300_v52 = vmul.f32 %v10580_v30, %v13673_v24  ;;  %v10584_v17 = vpop.permute.xlu1 %2188  ;;  %v10586_v59 = vpop.f32.mrb[4].mxu0  ;;  %3580 = vmatmul.mubr.f32.gmra.mrb[36].mxu0 %v3176_v4  ;;  %v7174_v24 = vunpack.i.l.bf16 %v7173_v31  ;;  %v3209_v4 = vsel %vm3091_vm2, %v7856_v63, %v7164_v27  ;;  %v13676_v63 = vld [vmem:[#allocation214_spill] sm:$0xff]  ;;  %v13677_v27 = vld [vmem:[#allocation115_spill] sm:$0xff] }
 0x2e4   : > { %v3503_v57 = vpop.f32.mrb[5].mxu0  ;;  %v2302_v18 = vmul.f32 %v10584_v17, %v13676_v63 }
 0x2e5   : > { %6630 = vmatmul.mubr.msk.f32.gmra.mrb[8].mxu1 %vm3091_vm2, %v2300_v52 }
 0x2e6   : > { %v7168_v32 = vpop.permute.xlu0 %7167 }
 0x2e7   : > { %v7170_v45 = vunpack.i.h.bf16 %v7168_v32  ;;  %v7169_v29 = vunpack.i.l.bf16 %v7168_v32  ;;  %v7183_v51 = vpop.permute.xlu1 %7182  ;;  %v10591_v50 = vpop.f32.mrb[6].mxu0 }
 0x2e8   : > { %v3508_v19 = vpop.f32.mrb[7].mxu0 }
 0x2e9   : > { %v3241_v57 = vsel %vm3124_vm3, %v3209_v4, %v7169_v29  ;;  %v3144_v52 = vsel %vm3124_vm3, %v3111_v53, %v7170_v45  ;;  %v13678_v29 = vld [vmem:[#allocation23_spill] sm:$0xff]  ;;  %v7857_v53 = vld [vmem:[%s8792_s28 + $0xa0] sm:$0xff] }
 0x2ea   : > { %v10598_v25 = vpop.permute.xlu0 %2183  ;;  %v3273_v3 = vsel %vm3157_vm4, %v3241_v57, %v7174_v24  ;;  %v3177_v32 = vsel %vm3157_vm4, %v3144_v52, %v7175_v47  ;;  %v671_v47 = vmul.f32 %v13678_v29, %v9791_v28 }
 0x2eb   : > { %v2301_v31 = vmul.f32 %v10598_v25, %v13675_v10  ;;  %v10604_v19 = vpop.permute.xlu1 %2193  ;;  %3584 = vmatprep.mubr.f32.mxu0 %v3273_v3  ;;  %v7185_v3 = vunpack.i.h.bf16 %v7183_v51 }
 0x2ec   : > { %3585 = vmatmul.mubr.f32.gmra.mrb[38].mxu0 %v3177_v32  ;;  %v2303_v37 = vmul.f32 %v10604_v19, %v13677_v27  ;;  %v7184_v32 = vunpack.i.l.bf16 %v7183_v51 }
 0x2ed   : > { %6632 = vmatprep.mubr.msk.f32.mxu1 %vm3091_vm2, %v2301_v31 }
 0x2ee   : > { %v7178_v45 = vpop.permute.xlu0 %7177  ;;  %6633 = vmatmul.mubr.msk.f32.gmra.mrb[10].mxu1 %vm3091_vm2, %v2302_v18 }
 0x2ef   : > { %v7180_v24 = vunpack.i.h.bf16 %v7178_v45  ;;  %v7179_v10 = vunpack.i.l.bf16 %v7178_v45  ;;  %v7193_v4 = vpop.permute.xlu1 %7192  ;;  %6635 = vmatprep.mubr.msk.f32.mxu1 %vm3091_vm2, %v2303_v37 }
 0x2f1   : > { %v3210_v57 = vsel %vm3091_vm2, %v7857_v53, %v7179_v10  ;;  %v3112_v52 = vsel %vm3091_vm2, %v671_v47, %v7180_v24  ;;  %v7195_v24 = vunpack.i.h.bf16 %v7193_v4  ;;  %v7194_v10 = vunpack.i.l.bf16 %v7193_v4  ;;  %v13679_v53 = vld [vmem:[#allocation22_spill] sm:$0xff] }
 0x2f2   : > { %v7188_v63 = vpop.permute.xlu0 %7187  ;;  %v3242_v18 = vsel %vm3124_vm3, %v3210_v57, %v7184_v32  ;;  %v3145_v28 = vsel %vm3124_vm3, %v3112_v52, %v7185_v3  ;;  %v672_v57 = vmul.f32 %v13679_v53, %v9888_v23  ;;  %v13680_v53 = vld [vmem:[#allocation228_spill] sm:$0xff] }
 0x2f3   : > { %v7190_v31 = vunpack.i.h.bf16 %v7188_v63  ;;  %v7189_v27 = vunpack.i.l.bf16 %v7188_v63  ;;  %v7203_v35 = vpop.permute.xlu1 %7202 }
 0x2f5   : > { %v3274_v45 = vsel %vm3157_vm4, %v3242_v18, %v7189_v27  ;;  %v3178_v29 = vsel %vm3157_vm4, %v3145_v28, %v7190_v31  ;;  %v7205_v31 = vunpack.i.h.bf16 %v7203_v35  ;;  %v7204_v27 = vunpack.i.l.bf16 %v7203_v35  ;;  %v7858_v18 = vld [vmem:[%s8792_s28 + $0xa8] sm:$0xff] }
 0x2f6   : > { %v10622_v37 = vpop.permute.xlu0 %2198  ;;  %3589 = vmatprep.mubr.f32.mxu0 %v3274_v45  ;;  %v3211_v28 = vsel %vm3091_vm2, %v7858_v18, %v7194_v10 }
 0x2f7   : > { %v2304_v47 = vmul.f32 %v10622_v37, %v9715_v1  ;;  %v10626_v51 = vpop.permute.xlu1 %2208  ;;  %3590 = vmatmul.mubr.f32.gmra.mrb[40].mxu0 %v3178_v29  ;;  %v3113_v1 = vsel %vm3091_vm2, %v672_v57, %v7195_v24  ;;  %v13681_v57 = vld [vmem:[#allocation236_spill] sm:$0xff] }
 0x2f8   : > { %v2306_v24 = vmul.f32 %v10626_v51, %v9830_v11 }
 0x2f9   : > { %6636 = vmatmul.mubr.msk.f32.gmra.mrb[12].mxu1 %vm3091_vm2, %v2304_v47 }
 0x2fa   : > { %v7198_v52 = vpop.permute.xlu0 %7197 }
 0x2fb   : > { %v7200_v3 = vunpack.i.h.bf16 %v7198_v52  ;;  %v7199_v32 = vunpack.i.l.bf16 %v7198_v52  ;;  %v7213_v63 = vpop.permute.xlu1 %7212 }
 0x2fd   : > { %v3243_v29 = vsel %vm3124_vm3, %v3211_v28, %v7199_v32  ;;  %v3146_v4 = vsel %vm3124_vm3, %v3113_v1, %v7200_v3 }
 0x2fe   : > { %v10636_v45 = vpop.permute.xlu0 %2203  ;;  %v3275_v47 = vsel %vm3157_vm4, %v3243_v29, %v7204_v27  ;;  %v3179_v23 = vsel %vm3157_vm4, %v3146_v4, %v7205_v31  ;;  %v13683_v31 = vld [vmem:[#allocation25_spill] sm:$0xff]  ;;  %v7859_v4 = vld [vmem:[%s8792_s28 + $0xb0] sm:$0xff] }
 0x2ff   : > { %v2305_v52 = vmul.f32 %v10636_v45, %v13680_v53  ;;  %v10642_v58 = vpop.permute.xlu1 %2213  ;;  %v10644_v35 = vpop.f32.mrb[8].mxu0  ;;  %3594 = vmatprep.mubr.f32.mxu0 %v3275_v47  ;;  %v13682_v53 = vld [vmem:[#allocation230_spill] sm:$0xff] }
 0x300   : > { %v3513_v10 = vpop.f32.mrb[9].mxu0  ;;  %3595 = vmatmul.mubr.f32.gmra.mrb[42].mxu0 %v3179_v23  ;;  %v2307_v3 = vmul.f32 %v10642_v58, %v13681_v57  ;;  %v673_v27 = vmul.f32 %v13683_v31, %v13682_v53 }
 0x301   : > { %6638 = vmatprep.mubr.msk.f32.mxu1 %vm3091_vm2, %v2305_v52  ;;  %v7215_v52 = vunpack.i.h.bf16 %v7213_v63  ;;  %v7214_v10 = vunpack.i.l.bf16 %v7213_v63 }
 0x302   : > { %v7208_v32 = vpop.permute.xlu0 %7207  ;;  %6639 = vmatmul.mubr.msk.f32.gmra.mrb[14].mxu1 %vm3091_vm2, %v2306_v24 }
 0x303   : > { %v7210_v18 = vunpack.i.h.bf16 %v7208_v32  ;;  %v7209_v28 = vunpack.i.l.bf16 %v7208_v32  ;;  %v7223_v1 = vpop.permute.xlu1 %7222  ;;  %v10654_v29 = vpop.f32.mrb[10].mxu0  ;;  %6641 = vmatprep.mubr.msk.f32.mxu1 %vm3091_vm2, %v2307_v3 }
 0x304   : > { %v3518_v11 = vpop.f32.mrb[11].mxu0 }
 0x305   : > { %v3212_v47 = vsel %vm3091_vm2, %v7859_v4, %v7209_v28  ;;  %v3114_v23 = vsel %vm3091_vm2, %v673_v27, %v7210_v18  ;;  %v13684_v28 = vld [vmem:[#allocation235_spill] sm:$0xff]  ;;  %v7225_v18 = vunpack.i.h.bf16 %v7223_v1  ;;  %v7224_v4 = vunpack.i.l.bf16 %v7223_v1 }
 0x306   : > { %v7218_v57 = vpop.permute.xlu0 %7217  ;;  %v3244_v53 = vsel %vm3124_vm3, %v3212_v47, %v7214_v10  ;;  %v3147_v32 = vsel %vm3124_vm3, %v3114_v23, %v7215_v52  ;;  %v13686_v47 = vld [vmem:[#allocation157_spill] sm:$0xff]  ;;  %v13687_v23 = vld [vmem:[#allocation24_spill] sm:$0xff] }
 0x307   : > { %v7220_v24 = vunpack.i.h.bf16 %v7218_v57  ;;  %v7219_v48 = vunpack.i.l.bf16 %v7218_v57  ;;  %v7233_v46 = vpop.permute.xlu1 %7232  ;;  %v674_v52 = vmul.f32 %v13687_v23, %v13686_v47 }
 0x309   : > { %v3276_v31 = vsel %vm3157_vm4, %v3244_v53, %v7219_v48  ;;  %v3180_v3 = vsel %vm3157_vm4, %v3147_v32, %v7220_v24  ;;  %v7235_v53 = vunpack.i.h.bf16 %v7233_v46  ;;  %v7234_v32 = vunpack.i.l.bf16 %v7233_v46 }
 0x30a   : > { %v10664_v11 = vpop.permute.xlu0 %2218  ;;  %3599 = vmatprep.mubr.f32.mxu0 %v3276_v31  ;;  %v7860_v31 = vld [vmem:[%s8792_s28 + $0xb8] sm:$0xff] }
 0x30b   : > { %v2308_v27 = vmul.f32 %v10664_v11, %v13684_v28  ;;  %v10668_v63 = vpop.permute.xlu1 %2228  ;;  %3600 = vmatmul.mubr.f32.gmra.mrb[44].mxu0 %v3180_v3  ;;  %v3213_v7 = vsel %vm3091_vm2, %v7860_v31, %v7224_v4  ;;  %v3115_v28 = vsel %vm3091_vm2, %v674_v52, %v7225_v18  ;;  %v13691_v4 = vld [vmem:[#allocation241_spill] sm:$0xff] }
 0x30c   : > { %13685 = vst [vmem:[#allocation194_spill] sm:$0xff] %v10668_v63  ;;  %v2310_v18 = vmul.f32 %v10668_v63, %v13691_v4 }
 0x30d   : > { %6642 = vmatmul.mubr.msk.f32.gmra.mrb[16].mxu1 %vm3091_vm2, %v2308_v27 }
 0x30e   : > { %v7228_v48 = vpop.permute.xlu0 %7227 }
 0x30f   : > { %v7230_v10 = vunpack.i.h.bf16 %v7228_v48  ;;  %v7229_v57 = vunpack.i.l.bf16 %v7228_v48  ;;  %v7243_v24 = vpop.permute.xlu1 %7242  ;;  %v13689_v48 = vld [vmem:[#allocation242_spill] sm:$0xff] }
 0x310   : > { %v7244_v4 = vunpack.i.l.bf16 %v7243_v24 }
 0x311   : > { %v3245_v3 = vsel %vm3124_vm3, %v3213_v7, %v7229_v57  ;;  %v3148_v1 = vsel %vm3124_vm3, %v3115_v28, %v7230_v10  ;;  %v13692_v7 = vld [vmem:[#allocation175_spill] sm:$0xff]  ;;  %v13693_v57 = vld [vmem:[#allocation161_spill] sm:$0xff] }
 0x312   : > { %v10678_v61 = vpop.permute.xlu0 %2223  ;;  %v3277_v27 = vsel %vm3157_vm4, %v3245_v3, %v7234_v32  ;;  %v3181_v47 = vsel %vm3157_vm4, %v3148_v1, %v7235_v53  ;;  %v13694_v53 = vld [vmem:[#allocation27_spill] sm:$0xff]  ;;  %v7861_v1 = vld [vmem:[%s8792_s28 + $0xc0] sm:$0xff] }
 0x313   : > { %13688 = vst [vmem:[#allocation199_spill] sm:$0xff] %v10678_v61  ;;  %v2309_v23 = vmul.f32 %v10678_v61, %v13689_v48  ;;  %v10684_v46 = vpop.permute.xlu1 %2233  ;;  %3604 = vmatprep.mubr.f32.mxu0 %v3277_v27  ;;  %v675_v32 = vmul.f32 %v13694_v53, %v13693_v57  ;;  %v7245_v48 = vunpack.i.h.bf16 %v7243_v24 }
 0x314   : > { %13690 = vst [vmem:[#allocation135_spill] sm:$0xff] %v10684_v46  ;;  %3605 = vmatmul.mubr.f32.gmra.mrb[46].mxu0 %v3181_v47  ;;  %v2311_v52 = vmul.f32 %v10684_v46, %v13692_v7 }
 0x315   : > { %6644 = vmatprep.mubr.msk.f32.mxu1 %vm3091_vm2, %v2309_v23 }
 0x316   : > { %v7238_v10 = vpop.permute.xlu0 %7237  ;;  %6645 = vmatmul.mubr.msk.f32.gmra.mrb[18].mxu1 %vm3091_vm2, %v2310_v18 }
 0x317   : > { %v7240_v31 = vunpack.i.h.bf16 %v7238_v10  ;;  %v7239_v28 = vunpack.i.l.bf16 %v7238_v10  ;;  %v7253_v3 = vpop.permute.xlu1 %7252  ;;  %6647 = vmatprep.mubr.msk.f32.mxu1 %vm3091_vm2, %v2311_v52 }
 0x319   : > { %v3214_v27 = vsel %vm3091_vm2, %v7861_v1, %v7239_v28  ;;  %v3116_v47 = vsel %vm3091_vm2, %v675_v32, %v7240_v31  ;;  %v7254_v1 = vunpack.i.l.bf16 %v7253_v3 }
 0x31a   : > { %v7248_v7 = vpop.permute.xlu0 %7247  ;;  %v3246_v57 = vsel %vm3124_vm3, %v3214_v27, %v7244_v4  ;;  %v3149_v10 = vsel %vm3124_vm3, %v3116_v47, %v7245_v48  ;;  %v13698_v47 = vld [vmem:[#allocation26_spill] sm:$0xff] }
 0x31b   : > { %v7250_v23 = vunpack.i.h.bf16 %v7248_v7  ;;  %v7249_v46 = vunpack.i.l.bf16 %v7248_v7  ;;  %v7263_v43 = vpop.permute.xlu1 %7262  ;;  %v10698_v18 = vpop.f32.mrb[12].mxu0 }
 0x31c   : > { %v3523_v63 = vpop.f32.mrb[13].mxu0 }
 0x31d   : > { %v3278_v52 = vsel %vm3157_vm4, %v3246_v57, %v7249_v46  ;;  %v3182_v53 = vsel %vm3157_vm4, %v3149_v10, %v7250_v23  ;;  %v7255_v63 = vunpack.i.h.bf16 %v7253_v3  ;;  %v13697_v46 = vld [vmem:[#allocation248_spill] sm:$0xff]  ;;  %v7265_v10 = vunpack.i.h.bf16 %v7263_v43 }
 0x31e   : > { %v10704_v28 = vpop.permute.xlu0 %2238  ;;  %3609 = vmatprep.mubr.f32.mxu0 %v3278_v52  ;;  %v676_v48 = vmul.f32 %v13698_v47, %v13697_v46  ;;  %v7264_v52 = vunpack.i.l.bf16 %v7263_v43  ;;  %v5259_v47 = vld [vmem:[%s12864_s4 + $0x40] sm:$0xff] }
 0x31f   : > { %13695 = vst [vmem:[#allocation110_spill] sm:$0xff] %v10704_v28  ;;  %v2312_v24 = vmul.f32 %v10704_v28, %v10114_v21  ;;  %v10708_v32 = vpop.permute.xlu1 %2248  ;;  %v10710_v31 = vpop.f32.mrb[14].mxu0  ;;  %3610 = vmatmul.mubr.f32.gmra.mrb[48].mxu0 %v3182_v53  ;;  %v7862_v21 = vld [vmem:[%s8792_s28 + $0xc8] sm:$0xff] }
 0x320   : > { %13696 = vst [vmem:[#allocation140_spill] sm:$0xff] %v10708_v32  ;;  %v3528_v27 = vpop.f32.mrb[15].mxu0  ;;  %v3215_v28 = vsel %vm3091_vm2, %v7862_v21, %v7254_v1  ;;  %v3117_v61 = vsel %vm3091_vm2, %v676_v48, %v7255_v63  ;;  %v2314_v63 = vmul.f32 %v10708_v32, %v10230_v12 }
 0x321   : > { %6648 = vmatmul.mubr.msk.f32.gmra.mrb[20].mxu1 %vm3091_vm2, %v2312_v24  ;;  %v5283_v24 = vld [vmem:[%s12864_s4 + $0x100] sm:$0xff]  ;;  %v5284_v27 = vld [vmem:[%s12864_s4 + $0x108] sm:$0xff] }
 0x322   : > { %v7258_v4 = vpop.permute.xlu0 %7257 }
 0x323   : > { %v7260_v7 = vunpack.i.h.bf16 %v7258_v4  ;;  %v7259_v23 = vunpack.i.l.bf16 %v7258_v4  ;;  %v7273_v57 = vpop.permute.xlu1 %7272  ;;  %v10730_v4 = vpack.c.bf16 %v5284_v27, %v5283_v24 }
 0x325   : > { %v3247_v53 = vsel %vm3124_vm3, %v3215_v28, %v7259_v23  ;;  %v3150_v3 = vsel %vm3124_vm3, %v3117_v61, %v7260_v7  ;;  %13700 = vst [vmem:[#allocation154_spill] sm:$0xff] %v10730_v4  ;;  %6842 = vmatprep.subr.bf16.mxu0 %v10730_v4  ;;  %v5286_v7 = vld [vmem:[%s12864_s4 + $0x118] sm:$0xff] }
 0x326   : > { %v10726_v46 = vpop.permute.xlu0 %2243  ;;  %v3279_v43 = vsel %vm3157_vm4, %v3247_v53, %v7264_v52  ;;  %v3183_v1 = vsel %vm3157_vm4, %v3150_v3, %v7265_v10  ;;  %6844 = vmatpush3.bf16.msra.mxu0 %v10730_v4  ;;  %v13703_v10 = vld [vmem:[#allocation29_spill] sm:$0xff]  ;;  %v7863_v3 = vld [vmem:[%s8792_s28 + $0xd0] sm:$0xff] }
 0x327   : > { %13699 = vst [vmem:[#allocation204_spill] sm:$0xff] %v10726_v46  ;;  %v2313_v28 = vmul.f32 %v10726_v46, %v10236_v2  ;;  %v10734_v61 = vpop.permute.xlu1 %2253  ;;  %3614 = vmatprep.mubr.f32.mxu0 %v3279_v43  ;;  %v5285_v2 = vld [vmem:[%s12864_s4 + $0x110] sm:$0xff]  ;;  %v7275_v43 = vunpack.i.h.bf16 %v7273_v57 }
 0x328   : > { %13701 = vst [vmem:[#allocation201_spill] sm:$0xff] %v10734_v61  ;;  %3615 = vmatmul.mubr.f32.gmra.mrb[50].mxu0 %v3183_v1  ;;  %v2315_v48 = vmul.f32 %v10734_v61, %v10334_v15  ;;  %v10750_v23 = vpack.c.bf16 %v5286_v7, %v5285_v2  ;;  %v677_v15 = vmul.f32 %v13703_v10, %v10090_v40  ;;  %v7274_v1 = vunpack.i.l.bf16 %v7273_v57 }
 0x329   : > { %6650 = vmatprep.mubr.msk.f32.mxu1 %vm3091_vm2, %v2313_v28 }
 0x32a   : > { %v7268_v12 = vpop.permute.xlu0 %7267  ;;  %6651 = vmatmul.mubr.msk.f32.gmra.mrb[22].mxu1 %vm3091_vm2, %v2314_v63  ;;  %13702 = vst [vmem:[#allocation158_spill] sm:$0xff] %v10750_v23  ;;  %6846 = vmatprep.subr.bf16.mxu0 %v10750_v23 }
 0x32b   : > { %v7270_v52 = vunpack.i.h.bf16 %v7268_v12  ;;  %v7269_v21 = vunpack.i.l.bf16 %v7268_v12  ;;  %v7283_v53 = vpop.permute.xlu1 %7282  ;;  %6653 = vmatprep.mubr.msk.f32.mxu1 %vm3091_vm2, %v2315_v48  ;;  %6848 = vmatpush3.bf16.msra.mxu0 %v10750_v23  ;;  %v5279_v23 = vld [vmem:[%s12864_s4 + $0xe0] sm:$0xff] }
 0x32d   : > { %v3216_v24 = vsel %vm3091_vm2, %v7863_v3, %v7269_v21  ;;  %v3118_v27 = vsel %vm3091_vm2, %v677_v15, %v7270_v52  ;;  %v7285_v52 = vunpack.i.h.bf16 %v7283_v53  ;;  %v7284_v21 = vunpack.i.l.bf16 %v7283_v53  ;;  %v13706_v3 = vld [vmem:[#allocation28_spill] sm:$0xff] }
 0x32e   : > { %v7278_v28 = vpop.permute.xlu0 %7277  ;;  %v3248_v7 = vsel %vm3124_vm3, %v3216_v24, %v7274_v1  ;;  %v3151_v12 = vsel %vm3124_vm3, %v3118_v27, %v7275_v43  ;;  %v678_v24 = vmul.f32 %v13706_v3, %v10188_v5 }
 0x32f   : > { %v7280_v63 = vunpack.i.h.bf16 %v7278_v28  ;;  %v7279_v2 = vunpack.i.l.bf16 %v7278_v28  ;;  %v7293_v40 = vpop.permute.xlu1 %7292 }
 0x331   : > { %v3280_v48 = vsel %vm3157_vm4, %v3248_v7, %v7279_v2  ;;  %v3184_v61 = vsel %vm3157_vm4, %v3151_v12, %v7280_v63  ;;  %v7295_v2 = vunpack.i.h.bf16 %v7293_v40  ;;  %v7294_v7 = vunpack.i.l.bf16 %v7293_v40 }
 0x332   : > { %v10764_v32 = vpop.permute.xlu0 %2258  ;;  %3619 = vmatprep.mubr.f32.mxu0 %v3280_v48 }
 0x333   : > { %13704 = vst [vmem:[#allocation121_spill] sm:$0xff] %v10764_v32  ;;  %v2316_v15 = vmul.f32 %v10764_v32, %v10328_v34  ;;  %v10768_v57 = vpop.permute.xlu1 %2268  ;;  %3620 = vmatmul.mubr.f32.gmra.mrb[52].mxu0 %v3184_v61  ;;  %v7864_v34 = vld [vmem:[%s8792_s28 + $0xd8] sm:$0xff]  ;;  %v3119_v61 = vsel %vm3091_vm2, %v678_v24, %v7285_v52 }
 0x334   : > { %13705 = vst [vmem:[#allocation172_spill] sm:$0xff] %v10768_v57  ;;  %v3217_v48 = vsel %vm3091_vm2, %v7864_v34, %v7284_v21  ;;  %v2318_v52 = vmul.f32 %v10768_v57, %v10415_v39 }
 0x335   : > { %6654 = vmatmul.mubr.msk.f32.gmra.mrb[24].mxu1 %vm3091_vm2, %v2316_v15 }
 0x336   : > { %v7288_v27 = vpop.permute.xlu0 %7287 }
 0x337   : > { %v7290_v43 = vunpack.i.h.bf16 %v7288_v27  ;;  %v7289_v1 = vunpack.i.l.bf16 %v7288_v27  ;;  %v7303_v28 = vpop.permute.xlu1 %7302  ;;  %v10773_v63 = vpop.f32.mrb[16].mxu0 }
 0x338   : > { %v3533_v12 = vpop.f32.mrb[17].mxu0 }
 0x339   : > { %v3249_v53 = vsel %vm3124_vm3, %v3217_v48, %v7289_v1  ;;  %v3152_v15 = vsel %vm3124_vm3, %v3119_v61, %v7290_v43  ;;  %v7865_v48 = vld [vmem:[%s8792_s28 + $0xe0] sm:$0xff] }
 0x33a   : > { %v10780_v32 = vpop.permute.xlu0 %2263  ;;  %v3281_v5 = vsel %vm3157_vm4, %v3249_v53, %v7294_v7  ;;  %v3185_v27 = vsel %vm3157_vm4, %v3152_v15, %v7295_v2  ;;  %v7305_v53 = vunpack.i.h.bf16 %v7303_v28 }
 0x33b   : > { %13707 = vst [vmem:[#allocation212_spill] sm:$0xff] %v10780_v32  ;;  %v2317_v46 = vmul.f32 %v10780_v32, %v10421_v8  ;;  %v10786_v40 = vpop.permute.xlu1 %2273  ;;  %v10788_v12 = vpop.f32.mrb[18].mxu0  ;;  %3624 = vmatprep.mubr.f32.mxu0 %v3281_v5  ;;  %v13709_v8 = vld [vmem:[#allocation31_spill] sm:$0xff] }
 0x33c   : > { %13708 = vst [vmem:[#allocation120_spill] sm:$0xff] %v10786_v40  ;;  %v3538_v21 = vpop.f32.mrb[19].mxu0  ;;  %3625 = vmatmul.mubr.f32.gmra.mrb[54].mxu0 %v3185_v27  ;;  %v2319_v24 = vmul.f32 %v10786_v40, %v13661_v16  ;;  %v679_v1 = vmul.f32 %v13709_v8, %v10194_v22  ;;  %v7304_v16 = vunpack.i.l.bf16 %v7303_v28 }
 0x33d   : > { %6656 = vmatprep.mubr.msk.f32.mxu1 %vm3091_vm2, %v2317_v46 }
 0x33e   : > { %v7298_v43 = vpop.permute.xlu0 %7297  ;;  %6657 = vmatmul.mubr.msk.f32.gmra.mrb[26].mxu1 %vm3091_vm2, %v2318_v52 }
 0x33f   : > { %v7300_v2 = vunpack.i.h.bf16 %v7298_v43  ;;  %v7299_v7 = vunpack.i.l.bf16 %v7298_v43  ;;  %v7313_v34 = vpop.permute.xlu1 %7312  ;;  %6659 = vmatprep.mubr.msk.f32.mxu1 %vm3091_vm2, %v2319_v24 }
 0x340   : > { %v7315_v28 = vunpack.i.h.bf16 %v7313_v34 }
 0x341   : > { %v3218_v39 = vsel %vm3091_vm2, %v7865_v48, %v7299_v7  ;;  %v3120_v61 = vsel %vm3091_vm2, %v679_v1, %v7300_v2  ;;  %v7314_v7 = vunpack.i.l.bf16 %v7313_v34  ;;  %v13712_v48 = vld [vmem:[#allocation30_spill] sm:$0xff] }
 0x342   : > { %v7308_v15 = vpop.permute.xlu0 %7307  ;;  %v3250_v52 = vsel %vm3124_vm3, %v3218_v39, %v7304_v16  ;;  %v3153_v22 = vsel %vm3124_vm3, %v3120_v61, %v7305_v53  ;;  %v680_v39 = vmul.f32 %v13712_v48, %v10286_v54 }
 0x343   : > { %v7310_v46 = vunpack.i.h.bf16 %v7308_v15  ;;  %v7309_v5 = vunpack.i.l.bf16 %v7308_v15  ;;  %v7323_v27 = vpop.permute.xlu1 %7322 }
 0x344   : > { %v7325_v15 = vunpack.i.h.bf16 %v7323_v27 }
 0x345   : > { %v3282_v21 = vsel %vm3157_vm4, %v3250_v52, %v7309_v5  ;;  %v3186_v43 = vsel %vm3157_vm4, %v3153_v22, %v7310_v46  ;;  %v7324_v46 = vunpack.i.l.bf16 %v7323_v27  ;;  %v3219_v5 = vsel %vm3091_vm2, %v10363_v56, %v7314_v7  ;;  %v13715_v27 = vld [vmem:[#allocation117_spill] sm:$0xff] }
 0x346   : > { %v10806_v24 = vpop.permute.xlu0 %2278  ;;  %3629 = vmatprep.mubr.f32.mxu0 %v3282_v21  ;;  %v13716_v7 = vld [vmem:[#allocation33_spill] sm:$0xff] }
 0x347   : > { %13710 = vst [vmem:[#allocation116_spill] sm:$0xff] %v10806_v24  ;;  %v2320_v1 = vmul.f32 %v10806_v24, %v13659_v41  ;;  %v10810_v2 = vpop.permute.xlu1 %2288  ;;  %3630 = vmatmul.mubr.f32.gmra.mrb[56].mxu0 %v3186_v43  ;;  %v3121_v41 = vsel %vm3091_vm2, %v680_v39, %v7315_v28  ;;  %v681_v39 = vmul.f32 %v13716_v7, %v10292_v6 }
 0x348   : > { %13711 = vst [vmem:[#allocation176_spill] sm:$0xff] %v10810_v2  ;;  %v2322_v56 = vmul.f32 %v10810_v2, %v13715_v27 }
 0x349   : > { %6660 = vmatmul.mubr.msk.f32.gmra.mrb[28].mxu1 %vm3091_vm2, %v2320_v1  ;;  %v13714_v1 = vld [vmem:[#allocation111_spill] sm:$0xff] }
 0x34a   : > { %v7318_v61 = vpop.permute.xlu0 %7317 }
 0x34b   : > { %v7320_v53 = vunpack.i.h.bf16 %v7318_v61  ;;  %v7319_v16 = vunpack.i.l.bf16 %v7318_v61  ;;  %v7333_v52 = vpop.permute.xlu1 %7332 }
 0x34d   : > { %v3251_v22 = vsel %vm3124_vm3, %v3219_v5, %v7319_v16  ;;  %v3154_v34 = vsel %vm3124_vm3, %v3121_v41, %v7320_v53 }
 0x34e   : > { %v10820_v21 = vpop.permute.xlu0 %2283  ;;  %v3283_v43 = vsel %vm3157_vm4, %v3251_v22, %v7324_v46  ;;  %v3187_v54 = vsel %vm3157_vm4, %v3154_v34, %v7325_v15  ;;  %v7335_v34 = vunpack.i.h.bf16 %v7333_v52 }
 0x34f   : > { %13713 = vst [vmem:[#allocation107_spill] sm:$0xff] %v10820_v21  ;;  %v2321_v61 = vmul.f32 %v10820_v21, %v13714_v1  ;;  %3634 = vmatprep.mubr.f32.mxu0 %v3283_v43  ;;  %v7343_v53 = vpop.permute.xlu1 %7342  ;;  %v7334_v43 = vunpack.i.l.bf16 %v7333_v52 }
 0x350   : > { %3635 = vmatmul.mubr.f32.gmra.mrb[58].mxu0 %v3187_v54  ;;  %v7344_v6 = vunpack.i.l.bf16 %v7343_v53 }
 0x351   : > { %6662 = vmatprep.mubr.msk.f32.mxu1 %vm3091_vm2, %v2321_v61 }
 0x352   : > { %v7328_v28 = vpop.permute.xlu0 %7327  ;;  %6663 = vmatmul.mubr.msk.f32.gmra.mrb[30].mxu1 %vm3091_vm2, %v2322_v56  ;;  %v7345_v56 = vunpack.i.h.bf16 %v7343_v53 }
 0x353   : > { %v7330_v16 = vunpack.i.h.bf16 %v7328_v28  ;;  %v7329_v46 = vunpack.i.l.bf16 %v7328_v28  ;;  %v10832_v15 = vpop.f32.mrb[20].mxu0 }
 0x354   : > { %v3543_v5 = vpop.f32.mrb[21].mxu0 }
 0x355   : > { %v3220_v41 = vsel %vm3091_vm2, %v10447_v49, %v7329_v46  ;;  %v3122_v22 = vsel %vm3091_vm2, %v681_v39, %v7330_v16  ;;  %v7353_v5 = vpop.permute.xlu1 %7352  ;;  %v13717_v39 = vld [vmem:[#allocation32_spill] sm:$0xff] }
 0x356   : > { %v7338_v54 = vpop.permute.xlu0 %7337  ;;  %v3252_v28 = vsel %vm3124_vm3, %v3220_v41, %v7334_v43  ;;  %v3155_v21 = vsel %vm3124_vm3, %v3122_v22, %v7335_v34  ;;  %v682_v52 = vmul.f32 %v13717_v39, %v10379_v44  ;;  %v7355_v40 = vunpack.i.h.bf16 %v7353_v5 }
 0x357   : > { %v7340_v1 = vunpack.i.h.bf16 %v7338_v54  ;;  %v7339_v61 = vunpack.i.l.bf16 %v7338_v54  ;;  %v10837_v27 = vpop.f32.mrb[22].mxu0  ;;  %v7354_v53 = vunpack.i.l.bf16 %v7353_v5 }
 0x358   : > { %v3548_v2 = vpop.f32.mrb[23].mxu0  ;;  %v3123_v41 = vsel %vm3091_vm2, %v682_v52, %v7345_v56  ;;  %v10861_v56 = vld [vmem:[%s12863_s3] ss:$0 sm:$0xff] }
 0x359   : > { %v3284_v24 = vsel %vm3157_vm4, %v3252_v28, %v7339_v61  ;;  %v3188_v49 = vsel %vm3157_vm4, %v3155_v21, %v7340_v1  ;;  %v3221_v2 = vsel %vm3091_vm2, %v10459_v0, %v7344_v6  ;;  %v3497_v6 = vadd.f32 %v10861_v56, %v10478_v33 }
 0x35a   : > { %v7348_v16 = vpop.permute.xlu0 %7347  ;;  %3639 = vmatprep.mubr.f32.mxu0 %v3284_v24 }
 0x35b   : > { %v7350_v46 = vunpack.i.h.bf16 %v7348_v16  ;;  %v7349_v54 = vunpack.i.l.bf16 %v7348_v16  ;;  %3640 = vmatmul.mubr.f32.gmra.mrb[60].mxu0 %v3188_v49 }
 0x35d   : > { %v3253_v22 = vsel %vm3124_vm3, %v3221_v2, %v7349_v54  ;;  %v3156_v34 = vsel %vm3124_vm3, %v3123_v41, %v7350_v46  ;;  %v3507_v46 = vadd.f32 %v10861_v56, %v10591_v50 }
 0x35e   : > { %v3285_v21 = vsel %vm3157_vm4, %v3253_v22, %v7354_v53  ;;  %v3189_v44 = vsel %vm3157_vm4, %v3156_v34, %v7355_v40  ;;  %v3492_v40 = vadd.f32 %v10861_v56, %v10433_v36  ;;  %v3502_v53 = vadd.f32 %v10861_v56, %v10586_v59 }
 0x35f   : > { %3644 = vmatprep.mubr.f32.mxu0 %v3285_v21 }
 0x360   : > { %3645 = vmatmul.mubr.f32.gmra.mrb[62].mxu0 %v3189_v44 }
 0x36f   : > { %v10852_v24 = vpop.f32.mrb[24].mxu0 }
 0x370   : > { %v3553_v43 = vpop.f32.mrb[25].mxu0 }
 0x373   : > { %v10854_v1 = vpop.f32.mrb[26].mxu0 }
 0x374   : > { %v3558_v61 = vpop.f32.mrb[27].mxu0 }
 0x375   : > { %v3517_v61 = vadd.f32 %v10861_v56, %v10654_v29 }
 0x38b   : > { %v10856_v28 = vpop.f32.mrb[28].mxu0 }
 0x38c   : > { %v3563_v0 = vpop.f32.mrb[29].mxu0 }
 0x390   : > { %v6619_v5 = vpop.f32.mrb[0].mxu1 }
 0x391   : > { %v10867_v49 = vadd.f32 %v6619_v5, %v3497_v6  ;;  %v3716_v52 = vpop.f32.mrb[1].mxu1  ;;  %v3512_v6 = vadd.f32 %v10861_v56, %v10644_v35  ;;  %v3527_v35 = vadd.f32 %v10861_v56, %v10710_v31 }
 0x392   : > { %v10869_v16 = vadd.f32 %v3716_v52, %v3492_v40 }
 0x398   : > { %v10873_v54 = vpop.f32.mrb[30].mxu0 }
 0x399   : > { %v3568_v2 = vpop.f32.mrb[31].mxu0  ;;  %v6622_v41 = vpop.f32.mrb[2].mxu1 }
 0x39a   : > { %v3732_v33 = vadd.f32 %v6622_v41, %v3507_v46  ;;  %v3726_v22 = vpop.f32.mrb[3].mxu1 }
 0x39b   : > { %v3727_v34 = vadd.f32 %v3726_v22, %v3502_v53 }
 0x39c   : > { %v10877_v36 = vmax.f32 %v3732_v33, 0.0 }
 0x39d   : > { %v10879_v21 = vmax.f32 %v3727_v34, 0.0 }
 0x39e   : > { %v4038_v44 = vrot.slane %v10877_v36, 1 }
 0x39f   : > { %v13176_v43 = vrot.slane %v10879_v21, 1 }
 0x3a1   : > { %v10887_v50 = vsel %vm940_vm0, %v13176_v43, %v4038_v44 }
 0x3a2   : > { %v4259_v59 = vmul.f32 %v10887_v50, %v10405_v13 }
 0x3a3   : > { %v10893_v0 = vpop.f32.mrb[32].mxu0 }
 0x3a4   : > { %v3573_v40 = vpop.f32.mrb[33].mxu0  ;;  %v6625_v5 = vpop.f32.mrb[4].mxu1  ;;  %6673 = vmatprep.mubr.msk.f32.mxu0 %vm3091_vm2, %v4259_v59 }
 0x3a5   : > { %v3742_v52 = vadd.f32 %v6625_v5, %v3517_v61  ;;  %v3736_v46 = vpop.f32.mrb[5].mxu1  ;;  %v3522_v61 = vadd.f32 %v10861_v56, %v10698_v18 }
 0x3a6   : > { %v3737_v53 = vadd.f32 %v3736_v46, %v3512_v6 }
 0x3a7   : > { %v10898_v2 = vmax.f32 %v3742_v52, 0.0 }
 0x3a8   : > { %v10900_v41 = vmax.f32 %v3737_v53, 0.0 }
 0x3a9   : > { %v4040_v13 = vrot.slane %v10898_v2, 1 }
 0x3aa   : > { %v4039_v29 = vrot.slane %v10900_v41, 1 }
 0x3ab   : > { %v10904_v33 = vpop.f32.mrb[34].mxu0 }
 0x3ac   : > { %v10910_v22 = vsel %vm940_vm0, %v4038_v44, %v4039_v29  ;;  %v3578_v34 = vpop.f32.mrb[35].mxu0  ;;  %v10914_v59 = vsel %vm940_vm0, %v4039_v29, %v4040_v13 }
 0x3ad   : > { %v6628_v6 = vpop.f32.mrb[6].mxu1  ;;  %v4260_v40 = vmul.f32 %v10910_v22, %v10436_v55  ;;  %v4261_v5 = vmul.f32 %v10914_v59, %v10470_v14 }
 0x3ae   : > { %v3752_v31 = vadd.f32 %v6628_v6, %v3527_v35  ;;  %v3746_v52 = vpop.f32.mrb[7].mxu1  ;;  %v3537_v6 = vadd.f32 %v10861_v56, %v10788_v12 }
 0x3af   : > { %v3747_v46 = vadd.f32 %v3746_v52, %v3522_v61  ;;  %6674 = vmatmul.mubr.msk.f32.vlgmr.msra.gmra.mrb[64].mxu0 %vm3091_vm2, %v4260_v40 }
 0x3b0   : > { %v10923_v44 = vmax.f32 %v3752_v31, 0.0  ;;  %6676 = vmatprep.mubr.msk.f32.mxu0 %vm3091_vm2, %v4261_v5 }
 0x3b1   : > { %v10926_v53 = vmax.f32 %v3747_v46, 0.0 }
 0x3b2   : > { %v4042_v18 = vrot.slane %v10923_v44, 1 }
 0x3b3   : > { %v4041_v29 = vrot.slane %v10926_v53, 1 }
 0x3b5   : > { %v10932_v55 = vsel %vm940_vm0, %v4040_v13, %v4041_v29  ;;  %v10936_v14 = vsel %vm940_vm0, %v4041_v29, %v4042_v18  ;;  %v3532_v13 = vadd.f32 %v10861_v56, %v10773_v63  ;;  %v3547_v63 = vadd.f32 %v10861_v56, %v10837_v27 }
 0x3b6   : > { %v10938_v35 = vpop.f32.mrb[36].mxu0  ;;  %v4262_v34 = vmul.f32 %v10932_v55, %v10444_v38  ;;  %v4263_v61 = vmul.f32 %v10936_v14, %v10476_v20 }
 0x3b7   : > { %v3583_v40 = vpop.f32.mrb[37].mxu0 }
 0x3b8   : > { %v6631_v5 = vpop.f32.mrb[8].mxu1  ;;  %6677 = vmatmul.mubr.msk.f32.gmra.mrb[66].mxu0 %vm3091_vm2, %v4262_v34 }
 0x3b9   : > { %v3762_v31 = vadd.f32 %v6631_v5, %v3537_v6  ;;  %v3756_v52 = vpop.f32.mrb[9].mxu1  ;;  %6679 = vmatprep.mubr.msk.f32.mxu0 %vm3091_vm2, %v4263_v61  ;;  %v3542_v6 = vadd.f32 %v10861_v56, %v10832_v15 }
 0x3ba   : > { %v3757_v46 = vadd.f32 %v3756_v52, %v3532_v13 }
 0x3bb   : > { %v10950_v29 = vmax.f32 %v3762_v31, 0.0 }
 0x3bc   : > { %v10952_v38 = vmax.f32 %v3757_v46, 0.0 }
 0x3bd   : > { %v4044_v20 = vrot.slane %v10950_v29, 1 }
 0x3be   : > { %v4043_v12 = vrot.slane %v10952_v38, 1 }
 0x3bf   : > { %v10956_v40 = vpop.f32.mrb[38].mxu0 }
 0x3c0   : > { %v3588_v43 = vpop.f32.mrb[39].mxu0  ;;  %v10962_v34 = vsel %vm940_vm0, %v4042_v18, %v4043_v12  ;;  %v10966_v61 = vsel %vm940_vm0, %v4043_v12, %v4044_v20 }
 0x3c1   : > { %v6634_v13 = vpop.f32.mrb[10].mxu1  ;;  %v4264_v5 = vmul.f32 %v10962_v34, %v10525_v62  ;;  %v4265_v31 = vmul.f32 %v10966_v61, %v10552_v60 }
 0x3c2   : > { %v3772_v27 = vadd.f32 %v6634_v13, %v3547_v63  ;;  %v3766_v43 = vpop.f32.mrb[11].mxu1 }
 0x3c3   : > { %v3767_v52 = vadd.f32 %v3766_v43, %v3542_v6  ;;  %6680 = vmatmul.mubr.msk.f32.gmra.mrb[68].mxu0 %vm3091_vm2, %v4264_v5  ;;  %v3557_v5 = vadd.f32 %v10861_v56, %v10854_v1 }
 0x3c4   : > { %v10975_v18 = vmax.f32 %v3772_v27, 0.0  ;;  %6682 = vmatprep.mubr.msk.f32.mxu0 %vm3091_vm2, %v4265_v31 }
 0x3c5   : > { %v10978_v46 = vmax.f32 %v3767_v52, 0.0 }
 0x3c6   : > { %13718 = vst [vmem:[#allocation125_spill] sm:$0xff] %v10975_v18  ;;  %v4046_v15 = vrot.slane %v10975_v18, 1 }
 0x3c7   : > { %v4045_v12 = vrot.slane %v10978_v46, 1 }
 0x3c9   : > { %v10984_v62 = vsel %vm940_vm0, %v4044_v20, %v4045_v12  ;;  %v10988_v60 = vsel %vm940_vm0, %v4045_v12, %v4046_v15  ;;  %v3552_v20 = vadd.f32 %v10861_v56, %v10852_v24  ;;  %v3567_v24 = vadd.f32 %v10861_v56, %v10873_v54 }
 0x3ca   : > { %v10990_v63 = vpop.f32.mrb[40].mxu0  ;;  %v4266_v6 = vmul.f32 %v10984_v62, %v10533_v42  ;;  %v4267_v13 = vmul.f32 %v10988_v60, %v10560_v26 }
 0x3cb   : > { %v3593_v31 = vpop.f32.mrb[41].mxu0 }
 0x3cc   : > { %v6637_v27 = vpop.f32.mrb[12].mxu1  ;;  %6683 = vmatmul.mubr.msk.f32.gmra.mrb[70].mxu0 %vm3091_vm2, %v4266_v6 }
 0x3cd   : > { %v3782_v43 = vadd.f32 %v6637_v27, %v3557_v5  ;;  %v3776_v52 = vpop.f32.mrb[13].mxu1  ;;  %6685 = vmatprep.mubr.msk.f32.mxu0 %vm3091_vm2, %v4267_v13  ;;  %v3562_v5 = vadd.f32 %v10861_v56, %v10856_v28 }
 0x3ce   : > { %v3777_v12 = vadd.f32 %v3776_v52, %v3552_v20 }
 0x3cf   : > { %v11002_v57 = vmax.f32 %v3782_v43, 0.0 }
 0x3d0   : > { %v11004_v42 = vmax.f32 %v3777_v12, 0.0 }
 0x3d1   : > { %13719 = vst [vmem:[#allocation190_spill] sm:$0xff] %v11002_v57  ;;  %v4048_v26 = vrot.slane %v11002_v57, 1 }
 0x3d2   : > { %13720 = vst [vmem:[#allocation193_spill] sm:$0xff] %v11004_v42  ;;  %v4047_v1 = vrot.slane %v11004_v42, 1 }
 0x3d3   : > { %v3596_v31 = vpop.f32.mrb[42].mxu0 }
 0x3d4   : > { %v3598_v32 = vpop.f32.mrb[43].mxu0  ;;  %v11012_v6 = vsel %vm940_vm0, %v4046_v15, %v4047_v1  ;;  %v11016_v13 = vsel %vm940_vm0, %v4047_v1, %v4048_v26 }
 0x3d5   : > { %v6640_v20 = vpop.f32.mrb[14].mxu1  ;;  %v4268_v27 = vmul.f32 %v11012_v6, %v10580_v30  ;;  %v4269_v43 = vmul.f32 %v11016_v13, %v10598_v25 }
 0x3d6   : > { %v3792_v54 = vadd.f32 %v6640_v20, %v3567_v24  ;;  %v3786_v32 = vpop.f32.mrb[15].mxu1 }
 0x3d7   : > { %v3787_v52 = vadd.f32 %v3786_v32, %v3562_v5  ;;  %6686 = vmatmul.mubr.msk.f32.gmra.mrb[72].mxu0 %vm3091_vm2, %v4268_v27  ;;  %v3577_v27 = vadd.f32 %v10861_v56, %v10904_v33 }
 0x3d8   : > { %v11025_v15 = vmax.f32 %v3792_v54, 0.0  ;;  %6688 = vmatprep.mubr.msk.f32.mxu0 %vm3091_vm2, %v4269_v43  ;;  %v3572_v54 = vadd.f32 %v10861_v56, %v10893_v0  ;;  %v3587_v0 = vadd.f32 %v10861_v56, %v10956_v40 }
 0x3d9   : > { %v11028_v12 = vmax.f32 %v3787_v52, 0.0 }
 0x3da   : > { %13721 = vst [vmem:[#allocation106_spill] sm:$0xff] %v11025_v15  ;;  %v4050_v28 = vrot.slane %v11025_v15, 1 }
 0x3db   : > { %13722 = vst [vmem:[#allocation222_spill] sm:$0xff] %v11028_v12  ;;  %v4049_v1 = vrot.slane %v11028_v12, 1 }
 0x3dd   : > { %v11034_v30 = vsel %vm940_vm0, %v4048_v26, %v4049_v1  ;;  %v11038_v25 = vsel %vm940_vm0, %v4049_v1, %v4050_v28 }
 0x3de   : > { %v3601_v24 = vpop.f32.mrb[44].mxu0  ;;  %v4270_v5 = vmul.f32 %v11034_v30, %v10584_v17  ;;  %v4271_v20 = vmul.f32 %v11038_v25, %v10604_v19 }
 0x3df   : > { %v3603_v43 = vpop.f32.mrb[45].mxu0 }
 0x3e0   : > { %v6643_v26 = vpop.f32.mrb[16].mxu1  ;;  %6689 = vmatmul.mubr.msk.f32.gmra.mrb[74].mxu0 %vm3091_vm2, %v4270_v5 }
 0x3e1   : > { %v3802_v32 = vadd.f32 %v6643_v26, %v3577_v27  ;;  %v3796_v52 = vpop.f32.mrb[17].mxu1  ;;  %6691 = vmatprep.mubr.msk.f32.mxu0 %vm3091_vm2, %v4271_v20  ;;  %v3582_v27 = vadd.f32 %v10861_v56, %v10938_v35 }
 0x3e2   : > { %v3797_v1 = vadd.f32 %v3796_v52, %v3572_v54 }
 0x3e3   : > { %v11050_v39 = vmax.f32 %v3802_v32, 0.0 }
 0x3e4   : > { %v11052_v17 = vmax.f32 %v3797_v1, 0.0 }
 0x3e5   : > { %13723 = vst [vmem:[#allocation202_spill] sm:$0xff] %v11050_v39  ;;  %v4052_v19 = vrot.slane %v11050_v39, 1 }
 0x3e6   : > { %13724 = vst [vmem:[#allocation213_spill] sm:$0xff] %v11052_v17  ;;  %v4051_v33 = vrot.slane %v11052_v17, 1 }
 0x3e7   : > { %v3606_v43 = vpop.f32.mrb[46].mxu0 }
 0x3e8   : > { %v3608_v7 = vpop.f32.mrb[47].mxu0  ;;  %v11060_v5 = vsel %vm940_vm0, %v4050_v28, %v4051_v33  ;;  %v11064_v20 = vsel %vm940_vm0, %v4051_v33, %v4052_v19 }
 0x3e9   : > { %v6646_v54 = vpop.f32.mrb[18].mxu1  ;;  %v4272_v26 = vmul.f32 %v11060_v5, %v10622_v37  ;;  %v4273_v32 = vmul.f32 %v11064_v20, %v10636_v45 }
 0x3ea   : > { %v3812_v40 = vadd.f32 %v6646_v54, %v3587_v0  ;;  %v3806_v7 = vpop.f32.mrb[19].mxu1 }
 0x3eb   : > { %v3807_v52 = vadd.f32 %v3806_v7, %v3582_v27  ;;  %6692 = vmatmul.mubr.msk.f32.gmra.mrb[76].mxu0 %vm3091_vm2, %v4272_v26  ;;  %v3597_v26 = vadd.f32 %v10861_v56, %v3596_v31  ;;  %v5251_v31 = vld [vmem:[%s12864_s4] sm:$0xff] }
 0x3ec   : > { %v11073_v28 = vmax.f32 %v3812_v40, 0.0  ;;  %6694 = vmatprep.mubr.msk.f32.mxu0 %vm3091_vm2, %v4273_v32  ;;  %v3592_v40 = vadd.f32 %v10861_v56, %v10990_v63  ;;  %v5252_v63 = vld [vmem:[%s12864_s4 + $0x8] sm:$0xff] }
 0x3ed   : > { %v11076_v1 = vmax.f32 %v3807_v52, 0.0 }
 0x3ee   : > { %13725 = vst [vmem:[#allocation214_spill] sm:$0xff] %v11073_v28  ;;  %v4054_v35 = vrot.slane %v11073_v28, 1 }
 0x3ef   : > { %13726 = vst [vmem:[#allocation115_spill] sm:$0xff] %v11076_v1  ;;  %v4053_v33 = vrot.slane %v11076_v1, 1 }
 0x3f1   : > { %v11082_v37 = vsel %vm940_vm0, %v4052_v19, %v4053_v33  ;;  %v11086_v45 = vsel %vm940_vm0, %v4053_v33, %v4054_v35 }
 0x3f2   : > { %v3611_v0 = vpop.f32.mrb[48].mxu0  ;;  %v4274_v27 = vmul.f32 %v11082_v37, %v10626_v51  ;;  %v4275_v54 = vmul.f32 %v11086_v45, %v10642_v58 }
 0x3f3   : > { %v3613_v32 = vpop.f32.mrb[49].mxu0 }
 0x3f4   : > { %v6649_v7 = vpop.f32.mrb[20].mxu1  ;;  %6695 = vmatmul.mubr.msk.f32.gmra.mrb[78].mxu0 %vm3091_vm2, %v4274_v27 }
 0x3f5   : > { %v3822_v19 = vadd.f32 %v6649_v7, %v3597_v26  ;;  %v3816_v52 = vpop.f32.mrb[21].mxu1  ;;  %6697 = vmatprep.mubr.msk.f32.mxu0 %vm3091_vm2, %v4275_v54  ;;  %v6794_v26 = vpack.c.bf16 %v5252_v63, %v5251_v31  ;;  %v3607_v54 = vadd.f32 %v10861_v56, %v3606_v43  ;;  %v13731_v31 = vld [vmem:[#allocation199_spill] sm:$0xff]  ;;  %v13732_v43 = vmov 0.0|0.0  }
 0x3f6   : > { %v3817_v33 = vadd.f32 %v3816_v52, %v3592_v40  ;;  %v3602_v52 = vadd.f32 %v10861_v56, %v3601_v24 }
 0x3f7   : > { %v11097_v48 = vmax.f32 %v3822_v19, 0.0  ;;  %6795 = vmatpush1.bf16.msra.mxu1 %v6794_v26 }
 0x3f8   : > { %v11099_v51 = vmax.f32 %v3817_v33, 0.0  ;;  %6796 = vmatprep.subr.bf16.mxu1 %v13732_v43 }
 0x3f9   : > { %13727 = vst [vmem:[#allocation228_spill] sm:$0xff] %v11097_v48  ;;  %v4056_v58 = vrot.slane %v11097_v48, 1 }
 0x3fa   : > { %13728 = vst [vmem:[#allocation236_spill] sm:$0xff] %v11099_v51  ;;  %v4055_v27 = vrot.slane %v11099_v51, 1 }
 0x3fb   : > { %v3616_v32 = vpop.f32.mrb[50].mxu0 }
 0x3fc   : > { %v3618_v40 = vpop.f32.mrb[51].mxu0  ;;  %v11112_v7 = vsel %vm940_vm0, %v4054_v35, %v4055_v27  ;;  %v11116_v19 = vsel %vm940_vm0, %v4055_v27, %v4056_v58  ;;  %v5253_v35 = vld [vmem:[%s12864_s4 + $0x10] sm:$0xff]  ;;  %v5254_v27 = vld [vmem:[%s12864_s4 + $0x18] sm:$0xff] }
 0x3fd   : > { %13729 = vst [vmem:[#allocation230_spill] sm:$0xff] %v11112_v7  ;;  %13730 = vst [vmem:[#allocation235_spill] sm:$0xff] %v11116_v19  ;;  %v6652_v33 = vpop.f32.mrb[22].mxu1  ;;  %v4276_v8 = vmul.f32 %v11112_v7, %v10664_v11  ;;  %v4277_v63 = vmul.f32 %v11116_v19, %v13731_v31  ;;  %v6797_v40 = vpack.c.bf16 %v5254_v27, %v5253_v35  ;;  %v5255_v31 = vld [vmem:[%s12864_s4 + $0x20] sm:$0xff]  ;;  %v13744_v19 = vld [vmem:[#allocation35_spill] sm:$0xff] }
 0x3fe   : > { %v11130_v26 = vadd.f32 %v6652_v33, %v3607_v54  ;;  %v3826_v24 = vpop.f32.mrb[23].mxu1  ;;  %v5256_v54 = vld [vmem:[%s12864_s4 + $0x28] sm:$0xff]  ;;  %v13736_v27 = vld [vmem:[#allocation194_spill] sm:$0xff] }
 0x3ff   : > { %v3827_v3 = vadd.f32 %v3826_v24, %v3602_v52  ;;  %6698 = vmatmul.mubr.msk.f32.gmra.mrb[80].mxu0 %vm3091_vm2, %v4276_v8  ;;  %6798 = vmatpush1.bf16.msra.mxu1 %v6797_v40  ;;  %v6800_v33 = vpack.c.bf16 %v5256_v54, %v5255_v31  ;;  %v5257_v8 = vld [vmem:[%s12864_s4 + $0x30] sm:$0xff]  ;;  %v3617_v31 = vadd.f32 %v10861_v56, %v3616_v32  ;;  %v5260_v32 = vld [vmem:[%s12864_s4 + $0x48] sm:$0xff] }
 0x400   : > { %13733 = vst [vmem:[#allocation157_spill] sm:$0xff] %v11130_v26  ;;  %6700 = vmatprep.mubr.msk.f32.mxu0 %vm3091_vm2, %v4277_v63  ;;  %6799 = vmatprep.subr.bf16.mxu1 %v13732_v43  ;;  %v5258_v63 = vld [vmem:[%s12864_s4 + $0x38] sm:$0xff]  ;;  %v3909_v26 = vrot.slane %v10879_v21, 7 }
 0x401   : > { %v11134_v11 = vmax.f32 %v3827_v3, 0.0  ;;  %v6803_v40 = vpack.c.bf16 %v5258_v63, %v5257_v8  ;;  %v5261_v63 = vld [vmem:[%s12864_s4 + $0x50] sm:$0xff] }
 0x403   : > { %13734 = vst [vmem:[#allocation242_spill] sm:$0xff] %v11134_v11  ;;  %v13179_v52 = vrot.slane %v11134_v11, 1  ;;  %6801 = vmatpush1.bf16.msra.mxu1 %v6800_v33 }
 0x404   : > { %6802 = vmatprep.subr.bf16.mxu1 %v13732_v43 }
 0x405   : > { %v11148_v3 = vsel %vm940_vm0, %v4056_v58, %v13179_v52  ;;  %v3612_v58 = vadd.f32 %v10861_v56, %v3611_v0  ;;  %v6806_v0 = vpack.c.bf16 %v5260_v32, %v5259_v47 }
 0x406   : > { %13735 = vst [vmem:[#allocation241_spill] sm:$0xff] %v11148_v3  ;;  %v3621_v35 = vpop.f32.mrb[52].mxu0  ;;  %v4278_v24 = vmul.f32 %v11148_v3, %v13736_v27  ;;  %v5262_v27 = vld [vmem:[%s12864_s4 + $0x58] sm:$0xff] }
 0x407   : > { %v3623_v54 = vpop.f32.mrb[53].mxu0  ;;  %6804 = vmatpush1.bf16.msra.mxu1 %v6803_v40 }
 0x408   : > { %v6655_v33 = vpop.f32.mrb[24].mxu1  ;;  %6701 = vmatmul.mubr.msk.f32.gmra.mrb[82].mxu0 %vm3091_vm2, %v4278_v24  ;;  %6805 = vmatprep.subr.bf16.mxu1 %v13732_v43  ;;  %v6809_v24 = vpack.c.bf16 %v5262_v27, %v5261_v63 }
 0x409   : > { %v11162_v52 = vadd.f32 %v6655_v33, %v3617_v31  ;;  %v3836_v10 = vpop.f32.mrb[25].mxu1  ;;  %v5264_v33 = vld [vmem:[%s12864_s4 + $0x68] sm:$0xff] }
 0x40a   : > { %v11171_v8 = vadd.f32 %v3836_v10, %v3612_v58  ;;  %v3622_v10 = vadd.f32 %v10861_v56, %v3621_v35  ;;  %v5263_v58 = vld [vmem:[%s12864_s4 + $0x60] sm:$0xff]  ;;  %v5265_v35 = vld [vmem:[%s12864_s4 + $0x70] sm:$0xff] }
 0x40b   : > { %13737 = vst [vmem:[#allocation175_spill] sm:$0xff] %v11162_v52  ;;  %6807 = vmatpush1.bf16.msra.mxu1 %v6806_v0  ;;  %v6812_v63 = vpack.c.bf16 %v5264_v33, %v5263_v58  ;;  %v5280_v52 = vld [vmem:[%s12864_s4 + $0xe8] sm:$0xff] }
 0x40c   : > { %13738 = vst [vmem:[#allocation161_spill] sm:$0xff] %v11171_v8  ;;  %6808 = vmatprep.subr.bf16.mxu1 %v13732_v43 }
 0x40f   : > { %v3626_v40 = vpop.f32.mrb[54].mxu0  ;;  %6810 = vmatpush1.bf16.msra.mxu1 %v6809_v24  ;;  %v5266_v24 = vld [vmem:[%s12864_s4 + $0x78] sm:$0xff] }
 0x410   : > { %v3627_v31 = vadd.f32 %v10861_v56, %v3626_v40  ;;  %v3628_v54 = vpop.f32.mrb[55].mxu0  ;;  %6811 = vmatprep.subr.bf16.mxu1 %v13732_v43  ;;  %v6815_v40 = vpack.c.bf16 %v5266_v24, %v5265_v35  ;;  %v5269_v35 = vld [vmem:[%s12864_s4 + $0x90] sm:$0xff]  ;;  %v5270_v24 = vld [vmem:[%s12864_s4 + $0x98] sm:$0xff] }
 0x411   : > { %v6658_v47 = vpop.f32.mrb[26].mxu1  ;;  %v5268_v54 = vld [vmem:[%s12864_s4 + $0x88] sm:$0xff] }
 0x412   : > { %v11189_v32 = vadd.f32 %v6658_v47, %v3627_v31  ;;  %v3846_v0 = vpop.f32.mrb[27].mxu1  ;;  %v5267_v31 = vld [vmem:[%s12864_s4 + $0x80] sm:$0xff] }
 0x413   : > { %v11191_v27 = vadd.f32 %v3846_v0, %v3622_v10  ;;  %6813 = vmatpush1.bf16.msra.mxu1 %v6812_v63  ;;  %v6818_v47 = vpack.c.bf16 %v5268_v54, %v5267_v31  ;;  %v5271_v31 = vld [vmem:[%s12864_s4 + $0xa0] sm:$0xff]  ;;  %v5272_v54 = vld [vmem:[%s12864_s4 + $0xa8] sm:$0xff] }
 0x414   : > { %13739 = vst [vmem:[#allocation248_spill] sm:$0xff] %v11189_v32  ;;  %6814 = vmatprep.subr.bf16.mxu1 %v13732_v43  ;;  %v6821_v32 = vpack.c.bf16 %v5270_v24, %v5269_v35 }
 0x415   : > { %13740 = vst [vmem:[#allocation111_spill] sm:$0xff] %v11191_v27 }
 0x417   : > { %6816 = vmatpush1.bf16.msra.mxu1 %v6815_v40 }
 0x418   : > { %6817 = vmatprep.subr.bf16.mxu1 %v13732_v43 }
 0x41a   : > { %v3631_v10 = vpop.f32.mrb[56].mxu0 }
 0x41b   : > { %v3632_v58 = vadd.f32 %v10861_v56, %v3631_v10  ;;  %v3633_v33 = vpop.f32.mrb[57].mxu0  ;;  %6819 = vmatpush1.bf16.msra.mxu1 %v6818_v47  ;;  %v6824_v10 = vpack.c.bf16 %v5272_v54, %v5271_v31  ;;  %v5276_v31 = vld [vmem:[%s12864_s4 + $0xc8] sm:$0xff]  ;;  %v11240_v54 = vmax.f32 %v10867_v49, 0.0  ;;  %v5278_v49 = vld [vmem:[%s12864_s4 + $0xd8] sm:$0xff] }
 0x41c   : > { %v6661_v0 = vpop.f32.mrb[28].mxu1  ;;  %6820 = vmatprep.subr.bf16.mxu1 %v13732_v43 }
 0x41d   : > { %v3856_v63 = vpop.f32.mrb[29].mxu1  ;;  %13742 = vst [vmem:[#allocation199_spill] sm:$0xff] %v11240_v54 }
 0x41e   : > { %v11215_v40 = vadd.f32 %v3856_v63, %v3632_v58  ;;  %v5274_v63 = vld [vmem:[%s12864_s4 + $0xb8] sm:$0xff] }
 0x41f   : > { %6822 = vmatpush1.bf16.msra.mxu1 %v6821_v32  ;;  %v5273_v32 = vld [vmem:[%s12864_s4 + $0xb0] sm:$0xff] }
 0x420   : > { %13741 = vst [vmem:[#allocation117_spill] sm:$0xff] %v11215_v40  ;;  %6823 = vmatprep.subr.bf16.mxu1 %v13732_v43  ;;  %v6827_v40 = vpack.c.bf16 %v5274_v63, %v5273_v32  ;;  %v5277_v32 = vld [vmem:[%s12864_s4 + $0xd0] sm:$0xff] }
 0x423   : > { %v3636_v47 = vpop.f32.mrb[58].mxu0  ;;  %6825 = vmatpush1.bf16.msra.mxu1 %v6824_v10  ;;  %v11243_v10 = vmax.f32 %v10869_v16, 0.0 }
 0x424   : > { %v3637_v33 = vadd.f32 %v10861_v56, %v3636_v47  ;;  %v3638_v27 = vpop.f32.mrb[59].mxu0  ;;  %6826 = vmatprep.subr.bf16.mxu1 %v13732_v43 }
 0x425   : > { %v6664_v58 = vpop.f32.mrb[30].mxu1  ;;  %v5275_v27 = vld [vmem:[%s12864_s4 + $0xc0] sm:$0xff]  ;;  %v4035_v47 = vrot.slane %v11243_v10, 1  ;;  %v3907_v3 = vrot.slane %v11243_v10, 7 }
 0x426   : > { %v3862_v35 = vadd.f32 %v6661_v0, %v3637_v33  ;;  %v3866_v24 = vpop.f32.mrb[31].mxu1  ;;  %v6830_v0 = vpack.c.bf16 %v5276_v31, %v5275_v27  ;;  %v6833_v27 = vpack.c.bf16 %v5278_v49, %v5277_v32  ;;  %v3908_v31 = vrot.slane %v11240_v54, 7 }
 0x427   : > { %6828 = vmatpush1.bf16.msra.mxu1 %v6827_v40  ;;  %v4036_v40 = vrot.slane %v11240_v54, 1 }
 0x428   : > { %6829 = vmatprep.subr.bf16.mxu1 %v13732_v43  ;;  %v11263_v8 = vmax.f32 %v3862_v35, 0.0  ;;  %v13745_v35 = vld [vmem:[#allocation113_spill] sm:$0xff] }
 0x42a   : > { %v13193_v48 = vrot.slane %v11263_v8, 1 }
 0x42b   : > { %6831 = vmatpush1.bf16.msra.mxu1 %v6830_v0 }
 0x42c   : > { %6832 = vmatprep.subr.bf16.mxu1 %v13732_v43 }
 0x42e   : > { %v3641_v33 = vpop.f32.mrb[60].mxu0 }
 0x42f   : > { %v3642_v16 = vadd.f32 %v10861_v56, %v3641_v33  ;;  %v3643_v63 = vpop.f32.mrb[61].mxu0  ;;  %6834 = vmatpush1.bf16.msra.mxu1 %v6833_v27  ;;  %v11267_v33 = vsel %vm940_vm0, %v4035_v47, %v4036_v40 }
 0x430   : > { %13743 = vst [vmem:[#allocation194_spill] sm:$0xff] %v11267_v33  ;;  %6835 = vmatprep.subr.bf16.mxu1 %v13732_v43  ;;  %v4163_v11 = vmul.f32 %v11267_v33, %v13745_v35  ;;  %v13750_v35 = vld [vmem:[#allocation260_spill] sm:$0xff] }
 0x431   : > { %v3867_v0 = vadd.f32 %v3866_v24, %v3642_v16  ;;  %v6836_v24 = vpack.c.bf16 %v5280_v52, %v5279_v23  ;;  %v11282_v52 = vsel %vm426_vm1, %v3907_v3, %v3908_v31 }
 0x433   : > { %v11270_v32 = vmax.f32 %v3867_v0, 0.0  ;;  %v3646_v49 = vpop.f32.mrb[62].mxu0  ;;  %6837 = vmatpush1.bf16.msra.mxu1 %v6836_v24 }
 0x434   : > { %v3647_v16 = vadd.f32 %v10861_v56, %v3646_v49  ;;  %v3648_v63 = vpop.f32.mrb[63].mxu0  ;;  %6838 = vmatprep.subr.bf16.mxu1 %v13732_v43  ;;  %v5281_v56 = vld [vmem:[%s12864_s4 + $0xf0] sm:$0xff]  ;;  %v11306_v43 = vmul.f32 %v11282_v52, %v13750_v35 }
 0x435   : > { %v4065_v27 = vrot.slane %v11270_v32, 1  ;;  %v4003_v7 = vmul.f32 %v11270_v32, %v13744_v19  ;;  %v5282_v19 = vld [vmem:[%s12864_s4 + $0xf8] sm:$0xff] }
 0x436   : > { %v3872_v23 = vadd.f32 %v6664_v58, %v3647_v16  ;;  %v6839_v24 = vpack.c.bf16 %v5282_v19, %v5281_v56  ;;  %v13748_v16 = vld [vmem:[#allocation96_spill] sm:$0xff]  ;;  %13751 = vst [vmem:[#allocation260_spill] sm:$0xff] %v11306_v43  ;;  %v11313_v56 = vsel %vm426_vm1, %v3908_v31, %v3909_v26  ;;  %v13755_v31 = vld [vmem:[#allocation67_spill] sm:$0xff] }
 0x437   : > { %v7356_v0 = vpack.i.bf16 %v4003_v7, %v4163_v11  ;;  %v11297_v58 = vsel %vm940_vm0, %v13193_v48, %v4065_v27  ;;  %v3910_v7 = vrot.slane %v10877_v36, 7  ;;  %v13756_v48 = vld [vmem:[#allocation112_spill] sm:$0xff]  ;;  %v13757_v43 = vld [vmem:[#allocation99_spill] sm:$0xff] }
 0x438   : > { %v11291_v49 = vmax.f32 %v3872_v23, 0.0  ;;  %13747 = vst [vmem:[#allocation113_spill] sm:$0xff] %v11297_v58  ;;  %6840 = vmatpush1.bf16.msra.mxu1 %v6839_v24  ;;  %v11302_v63 = vmul.f32 %v11297_v58, %v13748_v16  ;;  %v4195_v19 = vmul.f32 %v11313_v56, %v13756_v48 }
 0x439   : > { %7357 = vrot.lane.b32.xlu0 %v7356_v0, %s7908_s21  ;;  %6855 = vmatprep.subr.bf16.mxu1 %v10730_v4  ;;  %v13759_v4 = vrot.slane %v10879_v21, 1 }
 0x43a   : > { %13746 = vst [vmem:[#allocation35_spill] sm:$0xff] %v11291_v49  ;;  %13749 = vst [vmem:[#allocation96_spill] sm:$0xff] %v11302_v63  ;;  %v13199_v11 = vrot.slane %v11291_v49, 7  ;;  %v4066_v23 = vrot.slane %v11291_v49, 1  ;;  %v13758_v63 = vld [vmem:[#allocation119_spill] sm:$0xff] }
 0x43b   : > { %v4227_v58 = vmul.f32 %v10879_v21, %v13758_v63  ;;  %v3911_v63 = vrot.slane %v10900_v41, 7 }
 0x43c   : > { %v11320_v0 = vsel %vm940_vm0, %v4065_v27, %v4066_v23  ;;  %v11326_v24 = vsel %vm426_vm1, %v13199_v11, %v3907_v3  ;;  %v11330_v16 = vsel %vm940_vm0, %v4066_v23, %v4035_v47  ;;  %v11344_v3 = vsel %vm940_vm0, %v4036_v40, %v13759_v4  ;;  %v13761_v11 = vld [vmem:[#allocation34_spill] sm:$0xff] }
 0x43d   : > { %13752 = vst [vmem:[#allocation263_spill] sm:$0xff] %v11320_v0  ;;  %13753 = vst [vmem:[#allocation264_spill] sm:$0xff] %v11326_v24  ;;  %v4099_v35 = vmul.f32 %v11320_v0, %v13755_v31  ;;  %v4131_v27 = vmul.f32 %v11326_v24, %v13757_v43  ;;  %v11348_v47 = vsel %vm426_vm1, %v3909_v26, %v3910_v7  ;;  %v13762_v0 = vld [vmem:[#allocation66_spill] sm:$0xff]  ;;  %v13764_v24 = vld [vmem:[#allocation124_spill] sm:$0xff] }
 0x43e   : > { %13754 = vst [vmem:[#allocation265_spill] sm:$0xff] %v11330_v16  ;;  %13760 = vst [vmem:[#allocation67_spill] sm:$0xff] %v11344_v3  ;;  %v4004_v48 = vmul.f32 %v11291_v49, %v13761_v11  ;;  %v4100_v43 = vmul.f32 %v11330_v16, %v13762_v0  ;;  %v13763_v4 = vld [vmem:[#allocation118_spill] sm:$0xff]  ;;  %v4196_v26 = vmul.f32 %v11348_v47, %v13764_v24  ;;  %v3912_v16 = vrot.slane %v10898_v2, 7 }
 0x43f   : > { %v7361_v23 = vpack.i.bf16 %v4099_v35, %v4195_v19  ;;  %v7366_v31 = vpack.i.bf16 %v4131_v27, %v4227_v58  ;;  %v4164_v40 = vmul.f32 %v11344_v3, %v13763_v4  ;;  %v13765_v35 = vld [vmem:[#allocation123_spill] sm:$0xff] }
 0x440   : > { %v7376_v58 = vpack.i.bf16 %v4100_v43, %v4196_v26  ;;  %v4228_v11 = vmul.f32 %v10877_v36, %v13765_v35  ;;  %v13766_v27 = vld [vmem:[#allocation127_spill] sm:$0xff]  ;;  %v13769_v26 = vld [vmem:[#allocation129_spill] sm:$0xff] }
 0x441   : > { %7362 = vrot.lane.b32.xlu1 %v7361_v23, %s7909_s22  ;;  %7367 = vrot.lane.b32.xlu0 %v7366_v31, %s7910_s23  ;;  %v7371_v19 = vpack.i.bf16 %v4004_v48, %v4164_v40  ;;  %v4165_v0 = vmul.f32 %v10887_v50, %v13766_v27  ;;  %v11368_v23 = vsel %vm426_vm1, %v3910_v7, %v3911_v63  ;;  %v13767_v31 = vld [vmem:[#allocation98_spill] sm:$0xff]  ;;  %v13768_v48 = vld [vmem:[#allocation37_spill] sm:$0xff] }
 0x442   : > { %v4132_v24 = vmul.f32 %v11282_v52, %v13767_v31  ;;  %v4005_v43 = vmul.f32 %v11243_v10, %v13768_v48  ;;  %v4229_v35 = vmul.f32 %v10900_v41, %v13769_v26  ;;  %v13770_v27 = vld [vmem:[#allocation126_spill] sm:$0xff]  ;;  %v11382_v7 = vsel %vm426_vm1, %v3911_v63, %v3912_v16  ;;  %v13772_v31 = vld [vmem:[#allocation69_spill] sm:$0xff]  ;;  %v13773_v48 = vld [vmem:[#allocation131_spill] sm:$0xff] }
 0x443   : > { %v4197_v49 = vmul.f32 %v11368_v23, %v13770_v27  ;;  %v13774_v26 = vld [vmem:[#allocation128_spill] sm:$0xff]  ;;  %v3913_v63 = vrot.slane %v10926_v53, 7 }
 0x444   : > { %v7381_v4 = vpack.i.bf16 %v4132_v24, %v4228_v11  ;;  %v7386_v40 = vpack.i.bf16 %v4005_v43, %v4165_v0  ;;  %v4101_v11 = vmul.f32 %v11267_v33, %v13772_v31  ;;  %v4198_v43 = vmul.f32 %v11382_v7, %v13773_v48  ;;  %v13778_v48 = vld [vmem:[#allocation130_spill] sm:$0xff] }
 0x445   : > { %7372 = vrot.lane.b32.xlu1 %v7371_v19, %s7908_s21  ;;  %7377 = vrot.lane.b32.xlu0 %v7376_v58, %s7909_s22  ;;  %v13771_v19 = vld [vmem:[#allocation101_spill] sm:$0xff]  ;;  %v4166_v27 = vmul.f32 %v10910_v22, %v13774_v26  ;;  %v4230_v26 = vmul.f32 %v10898_v2, %v13778_v48  ;;  %v3914_v33 = vrot.slane %v10923_v44, 7  ;;  %v13782_v48 = vld [vmem:[#allocation138_spill] sm:$0xff] }
 0x446   : > { %v4133_v58 = vmul.f32 %v11313_v56, %v13771_v19  ;;  %v7391_v24 = vpack.i.bf16 %v4101_v11, %v4197_v49  ;;  %v13776_v19 = vld [vmem:[#allocation36_spill] sm:$0xff] }
 0x447   : > { %v4006_v31 = vmul.f32 %v11240_v54, %v13776_v19 }
 0x448   : > { %v7396_v0 = vpack.i.bf16 %v4133_v58, %v4229_v35  ;;  %v13777_v58 = vld [vmem:[#allocation134_spill] sm:$0xff] }
 0x449   : > { %7382 = vrot.lane.b32.xlu1 %v7381_v4, %s7910_s23  ;;  %7387 = vrot.lane.b32.xlu0 %v7386_v40, %s7908_s21  ;;  %v13775_v4 = vld [vmem:[#allocation68_spill] sm:$0xff]  ;;  %v7401_v49 = vpack.i.bf16 %v4006_v31, %v4166_v27  ;;  %v4167_v11 = vmul.f32 %v10914_v59, %v13777_v58  ;;  %v13781_v31 = vld [vmem:[#allocation133_spill] sm:$0xff] }
 0x44a   : > { %v4102_v40 = vmul.f32 %v11344_v3, %v13775_v4  ;;  %v13780_v27 = vld [vmem:[#allocation100_spill] sm:$0xff]  ;;  %v4231_v3 = vmul.f32 %v10926_v53, %v13782_v48 }
 0x44b   : > { %v4134_v4 = vmul.f32 %v11348_v47, %v13780_v27  ;;  %v13785_v27 = vld [vmem:[#allocation137_spill] sm:$0xff] }
 0x44c   : > { %v7406_v35 = vpack.i.bf16 %v4102_v40, %v4198_v43 }
 0x44d   : > { %7397 = vrot.lane.b32.xlu0 %v7396_v0, %s7910_s23  ;;  %7392 = vrot.lane.b32.xlu1 %v7391_v24, %s7909_s22  ;;  %v11408_v0 = vsel %vm426_vm1, %v3912_v16, %v3913_v63  ;;  %v13779_v24 = vld [vmem:[#allocation39_spill] sm:$0xff]  ;;  %v7411_v19 = vpack.i.bf16 %v4134_v4, %v4230_v26  ;;  %v11422_v16 = vsel %vm426_vm1, %v3913_v63, %v3914_v33  ;;  %v3915_v63 = vrot.slane %v10952_v38, 7 }
 0x44e   : > { %v4007_v43 = vmul.f32 %v10879_v21, %v13779_v24  ;;  %v4199_v58 = vmul.f32 %v11408_v0, %v13781_v31  ;;  %v13784_v24 = vld [vmem:[#allocation103_spill] sm:$0xff]  ;;  %v4168_v4 = vmul.f32 %v10932_v55, %v13785_v27  ;;  %v13786_v31 = vld [vmem:[#allocation142_spill] sm:$0xff] }
 0x44f   : > { %v4200_v48 = vmul.f32 %v11422_v16, %v13786_v31  ;;  %v3916_v31 = vrot.slane %v10950_v29, 7 }
 0x450   : > { %v7416_v40 = vpack.i.bf16 %v4007_v43, %v4167_v11  ;;  %v4135_v11 = vmul.f32 %v11368_v23, %v13784_v24 }
 0x451   : > { %7407 = vrot.lane.b32.xlu0 %v7406_v35, %s7909_s22  ;;  %7402 = vrot.lane.b32.xlu1 %v7401_v49, %s7908_s21  ;;  %v13783_v35 = vld [vmem:[#allocation71_spill] sm:$0xff] }
 0x452   : > { %v4103_v49 = vmul.f32 %v10887_v50, %v13783_v35  ;;  %v7426_v43 = vpack.i.bf16 %v4135_v11, %v4231_v3  ;;  %v13790_v11 = vld [vmem:[#allocation145_spill] sm:$0xff] }
 0x453   : > { %v4169_v27 = vmul.f32 %v10936_v14, %v13790_v11 }
 0x454   : > { %v7421_v26 = vpack.i.bf16 %v4103_v49, %v4199_v58  ;;  %v13789_v49 = vld [vmem:[#allocation141_spill] sm:$0xff] }
 0x455   : > { %7417 = vrot.lane.b32.xlu0 %v7416_v40, %s7908_s21  ;;  %7412 = vrot.lane.b32.xlu1 %v7411_v19, %s7910_s23  ;;  %v13787_v40 = vld [vmem:[#allocation38_spill] sm:$0xff]  ;;  %v4232_v24 = vmul.f32 %v10923_v44, %v13789_v49  ;;  %v13794_v49 = vld [vmem:[#allocation147_spill] sm:$0xff] }
 0x456   : > { %v4008_v50 = vmul.f32 %v10877_v36, %v13787_v40  ;;  %v13788_v19 = vld [vmem:[#allocation70_spill] sm:$0xff]  ;;  %v4233_v11 = vmul.f32 %v10952_v38, %v13794_v49 }
 0x457   : > { %v4104_v35 = vmul.f32 %v10910_v22, %v13788_v19  ;;  %v13793_v19 = vld [vmem:[#allocation144_spill] sm:$0xff] }
 0x458   : > { %v7431_v58 = vpack.i.bf16 %v4008_v50, %v4168_v4  ;;  %v13792_v4 = vld [vmem:[#allocation41_spill] sm:$0xff] }
 0x459   : > { %7422 = vrot.lane.b32.xlu1 %v7421_v26, %s7909_s22  ;;  %7427 = vrot.lane.b32.xlu0 %v7426_v43, %s7910_s23  ;;  %v7436_v3 = vpack.i.bf16 %v4104_v35, %v4200_v48  ;;  %v11448_v26 = vsel %vm426_vm1, %v3914_v33, %v3915_v63  ;;  %v13791_v43 = vld [vmem:[#allocation102_spill] sm:$0xff]  ;;  %v4009_v48 = vmul.f32 %v10900_v41, %v13792_v4 }
 0x45a   : > { %v4136_v22 = vmul.f32 %v11382_v7, %v13791_v43  ;;  %v4201_v35 = vmul.f32 %v11448_v26, %v13793_v19  ;;  %v11462_v33 = vsel %vm426_vm1, %v3915_v63, %v3916_v31  ;;  %v13796_v43 = vld [vmem:[#allocation105_spill] sm:$0xff]  ;;  %v13797_v4 = vld [vmem:[#allocation146_spill] sm:$0xff]  ;;  %v3917_v63 = vrot.slane %v10978_v46, 7 }
 0x45b   : > { %v7446_v50 = vpack.i.bf16 %v4009_v48, %v4169_v27  ;;  %v4170_v48 = vmul.f32 %v10962_v34, %v13797_v4  ;;  %v13798_v19 = vld [vmem:[#allocation149_spill] sm:$0xff] }
 0x45c   : > { %v7441_v40 = vpack.i.bf16 %v4136_v22, %v4232_v24  ;;  %v4137_v24 = vmul.f32 %v11408_v0, %v13796_v43  ;;  %v4202_v49 = vmul.f32 %v11462_v33, %v13798_v19  ;;  %v3918_v19 = vrot.slane %v10975_v18, 7 }
 0x45d   : > { %7432 = vrot.lane.b32.xlu1 %v7431_v58, %s7908_s21  ;;  %7437 = vrot.lane.b32.xlu0 %v7436_v3, %s7909_s22  ;;  %v13795_v58 = vld [vmem:[#allocation73_spill] sm:$0xff] }
 0x45e   : > { %v4105_v3 = vmul.f32 %v10914_v59, %v13795_v58  ;;  %v7456_v22 = vpack.i.bf16 %v4137_v24, %v4233_v11  ;;  %v13802_v24 = vld [vmem:[#allocation151_spill] sm:$0xff] }
 0x45f   : > { %v4171_v4 = vmul.f32 %v10966_v61, %v13802_v24 }
 0x460   : > { %v7451_v27 = vpack.i.bf16 %v4105_v3, %v4201_v35  ;;  %v13801_v3 = vld [vmem:[#allocation148_spill] sm:$0xff] }
 0x461   : > { %7442 = vrot.lane.b32.xlu1 %v7441_v40, %s7910_s23  ;;  %7447 = vrot.lane.b32.xlu0 %v7446_v50, %s7908_s21  ;;  %v13799_v40 = vld [vmem:[#allocation40_spill] sm:$0xff]  ;;  %v4234_v43 = vmul.f32 %v10950_v29, %v13801_v3  ;;  %v13807_v3 = vld [vmem:[#allocation153_spill] sm:$0xff] }
 0x462   : > { %v4010_v59 = vmul.f32 %v10898_v2, %v13799_v40  ;;  %v13800_v50 = vld [vmem:[#allocation72_spill] sm:$0xff]  ;;  %v4235_v24 = vmul.f32 %v10978_v46, %v13807_v3 }
 0x463   : > { %v4106_v58 = vmul.f32 %v10932_v55, %v13800_v50  ;;  %v13806_v50 = vld [vmem:[#allocation150_spill] sm:$0xff] }
 0x464   : > { %v7461_v35 = vpack.i.bf16 %v4010_v59, %v4170_v48  ;;  %v13805_v48 = vld [vmem:[#allocation43_spill] sm:$0xff] }
 0x465   : > { %7452 = vrot.lane.b32.xlu1 %v7451_v27, %s7909_s22  ;;  %7457 = vrot.lane.b32.xlu0 %v7456_v22, %s7910_s23  ;;  %v7466_v11 = vpack.i.bf16 %v4106_v58, %v4202_v49  ;;  %v11488_v27 = vsel %vm426_vm1, %v3916_v31, %v3917_v63  ;;  %v13804_v22 = vld [vmem:[#allocation104_spill] sm:$0xff]  ;;  %v4011_v49 = vmul.f32 %v10926_v53, %v13805_v48 }
 0x466   : > { %13803 = vst [vmem:[#allocation112_spill] sm:$0xff] %v11488_v27  ;;  %v4138_v55 = vmul.f32 %v11422_v16, %v13804_v22  ;;  %v4203_v58 = vmul.f32 %v11488_v27, %v13806_v50  ;;  %v11502_v31 = vsel %vm426_vm1, %v3917_v63, %v3918_v19  ;;  %v13810_v22 = vld [vmem:[#allocation109_spill] sm:$0xff]  ;;  %v13811_v48 = vld [vmem:[#allocation152_spill] sm:$0xff]  ;;  %v3919_v63 = vrot.slane %v11004_v42, 7 }
 0x467   : > { %v7476_v59 = vpack.i.bf16 %v4011_v49, %v4171_v4  ;;  %13808 = vst [vmem:[#allocation99_spill] sm:$0xff] %v11502_v31  ;;  %v4172_v49 = vmul.f32 %v10984_v62, %v13811_v48  ;;  %v13812_v50 = vld [vmem:[#allocation156_spill] sm:$0xff] }
 0x468   : > { %v7471_v40 = vpack.i.bf16 %v4138_v55, %v4234_v43  ;;  %v4139_v43 = vmul.f32 %v11448_v26, %v13810_v22  ;;  %v4204_v3 = vmul.f32 %v11502_v31, %v13812_v50  ;;  %v3920_v50 = vrot.slane %v11002_v57, 7 }
 0x469   : > { %7462 = vrot.lane.b32.xlu1 %v7461_v35, %s7908_s21  ;;  %7467 = vrot.lane.b32.xlu0 %v7466_v11, %s7909_s22  ;;  %v13809_v35 = vld [vmem:[#allocation75_spill] sm:$0xff] }
 0x46a   : > { %v4107_v11 = vmul.f32 %v10936_v14, %v13809_v35  ;;  %v7486_v55 = vpack.i.bf16 %v4139_v43, %v4235_v24  ;;  %v13816_v43 = vld [vmem:[#allocation160_spill] sm:$0xff] }
 0x46b   : > { %v4173_v48 = vmul.f32 %v10988_v60, %v13816_v43 }
 0x46c   : > { %v7481_v4 = vpack.i.bf16 %v4107_v11, %v4203_v58  ;;  %v13815_v11 = vld [vmem:[#allocation155_spill] sm:$0xff] }
 0x46d   : > { %7472 = vrot.lane.b32.xlu1 %v7471_v40, %s7910_s23  ;;  %7477 = vrot.lane.b32.xlu0 %v7476_v59, %s7908_s21  ;;  %v13813_v40 = vld [vmem:[#allocation42_spill] sm:$0xff]  ;;  %v4236_v22 = vmul.f32 %v10975_v18, %v13815_v11  ;;  %v13821_v11 = vld [vmem:[#allocation163_spill] sm:$0xff] }
 0x46e   : > { %v4012_v14 = vmul.f32 %v10923_v44, %v13813_v40  ;;  %v13814_v59 = vld [vmem:[#allocation74_spill] sm:$0xff]  ;;  %v4237_v43 = vmul.f32 %v11004_v42, %v13821_v11 }
 0x46f   : > { %v4108_v35 = vmul.f32 %v10962_v34, %v13814_v59  ;;  %v13820_v59 = vld [vmem:[#allocation159_spill] sm:$0xff] }
 0x470   : > { %v7491_v58 = vpack.i.bf16 %v4012_v14, %v4172_v49  ;;  %v13819_v49 = vld [vmem:[#allocation45_spill] sm:$0xff] }
 0x471   : > { %7482 = vrot.lane.b32.xlu1 %v7481_v4, %s7909_s22  ;;  %7487 = vrot.lane.b32.xlu0 %v7486_v55, %s7910_s23  ;;  %v7496_v24 = vpack.i.bf16 %v4108_v35, %v4204_v3  ;;  %v11528_v4 = vsel %vm426_vm1, %v3918_v19, %v3919_v63  ;;  %v13818_v55 = vld [vmem:[#allocation108_spill] sm:$0xff]  ;;  %v4013_v3 = vmul.f32 %v10952_v38, %v13819_v49  ;;  %v13825_v49 = vld [vmem:[#allocation165_spill] sm:$0xff] }
 0x472   : > { %13817 = vst [vmem:[#allocation119_spill] sm:$0xff] %v11528_v4  ;;  %v4140_v34 = vmul.f32 %v11462_v33, %v13818_v55  ;;  %v4205_v35 = vmul.f32 %v11528_v4, %v13820_v59  ;;  %v11542_v19 = vsel %vm426_vm1, %v3919_v63, %v3920_v50  ;;  %v13824_v55 = vld [vmem:[#allocation162_spill] sm:$0xff]  ;;  %v13826_v59 = vld [vmem:[#allocation164_spill] sm:$0xff]  ;;  %v3921_v63 = vrot.slane %v11028_v12, 7 }
 0x473   : > { %v7506_v14 = vpack.i.bf16 %v4013_v3, %v4173_v48  ;;  %13822 = vst [vmem:[#allocation34_spill] sm:$0xff] %v11542_v19  ;;  %v4174_v3 = vmul.f32 %v11012_v6, %v13825_v49  ;;  %v4206_v11 = vmul.f32 %v11542_v19, %v13826_v59  ;;  %v3922_v59 = vrot.slane %v11025_v15, 7 }
 0x474   : > { %v7501_v40 = vpack.i.bf16 %v4140_v34, %v4236_v22  ;;  %v4141_v22 = vmul.f32 %v11488_v27, %v13824_v55 }
 0x475   : > { %7492 = vrot.lane.b32.xlu1 %v7491_v58, %s7908_s21  ;;  %7497 = vrot.lane.b32.xlu0 %v7496_v24, %s7909_s22  ;;  %v13823_v58 = vld [vmem:[#allocation77_spill] sm:$0xff] }
 0x476   : > { %v4109_v24 = vmul.f32 %v10966_v61, %v13823_v58  ;;  %v7516_v34 = vpack.i.bf16 %v4141_v22, %v4237_v43  ;;  %v13830_v22 = vld [vmem:[#allocation169_spill] sm:$0xff] }
 0x477   : > { %v4175_v49 = vmul.f32 %v11016_v13, %v13830_v22  ;;  %v13837_v22 = vld [vmem:[#allocation171_spill] sm:$0xff] }
 0x478   : > { %v7511_v48 = vpack.i.bf16 %v4109_v24, %v4205_v35  ;;  %v13829_v24 = vld [vmem:[#allocation167_spill] sm:$0xff] }
 0x479   : > { %7502 = vrot.lane.b32.xlu1 %v7501_v40, %s7910_s23  ;;  %7507 = vrot.lane.b32.xlu0 %v7506_v14, %s7908_s21  ;;  %v13827_v40 = vld [vmem:[#allocation44_spill] sm:$0xff]  ;;  %v4238_v55 = vmul.f32 %v11002_v57, %v13829_v24 }
 0x47a   : > { %v4014_v61 = vmul.f32 %v10950_v29, %v13827_v40  ;;  %v13828_v14 = vld [vmem:[#allocation76_spill] sm:$0xff] }
 0x47b   : > { %v4110_v58 = vmul.f32 %v10984_v62, %v13828_v14  ;;  %v13836_v24 = vld [vmem:[#allocation168_spill] sm:$0xff] }
 0x47c   : > { %v7521_v35 = vpack.i.bf16 %v4014_v61, %v4174_v3  ;;  %v13833_v3 = vld [vmem:[#allocation47_spill] sm:$0xff] }
 0x47d   : > { %7512 = vrot.lane.b32.xlu1 %v7511_v48, %s7909_s22  ;;  %7517 = vrot.lane.b32.xlu0 %v7516_v34, %s7910_s23  ;;  %v7526_v43 = vpack.i.bf16 %v4110_v58, %v4206_v11  ;;  %v11568_v48 = vsel %vm426_vm1, %v3920_v50, %v3921_v63  ;;  %v13832_v34 = vld [vmem:[#allocation166_spill] sm:$0xff]  ;;  %v4015_v11 = vmul.f32 %v10978_v46, %v13833_v3 }
 0x47e   : > { %13831 = vst [vmem:[#allocation66_spill] sm:$0xff] %v11568_v48  ;;  %v4142_v62 = vmul.f32 %v11502_v31, %v13832_v34  ;;  %v4207_v50 = vmul.f32 %v11568_v48, %v13836_v24  ;;  %v13839_v34 = vld [vmem:[#allocation79_spill] sm:$0xff] }
 0x47f   : > { %v7536_v58 = vpack.i.bf16 %v4015_v11, %v4175_v49  ;;  %v4111_v3 = vmul.f32 %v10988_v60, %v13839_v34  ;;  %v13841_v11 = vld [vmem:[#allocation174_spill] sm:$0xff]  ;;  %v13928_v31 = vld [vmem:[#allocation35_spill] sm:$0xff] }
 0x480   : > { %v7531_v14 = vpack.i.bf16 %v4142_v62, %v4238_v55  ;;  %v4176_v24 = vmul.f32 %v11034_v30, %v13841_v11  ;;  %v13847_v11 = vld [vmem:[#allocation181_spill] sm:$0xff] }
 0x481   : > { %7522 = vrot.lane.b32.xlu1 %v7521_v35, %s7908_s21  ;;  %7527 = vrot.lane.b32.xlu0 %v7526_v43, %s7909_s22  ;;  %v4239_v35 = vmul.f32 %v11028_v12, %v13837_v22  ;;  %v11586_v43 = vsel %vm426_vm1, %v3921_v63, %v3922_v59  ;;  %v7541_v49 = vpack.i.bf16 %v4111_v3, %v4207_v50  ;;  %v13842_v22 = vld [vmem:[#allocation173_spill] sm:$0xff]  ;;  %v3923_v63 = vrot.slane %v11052_v17, 7  ;;  %v13846_v3 = vld [vmem:[#allocation178_spill] sm:$0xff] }
 0x482   : > { %v11576_v40 = vpop.f32.mrb[64].mxu0  ;;  %13838 = vst [vmem:[#allocation123_spill] sm:$0xff] %v11586_v43 }
 0x483   : > { %13834 = vst [vmem:[#allocation118_spill] sm:$0xff] %v11576_v40  ;;  %v11578_v61 = vpop.f32.mrb[65].mxu0  ;;  %v13840_v40 = vld [vmem:[#allocation170_spill] sm:$0xff] }
 0x484   : > { %13835 = vst [vmem:[#allocation124_spill] sm:$0xff] %v11578_v61  ;;  %v4143_v55 = vmul.f32 %v11528_v4, %v13840_v40  ;;  %v4208_v61 = vmul.f32 %v11586_v43, %v13842_v22  ;;  %v4177_v22 = vmul.f32 %v11038_v25, %v13847_v11  ;;  %v13853_v11 = vld [vmem:[#allocation183_spill] sm:$0xff] }
 0x485   : > { %7532 = vrot.lane.b32.xlu1 %v7531_v14, %s7910_s23  ;;  %7537 = vrot.lane.b32.xlu0 %v7536_v58, %s7908_s21  ;;  %v13843_v14 = vld [vmem:[#allocation46_spill] sm:$0xff] }
 0x486   : > { %v7546_v62 = vpack.i.bf16 %v4143_v55, %v4239_v35  ;;  %v4016_v60 = vmul.f32 %v10975_v18, %v13843_v14  ;;  %v13844_v58 = vld [vmem:[#allocation78_spill] sm:$0xff]  ;;  %v4240_v55 = vmul.f32 %v11025_v15, %v13846_v3 }
 0x487   : > { %v4112_v40 = vmul.f32 %v11012_v6, %v13844_v58  ;;  %v13850_v6 = vld [vmem:[#allocation177_spill] sm:$0xff] }
 0x488   : > { %v7551_v35 = vpack.i.bf16 %v4016_v60, %v4176_v24  ;;  %v13851_v24 = vld [vmem:[#allocation49_spill] sm:$0xff] }
 0x489   : > { %7542 = vrot.lane.b32.xlu1 %v7541_v49, %s7909_s22  ;;  %7547 = vrot.lane.b32.xlu0 %v7546_v62, %s7910_s23  ;;  %v7556_v34 = vpack.i.bf16 %v4112_v40, %v4208_v61  ;;  %v3924_v49 = vrot.slane %v11050_v39, 7  ;;  %v11616_v62 = vsel %vm426_vm1, %v3922_v59, %v3923_v63  ;;  %v4144_v61 = vmul.f32 %v11542_v19, %v13850_v6  ;;  %v13852_v40 = vld [vmem:[#allocation180_spill] sm:$0xff]  ;;  %v13856_v6 = vld [vmem:[#allocation182_spill] sm:$0xff] }
 0x48a   : > { %13849 = vst [vmem:[#allocation37_spill] sm:$0xff] %v11616_v62  ;;  %v4017_v14 = vmul.f32 %v11004_v42, %v13851_v24  ;;  %v4209_v3 = vmul.f32 %v11616_v62, %v13852_v40  ;;  %v13857_v24 = vld [vmem:[#allocation185_spill] sm:$0xff]  ;;  %v13858_v40 = vld [vmem:[#allocation184_spill] sm:$0xff] }
 0x48b   : > { %v11605_v50 = vpop.f32.mrb[66].mxu0  ;;  %v7561_v60 = vpack.i.bf16 %v4144_v61, %v4240_v55  ;;  %v11630_v59 = vsel %vm426_vm1, %v3923_v63, %v3924_v49  ;;  %v4145_v55 = vmul.f32 %v11568_v48, %v13856_v6  ;;  %v3925_v63 = vrot.slane %v11076_v1, 7 }
 0x48c   : > { %13845 = vst [vmem:[#allocation127_spill] sm:$0xff] %v11605_v50  ;;  %v11612_v4 = vpop.f32.mrb[67].mxu0  ;;  %v7566_v58 = vpack.i.bf16 %v4017_v14, %v4177_v22  ;;  %v4241_v50 = vmul.f32 %v11052_v17, %v13853_v11  ;;  %13854 = vst [vmem:[#allocation129_spill] sm:$0xff] %v11630_v59  ;;  %v4178_v14 = vmul.f32 %v11060_v5, %v13857_v24 }
 0x48d   : > { %13848 = vst [vmem:[#allocation98_spill] sm:$0xff] %v11612_v4  ;;  %7552 = vrot.lane.b32.xlu1 %v7551_v35, %s7908_s21  ;;  %7557 = vrot.lane.b32.xlu0 %v7556_v34, %s7909_s22  ;;  %v13855_v35 = vld [vmem:[#allocation81_spill] sm:$0xff]  ;;  %v4210_v11 = vmul.f32 %v11630_v59, %v13858_v40 }
 0x48e   : > { %v4113_v34 = vmul.f32 %v11016_v13, %v13855_v35  ;;  %v7576_v61 = vpack.i.bf16 %v4145_v55, %v4241_v50  ;;  %v13863_v55 = vld [vmem:[#allocation187_spill] sm:$0xff]  ;;  %v13864_v40 = vld [vmem:[#allocation189_spill] sm:$0xff] }
 0x48f   : > { %v4242_v24 = vmul.f32 %v11050_v39, %v13863_v55  ;;  %v13868_v55 = vld [vmem:[#allocation188_spill] sm:$0xff] }
 0x490   : > { %v7571_v22 = vpack.i.bf16 %v4113_v34, %v4209_v3 }
 0x491   : > { %7562 = vrot.lane.b32.xlu1 %v7561_v60, %s7910_s23  ;;  %7567 = vrot.lane.b32.xlu0 %v7566_v58, %s7908_s21  ;;  %v13859_v60 = vld [vmem:[#allocation48_spill] sm:$0xff] }
 0x492   : > { %v4018_v13 = vmul.f32 %v11002_v57, %v13859_v60  ;;  %v13860_v58 = vld [vmem:[#allocation80_spill] sm:$0xff]  ;;  %v11660_v60 = vsel %vm426_vm1, %v3924_v49, %v3925_v63 }
 0x493   : > { %v4114_v35 = vmul.f32 %v11034_v30, %v13860_v58  ;;  %13865 = vst [vmem:[#allocation69_spill] sm:$0xff] %v11660_v60  ;;  %v13866_v30 = vld [vmem:[#allocation186_spill] sm:$0xff] }
 0x494   : > { %v7581_v34 = vpack.i.bf16 %v4018_v13, %v4178_v14  ;;  %v4146_v14 = vmul.f32 %v11586_v43, %v13866_v30  ;;  %v13872_v30 = vld [vmem:[#allocation191_spill] sm:$0xff]  ;;  %v13889_v43 = vld [vmem:[#allocation52_spill] sm:$0xff] }
 0x495   : > { %7572 = vrot.lane.b32.xlu1 %v7571_v22, %s7909_s22  ;;  %7577 = vrot.lane.b32.xlu0 %v7576_v61, %s7910_s23  ;;  %v7586_v6 = vpack.i.bf16 %v4114_v35, %v4210_v11  ;;  %v4179_v22 = vmul.f32 %v11064_v20, %v13864_v40  ;;  %v3926_v61 = vrot.slane %v11073_v28, 7  ;;  %v13867_v11 = vld [vmem:[#allocation51_spill] sm:$0xff]  ;;  %v4211_v40 = vmul.f32 %v11660_v60, %v13868_v55  ;;  %v13875_v55 = vld [vmem:[#allocation198_spill] sm:$0xff] }
 0x496   : > { %v11649_v3 = vpop.f32.mrb[68].mxu0  ;;  %v4019_v13 = vmul.f32 %v11028_v12, %v13867_v11  ;;  %v7591_v58 = vpack.i.bf16 %v4146_v14, %v4242_v24  ;;  %v4147_v24 = vmul.f32 %v11616_v62, %v13872_v30  ;;  %v13879_v30 = vld [vmem:[#allocation200_spill] sm:$0xff] }
 0x497   : > { %13861 = vst [vmem:[#allocation126_spill] sm:$0xff] %v11649_v3  ;;  %v11651_v50 = vpop.f32.mrb[69].mxu0  ;;  %v13869_v3 = vld [vmem:[#allocation195_spill] sm:$0xff]  ;;  %v11674_v49 = vsel %vm426_vm1, %v3925_v63, %v3926_v61 }
 0x498   : > { %13862 = vst [vmem:[#allocation101_spill] sm:$0xff] %v11651_v50  ;;  %v7596_v35 = vpack.i.bf16 %v4019_v13, %v4179_v22  ;;  %v4243_v50 = vmul.f32 %v11076_v1, %v13869_v3  ;;  %13870 = vst [vmem:[#allocation131_spill] sm:$0xff] %v11674_v49  ;;  %v13874_v13 = vld [vmem:[#allocation196_spill] sm:$0xff]  ;;  %v4212_v63 = vmul.f32 %v11674_v49, %v13875_v55 }
 0x499   : > { %7582 = vrot.lane.b32.xlu1 %v7581_v34, %s7908_s21  ;;  %7587 = vrot.lane.b32.xlu0 %v7586_v6, %s7909_s22  ;;  %v13871_v34 = vld [vmem:[#allocation83_spill] sm:$0xff]  ;;  %v4180_v3 = vmul.f32 %v11082_v37, %v13874_v13  ;;  %v13880_v13 = vld [vmem:[#allocation205_spill] sm:$0xff] }
 0x49a   : > { %v4115_v6 = vmul.f32 %v11038_v25, %v13871_v34  ;;  %v7606_v11 = vpack.i.bf16 %v4147_v24, %v4243_v50  ;;  %v13877_v25 = vld [vmem:[#allocation50_spill] sm:$0xff]  ;;  %v4244_v24 = vmul.f32 %v11073_v28, %v13879_v30  ;;  %v4181_v55 = vmul.f32 %v11086_v45, %v13880_v13  ;;  %v13886_v30 = vld [vmem:[#allocation207_spill] sm:$0xff] }
 0x49b   : > { %v13878_v34 = vld [vmem:[#allocation82_spill] sm:$0xff] }
 0x49c   : > { %v7601_v14 = vpack.i.bf16 %v4115_v6, %v4211_v40  ;;  %v4116_v50 = vmul.f32 %v11060_v5, %v13878_v34 }
 0x49d   : > { %7592 = vrot.lane.b32.xlu1 %v7591_v58, %s7910_s23  ;;  %7597 = vrot.lane.b32.xlu0 %v7596_v35, %s7908_s21  ;;  %v3927_v58 = vrot.slane %v11099_v51, 7  ;;  %v4020_v35 = vmul.f32 %v11025_v15, %v13877_v25  ;;  %v13885_v25 = vld [vmem:[#allocation209_spill] sm:$0xff] }
 0x49e   : > { %v7616_v6 = vpack.i.bf16 %v4116_v50, %v4212_v63 }
 0x49f   : > { %v11682_v22 = vpop.f32.mrb[70].mxu0  ;;  %v7611_v40 = vpack.i.bf16 %v4020_v35, %v4180_v3  ;;  %v13884_v3 = vld [vmem:[#allocation53_spill] sm:$0xff]  ;;  %v4245_v35 = vmul.f32 %v11099_v51, %v13885_v25  ;;  %v13891_v25 = vld [vmem:[#allocation7_spill] sm:$0xff] }
 0x4a0   : > { %13873 = vst [vmem:[#allocation128_spill] sm:$0xff] %v11682_v22  ;;  %v11689_v4 = vpop.f32.mrb[71].mxu0  ;;  %v13881_v22 = vld [vmem:[#allocation228_spill] sm:$0xff]  ;;  %v4021_v63 = vmul.f32 %v11052_v17, %v13884_v3  ;;  %v13903_v17 = vld [vmem:[#allocation210_spill] sm:$0xff] }
 0x4a1   : > { %13876 = vst [vmem:[#allocation68_spill] sm:$0xff] %v11689_v4  ;;  %7602 = vrot.lane.b32.xlu1 %v7601_v14, %s7909_s22  ;;  %7607 = vrot.lane.b32.xlu0 %v7606_v11, %s7910_s23  ;;  %v3928_v4 = vrot.slane %v13881_v22, 7  ;;  %v11704_v14 = vsel %vm426_vm1, %v3926_v61, %v3927_v58  ;;  %v13883_v11 = vld [vmem:[#allocation203_spill] sm:$0xff]  ;;  %v13887_v61 = vld [vmem:[#allocation4_spill] sm:$0xff] }
 0x4a2   : > { %13882 = vst [vmem:[#allocation36_spill] sm:$0xff] %v11704_v14  ;;  %v4148_v5 = vmul.f32 %v11630_v59, %v13883_v11  ;;  %v7626_v50 = vpack.i.bf16 %v4021_v63, %v4181_v55  ;;  %v4213_v13 = vmul.f32 %v11704_v14, %v13886_v30  ;;  %v11718_v62 = vmul.f32 %v11282_v52, %v13887_v61  ;;  %v13892_v52 = vld [vmem:[#allocation85_spill] sm:$0xff]  ;;  %v13894_v30 = vld [vmem:[#allocation54_spill] sm:$0xff] }
 0x4a3   : > { %v4022_v11 = vmul.f32 %v11050_v39, %v13889_v43  ;;  %v11726_v3 = vsel %vm426_vm1, %v3927_v58, %v3928_v4  ;;  %v4117_v55 = vmul.f32 %v11064_v20, %v13892_v52  ;;  %v11740_v43 = vmul.f32 %v11073_v28, %v13894_v30  ;;  %v13895_v58 = vld [vmem:[#allocation157_spill] sm:$0xff]  ;;  %v13899_v20 = vld [vmem:[#allocation242_spill] sm:$0xff]  ;;  %v13901_v39 = vld [vmem:[#allocation208_spill] sm:$0xff] }
 0x4a4   : > { %v7621_v34 = vpack.i.bf16 %v4148_v5, %v4244_v24  ;;  %13890 = vst [vmem:[#allocation134_spill] sm:$0xff] %v11726_v3  ;;  %v11730_v24 = vmul.f32 %v11313_v56, %v13891_v25  ;;  %v13893_v5 = vld [vmem:[#allocation211_spill] sm:$0xff]  ;;  %v11743_v61 = vmax.f32 %v13895_v58, 0.0  ;;  %v3929_v52 = vrot.slane %v13899_v20, 7  ;;  %v13902_v30 = vld [vmem:[#allocation230_spill] sm:$0xff] }
 0x4a5   : > { %7612 = vrot.lane.b32.xlu1 %v7611_v40, %s7908_s21  ;;  %7617 = vrot.lane.b32.xlu0 %v7616_v6, %s7909_s22  ;;  %v13888_v40 = vld [vmem:[#allocation206_spill] sm:$0xff]  ;;  %v4246_v63 = vmul.f32 %v13881_v22, %v13893_v5  ;;  %v13897_v25 = vld [vmem:[#allocation215_spill] sm:$0xff]  ;;  %v7631_v5 = vpack.i.bf16 %v4117_v55, %v4213_v13  ;;  %v4182_v28 = vmul.f32 %v13902_v30, %v13901_v39  ;;  %v13925_v15 = vrot.slane %v13899_v20, 1 }
 0x4a6   : > { %v4149_v6 = vmul.f32 %v11660_v60, %v13888_v40  ;;  %v4214_v58 = vmul.f32 %v11726_v3, %v13903_v17  ;;  %v13907_v13 = vld [vmem:[#allocation114_spill] sm:$0xff]  ;;  %v13908_v17 = vld [vmem:[#allocation235_spill] sm:$0xff] }
 0x4a7   : > { %v4183_v55 = vmul.f32 %v13908_v17, %v13907_v13 }
 0x4a8   : > { %v7636_v56 = vpack.i.bf16 %v4149_v6, %v4245_v35  ;;  %v13904_v35 = vld [vmem:[#allocation84_spill] sm:$0xff] }
 0x4a9   : > { %7622 = vrot.lane.b32.xlu1 %v7621_v34, %s7910_s23  ;;  %7627 = vrot.lane.b32.xlu0 %v7626_v50, %s7908_s21  ;;  %v4150_v34 = vmul.f32 %v11674_v49, %v13897_v25  ;;  %v13898_v50 = vld [vmem:[#allocation55_spill] sm:$0xff]  ;;  %v4118_v6 = vmul.f32 %v11082_v37, %v13904_v35  ;;  %v13913_v37 = vld [vmem:[#allocation216_spill] sm:$0xff] }
 0x4aa   : > { %v11745_v40 = vpop.f32.mrb[72].mxu0  ;;  %v4023_v60 = vmul.f32 %v11076_v1, %v13898_v50  ;;  %v13905_v25 = vld [vmem:[#allocation87_spill] sm:$0xff]  ;;  %v13906_v50 = vld [vmem:[#allocation56_spill] sm:$0xff] }
 0x4ab   : > { %13896 = vst [vmem:[#allocation130_spill] sm:$0xff] %v11745_v40  ;;  %v11752_v59 = vpop.f32.mrb[73].mxu0  ;;  %v3937_v40 = vrot.slane %v11270_v32, 7  ;;  %v11763_v49 = vmul.f32 %v11086_v45, %v13905_v25  ;;  %v11767_v1 = vmul.f32 %v13881_v22, %v13906_v50  ;;  %v7651_v39 = vpack.i.bf16 %v4150_v34, %v4246_v63  ;;  %v7358_v35 = vpop.permute.xlu0 %7357  ;;  %v13910_v25 = vld [vmem:[#allocation219_spill] sm:$0xff]  ;;  %v13911_v22 = vld [vmem:[#allocation221_spill] sm:$0xff]  ;;  %v13915_v63 = vld [vmem:[#allocation132_spill] sm:$0xff] }
 0x4ac   : > { %13900 = vst [vmem:[#allocation39_spill] sm:$0xff] %v11752_v59  ;;  %v13909_v59 = vld [vmem:[#allocation57_spill] sm:$0xff]  ;;  %v13223_v45 = vrot.slane %v11263_v8, 7  ;;  %v4247_v50 = vmul.f32 %v13899_v20, %v13910_v25  ;;  %v7646_v34 = vpack.i.bf16 %v4118_v6, %v4214_v58  ;;  %v4151_v25 = vmul.f32 %v11704_v14, %v13913_v37 }
 0x4ad   : > { %7632 = vrot.lane.b32.xlu1 %v7631_v5, %s7909_s22  ;;  %7637 = vrot.lane.b32.xlu0 %v7636_v56, %s7910_s23  ;;  %v11775_v48 = vmul.f32 %v11099_v51, %v13909_v59  ;;  %v11783_v5 = vmul.f32 %v11743_v61, %v13911_v22  ;;  %v7641_v56 = vpack.i.bf16 %v4022_v11, %v4182_v28  ;;  %v13914_v51 = vld [vmem:[#allocation86_spill] sm:$0xff]  ;;  %v7360_v11 = vunpack.i.h.bf16 %v7358_v35  ;;  %v13916_v6 = vld [vmem:[#allocation89_spill] sm:$0xff] }
 0x4ae   : > { %v11788_v59 = vsel %vm426_vm1, %v3928_v4, %v3929_v52  ;;  %v11794_v13 = vsel %vm426_vm1, %v13223_v45, %v3937_v40  ;;  %v11800_v22 = vmul.f32 %v13902_v30, %v13914_v51  ;;  %v11804_v28 = vmul.f32 %v11726_v3, %v13915_v63  ;;  %v13917_v37 = vld [vmem:[#allocation217_spill] sm:$0xff]  ;;  %v13922_v3 = vld [vmem:[#allocation218_spill] sm:$0xff] }
 0x4af   : > { %13912 = vst [vmem:[#allocation100_spill] sm:$0xff] %v11788_v59  ;;  %v7359_v4 = vunpack.i.l.bf16 %v7358_v35  ;;  %v7656_v58 = vpack.i.bf16 %v4023_v60, %v4183_v55  ;;  %v11810_v45 = vmul.f32 %v13908_v17, %v13916_v6  ;;  %v4215_v14 = vmul.f32 %v11788_v59, %v13917_v37  ;;  %v13921_v60 = vld [vmem:[#allocation3_spill] sm:$0xff]  ;;  %v13923_v37 = vld [vmem:[#allocation241_spill] sm:$0xff] }
 0x4b0   : > { %v7666_v51 = vpack.i.bf16 %v4151_v25, %v4247_v50  ;;  %v13918_v30 = vrot.slane %v11743_v61, 7  ;;  %v3971_v17 = vmul.f32 %v11794_v13, %v13921_v60  ;;  %v4184_v50 = vmul.f32 %v13923_v37, %v13922_v3 }
 0x4b1   : > { %7642 = vrot.lane.b32.xlu1 %v7641_v56, %s7908_s21  ;;  %7647 = vrot.lane.b32.xlu0 %v7646_v34, %s7909_s22  ;;  %v13920_v56 = vld [vmem:[#allocation161_spill] sm:$0xff]  ;;  %v13924_v25 = vrot.slane %v11743_v61, 1  ;;  %v5155_v3 = vsel %vm3091_vm2, %v11243_v10, %v7359_v4 }
 0x4b2   : > { %v11818_v63 = vsel %vm426_vm1, %v3929_v52, %v13918_v30  ;;  %v11823_v34 = vmax.f32 %v13920_v56, 0.0  ;;  %v5059_v60 = vsel %vm3091_vm2, %v3971_v17, %v7360_v11  ;;  %v7661_v11 = vpack.i.bf16 %v11763_v49, %v4215_v14  ;;  %v13930_v17 = vld [vmem:[#allocation220_spill] sm:$0xff]  ;;  %v13933_v49 = vld [vmem:[#allocation5_spill] sm:$0xff] }
 0x4b3   : > { %13919 = vst [vmem:[#allocation133_spill] sm:$0xff] %v11818_v63  ;;  %v7363_v55 = vpop.permute.xlu1 %7362  ;;  %v7368_v6 = vpop.permute.xlu0 %7367  ;;  %v11835_v52 = vsel %vm940_vm0, %v13925_v15, %v13924_v25  ;;  %v13929_v15 = vrot.slane %v13928_v31, 7 }
 0x4b4   : > { %v7365_v30 = vunpack.i.h.bf16 %v7363_v55  ;;  %v7364_v35 = vunpack.i.l.bf16 %v7363_v55  ;;  %v7370_v56 = vunpack.i.h.bf16 %v7368_v6  ;;  %v7369_v19 = vunpack.i.l.bf16 %v7368_v6  ;;  %v11837_v12 = vpop.f32.mrb[74].mxu0 }
 0x4b5   : > { %13926 = vst [vmem:[#allocation138_spill] sm:$0xff] %v11837_v12  ;;  %v11840_v57 = vpop.f32.mrb[75].mxu0  ;;  %7652 = vrot.lane.b32.xlu1 %v7651_v39, %s7910_s23  ;;  %7657 = vrot.lane.b32.xlu0 %v7656_v58, %s7908_s21  ;;  %v11850_v55 = vsel %vm426_vm1, %v3937_v40, %v13929_v15  ;;  %v4216_v39 = vmul.f32 %v11818_v63, %v13930_v17  ;;  %v13931_v12 = vld [vmem:[#allocation175_spill] sm:$0xff]  ;;  %v13932_v40 = vld [vmem:[#allocation122_spill] sm:$0xff] }
 0x4b6   : > { %13927 = vst [vmem:[#allocation71_spill] sm:$0xff] %v11840_v57  ;;  %v5091_v6 = vsel %vm3124_vm3, %v5059_v60, %v7365_v30  ;;  %v5187_v25 = vsel %vm3124_vm3, %v5155_v3, %v7364_v35  ;;  %v11858_v58 = vmax.f32 %v13931_v12, 0.0  ;;  %v4185_v15 = vmul.f32 %v11835_v52, %v13932_v40 }
 0x4b7   : > { %v7373_v57 = vpop.permute.xlu1 %7372  ;;  %v7378_v4 = vpop.permute.xlu0 %7377  ;;  %v5219_v42 = vsel %vm3157_vm4, %v5187_v25, %v7369_v19  ;;  %v5123_v27 = vsel %vm3157_vm4, %v5091_v6, %v7370_v56  ;;  %v3931_v30 = vrot.slane %v11823_v34, 7  ;;  %v3972_v14 = vmul.f32 %v11850_v55, %v13933_v49  ;;  %v13934_v19 = vld [vmem:[#allocation136_spill] sm:$0xff]  ;;  %v13935_v25 = vld [vmem:[#allocation154_spill] sm:$0xff] }
 0x4b8   : > { %v7375_v35 = vunpack.i.h.bf16 %v7373_v57  ;;  %v7374_v60 = vunpack.i.l.bf16 %v7373_v57  ;;  %5454 = vmatprep.mubr.f32.mxu1 %v5219_v42  ;;  %v4059_v12 = vrot.slane %v11823_v34, 1  ;;  %v7380_v3 = vunpack.i.h.bf16 %v7378_v4 }
 0x4b9   : > { %v7379_v17 = vunpack.i.l.bf16 %v7378_v4  ;;  %5455 = vmatmul.mubr.f32.vlgmr.msra.gmra.mrb[32].mxu1 %v5123_v27  ;;  %7662 = vrot.lane.b32.xlu1 %v7661_v11, %s7909_s22  ;;  %v11871_v56 = vmul.f32 %v11788_v59, %v13934_v19  ;;  %v7671_v6 = vpack.i.bf16 %v11740_v43, %v4184_v50  ;;  %v7676_v49 = vpack.i.bf16 %v11800_v22, %v4216_v39  ;;  %v13936_v19 = vld [vmem:[#allocation139_spill] sm:$0xff]  ;;  %v13937_v43 = vld [vmem:[#allocation158_spill] sm:$0xff] }
 0x4ba   : > { %7667 = vrot.lane.b32.xlu0 %v7666_v51, %s7910_s23  ;;  %v5156_v57 = vsel %vm3091_vm2, %v11240_v54, %v7374_v60  ;;  %v5060_v42 = vsel %vm3091_vm2, %v3972_v14, %v7375_v35  ;;  %6857 = vmatpush3.bf16.msra.mxu1 %v13935_v25  ;;  %v11884_v51 = vmul.f32 %v11818_v63, %v13936_v19  ;;  %v13938_v14 = vrot.slane %v11743_v61, 7  ;;  %v13939_v19 = vld [vmem:[#allocation225_spill] sm:$0xff]  ;;  %v13955_v54 = vld [vmem:[#allocation248_spill] sm:$0xff] }
 0x4bb   : > { %v7383_v11 = vpop.permute.xlu1 %7382  ;;  %v7388_v40 = vpop.permute.xlu0 %7387  ;;  %6856 = vmatprep.subr.bf16.mxu1 %v13937_v43  ;;  %v7686_v35 = vpack.i.bf16 %v11775_v48, %v4185_v15  ;;  %v5188_v22 = vsel %vm3124_vm3, %v5156_v57, %v7379_v17  ;;  %v5092_v39 = vsel %vm3124_vm3, %v5060_v42, %v7380_v3  ;;  %v4249_v27 = vmul.f32 %v11823_v34, %v13939_v19  ;;  %v13943_v42 = vld [vmem:[#allocation223_spill] sm:$0xff] }
 0x4bc   : > { %v7385_v50 = vunpack.i.h.bf16 %v7383_v11  ;;  %v7384_v60 = vunpack.i.l.bf16 %v7383_v11  ;;  %v11892_v25 = vsel %vm426_vm1, %v13938_v14, %v3931_v30  ;;  %v13940_v4 = vrot.slane %v11743_v61, 1 }
 0x4bd   : > { %7672 = vrot.lane.b32.xlu1 %v7671_v6, %s7908_s21  ;;  %v7390_v15 = vunpack.i.h.bf16 %v7388_v40  ;;  %v7389_v11 = vunpack.i.l.bf16 %v7388_v40  ;;  %v4217_v19 = vmul.f32 %v11892_v25, %v13943_v42 }
 0x4be   : > { %v11903_v48 = vsel %vm940_vm0, %v13940_v4, %v4059_v12  ;;  %7677 = vrot.lane.b32.xlu0 %v7676_v49, %s7909_s22  ;;  %v11906_v14 = vpop.f32.mrb[76].mxu0  ;;  %v5220_v6 = vsel %vm3157_vm4, %v5188_v22, %v7384_v60  ;;  %v5124_v17 = vsel %vm3157_vm4, %v5092_v39, %v7385_v50  ;;  %v13944_v4 = vrot.slane %v11858_v58, 7  ;;  %6858 = vmatpush3.bf16.msra.mxu1 %v13937_v43  ;;  %v13946_v50 = vld [vmem:[#allocation111_spill] sm:$0xff] }
 0x4bf   : > { %13941 = vst [vmem:[#allocation103_spill] sm:$0xff] %v11906_v14  ;;  %v11910_v3 = vpop.f32.mrb[77].mxu0  ;;  %v7398_v57 = vpop.permute.xlu0 %7397  ;;  %5459 = vmatprep.mubr.f32.mxu1 %v5220_v6  ;;  %v13945_v49 = vrot.slane %v11858_v58, 1  ;;  %v11928_v22 = vmax.f32 %v13946_v50, 0.0  ;;  %v13947_v14 = vld [vmem:[#allocation2_spill] sm:$0xff]  ;;  %v7696_v43 = vpack.i.bf16 %v11871_v56, %v4249_v27  ;;  %v7691_v27 = vpack.i.bf16 %v11810_v45, %v4217_v19  ;;  %v13956_v45 = vld [vmem:[#allocation88_spill] sm:$0xff] }
 0x4c0   : > { %13942 = vst [vmem:[#allocation137_spill] sm:$0xff] %v11910_v3  ;;  %v11918_v40 = vsel %vm426_vm1, %v3931_v30, %v13944_v4  ;;  %v7400_v39 = vunpack.i.h.bf16 %v7398_v57  ;;  %v7399_v6 = vunpack.i.l.bf16 %v7398_v57  ;;  %v7393_v42 = vpop.permute.xlu1 %7392  ;;  %5460 = vmatmul.mubr.f32.gmra.mrb[34].mxu1 %v5124_v17  ;;  %v13948_v3 = vld [vmem:[#allocation264_spill] sm:$0xff]  ;;  %v13949_v30 = vmov 0.0|0.0   ;;  %v13957_v19 = vld [vmem:[#allocation59_spill] sm:$0xff] }
 0x4c1   : > { %v11924_v60 = vsel %vm940_vm0, %v4059_v12, %v13945_v49  ;;  %v3973_v63 = vmul.f32 %v13948_v3, %v13947_v14  ;;  %6849 = vmatprep.subr.bf16.mxu1 %v13949_v30  ;;  %v7395_v4 = vunpack.i.h.bf16 %v7393_v42  ;;  %v7394_v59 = vunpack.i.l.bf16 %v7393_v42  ;;  %v13951_v49 = vld [vmem:[#allocation227_spill] sm:$0xff]  ;;  %v13952_v57 = vld [vmem:[#allocation224_spill] sm:$0xff]  ;;  %v13953_v30 = vld [vmem:[#allocation226_spill] sm:$0xff] }
 0x4c2   : > { %v13950_v12 = vpack.i.bf16 %v11804_v28, %v11783_v5  ;;  %v11940_v50 = vmul.f32 %v11858_v58, %v13951_v49  ;;  %7687 = vrot.lane.b32.xlu0 %v7686_v35, %s7908_s21  ;;  %v5157_v14 = vsel %vm3091_vm2, %v10879_v21, %v7389_v11  ;;  %v4186_v42 = vmul.f32 %v11903_v48, %v13952_v57  ;;  %v13954_v49 = vld [vmem:[#allocation143_spill] sm:$0xff] }
 0x4c3   : > { %v5061_v17 = vsel %vm3091_vm2, %v3973_v63, %v7390_v15  ;;  %v4218_v5 = vmul.f32 %v11918_v40, %v13953_v30  ;;  %v7408_v28 = vpop.permute.xlu0 %7407  ;;  %v5189_v56 = vsel %vm3124_vm3, %v5157_v14, %v7394_v59  ;;  %v4187_v35 = vmul.f32 %v11924_v60, %v13954_v49 }
 0x4c4   : > { %7682 = vrot.lane.b32.xlu1 %v13950_v12, %s7910_s23  ;;  %v5093_v12 = vsel %vm3124_vm3, %v5061_v17, %v7395_v4  ;;  %v11956_v21 = vmax.f32 %v13955_v54, 0.0  ;;  %v3933_v63 = vrot.slane %v11928_v22, 7  ;;  %v7403_v15 = vpop.permute.xlu1 %7402  ;;  %v5221_v11 = vsel %vm3157_vm4, %v5189_v56, %v7399_v6 }
 0x4c5   : > { %v5125_v30 = vsel %vm3157_vm4, %v5093_v12, %v7400_v39  ;;  %v7405_v57 = vunpack.i.h.bf16 %v7403_v15  ;;  %v7404_v18 = vunpack.i.l.bf16 %v7403_v15  ;;  %5464 = vmatprep.mubr.f32.mxu1 %v5221_v11  ;;  %v4122_v59 = vmul.f32 %v13923_v37, %v13956_v45 }
 0x4c6   : > { %v4027_v4 = vmul.f32 %v13899_v20, %v13957_v19  ;;  %v7410_v54 = vunpack.i.h.bf16 %v7408_v28  ;;  %v7409_v14 = vunpack.i.l.bf16 %v7408_v28  ;;  %5465 = vmatmul.mubr.f32.gmra.mrb[36].mxu1 %v5125_v30  ;;  %7697 = vrot.lane.b32.xlu0 %v7696_v43, %s7910_s23  ;;  %v7701_v6 = vpack.i.bf16 %v11767_v1, %v4186_v42  ;;  %v13959_v42 = vld [vmem:[#allocation229_spill] sm:$0xff] }
 0x4c7   : > { %v7711_v39 = vpack.i.bf16 %v11884_v51, %v11940_v50  ;;  %v4061_v17 = vrot.slane %v11928_v22, 1  ;;  %v11971_v56 = vpop.f32.mrb[78].mxu0  ;;  %v7706_v12 = vpack.i.bf16 %v4122_v59, %v4218_v5  ;;  %v5158_v37 = vsel %vm3091_vm2, %v10877_v36, %v7404_v18  ;;  %v13967_v36 = vld [vmem:[#allocation234_spill] sm:$0xff] }
 0x4c8   : > { %7692 = vrot.lane.b32.xlu1 %v7691_v27, %s7909_s22  ;;  %v7418_v27 = vpop.permute.xlu0 %7417  ;;  %v5062_v28 = vsel %vm3091_vm2, %v11718_v62, %v7405_v57  ;;  %v13237_v49 = vrot.slane %v11956_v21, 7  ;;  %v7413_v43 = vpop.permute.xlu1 %7412  ;;  %v7716_v1 = vpack.i.bf16 %v4027_v4, %v4187_v35  ;;  %v13958_v51 = vrot.slane %v11858_v58, 7  ;;  %v13960_v62 = vld [vmem:[#allocation233_spill] sm:$0xff] }
 0x4c9   : > { %v11978_v15 = vpop.f32.mrb[79].mxu0  ;;  %v4155_v5 = vmul.f32 %v11892_v25, %v13959_v42  ;;  %v7415_v18 = vunpack.i.h.bf16 %v7413_v43  ;;  %v7414_v11 = vunpack.i.l.bf16 %v7413_v43  ;;  %v4251_v30 = vmul.f32 %v11928_v22, %v13960_v62  ;;  %v13961_v42 = vld [vmem:[#allocation231_spill] sm:$0xff] }
 0x4ca   : > { %v11984_v50 = vsel %vm426_vm1, %v13958_v51, %v3933_v63  ;;  %v7420_v57 = vunpack.i.h.bf16 %v7418_v27  ;;  %v7419_v35 = vunpack.i.l.bf16 %v7418_v27  ;;  %7707 = vrot.lane.b32.xlu0 %v7706_v12, %s7909_s22  ;;  %v5190_v45 = vsel %vm3124_vm3, %v5158_v37, %v7409_v14  ;;  %v13963_v27 = vld [vmem:[#allocation117_spill] sm:$0xff] }
 0x4cb   : > { %v5094_v59 = vsel %vm3124_vm3, %v5062_v28, %v7410_v54  ;;  %v5222_v19 = vsel %vm3157_vm4, %v5190_v45, %v7414_v11  ;;  %v4219_v43 = vmul.f32 %v11984_v50, %v13961_v42  ;;  %v12006_v12 = vmax.f32 %v13963_v27, 0.0  ;;  %v13964_v45 = vld [vmem:[#allocation91_spill] sm:$0xff]  ;;  %v13965_v42 = vld [vmem:[#allocation6_spill] sm:$0xff]  ;;  %v13966_v27 = vld [vmem:[#allocation232_spill] sm:$0xff] }
 0x4cc   : > { %7702 = vrot.lane.b32.xlu1 %v7701_v6, %s7908_s21  ;;  %v7428_v4 = vpop.permute.xlu0 %7427  ;;  %v5126_v51 = vsel %vm3157_vm4, %v5094_v59, %v7415_v18  ;;  %v13962_v6 = vrot.slane %v11858_v58, 1  ;;  %v7423_v14 = vpop.permute.xlu1 %7422  ;;  %5469 = vmatprep.mubr.f32.mxu1 %v5222_v19  ;;  %v12012_v28 = vsel %vm426_vm1, %v3933_v63, %v13237_v49  ;;  %v4123_v59 = vmul.f32 %v11835_v52, %v13964_v45 }
 0x4cd   : > { %v7430_v54 = vunpack.i.h.bf16 %v7428_v4  ;;  %v7429_v37 = vunpack.i.l.bf16 %v7428_v4  ;;  %v7425_v18 = vunpack.i.h.bf16 %v7423_v14  ;;  %v7424_v11 = vunpack.i.l.bf16 %v7423_v14  ;;  %5470 = vmatmul.mubr.f32.gmra.mrb[38].mxu1 %v5126_v51 }
 0x4ce   : > { %v12003_v62 = vsel %vm940_vm0, %v13962_v6, %v4061_v17  ;;  %v3976_v6 = vmul.f32 %v11348_v47, %v13965_v42  ;;  %7717 = vrot.lane.b32.xlu0 %v7716_v1, %s7908_s21  ;;  %v5159_v19 = vsel %vm3091_vm2, %v10900_v41, %v7419_v35  ;;  %v7726_v4 = vpack.i.bf16 %v4155_v5, %v4251_v30 }
 0x4cf   : > { %v5063_v63 = vsel %vm3091_vm2, %v11730_v24, %v7420_v57  ;;  %v4188_v51 = vmul.f32 %v12003_v62, %v13966_v27  ;;  %v7721_v49 = vpack.i.bf16 %v4123_v59, %v4219_v43  ;;  %v4220_v47 = vmul.f32 %v12012_v28, %v13967_v36  ;;  %v13969_v43 = vld [vmem:[#allocation58_spill] sm:$0xff] }
 0x4d0   : > { %7712 = vrot.lane.b32.xlu1 %v7711_v39, %s7910_s23  ;;  %v7438_v14 = vpop.permute.xlu0 %7437  ;;  %v5191_v39 = vsel %vm3124_vm3, %v5159_v19, %v7424_v11  ;;  %v5095_v45 = vsel %vm3124_vm3, %v5063_v63, %v7425_v18  ;;  %v3935_v1 = vrot.slane %v12006_v12, 7  ;;  %v7433_v42 = vpop.permute.xlu1 %7432  ;;  %v13968_v24 = vrot.slane %v11956_v21, 1  ;;  %v13970_v18 = vld [vmem:[#allocation237_spill] sm:$0xff]  ;;  %v13973_v63 = vld [vmem:[#allocation238_spill] sm:$0xff] }
 0x4d1   : > { %v5223_v41 = vsel %vm3157_vm4, %v5191_v39, %v7429_v37  ;;  %v5127_v5 = vsel %vm3157_vm4, %v5095_v45, %v7430_v54  ;;  %v7435_v57 = vunpack.i.h.bf16 %v7433_v42  ;;  %v7434_v35 = vunpack.i.l.bf16 %v7433_v42 }
 0x4d2   : > { %v12037_v30 = vsel %vm940_vm0, %v4061_v17, %v13968_v24  ;;  %5474 = vmatprep.mubr.f32.mxu1 %v5223_v41  ;;  %v4028_v36 = vmul.f32 %v11743_v61, %v13969_v43  ;;  %v4252_v11 = vmul.f32 %v11956_v21, %v13970_v18  ;;  %v7440_v37 = vunpack.i.h.bf16 %v7438_v14  ;;  %7727 = vrot.lane.b32.xlu0 %v7726_v4, %s7910_s23  ;;  %v12045_v54 = vpop.f32.mrb[80].mxu0  ;;  %v13972_v17 = vld [vmem:[#allocation90_spill] sm:$0xff]  ;;  %v13975_v41 = vld [vmem:[#allocation239_spill] sm:$0xff] }
 0x4d3   : > { %v7439_v59 = vunpack.i.l.bf16 %v7438_v14  ;;  %5475 = vmatmul.mubr.f32.gmra.mrb[40].mxu1 %v5127_v5  ;;  %13971 = vst [vmem:[#allocation142_spill] sm:$0xff] %v12045_v54  ;;  %v4124_v19 = vmul.f32 %v11903_v48, %v13972_v17  ;;  %v4156_v27 = vmul.f32 %v11918_v40, %v13973_v63  ;;  %v5160_v42 = vsel %vm3091_vm2, %v10898_v2, %v7434_v35  ;;  %v13977_v63 = vld [vmem:[#allocation9_spill] sm:$0xff] }
 0x4d4   : > { %7722 = vrot.lane.b32.xlu1 %v7721_v49, %s7909_s22  ;;  %v12051_v49 = vpop.f32.mrb[81].mxu0  ;;  %v7448_v39 = vpop.permute.xlu0 %7447  ;;  %v7731_v45 = vpack.i.bf16 %v4028_v36, %v4188_v51  ;;  %v5064_v14 = vsel %vm3091_vm2, %v3976_v6, %v7435_v57  ;;  %v4189_v4 = vmul.f32 %v12037_v30, %v13975_v41  ;;  %v4063_v5 = vrot.slane %v12006_v12, 1  ;;  %v13978_v57 = vld [vmem:[#allocation61_spill] sm:$0xff] }
 0x4d5   : > { %13974 = vst [vmem:[#allocation38_spill] sm:$0xff] %v12051_v49  ;;  %v7443_v24 = vpop.permute.xlu1 %7442  ;;  %v7736_v43 = vpack.i.bf16 %v4124_v19, %v4220_v47  ;;  %v13976_v18 = vrot.slane %v11956_v21, 7  ;;  %v3977_v51 = vmul.f32 %v11368_v23, %v13977_v63  ;;  %v7741_v6 = vpack.i.bf16 %v4156_v27, %v4252_v11  ;;  %v13979_v63 = vld [vmem:[#allocation243_spill] sm:$0xff] }
 0x4d6   : > { %v7445_v36 = vunpack.i.h.bf16 %v7443_v24  ;;  %v7444_v2 = vunpack.i.l.bf16 %v7443_v24  ;;  %v4029_v35 = vmul.f32 %v11823_v34, %v13978_v57  ;;  %v7450_v41 = vunpack.i.h.bf16 %v7448_v39 }
 0x4d7   : > { %v12063_v17 = vsel %vm426_vm1, %v13976_v18, %v3935_v1  ;;  %v7449_v54 = vunpack.i.l.bf16 %v7448_v39  ;;  %7737 = vrot.lane.b32.xlu0 %v7736_v43, %s7909_s22  ;;  %v5192_v47 = vsel %vm3124_vm3, %v5160_v42, %v7439_v59  ;;  %v5096_v19 = vsel %vm3124_vm3, %v5064_v14, %v7440_v37  ;;  %v13980_v39 = vld [vmem:[#allocation245_spill] sm:$0xff] }
 0x4d8   : > { %7732 = vrot.lane.b32.xlu1 %v7731_v45, %s7908_s21  ;;  %v7458_v18 = vpop.permute.xlu0 %7457  ;;  %v5224_v49 = vsel %vm3157_vm4, %v5192_v47, %v7444_v2  ;;  %v5128_v23 = vsel %vm3157_vm4, %v5096_v19, %v7445_v36  ;;  %v7746_v24 = vpack.i.bf16 %v4029_v35, %v4189_v4  ;;  %v4221_v11 = vmul.f32 %v12063_v17, %v13979_v63  ;;  %v13982_v4 = vld [vmem:[#allocation93_spill] sm:$0xff]  ;;  %v13984_v47 = vld [vmem:[#allocation240_spill] sm:$0xff] }
 0x4d9   : > { %v7453_v27 = vpop.permute.xlu1 %7452  ;;  %v7460_v45 = vunpack.i.h.bf16 %v7458_v18  ;;  %v7459_v57 = vunpack.i.l.bf16 %v7458_v18  ;;  %5479 = vmatprep.mubr.f32.mxu1 %v5224_v49  ;;  %v4253_v43 = vmul.f32 %v12006_v12, %v13980_v39  ;;  %v13981_v59 = vrot.slane %v11956_v21, 1 }
 0x4da   : > { %v7455_v42 = vunpack.i.h.bf16 %v7453_v27  ;;  %v7454_v14 = vunpack.i.l.bf16 %v7453_v27  ;;  %5480 = vmatmul.mubr.f32.gmra.mrb[42].mxu1 %v5128_v23  ;;  %v4125_v36 = vmul.f32 %v11924_v60, %v13982_v4  ;;  %v13983_v2 = vrot.slane %v11263_v8, 7 }
 0x4db   : > { %v12083_v37 = vsel %vm940_vm0, %v13981_v59, %v4063_v5  ;;  %7747 = vrot.lane.b32.xlu0 %v7746_v24, %s7908_s21  ;;  %v5161_v35 = vsel %vm3091_vm2, %v10926_v53, %v7449_v54  ;;  %v4157_v19 = vmul.f32 %v11984_v50, %v13984_v47  ;;  %v5065_v18 = vsel %vm3091_vm2, %v3977_v51, %v7450_v41  ;;  %v12102_v63 = vpop.f32.mrb[82].mxu0  ;;  %v13987_v24 = vld [vmem:[#allocation244_spill] sm:$0xff] }
 0x4dc   : > { %7742 = vrot.lane.b32.xlu1 %v7741_v6, %s7910_s23  ;;  %v12092_v49 = vsel %vm426_vm1, %v3935_v1, %v13983_v2  ;;  %v13985_v6 = vld [vmem:[#allocation8_spill] sm:$0xff]  ;;  %13986 = vst [vmem:[#allocation70_spill] sm:$0xff] %v12102_v63  ;;  %v7468_v27 = vpop.permute.xlu0 %7467  ;;  %v5193_v39 = vsel %vm3124_vm3, %v5161_v35, %v7454_v14  ;;  %v7751_v1 = vpack.i.bf16 %v4125_v36, %v4221_v11  ;;  %v12109_v2 = vpop.f32.mrb[83].mxu0  ;;  %v13990_v14 = vrot.slane %v11263_v8, 1 }
 0x4dd   : > { %v3978_v23 = vmul.f32 %v11382_v7, %v13985_v6  ;;  %v5097_v59 = vsel %vm3124_vm3, %v5065_v18, %v7455_v42  ;;  %v4190_v4 = vmul.f32 %v12083_v37, %v13987_v24  ;;  %v7463_v53 = vpop.permute.xlu1 %7462  ;;  %v5225_v54 = vsel %vm3157_vm4, %v5193_v39, %v7459_v57  ;;  %v13988_v7 = vld [vmem:[#allocation246_spill] sm:$0xff]  ;;  %v13989_v11 = vld [vmem:[#allocation60_spill] sm:$0xff] }
 0x4de   : > { %v7756_v51 = vpack.i.bf16 %v4157_v19, %v4253_v43  ;;  %v5129_v41 = vsel %vm3157_vm4, %v5097_v59, %v7460_v45  ;;  %v4222_v47 = vmul.f32 %v12092_v49, %v13988_v7  ;;  %v7465_v6 = vunpack.i.h.bf16 %v7463_v53  ;;  %5484 = vmatprep.mubr.f32.mxu1 %v5225_v54  ;;  %v13991_v45 = vld [vmem:[#allocation92_spill] sm:$0xff]  ;;  %v13992_v59 = vld [vmem:[#allocation247_spill] sm:$0xff]  ;;  %v13993_v54 = vld [vmem:[#allocation249_spill] sm:$0xff] }
 0x4df   : > { %v7464_v63 = vunpack.i.l.bf16 %v7463_v53  ;;  %v4030_v42 = vmul.f32 %v11858_v58, %v13989_v11  ;;  %v12121_v57 = vsel %vm940_vm0, %v4063_v5, %v13990_v14  ;;  %v7470_v43 = vunpack.i.h.bf16 %v7468_v27  ;;  %5485 = vmatmul.mubr.f32.gmra.mrb[44].mxu1 %v5129_v41 }
 0x4e0   : > { %7752 = vrot.lane.b32.xlu1 %v7751_v1, %s7909_s22  ;;  %v7469_v36 = vunpack.i.l.bf16 %v7468_v27  ;;  %7757 = vrot.lane.b32.xlu0 %v7756_v51, %s7910_s23  ;;  %v4126_v35 = vmul.f32 %v12003_v62, %v13991_v45  ;;  %v7478_v19 = vpop.permute.xlu0 %7477  ;;  %v5066_v1 = vsel %vm3091_vm2, %v3978_v23, %v7465_v6  ;;  %v4254_v24 = vmul.f32 %v11263_v8, %v13992_v59  ;;  %v13994_v51 = vld [vmem:[#allocation11_spill] sm:$0xff] }
 0x4e1   : > { %v7761_v18 = vpack.i.bf16 %v4030_v42, %v4190_v4  ;;  %v5162_v39 = vsel %vm3091_vm2, %v10923_v44, %v7464_v63  ;;  %v7473_v5 = vpop.permute.xlu1 %7472  ;;  %v4191_v27 = vmul.f32 %v12121_v57, %v13993_v54  ;;  %v3979_v41 = vmul.f32 %v11408_v0, %v13994_v51  ;;  %v13995_v4 = vld [vmem:[#allocation179_spill] sm:$0xff] }
 0x4e2   : > { %v7766_v53 = vpack.i.bf16 %v4126_v35, %v4222_v47  ;;  %v7475_v7 = vunpack.i.h.bf16 %v7473_v5  ;;  %v7474_v11 = vunpack.i.l.bf16 %v7473_v5  ;;  %v4158_v44 = vmul.f32 %v12012_v28, %v13995_v4  ;;  %v13996_v63 = vld [vmem:[#allocation63_spill] sm:$0xff] }
 0x4e3   : > { %v4031_v23 = vmul.f32 %v11928_v22, %v13996_v63  ;;  %v7480_v6 = vunpack.i.h.bf16 %v7478_v19  ;;  %v7479_v42 = vunpack.i.l.bf16 %v7478_v19  ;;  %v5194_v47 = vsel %vm3124_vm3, %v5162_v39, %v7469_v36  ;;  %v13997_v59 = vld [vmem:[#allocation251_spill] sm:$0xff]  ;;  %v13998_v63 = vld [vmem:[#allocation253_spill] sm:$0xff] }
 0x4e4   : > { %7762 = vrot.lane.b32.xlu1 %v7761_v18, %s7908_s21  ;;  %7767 = vrot.lane.b32.xlu0 %v7766_v53, %s7909_s22  ;;  %v5098_v14 = vsel %vm3124_vm3, %v5066_v1, %v7470_v43  ;;  %v7488_v45 = vpop.permute.xlu0 %7487  ;;  %v5226_v0 = vsel %vm3157_vm4, %v5194_v47, %v7474_v11  ;;  %v7771_v18 = vpack.i.bf16 %v4158_v44, %v4254_v24  ;;  %v13999_v43 = vld [vmem:[#allocation95_spill] sm:$0xff] }
 0x4e5   : > { %v5130_v35 = vsel %vm3157_vm4, %v5098_v14, %v7475_v7  ;;  %v4223_v5 = vmul.f32 %v11794_v13, %v13997_v59  ;;  %v7483_v54 = vpop.permute.xlu1 %7482  ;;  %v7490_v51 = vunpack.i.h.bf16 %v7488_v45  ;;  %v7489_v4 = vunpack.i.l.bf16 %v7488_v45  ;;  %5489 = vmatprep.mubr.f32.mxu1 %v5226_v0  ;;  %v14000_v7 = vld [vmem:[#allocation250_spill] sm:$0xff]  ;;  %v14001_v45 = vld [vmem:[#allocation252_spill] sm:$0xff]  ;;  %v14002_v0 = vld [vmem:[#allocation113_spill] sm:$0xff] }
 0x4e6   : > { %v7776_v19 = vpack.i.bf16 %v4031_v23, %v4191_v27  ;;  %v4255_v53 = vmul.f32 %v11270_v32, %v13998_v63  ;;  %v7485_v36 = vunpack.i.h.bf16 %v7483_v54  ;;  %v7484_v39 = vunpack.i.l.bf16 %v7483_v54  ;;  %5490 = vmatmul.mubr.f32.gmra.mrb[46].mxu1 %v5130_v35 }
 0x4e7   : > { %v4127_v1 = vmul.f32 %v12037_v30, %v13999_v43  ;;  %v5163_v24 = vsel %vm3091_vm2, %v10952_v38, %v7479_v42  ;;  %v4159_v11 = vmul.f32 %v12063_v17, %v14000_v7  ;;  %v5067_v27 = vsel %vm3091_vm2, %v3979_v41, %v7480_v6  ;;  %v14003_v42 = vld [vmem:[#allocation254_spill] sm:$0xff] }
 0x4e8   : > { %7772 = vrot.lane.b32.xlu1 %v7771_v18, %s7910_s23  ;;  %7777 = vrot.lane.b32.xlu0 %v7776_v19, %s7908_s21  ;;  %v7498_v44 = vpop.permute.xlu0 %7497  ;;  %v5195_v23 = vsel %vm3124_vm3, %v5163_v24, %v7484_v39  ;;  %v5099_v14 = vsel %vm3124_vm3, %v5067_v27, %v7485_v36  ;;  %v4192_v35 = vmul.f32 %v14002_v0, %v14001_v45  ;;  %v14004_v6 = vld [vmem:[#allocation62_spill] sm:$0xff]  ;;  %v14007_v27 = vld [vmem:[#allocation255_spill] sm:$0xff] }
 0x4e9   : > { %v7781_v47 = vpack.i.bf16 %v4127_v1, %v4223_v5  ;;  %v7493_v18 = vpop.permute.xlu1 %7492  ;;  %v5227_v59 = vsel %vm3157_vm4, %v5195_v23, %v7489_v4  ;;  %v7786_v54 = vpack.i.bf16 %v4159_v11, %v4255_v53  ;;  %v5131_v38 = vsel %vm3157_vm4, %v5099_v14, %v7490_v51  ;;  %v14005_v36 = vld [vmem:[#allocation10_spill] sm:$0xff]  ;;  %v14008_v14 = vld [vmem:[#allocation192_spill] sm:$0xff] }
 0x4ea   : > { %v4224_v19 = vmul.f32 %v11850_v55, %v14003_v42  ;;  %v7495_v63 = vunpack.i.h.bf16 %v7493_v18  ;;  %v7494_v41 = vunpack.i.l.bf16 %v7493_v18  ;;  %5494 = vmatprep.mubr.f32.mxu1 %v5227_v59  ;;  %v4032_v5 = vmul.f32 %v11956_v21, %v14004_v6  ;;  %v14006_v51 = vld [vmem:[#allocation94_spill] sm:$0xff]  ;;  %v14010_v18 = vld [vmem:[#allocation13_spill] sm:$0xff] }
 0x4eb   : > { %v3980_v39 = vmul.f32 %v11422_v16, %v14005_v36  ;;  %v7500_v43 = vunpack.i.h.bf16 %v7498_v44  ;;  %v7499_v1 = vunpack.i.l.bf16 %v7498_v44  ;;  %5495 = vmatmul.mubr.f32.gmra.mrb[48].mxu1 %v5131_v38  ;;  %v4128_v4 = vmul.f32 %v12083_v37, %v14006_v51  ;;  %v14009_v44 = vld [vmem:[#allocation263_spill] sm:$0xff]  ;;  %v14012_v42 = vld [vmem:[#allocation65_spill] sm:$0xff] }
 0x4ec   : > { %7782 = vrot.lane.b32.xlu1 %v7781_v47, %s7909_s22  ;;  %7787 = vrot.lane.b32.xlu0 %v7786_v54, %s7910_s23  ;;  %v7508_v53 = vpop.permute.xlu0 %7507  ;;  %v7791_v24 = vpack.i.bf16 %v4032_v5, %v4192_v35  ;;  %v5164_v7 = vsel %vm3091_vm2, %v10950_v29, %v7494_v41  ;;  %v4256_v23 = vmul.f32 %v13928_v31, %v14007_v27  ;;  %v14011_v35 = vld [vmem:[#allocation197_spill] sm:$0xff] }
 0x4ed   : > { %v5068_v11 = vsel %vm3091_vm2, %v3980_v39, %v7495_v63  ;;  %v7503_v47 = vpop.permute.xlu1 %7502  ;;  %v7796_v16 = vpack.i.bf16 %v4128_v4, %v4224_v19  ;;  %v4193_v45 = vmul.f32 %v14009_v44, %v14008_v14  ;;  %v3981_v59 = vmul.f32 %v11448_v26, %v14010_v18  ;;  %v14013_v4 = vld [vmem:[#allocation257_spill] sm:$0xff]  ;;  %v14014_v18 = vld [vmem:[#allocation256_spill] sm:$0xff] }
 0x4ee   : > { %v7505_v54 = vunpack.i.h.bf16 %v7503_v47  ;;  %v7504_v38 = vunpack.i.l.bf16 %v7503_v47  ;;  %v4160_v29 = vmul.f32 %v12092_v49, %v14011_v35  ;;  %v4033_v63 = vmul.f32 %v12006_v12, %v14012_v42  ;;  %v14017_v42 = vld [vmem:[#allocation258_spill] sm:$0xff] }
 0x4ef   : > { %v7510_v41 = vunpack.i.h.bf16 %v7508_v53  ;;  %v7509_v6 = vunpack.i.l.bf16 %v7508_v53  ;;  %v5196_v19 = vsel %vm3124_vm3, %v5164_v7, %v7499_v1  ;;  %v5100_v5 = vsel %vm3124_vm3, %v5068_v11, %v7500_v43  ;;  %v14015_v43 = vld [vmem:[#allocation97_spill] sm:$0xff] }
 0x4f0   : > { %7792 = vrot.lane.b32.xlu1 %v7791_v24, %s7908_s21  ;;  %7797 = vrot.lane.b32.xlu0 %v7796_v16, %s7909_s22  ;;  %v7518_v36 = vpop.permute.xlu0 %7517  ;;  %v5228_v26 = vsel %vm3157_vm4, %v5196_v19, %v7504_v38  ;;  %v5132_v39 = vsel %vm3157_vm4, %v5100_v5, %v7505_v54  ;;  %v7801_v51 = vpack.i.bf16 %v4160_v29, %v4256_v23  ;;  %v14016_v23 = vld [vmem:[#allocation259_spill] sm:$0xff] }
 0x4f1   : > { %v4225_v24 = vmul.f32 %v13948_v3, %v14013_v4  ;;  %v7513_v27 = vpop.permute.xlu1 %7512  ;;  %v7520_v47 = vunpack.i.h.bf16 %v7518_v36  ;;  %v7519_v14 = vunpack.i.l.bf16 %v7518_v36  ;;  %5499 = vmatprep.mubr.f32.mxu1 %v5228_v26  ;;  %v7806_v53 = vpack.i.bf16 %v4033_v63, %v4193_v45  ;;  %v14018_v63 = vld [vmem:[#allocation265_spill] sm:$0xff] }
 0x4f2   : > { %v4161_v16 = vmul.f32 %v11794_v13, %v14014_v18  ;;  %v7515_v1 = vunpack.i.h.bf16 %v7513_v27  ;;  %v7514_v7 = vunpack.i.l.bf16 %v7513_v27  ;;  %5500 = vmatmul.mubr.f32.gmra.mrb[50].mxu1 %v5132_v39  ;;  %v4129_v11 = vmul.f32 %v12121_v57, %v14015_v43 }
 0x4f3   : > { %v5165_v3 = vsel %vm3091_vm2, %v10978_v46, %v7509_v6  ;;  %v4257_v54 = vmul.f32 %v11243_v10, %v14016_v23  ;;  %v5069_v45 = vsel %vm3091_vm2, %v3981_v59, %v7510_v41  ;;  %v4194_v19 = vmul.f32 %v14018_v63, %v14017_v42  ;;  %v14019_v10 = vld [vmem:[#allocation64_spill] sm:$0xff] }
 0x4f4   : > { %7802 = vrot.lane.b32.xlu1 %v7801_v51, %s7910_s23  ;;  %7807 = vrot.lane.b32.xlu0 %v7806_v53, %s7908_s21  ;;  %v7528_v38 = vpop.permute.xlu0 %7527  ;;  %v5197_v13 = vsel %vm3124_vm3, %v5165_v3, %v7514_v7  ;;  %v7811_v35 = vpack.i.bf16 %v4129_v11, %v4225_v24  ;;  %v5101_v29 = vsel %vm3124_vm3, %v5069_v45, %v7515_v1  ;;  %v14020_v41 = vld [vmem:[#allocation12_spill] sm:$0xff]  ;;  %v14021_v53 = vld [vmem:[#allocation125_spill] sm:$0xff]  ;;  %v14024_v3 = vld [vmem:[#allocation199_spill] sm:$0xff] }
 0x4f5   : > { %v7523_v5 = vpop.permute.xlu1 %7522  ;;  %v5229_v36 = vsel %vm3157_vm4, %v5197_v13, %v7519_v14  ;;  %v7816_v26 = vpack.i.bf16 %v4161_v16, %v4257_v54  ;;  %v5133_v46 = vsel %vm3157_vm4, %v5101_v29, %v7520_v47  ;;  %v4034_v59 = vmul.f32 %v11263_v8, %v14019_v10  ;;  %v14022_v16 = vld [vmem:[#allocation262_spill] sm:$0xff]  ;;  %v14026_v13 = vld [vmem:[#allocation260_spill] sm:$0xff] }
 0x4f6   : > { %v7525_v6 = vunpack.i.h.bf16 %v7523_v5  ;;  %v7524_v39 = vunpack.i.l.bf16 %v7523_v5  ;;  %5504 = vmatprep.mubr.f32.mxu1 %v5229_v36  ;;  %v3982_v51 = vmul.f32 %v11462_v33, %v14020_v41  ;;  %v7530_v4 = vunpack.i.h.bf16 %v7528_v38  ;;  %v14023_v33 = vld [vmem:[#allocation261_spill] sm:$0xff]  ;;  %v14029_v10 = vld [vmem:[#allocation112_spill] sm:$0xff] }
 0x4f7   : > { %v7529_v24 = vunpack.i.l.bf16 %v7528_v38  ;;  %5505 = vmatmul.mubr.f32.gmra.mrb[52].mxu1 %v5133_v46  ;;  %v7821_v14 = vpack.i.bf16 %v4034_v59, %v4194_v19  ;;  %v4162_v1 = vmul.f32 %v11850_v55, %v14022_v16  ;;  %v4258_v23 = vmul.f32 %v14024_v3, %v14023_v33  ;;  %v14025_v38 = vld [vmem:[#allocation96_spill] sm:$0xff]  ;;  %v14032_v33 = vld [vmem:[#allocation99_spill] sm:$0xff] }
 0x4f8   : > { %7812 = vrot.lane.b32.xlu1 %v7811_v35, %s7909_s22  ;;  %7817 = vrot.lane.b32.xlu0 %v7816_v26, %s7910_s23  ;;  %v7538_v27 = vpop.permute.xlu0 %7537  ;;  %v5166_v47 = vsel %vm3091_vm2, %v14021_v53, %v7524_v39  ;;  %v5070_v18 = vsel %vm3091_vm2, %v3982_v51, %v7525_v6  ;;  %v14027_v35 = vpack.i.bf16 %v14025_v38, %v14026_v13  ;;  %v14028_v39 = vld [vmem:[#allocation15_spill] sm:$0xff]  ;;  %v14033_v38 = vld [vmem:[#allocation190_spill] sm:$0xff] }
 0x4f9   : > { %v7533_v7 = vpop.permute.xlu1 %7532  ;;  %v7540_v54 = vunpack.i.h.bf16 %v7538_v27  ;;  %v7539_v45 = vunpack.i.l.bf16 %v7538_v27  ;;  %v5198_v29 = vsel %vm3124_vm3, %v5166_v47, %v7529_v24  ;;  %v5102_v42 = vsel %vm3124_vm3, %v5070_v18, %v7530_v4  ;;  %v14030_v24 = vld [vmem:[#allocation193_spill] sm:$0xff] }
 0x4fa   : > { %v7535_v43 = vunpack.i.h.bf16 %v7533_v7  ;;  %v7534_v11 = vunpack.i.l.bf16 %v7533_v7  ;;  %v7831_v36 = vpack.i.bf16 %v4162_v1, %v4258_v23  ;;  %v3983_v59 = vmul.f32 %v14029_v10, %v14028_v39 }
 0x4fb   : > { %v5167_v4 = vsel %vm3091_vm2, %v14030_v24, %v7539_v45  ;;  %v14035_v24 = vld [vmem:[#allocation119_spill] sm:$0xff] }
 0x4fc   : > { %7822 = vrot.lane.b32.xlu1 %v7821_v14, %s7908_s21  ;;  %7827 = vrot.lane.b32.xlu0 %v14027_v35, %s7909_s22  ;;  %v7548_v55 = vpop.permute.xlu0 %7547  ;;  %v5230_v19 = vsel %vm3157_vm4, %v5198_v29, %v7534_v11  ;;  %v5134_v5 = vsel %vm3157_vm4, %v5102_v42, %v7535_v43  ;;  %v5071_v27 = vsel %vm3091_vm2, %v3983_v59, %v7540_v54  ;;  %v14031_v11 = vld [vmem:[#allocation14_spill] sm:$0xff] }
 0x4fd   : > { %v7543_v26 = vpop.permute.xlu1 %7542  ;;  %v7550_v46 = vunpack.i.h.bf16 %v7548_v55  ;;  %v7549_v6 = vunpack.i.l.bf16 %v7548_v55  ;;  %5509 = vmatprep.mubr.f32.mxu1 %v5230_v19  ;;  %v3984_v3 = vmul.f32 %v14032_v33, %v14031_v11 }
 0x4fe   : > { %v7545_v41 = vunpack.i.h.bf16 %v7543_v26  ;;  %v7544_v51 = vunpack.i.l.bf16 %v7543_v26  ;;  %5510 = vmatmul.mubr.f32.gmra.mrb[54].mxu1 %v5134_v5 }
 0x500   : > { %7832 = vrot.lane.b32.xlu1 %v7831_v36, %s7910_s23  ;;  %v7558_v14 = vpop.permute.xlu0 %7557  ;;  %v5199_v53 = vsel %vm3124_vm3, %v5167_v4, %v7544_v51  ;;  %v5103_v47 = vsel %vm3124_vm3, %v5071_v27, %v7545_v41  ;;  %v14034_v51 = vld [vmem:[#allocation17_spill] sm:$0xff]  ;;  %s12735_s23 = scalar_lea.vmem %s12870_s10, %s6528_s25 }
 0x501   : > { %v7553_v18 = vpop.permute.xlu1 %7552  ;;  %v5231_v16 = vsel %vm3157_vm4, %v5199_v53, %v7549_v6  ;;  %v5135_v1 = vsel %vm3157_vm4, %v5103_v47, %v7550_v46  ;;  %v7560_v23 = vunpack.i.h.bf16 %v7558_v14  ;;  %v7559_v45 = vunpack.i.l.bf16 %v7558_v14  ;;  %v14036_v53 = vld [vmem:[#allocation222_spill] sm:$0xff] }
 0x502   : > { %v7555_v7 = vunpack.i.h.bf16 %v7553_v18  ;;  %v7554_v43 = vunpack.i.l.bf16 %v7553_v18  ;;  %5514 = vmatprep.mubr.f32.mxu1 %v5231_v16  ;;  %v3985_v4 = vmul.f32 %v14035_v24, %v14034_v51 }
 0x503   : > { %5515 = vmatmul.mubr.f32.gmra.mrb[56].mxu1 %v5135_v1 }
 0x504   : > { %v7568_v54 = vpop.permute.xlu0 %7567  ;;  %v5168_v13 = vsel %vm3091_vm2, %v14033_v38, %v7554_v43  ;;  %v5072_v35 = vsel %vm3091_vm2, %v3984_v3, %v7555_v7 }
 0x505   : > { %v7563_v29 = vpop.permute.xlu1 %7562  ;;  %v7570_v19 = vunpack.i.h.bf16 %v7568_v54  ;;  %v7569_v5 = vunpack.i.l.bf16 %v7568_v54  ;;  %v5200_v36 = vsel %vm3124_vm3, %v5168_v13, %v7559_v45  ;;  %v5104_v26 = vsel %vm3124_vm3, %v5072_v35, %v7560_v23  ;;  %v14037_v45 = vld [vmem:[#allocation16_spill] sm:$0xff]  ;;  %v14038_v54 = vld [vmem:[#allocation34_spill] sm:$0xff] }
 0x506   : > { %v7565_v42 = vunpack.i.h.bf16 %v7563_v29  ;;  %v7564_v55 = vunpack.i.l.bf16 %v7563_v29  ;;  %v3986_v38 = vmul.f32 %v14038_v54, %v14037_v45 }
 0x507   : > { %v5169_v47 = vsel %vm3091_vm2, %v14036_v53, %v7569_v5  ;;  %v5073_v18 = vsel %vm3091_vm2, %v3985_v4, %v7570_v19  ;;  %v14041_v53 = vld [vmem:[#allocation66_spill] sm:$0xff] }
 0x508   : > { %v7578_v46 = vpop.permute.xlu0 %7577  ;;  %v5232_v6 = vsel %vm3157_vm4, %v5200_v36, %v7564_v55  ;;  %v5136_v39 = vsel %vm3157_vm4, %v5104_v26, %v7565_v42  ;;  %v14039_v42 = vld [vmem:[#allocation106_spill] sm:$0xff] }
 0x509   : > { %v7573_v10 = vpop.permute.xlu1 %7572  ;;  %v7580_v59 = vunpack.i.h.bf16 %v7578_v46  ;;  %v7579_v41 = vunpack.i.l.bf16 %v7578_v46  ;;  %5519 = vmatprep.mubr.f32.mxu1 %v5232_v6 }
 0x50a   : > { %v7575_v27 = vunpack.i.h.bf16 %v7573_v10  ;;  %v7574_v14 = vunpack.i.l.bf16 %v7573_v10  ;;  %5520 = vmatmul.mubr.f32.gmra.mrb[58].mxu1 %v5136_v39 }
 0x50c   : > { %v7588_v16 = vpop.permute.xlu0 %7587  ;;  %v5201_v1 = vsel %vm3124_vm3, %v5169_v47, %v7574_v14  ;;  %v5105_v7 = vsel %vm3124_vm3, %v5073_v18, %v7575_v27  ;;  %v14040_v14 = vld [vmem:[#allocation19_spill] sm:$0xff] }
 0x50d   : > { %v7583_v43 = vpop.permute.xlu1 %7582  ;;  %v5233_v11 = vsel %vm3157_vm4, %v5201_v1, %v7579_v41  ;;  %v5137_v33 = vsel %vm3157_vm4, %v5105_v7, %v7580_v59  ;;  %v7590_v13 = vunpack.i.h.bf16 %v7588_v16  ;;  %v7589_v35 = vunpack.i.l.bf16 %v7588_v16  ;;  %v14042_v1 = vld [vmem:[#allocation213_spill] sm:$0xff] }
 0x50e   : > { %v7585_v3 = vunpack.i.h.bf16 %v7583_v43  ;;  %v7584_v23 = vunpack.i.l.bf16 %v7583_v43  ;;  %5524 = vmatprep.mubr.f32.mxu1 %v5233_v11  ;;  %v3987_v47 = vmul.f32 %v14041_v53, %v14040_v14 }
 0x50f   : > { %5525 = vmatmul.mubr.f32.gmra.mrb[60].mxu1 %v5137_v33 }
 0x510   : > { %v7598_v29 = vpop.permute.xlu0 %7597  ;;  %v5170_v55 = vsel %vm3091_vm2, %v14039_v42, %v7584_v23  ;;  %v5074_v19 = vsel %vm3091_vm2, %v3986_v38, %v7585_v3 }
 0x511   : > { %v7593_v5 = vpop.permute.xlu1 %7592  ;;  %v7600_v46 = vunpack.i.h.bf16 %v7598_v29  ;;  %v7599_v6 = vunpack.i.l.bf16 %v7598_v29  ;;  %v5202_v39 = vsel %vm3124_vm3, %v5170_v55, %v7589_v35  ;;  %v5106_v10 = vsel %vm3124_vm3, %v5074_v19, %v7590_v13  ;;  %v14043_v35 = vld [vmem:[#allocation18_spill] sm:$0xff]  ;;  %v14044_v29 = vld [vmem:[#allocation123_spill] sm:$0xff] }
 0x512   : > { %v7595_v36 = vunpack.i.h.bf16 %v7593_v5  ;;  %v7594_v26 = vunpack.i.l.bf16 %v7593_v5  ;;  %v3988_v42 = vmul.f32 %v14044_v29, %v14043_v35 }
 0x513   : > { %v5171_v7 = vsel %vm3091_vm2, %v14042_v1, %v7599_v6  ;;  %v5075_v43 = vsel %vm3091_vm2, %v3987_v47, %v7600_v46  ;;  %v14047_v1 = vld [vmem:[#allocation37_spill] sm:$0xff] }
 0x514   : > { %v7608_v59 = vpop.permute.xlu0 %7607  ;;  %v5234_v41 = vsel %vm3157_vm4, %v5202_v39, %v7594_v26  ;;  %v5138_v51 = vsel %vm3157_vm4, %v5106_v10, %v7595_v36  ;;  %v14045_v36 = vld [vmem:[#allocation202_spill] sm:$0xff] }
 0x515   : > { %v7603_v24 = vpop.permute.xlu1 %7602  ;;  %v7610_v4 = vunpack.i.h.bf16 %v7608_v59  ;;  %v7609_v27 = vunpack.i.l.bf16 %v7608_v59  ;;  %5529 = vmatprep.mubr.f32.mxu1 %v5234_v41 }
 0x516   : > { %v7605_v18 = vunpack.i.h.bf16 %v7603_v24  ;;  %v7604_v16 = vunpack.i.l.bf16 %v7603_v24  ;;  %5530 = vmatmul.mubr.f32.gmra.mrb[62].mxu1 %v5138_v51 }
 0x518   : > { %v7618_v11 = vpop.permute.xlu0 %7617  ;;  %v5203_v33 = vsel %vm3124_vm3, %v5171_v7, %v7604_v16  ;;  %v5107_v3 = vsel %vm3124_vm3, %v5075_v43, %v7605_v18  ;;  %v14046_v16 = vld [vmem:[#allocation21_spill] sm:$0xff] }
 0x519   : > { %v7613_v23 = vpop.permute.xlu1 %7612  ;;  %v5235_v45 = vsel %vm3157_vm4, %v5203_v33, %v7609_v27  ;;  %v5139_v54 = vsel %vm3157_vm4, %v5107_v3, %v7610_v4  ;;  %v7620_v55 = vunpack.i.h.bf16 %v7618_v11  ;;  %v7619_v19 = vunpack.i.l.bf16 %v7618_v11  ;;  %v14048_v33 = vld [vmem:[#allocation115_spill] sm:$0xff] }
 0x51a   : > { %v7615_v38 = vunpack.i.h.bf16 %v7613_v23  ;;  %v7614_v13 = vunpack.i.l.bf16 %v7613_v23  ;;  %5534 = vmatprep.mubr.f32.mxu1 %v5235_v45  ;;  %v3989_v7 = vmul.f32 %v14047_v1, %v14046_v16 }
 0x51b   : > { %5535 = vmatmul.mubr.f32.gmra.mrb[64].mxu1 %v5139_v54 }
 0x51c   : > { %v7628_v5 = vpop.permute.xlu0 %7627  ;;  %v5172_v26 = vsel %vm3091_vm2, %v14045_v36, %v7614_v13  ;;  %v5076_v46 = vsel %vm3091_vm2, %v3988_v42, %v7615_v38 }
 0x51d   : > { %v7623_v6 = vpop.permute.xlu1 %7622  ;;  %v7630_v59 = vunpack.i.h.bf16 %v7628_v5  ;;  %v7629_v41 = vunpack.i.l.bf16 %v7628_v5  ;;  %v5204_v51 = vsel %vm3124_vm3, %v5172_v26, %v7619_v19  ;;  %v5108_v24 = vsel %vm3124_vm3, %v5076_v46, %v7620_v55  ;;  %v14049_v19 = vld [vmem:[#allocation20_spill] sm:$0xff]  ;;  %v14050_v5 = vld [vmem:[#allocation129_spill] sm:$0xff] }
 0x51e   : > { %v7625_v39 = vunpack.i.h.bf16 %v7623_v6  ;;  %v7624_v10 = vunpack.i.l.bf16 %v7623_v6  ;;  %v3990_v36 = vmul.f32 %v14050_v5, %v14049_v19 }
 0x51f   : > { %v5173_v3 = vsel %vm3091_vm2, %v14048_v33, %v7629_v41  ;;  %v5077_v23 = vsel %vm3091_vm2, %v3989_v7, %v7630_v59  ;;  %v14052_v7 = vld [vmem:[#allocation23_spill] sm:$0xff] }
 0x520   : > { %v7638_v4 = vpop.permute.xlu0 %7637  ;;  %v5236_v27 = vsel %vm3157_vm4, %v5204_v51, %v7624_v10  ;;  %v5140_v14 = vsel %vm3157_vm4, %v5108_v24, %v7625_v39  ;;  %v14051_v39 = vld [vmem:[#allocation214_spill] sm:$0xff] }
 0x521   : > { %v7633_v53 = vpop.permute.xlu1 %7632  ;;  %v7640_v47 = vunpack.i.h.bf16 %v7638_v4  ;;  %v7639_v18 = vunpack.i.l.bf16 %v7638_v4  ;;  %5539 = vmatprep.mubr.f32.mxu1 %v5236_v27 }
 0x522   : > { %v7635_v43 = vunpack.i.h.bf16 %v7633_v53  ;;  %v7634_v11 = vunpack.i.l.bf16 %v7633_v53  ;;  %5540 = vmatmul.mubr.f32.gmra.mrb[66].mxu1 %v5140_v14 }
 0x524   : > { %v7648_v45 = vpop.permute.xlu0 %7647  ;;  %v5205_v54 = vsel %vm3124_vm3, %v5173_v3, %v7634_v11  ;;  %v5109_v38 = vsel %vm3124_vm3, %v5077_v23, %v7635_v43  ;;  %v14053_v43 = vld [vmem:[#allocation69_spill] sm:$0xff] }
 0x525   : > { %v7643_v13 = vpop.permute.xlu1 %7642  ;;  %v5237_v35 = vsel %vm3157_vm4, %v5205_v54, %v7639_v18  ;;  %v5141_v29 = vsel %vm3157_vm4, %v5109_v38, %v7640_v47  ;;  %v7650_v26 = vunpack.i.h.bf16 %v7648_v45  ;;  %v7649_v46 = vunpack.i.l.bf16 %v7648_v45  ;;  %v14054_v54 = vld [vmem:[#allocation236_spill] sm:$0xff] }
 0x526   : > { %v7645_v42 = vunpack.i.h.bf16 %v7643_v13  ;;  %v7644_v55 = vunpack.i.l.bf16 %v7643_v13  ;;  %5544 = vmatprep.mubr.f32.mxu1 %v5237_v35  ;;  %v3991_v11 = vmul.f32 %v14053_v43, %v14052_v7 }
 0x527   : > { %5545 = vmatmul.mubr.f32.gmra.mrb[68].mxu1 %v5141_v29 }
 0x528   : > { %v7658_v6 = vpop.permute.xlu0 %7657  ;;  %v5174_v10 = vsel %vm3091_vm2, %v14051_v39, %v7644_v55  ;;  %v5078_v59 = vsel %vm3091_vm2, %v3990_v36, %v7645_v42 }
 0x529   : > { %v7653_v41 = vpop.permute.xlu1 %7652  ;;  %v7660_v4 = vunpack.i.h.bf16 %v7658_v6  ;;  %v7659_v27 = vunpack.i.l.bf16 %v7658_v6  ;;  %v5206_v14 = vsel %vm3124_vm3, %v5174_v10, %v7649_v46  ;;  %v5110_v53 = vsel %vm3124_vm3, %v5078_v59, %v7650_v26  ;;  %v14055_v46 = vld [vmem:[#allocation22_spill] sm:$0xff]  ;;  %v14056_v6 = vld [vmem:[#allocation131_spill] sm:$0xff] }
 0x52a   : > { %v7655_v51 = vunpack.i.h.bf16 %v7653_v41  ;;  %v7654_v24 = vunpack.i.l.bf16 %v7653_v41  ;;  %v3992_v39 = vmul.f32 %v14056_v6, %v14055_v46  ;;  %v14057_v41 = vld [vmem:[#allocation228_spill] sm:$0xff] }
 0x52b   : > { %v5175_v38 = vsel %vm3091_vm2, %v14054_v54, %v7659_v27  ;;  %v5079_v13 = vsel %vm3091_vm2, %v3991_v11, %v7660_v4 }
 0x52c   : > { %v5238_v47 = vsel %vm3157_vm4, %v5206_v14, %v7654_v24  ;;  %v5142_v18 = vsel %vm3157_vm4, %v5110_v53, %v7655_v51  ;;  %v7668_v1 = vpop.permute.xlu0 %7667 }
 0x52d   : > { %v7663_v16 = vpop.permute.xlu1 %7662  ;;  %5549 = vmatprep.mubr.f32.mxu1 %v5238_v47  ;;  %v7670_v23 = vunpack.i.h.bf16 %v7668_v1  ;;  %v7669_v45 = vunpack.i.l.bf16 %v7668_v1 }
 0x52e   : > { %v7665_v33 = vunpack.i.h.bf16 %v7663_v16  ;;  %v7664_v3 = vunpack.i.l.bf16 %v7663_v16  ;;  %5550 = vmatmul.mubr.f32.gmra.mrb[70].mxu1 %v5142_v18 }
 0x530   : > { %v5207_v35 = vsel %vm3124_vm3, %v5175_v38, %v7664_v3  ;;  %v5111_v29 = vsel %vm3124_vm3, %v5079_v13, %v7665_v33  ;;  %v7678_v55 = vpop.permute.xlu0 %7677  ;;  %v14058_v3 = vld [vmem:[#allocation25_spill] sm:$0xff] }
 0x531   : > { %v7673_v42 = vpop.permute.xlu1 %7672  ;;  %v5239_v19 = vsel %vm3157_vm4, %v5207_v35, %v7669_v45  ;;  %v5143_v5 = vsel %vm3157_vm4, %v5111_v29, %v7670_v23  ;;  %v7680_v10 = vunpack.i.h.bf16 %v7678_v55  ;;  %v7679_v59 = vunpack.i.l.bf16 %v7678_v55  ;;  %v14059_v23 = vld [vmem:[#allocation36_spill] sm:$0xff] }
 0x532   : > { %v7675_v36 = vunpack.i.h.bf16 %v7673_v42  ;;  %v7674_v26 = vunpack.i.l.bf16 %v7673_v42  ;;  %5554 = vmatprep.mubr.f32.mxu1 %v5239_v19  ;;  %v3993_v45 = vmul.f32 %v14059_v23, %v14058_v3  ;;  %v14063_v23 = vld [vmem:[#allocation100_spill] sm:$0xff] }
 0x533   : > { %5555 = vmatmul.mubr.f32.gmra.mrb[72].mxu1 %v5143_v5 }
 0x534   : > { %v5176_v51 = vsel %vm3091_vm2, %v14057_v41, %v7674_v26  ;;  %v5080_v24 = vsel %vm3091_vm2, %v3992_v39, %v7675_v36  ;;  %v7688_v27 = vpop.permute.xlu0 %7687 }
 0x535   : > { %v7690_v47 = vunpack.i.h.bf16 %v7688_v27  ;;  %v7689_v18 = vunpack.i.l.bf16 %v7688_v27  ;;  %v5208_v16 = vsel %vm3124_vm3, %v5176_v51, %v7679_v59  ;;  %v5112_v1 = vsel %vm3124_vm3, %v5080_v24, %v7680_v10  ;;  %v14060_v10 = vld [vmem:[#allocation24_spill] sm:$0xff]  ;;  %v14061_v59 = vld [vmem:[#allocation134_spill] sm:$0xff] }
 0x536   : > { %v7683_v4 = vpop.permute.xlu1 %7682  ;;  %v3994_v41 = vmul.f32 %v14061_v59, %v14060_v10  ;;  %v14064_v10 = vld [vmem:[#allocation26_spill] sm:$0xff]  ;;  %v14065_v59 = vld [vmem:[#allocation133_spill] sm:$0xff] }
 0x537   : > { %v7685_v14 = vunpack.i.h.bf16 %v7683_v4  ;;  %v7684_v53 = vunpack.i.l.bf16 %v7683_v4  ;;  %v5177_v29 = vsel %vm3091_vm2, %v13899_v20, %v7689_v18  ;;  %v5081_v42 = vsel %vm3091_vm2, %v3993_v45, %v7690_v47 }
 0x538   : > { %v7698_v33 = vpop.permute.xlu0 %7697 }
 0x539   : > { %v5240_v7 = vsel %vm3157_vm4, %v5208_v16, %v7684_v53  ;;  %v5144_v43 = vsel %vm3157_vm4, %v5112_v1, %v7685_v14  ;;  %v7700_v13 = vunpack.i.h.bf16 %v7698_v33  ;;  %v7699_v35 = vunpack.i.l.bf16 %v7698_v33 }
 0x53a   : > { %v7693_v11 = vpop.permute.xlu1 %7692  ;;  %5559 = vmatprep.mubr.f32.mxu1 %v5240_v7 }
 0x53b   : > { %v7695_v54 = vunpack.i.h.bf16 %v7693_v11  ;;  %v7694_v38 = vunpack.i.l.bf16 %v7693_v11  ;;  %5560 = vmatmul.mubr.f32.gmra.mrb[74].mxu1 %v5144_v43 }
 0x53c   : > { %v7708_v36 = vpop.permute.xlu0 %7707 }
 0x53d   : > { %v5209_v55 = vsel %vm3124_vm3, %v5177_v29, %v7694_v38  ;;  %v5113_v19 = vsel %vm3124_vm3, %v5081_v42, %v7695_v54  ;;  %v7710_v51 = vunpack.i.h.bf16 %v7708_v36  ;;  %v7709_v20 = vunpack.i.l.bf16 %v7708_v36 }
 0x53e   : > { %v7703_v5 = vpop.permute.xlu1 %7702  ;;  %v5241_v26 = vsel %vm3157_vm4, %v5209_v55, %v7699_v35  ;;  %v5145_v46 = vsel %vm3157_vm4, %v5113_v19, %v7700_v13 }
 0x53f   : > { %v7705_v6 = vunpack.i.h.bf16 %v7703_v5  ;;  %v7704_v39 = vunpack.i.l.bf16 %v7703_v5  ;;  %5564 = vmatprep.mubr.f32.mxu1 %v5241_v26 }
 0x540   : > { %5565 = vmatmul.mubr.f32.gmra.mrb[76].mxu1 %v5145_v46  ;;  %v7718_v14 = vpop.permute.xlu0 %7717 }
 0x541   : > { %v5178_v24 = vsel %vm3091_vm2, %v11743_v61, %v7704_v39  ;;  %v5082_v4 = vsel %vm3091_vm2, %v3994_v41, %v7705_v6  ;;  %v7720_v18 = vunpack.i.h.bf16 %v7718_v14  ;;  %v7719_v16 = vunpack.i.l.bf16 %v7718_v14  ;;  %v14062_v61 = vld [vmem:[#allocation27_spill] sm:$0xff] }
 0x542   : > { %v7713_v27 = vpop.permute.xlu1 %7712  ;;  %v5210_v1 = vsel %vm3124_vm3, %v5178_v24, %v7709_v20  ;;  %v5114_v7 = vsel %vm3124_vm3, %v5082_v4, %v7710_v51  ;;  %v3995_v45 = vmul.f32 %v14063_v23, %v14062_v61  ;;  %v3996_v41 = vmul.f32 %v14065_v59, %v14064_v10 }
 0x543   : > { %v7715_v53 = vunpack.i.h.bf16 %v7713_v27  ;;  %v7714_v47 = vunpack.i.l.bf16 %v7713_v27  ;;  %v5179_v29 = vsel %vm3091_vm2, %v11823_v34, %v7719_v16 }
 0x544   : > { %v7728_v3 = vpop.permute.xlu0 %7727  ;;  %v5083_v42 = vsel %vm3091_vm2, %v3995_v45, %v7720_v18 }
 0x545   : > { %v5242_v43 = vsel %vm3157_vm4, %v5210_v1, %v7714_v47  ;;  %v5146_v11 = vsel %vm3157_vm4, %v5114_v7, %v7715_v53  ;;  %v7730_v13 = vunpack.i.h.bf16 %v7728_v3  ;;  %v7729_v35 = vunpack.i.l.bf16 %v7728_v3 }
 0x546   : > { %v7723_v33 = vpop.permute.xlu1 %7722  ;;  %5569 = vmatprep.mubr.f32.mxu1 %v5242_v43 }
 0x547   : > { %v7725_v54 = vunpack.i.h.bf16 %v7723_v33  ;;  %v7724_v38 = vunpack.i.l.bf16 %v7723_v33  ;;  %5570 = vmatmul.mubr.f32.gmra.mrb[78].mxu1 %v5146_v11 }
 0x549   : > { %v5211_v55 = vsel %vm3124_vm3, %v5179_v29, %v7724_v38  ;;  %v5115_v19 = vsel %vm3124_vm3, %v5083_v42, %v7725_v54  ;;  %v7738_v36 = vpop.permute.xlu0 %7737 }
 0x54a   : > { %v7733_v5 = vpop.permute.xlu1 %7732  ;;  %v5243_v26 = vsel %vm3157_vm4, %v5211_v55, %v7729_v35  ;;  %v5147_v46 = vsel %vm3157_vm4, %v5115_v19, %v7730_v13  ;;  %v7740_v51 = vunpack.i.h.bf16 %v7738_v36  ;;  %v7739_v34 = vunpack.i.l.bf16 %v7738_v36 }
 0x54b   : > { %v7735_v6 = vunpack.i.h.bf16 %v7733_v5  ;;  %v7734_v39 = vunpack.i.l.bf16 %v7733_v5  ;;  %5574 = vmatprep.mubr.f32.mxu1 %v5243_v26  ;;  %v14067_v26 = vld [vmem:[#allocation28_spill] sm:$0xff] }
 0x54c   : > { %5575 = vmatmul.mubr.f32.gmra.mrb[80].mxu1 %v5147_v46  ;;  %v3998_v46 = vmul.f32 %v11918_v40, %v14067_v26 }
 0x54d   : > { %v5180_v20 = vsel %vm3091_vm2, %v11858_v58, %v7734_v39  ;;  %v5084_v24 = vsel %vm3091_vm2, %v3996_v41, %v7735_v6  ;;  %v7748_v27 = vpop.permute.xlu0 %7747  ;;  %v14066_v58 = vld [vmem:[#allocation29_spill] sm:$0xff] }
 0x54e   : > { %v7743_v4 = vpop.permute.xlu1 %7742  ;;  %v7750_v47 = vunpack.i.h.bf16 %v7748_v27  ;;  %v7749_v18 = vunpack.i.l.bf16 %v7748_v27  ;;  %v5212_v16 = vsel %vm3124_vm3, %v5180_v20, %v7739_v34  ;;  %v5116_v1 = vsel %vm3124_vm3, %v5084_v24, %v7740_v51 }
 0x54f   : > { %v7745_v14 = vunpack.i.h.bf16 %v7743_v4  ;;  %v7744_v53 = vunpack.i.l.bf16 %v7743_v4  ;;  %v3997_v3 = vmul.f32 %v11892_v25, %v14066_v58 }
 0x550   : > { %v5181_v38 = vsel %vm3091_vm2, %v11928_v22, %v7749_v18 }
 0x551   : > { %v5244_v7 = vsel %vm3157_vm4, %v5212_v16, %v7744_v53  ;;  %v5148_v43 = vsel %vm3157_vm4, %v5116_v1, %v7745_v14  ;;  %v5085_v13 = vsel %vm3091_vm2, %v3997_v3, %v7750_v47 }
 0x552   : > { %v7753_v11 = vpop.permute.xlu1 %7752  ;;  %v7758_v33 = vpop.permute.xlu0 %7757  ;;  %5579 = vmatprep.mubr.f32.mxu1 %v5244_v7 }
 0x553   : > { %v7755_v61 = vunpack.i.h.bf16 %v7753_v11  ;;  %v7754_v23 = vunpack.i.l.bf16 %v7753_v11  ;;  %v7760_v45 = vunpack.i.h.bf16 %v7758_v33  ;;  %v7759_v54 = vunpack.i.l.bf16 %v7758_v33  ;;  %5580 = vmatmul.mubr.f32.gmra.mrb[82].mxu1 %v5148_v43 }
 0x555   : > { %v5213_v35 = vsel %vm3124_vm3, %v5181_v38, %v7754_v23  ;;  %v5117_v29 = vsel %vm3124_vm3, %v5085_v13, %v7755_v61  ;;  %v14069_v13 = vld [vmem:[#allocation30_spill] sm:$0xff] }
 0x556   : > { %v7763_v42 = vpop.permute.xlu1 %7762  ;;  %v7768_v55 = vpop.permute.xlu0 %7767  ;;  %v5245_v19 = vsel %vm3157_vm4, %v5213_v35, %v7759_v54  ;;  %v5149_v25 = vsel %vm3157_vm4, %v5117_v29, %v7760_v45  ;;  %v4000_v35 = vmul.f32 %v12012_v28, %v14069_v13 }
 0x557   : > { %v7765_v5 = vunpack.i.h.bf16 %v7763_v42  ;;  %v7764_v36 = vunpack.i.l.bf16 %v7763_v42  ;;  %5584 = vmatprep.mubr.f32.mxu1 %v5245_v19  ;;  %v7770_v6 = vunpack.i.h.bf16 %v7768_v55  ;;  %v7769_v22 = vunpack.i.l.bf16 %v7768_v55 }
 0x558   : > { %5585 = vmatmul.mubr.f32.gmra.mrb[84].mxu1 %v5149_v25 }
 0x559   : > { %v5182_v39 = vsel %vm3091_vm2, %v11956_v21, %v7764_v36  ;;  %v5086_v10 = vsel %vm3091_vm2, %v3998_v46, %v7765_v5  ;;  %v14068_v21 = vld [vmem:[#allocation31_spill] sm:$0xff] }
 0x55a   : > { %v7773_v59 = vpop.permute.xlu1 %7772  ;;  %v7778_v41 = vpop.permute.xlu0 %7777  ;;  %v5214_v4 = vsel %vm3124_vm3, %v5182_v39, %v7769_v22  ;;  %v5118_v27 = vsel %vm3124_vm3, %v5086_v10, %v7770_v6  ;;  %v3999_v18 = vmul.f32 %v11984_v50, %v14068_v21 }
 0x55b   : > { %v7775_v51 = vunpack.i.h.bf16 %v7773_v59  ;;  %v7774_v34 = vunpack.i.l.bf16 %v7773_v59  ;;  %v7780_v20 = vunpack.i.h.bf16 %v7778_v41  ;;  %v7779_v24 = vunpack.i.l.bf16 %v7778_v41 }
 0x55d   : > { %v5246_v40 = vsel %vm3157_vm4, %v5214_v4, %v7774_v34  ;;  %v5150_v14 = vsel %vm3157_vm4, %v5118_v27, %v7775_v51  ;;  %v5183_v11 = vsel %vm3091_vm2, %v12006_v12, %v7779_v24  ;;  %v5087_v33 = vsel %vm3091_vm2, %v3999_v18, %v7780_v20 }
 0x55e   : > { %v7783_v53 = vpop.permute.xlu1 %7782  ;;  %v7788_v47 = vpop.permute.xlu0 %7787  ;;  %5589 = vmatprep.mubr.f32.mxu1 %v5246_v40 }
 0x55f   : > { %v7785_v16 = vunpack.i.h.bf16 %v7783_v53  ;;  %v7784_v1 = vunpack.i.l.bf16 %v7783_v53  ;;  %v7790_v7 = vunpack.i.h.bf16 %v7788_v47  ;;  %v7789_v43 = vunpack.i.l.bf16 %v7788_v47  ;;  %5590 = vmatmul.mubr.f32.gmra.mrb[86].mxu1 %v5150_v14 }
 0x561   : > { %v5215_v58 = vsel %vm3124_vm3, %v5183_v11, %v7784_v1  ;;  %v5119_v3 = vsel %vm3124_vm3, %v5087_v33, %v7785_v16  ;;  %v14071_v1 = vld [vmem:[#allocation32_spill] sm:$0xff] }
 0x562   : > { %v7793_v61 = vpop.permute.xlu1 %7792  ;;  %v7798_v23 = vpop.permute.xlu0 %7797  ;;  %v5247_v45 = vsel %vm3157_vm4, %v5215_v58, %v7789_v43  ;;  %v5151_v50 = vsel %vm3157_vm4, %v5119_v3, %v7790_v7  ;;  %v4002_v7 = vmul.f32 %v12092_v49, %v14071_v1  ;;  %v14072_v49 = vld [vmem:[#allocation135_spill] sm:$0xff] }
 0x563   : > { %v7795_v54 = vunpack.i.h.bf16 %v7793_v61  ;;  %v7794_v38 = vunpack.i.l.bf16 %v7793_v61  ;;  %5594 = vmatprep.mubr.f32.mxu1 %v5247_v45  ;;  %v7800_v29 = vunpack.i.h.bf16 %v7798_v23  ;;  %v7799_v12 = vunpack.i.l.bf16 %v7798_v23 }
 0x564   : > { %5595 = vmatmul.mubr.f32.gmra.mrb[88].mxu1 %v5151_v50 }
 0x565   : > { %v5184_v42 = vsel %vm3091_vm2, %v11263_v8, %v7794_v38  ;;  %v5088_v55 = vsel %vm3091_vm2, %v4000_v35, %v7795_v54  ;;  %v14070_v8 = vld [vmem:[#allocation33_spill] sm:$0xff]  ;;  %v4279_v38 = vmul.f32 %v11835_v52, %v14072_v49  ;;  %v14074_v35 = vld [vmem:[#allocation204_spill] sm:$0xff] }
 0x566   : > { %v7803_v19 = vpop.permute.xlu1 %7802  ;;  %v7808_v25 = vpop.permute.xlu0 %7807  ;;  %v5216_v6 = vsel %vm3124_vm3, %v5184_v42, %v7799_v12  ;;  %v5120_v22 = vsel %vm3124_vm3, %v5088_v55, %v7800_v29  ;;  %v4001_v41 = vmul.f32 %v12063_v17, %v14070_v8  ;;  %v4281_v29 = vmul.f32 %v11924_v60, %v14074_v35  ;;  %v14075_v12 = vld [vmem:[#allocation140_spill] sm:$0xff]  ;;  %v14076_v55 = vld [vmem:[#allocation201_spill] sm:$0xff] }
 0x567   : > { %v7805_v5 = vunpack.i.h.bf16 %v7803_v19  ;;  %v7804_v36 = vunpack.i.l.bf16 %v7803_v19  ;;  %v7810_v26 = vunpack.i.h.bf16 %v7808_v25  ;;  %v7809_v46 = vunpack.i.l.bf16 %v7808_v25  ;;  %v14077_v52 = vld [vmem:[#allocation121_spill] sm:$0xff]  ;;  %v14078_v25 = vld [vmem:[#allocation212_spill] sm:$0xff] }
 0x568   : > { %v4282_v42 = vmul.f32 %v12003_v62, %v14075_v12  ;;  %v4283_v19 = vmul.f32 %v12037_v30, %v14076_v55  ;;  %v4285_v60 = vmul.f32 %v12121_v57, %v14078_v25  ;;  %v14092_v49 = vld [vmem:[#allocation68_spill] sm:$0xff] }
 0x569   : > { %v5248_v28 = vsel %vm3157_vm4, %v5216_v6, %v7804_v36  ;;  %v5152_v39 = vsel %vm3157_vm4, %v5120_v22, %v7805_v5  ;;  %v5185_v4 = vsel %vm3091_vm2, %v11270_v32, %v7809_v46  ;;  %v5089_v27 = vsel %vm3091_vm2, %v4001_v41, %v7810_v26  ;;  %v14079_v5 = vld [vmem:[#allocation172_spill] sm:$0xff]  ;;  %v14082_v46 = vld [vmem:[#allocation107_spill] sm:$0xff]  ;;  %v14083_v6 = vld [vmem:[#allocation194_spill] sm:$0xff] }
 0x56a   : > { %v7813_v10 = vpop.permute.xlu1 %7812  ;;  %v7818_v59 = vpop.permute.xlu0 %7817  ;;  %5599 = vmatprep.mubr.f32.mxu1 %v5248_v28  ;;  %v4286_v62 = vmul.f32 %v14002_v0, %v14079_v5  ;;  %v14080_v36 = vld [vmem:[#allocation120_spill] sm:$0xff]  ;;  %v4289_v57 = vmul.f32 %v14083_v6, %v14082_v46  ;;  %v12451_v0 = vld [vmem:[%s12865_s5] ss:$0 sm:$0xff]  ;;  %v14085_v22 = vld [vmem:[#allocation67_spill] sm:$0xff] }
 0x56b   : > { %v7815_v51 = vunpack.i.h.bf16 %v7813_v10  ;;  %v7814_v34 = vunpack.i.l.bf16 %v7813_v10  ;;  %v7820_v20 = vunpack.i.h.bf16 %v7818_v59  ;;  %v7819_v24 = vunpack.i.l.bf16 %v7818_v59  ;;  %5600 = vmatmul.mubr.f32.gmra.mrb[90].mxu1 %v5152_v39  ;;  %v14081_v26 = vld [vmem:[#allocation116_spill] sm:$0xff]  ;;  %v14096_v46 = vld [vmem:[#allocation71_spill] sm:$0xff] }
 0x56c   : > { %v4287_v30 = vmul.f32 %v14009_v44, %v14080_v36  ;;  %v14084_v44 = vld [vmem:[#allocation176_spill] sm:$0xff] }
 0x56d   : > { %v5217_v40 = vsel %vm3124_vm3, %v5185_v4, %v7814_v34  ;;  %v5121_v14 = vsel %vm3124_vm3, %v5089_v27, %v7815_v51  ;;  %v4290_v28 = vmul.f32 %v14085_v22, %v14084_v44  ;;  %v14086_v59 = vld [vmem:[#allocation124_spill] sm:$0xff] }
 0x56e   : > { %v7823_v53 = vpop.permute.xlu1 %7822  ;;  %v7828_v47 = vpop.permute.xlu0 %7827  ;;  %v5249_v21 = vsel %vm3157_vm4, %v5217_v40, %v7819_v24  ;;  %v5153_v17 = vsel %vm3157_vm4, %v5121_v14, %v7820_v20  ;;  %v14087_v20 = vld [vmem:[#allocation118_spill] sm:$0xff] }
 0x56f   : > { %v7825_v18 = vunpack.i.h.bf16 %v7823_v53  ;;  %v7824_v16 = vunpack.i.l.bf16 %v7823_v53  ;;  %5604 = vmatprep.mubr.f32.mxu1 %v5249_v21  ;;  %v7830_v43 = vunpack.i.h.bf16 %v7828_v47  ;;  %v7829_v32 = vunpack.i.l.bf16 %v7828_v47  ;;  %v14088_v14 = vld [vmem:[#allocation98_spill] sm:$0xff] }
 0x570   : > { %5605 = vmatmul.mubr.f32.gmra.mrb[92].mxu1 %v5153_v17 }
 0x571   : > { %v5186_v11 = vsel %vm3091_vm2, %v13928_v31, %v7824_v16  ;;  %v5090_v33 = vsel %vm3091_vm2, %v4002_v7, %v7825_v18  ;;  %v14073_v31 = vld [vmem:[#allocation110_spill] sm:$0xff]  ;;  %v14089_v18 = vld [vmem:[#allocation127_spill] sm:$0xff] }
 0x572   : > { %v7833_v58 = vpop.permute.xlu1 %7832  ;;  %v5218_v23 = vsel %vm3124_vm3, %v5186_v11, %v7829_v32  ;;  %v5122_v45 = vsel %vm3124_vm3, %v5090_v33, %v7830_v43  ;;  %v4280_v13 = vmul.f32 %v11903_v48, %v14073_v31  ;;  %v4284_v48 = vmul.f32 %v12083_v37, %v14077_v52  ;;  %v14090_v32 = vld [vmem:[#allocation101_spill] sm:$0xff]  ;;  %v14094_v52 = vld [vmem:[#allocation39_spill] sm:$0xff] }
 0x573   : > { %v7835_v3 = vunpack.i.h.bf16 %v7833_v58  ;;  %v7834_v61 = vunpack.i.l.bf16 %v7833_v58  ;;  %v4288_v37 = vmul.f32 %v14018_v63, %v14081_v26 }
 0x575   : > { %v5250_v50 = vsel %vm3157_vm4, %v5218_v23, %v7834_v61  ;;  %v5154_v54 = vsel %vm3157_vm4, %v5122_v45, %v7835_v3  ;;  %v14091_v61 = vld [vmem:[#allocation126_spill] sm:$0xff] }
 0x576   : > { %5609 = vmatprep.mubr.f32.mxu1 %v5250_v50 }
 0x577   : > { %5610 = vmatmul.mubr.f32.gmra.mrb[94].mxu1 %v5154_v54 }
 0x578   : > { %6703 = vmatprep.mubr.msk.f32.mxu1 %vm3091_vm2, %v4279_v38 }
 0x57b   : > { %6704 = vmatmul.mubr.msk.f32.vlgmr.msra.gmra.mrb[96].mxu1 %vm3091_vm2, %v4280_v13 }
 0x57c   : > { %6706 = vmatprep.mubr.msk.f32.mxu1 %vm3091_vm2, %v4281_v29  ;;  %v14093_v29 = vld [vmem:[#allocation128_spill] sm:$0xff] }
 0x57f   : > { %6707 = vmatmul.mubr.msk.f32.gmra.mrb[98].mxu1 %vm3091_vm2, %v4282_v42 }
 0x580   : > { %6709 = vmatprep.mubr.msk.f32.mxu1 %vm3091_vm2, %v4283_v19 }
 0x583   : > { %6710 = vmatmul.mubr.msk.f32.gmra.mrb[100].mxu1 %vm3091_vm2, %v4284_v48 }
 0x584   : > { %6712 = vmatprep.mubr.msk.f32.mxu1 %vm3091_vm2, %v4285_v60 }
 0x587   : > { %6713 = vmatmul.mubr.msk.f32.gmra.mrb[102].mxu1 %vm3091_vm2, %v4286_v62  ;;  %v14095_v62 = vld [vmem:[#allocation130_spill] sm:$0xff] }
 0x588   : > { %6715 = vmatprep.mubr.msk.f32.mxu1 %vm3091_vm2, %v4287_v30 }
 0x58b   : > { %6716 = vmatmul.mubr.msk.f32.gmra.mrb[104].mxu1 %vm3091_vm2, %v4288_v37 }
 0x58c   : > { %6718 = vmatprep.mubr.msk.f32.mxu1 %vm3091_vm2, %v4289_v57  ;;  %v5456_v39 = vpop.f32.mrb[32].mxu1 }
 0x58d   : > { %v5457_v10 = vadd.f32 %v12451_v0, %v5456_v39  ;;  %v5458_v63 = vpop.f32.mrb[33].mxu1 }
 0x58f   : > { %6719 = vmatmul.mubr.msk.f32.gmra.mrb[106].mxu1 %vm3091_vm2, %v4290_v28  ;;  %v12458_v8 = vadd.f32 %v14086_v59, %v5457_v10  ;;  %v14097_v28 = vld [vmem:[#allocation138_spill] sm:$0xff] }
 0x593   : > { %v5461_v41 = vpop.f32.mrb[34].mxu1 }
 0x594   : > { %v5462_v51 = vadd.f32 %v12451_v0, %v5461_v41  ;;  %v5463_v34 = vpop.f32.mrb[35].mxu1  ;;  %v14098_v41 = vld [vmem:[#allocation137_spill] sm:$0xff] }
 0x596   : > { %v12462_v24 = vadd.f32 %v14087_v20, %v5462_v51 }
 0x599   : > { %v5466_v4 = vpop.f32.mrb[36].mxu1 }
 0x59a   : > { %v5467_v27 = vadd.f32 %v12451_v0, %v5466_v4  ;;  %v5468_v40 = vpop.f32.mrb[37].mxu1 }
 0x59c   : > { %v12466_v53 = vadd.f32 %v14088_v14, %v5467_v27  ;;  %v14099_v27 = vld [vmem:[#allocation103_spill] sm:$0xff] }
 0x5a0   : > { %v5471_v47 = vpop.f32.mrb[38].mxu1 }
 0x5a1   : > { %v5472_v21 = vadd.f32 %v12451_v0, %v5471_v47  ;;  %v5473_v17 = vpop.f32.mrb[39].mxu1  ;;  %v5911_v47 = vld [vmem:[%s12866_s6] sm:$0xff] }
 0x5a3   : > { %v12470_v16 = vadd.f32 %v14089_v18, %v5472_v21  ;;  %v5912_v21 = vld [vmem:[%s12866_s6 + $0x8] sm:$0xff] }
 0x5a6   : > { %v5476_v1 = vpop.f32.mrb[40].mxu1 }
 0x5a7   : > { %v5477_v7 = vadd.f32 %v12451_v0, %v5476_v1  ;;  %v5478_v43 = vpop.f32.mrb[41].mxu1  ;;  %v6850_v1 = vpack.c.bf16 %v5912_v21, %v5911_v47  ;;  %v5840_v47 = vsel %vm3091_vm2, %v12458_v8, 0.0  ;;  %v5843_v21 = vsel %vm3091_vm2, %v12466_v53, 0.0 }
 0x5a8   : > { %v14100_v43 = vmov 0.0|0.0  }
 0x5a9   : > { %v12474_v11 = vadd.f32 %v14090_v32, %v5477_v7  ;;  %6851 = vmatpush3.bf16.msra.mxu1 %v6850_v1  ;;  %v5845_v1 = vsel %vm3091_vm2, %v12470_v16, 0.0 }
 0x5aa   : > { %6852 = vmatprep.subr.bf16.mxu1 %v14100_v43 }
 0x5ad   : > { %v5481_v33 = vpop.f32.mrb[42].mxu1 }
 0x5ae   : > { %v5482_v58 = vadd.f32 %v12451_v0, %v5481_v33  ;;  %v5483_v3 = vpop.f32.mrb[43].mxu1 }
 0x5b0   : > { %v12478_v23 = vadd.f32 %v14091_v61, %v5482_v58 }
 0x5b2   : > { %v5486_v45 = vpop.f32.mrb[44].mxu1 }
 0x5b3   : > { %v5487_v50 = vadd.f32 %v12451_v0, %v5486_v45  ;;  %v5488_v54 = vpop.f32.mrb[45].mxu1 }
 0x5b4   : > { %v14101_v54 = vld [vmem:[#allocation38_spill] sm:$0xff] }
 0x5b5   : > { %v12482_v38 = vadd.f32 %v14092_v49, %v5487_v50 }
 0x5b9   : > { %v5491_v31 = vpop.f32.mrb[46].mxu1 }
 0x5ba   : > { %v5492_v13 = vadd.f32 %v12451_v0, %v5491_v31  ;;  %v5493_v35 = vpop.f32.mrb[47].mxu1 }
 0x5bb   : > { %v5913_v35 = vld [vmem:[%s12866_s6 + $0x10] sm:$0xff] }
 0x5bc   : > { %v12486_v12 = vadd.f32 %v14093_v29, %v5492_v13 }
 0x5be   : > { %v5496_v42 = vpop.f32.mrb[48].mxu1 }
 0x5bf   : > { %v5497_v55 = vadd.f32 %v12451_v0, %v5496_v42  ;;  %v5498_v19 = vpop.f32.mrb[49].mxu1  ;;  %v7912_v42 = vmov 0.0  }
 0x5c0   : > { %6729 = vmatprep.mubr.msk.f32.mxu1 %vm7911_vm5, %v7912_v42 }
 0x5c1   : > { %v12490_v48 = vadd.f32 %v14094_v52, %v5497_v55  ;;  %v14102_v55 = vld [vmem:[#allocation142_spill] sm:$0xff] }
 0x5c5   : > { %v5501_v25 = vpop.f32.mrb[50].mxu1 }
 0x5c6   : > { %v5502_v60 = vadd.f32 %v12451_v0, %v5501_v25  ;;  %v5503_v5 = vpop.f32.mrb[51].mxu1 }
 0x5c8   : > { %v12494_v36 = vadd.f32 %v14095_v62, %v5502_v60 }
 0x5ca   : > { %v5506_v30 = vpop.f32.mrb[52].mxu1 }
 0x5cb   : > { %v5507_v26 = vadd.f32 %v12451_v0, %v5506_v30  ;;  %v5508_v37 = vpop.f32.mrb[53].mxu1 }
 0x5cc   : > { %v14103_v37 = vld [vmem:[#allocation70_spill] sm:$0xff] }
 0x5cd   : > { %v12498_v6 = vadd.f32 %v14096_v46, %v5507_v26 }
 0x5d1   : > { %v5511_v57 = vpop.f32.mrb[54].mxu1 }
 0x5d2   : > { %v5512_v44 = vadd.f32 %v12451_v0, %v5511_v57  ;;  %v5513_v22 = vpop.f32.mrb[55].mxu1 }
 0x5d4   : > { %v12502_v39 = vadd.f32 %v14097_v28, %v5512_v44 }
 0x5d6   : > { %v5516_v10 = vpop.f32.mrb[56].mxu1 }
 0x5d7   : > { %v5517_v63 = vadd.f32 %v12451_v0, %v5516_v10  ;;  %v5518_v59 = vpop.f32.mrb[57].mxu1 }
 0x5d9   : > { %v12506_v51 = vadd.f32 %v14098_v41, %v5517_v63 }
 0x5dd   : > { %v5521_v34 = vpop.f32.mrb[58].mxu1 }
 0x5de   : > { %v5522_v20 = vadd.f32 %v12451_v0, %v5521_v34  ;;  %v5523_v4 = vpop.f32.mrb[59].mxu1 }
 0x5e0   : > { %v12510_v40 = vadd.f32 %v14099_v27, %v5522_v20  ;;  %v5841_v27 = vsel %vm3091_vm2, %v12462_v24, 0.0 }
 0x5e2   : > { %v5526_v14 = vpop.f32.mrb[60].mxu1 }
 0x5e3   : > { %v5527_v17 = vadd.f32 %v12451_v0, %v5526_v14  ;;  %v5528_v18 = vpop.f32.mrb[61].mxu1 }
 0x5e4   : > { %v5842_v18 = vadd.f32 %v5841_v27, %v5840_v47 }
 0x5e5   : > { %v12520_v7 = vadd.f32 %v11978_v15, %v5527_v17 }
 0x5e6   : > { %v5844_v43 = vadd.f32 %v5843_v21, %v5842_v18 }
 0x5e7   : > { %v5867_v27 = vsel %vm3091_vm2, %v12520_v7, 0.0 }
 0x5e9   : > { %v5531_v32 = vpop.f32.mrb[62].mxu1 }
 0x5ea   : > { %v5532_v33 = vadd.f32 %v12451_v0, %v5531_v32  ;;  %v5533_v58 = vpop.f32.mrb[63].mxu1  ;;  %v5847_v32 = vsel %vm3091_vm2, %v12474_v11, 0.0 }
 0x5eb   : > { %v5849_v58 = vsel %vm3091_vm2, %v12478_v23, 0.0 }
 0x5ec   : > { %v12525_v3 = vadd.f32 %v11971_v56, %v5532_v33  ;;  %v5914_v56 = vld [vmem:[%s12866_s6 + $0x18] sm:$0xff]  ;;  %v5846_v33 = vadd.f32 %v5845_v1, %v5844_v43 }
 0x5ed   : > { %v6853_v29 = vpack.c.bf16 %v5914_v56, %v5913_v35  ;;  %v5855_v56 = vsel %vm3091_vm2, %v12490_v48, 0.0 }
 0x5ee   : > { %v5536_v61 = vpop.f32.mrb[64].mxu1 }
 0x5ef   : > { %v5537_v45 = vadd.f32 %v12451_v0, %v5536_v61  ;;  %v5538_v50 = vpop.f32.mrb[65].mxu1  ;;  %6854 = vmatpush3.bf16.msra.mxu1 %v6853_v29 }
 0x5f0   : > { %6732 = vmatprep.subr.mxu1 %v7912_v42 }
 0x5f1   : > { %v12529_v49 = vadd.f32 %v14101_v54, %v5537_v45  ;;  %v5848_v45 = vadd.f32 %v5847_v32, %v5846_v33  ;;  %v5851_v54 = vsel %vm3091_vm2, %v12482_v38, 0.0 }
 0x5f3   : > { %v5871_v1 = vsel %vm3091_vm2, %v12529_v49, 0.0 }
 0x5f5   : > { %v5541_v31 = vpop.f32.mrb[66].mxu1 }
 0x5f6   : > { %v5542_v15 = vadd.f32 %v12451_v0, %v5541_v31  ;;  %v5543_v13 = vpop.f32.mrb[67].mxu1  ;;  %v5850_v31 = vadd.f32 %v5849_v58, %v5848_v45 }
 0x5f8   : > { %v12541_v19 = vadd.f32 %v14102_v55, %v5542_v15  ;;  %v5853_v15 = vsel %vm3091_vm2, %v12486_v12, 0.0  ;;  %v5852_v13 = vadd.f32 %v5851_v54, %v5850_v31 }
 0x5fa   : > { %v5546_v52 = vpop.f32.mrb[68].mxu1  ;;  %v5854_v55 = vadd.f32 %v5853_v15, %v5852_v13  ;;  %v5873_v32 = vsel %vm3091_vm2, %v12541_v19, 0.0 }
 0x5fb   : > { %v5547_v25 = vadd.f32 %v12451_v0, %v5546_v52  ;;  %v5548_v60 = vpop.f32.mrb[69].mxu1  ;;  %v5857_v52 = vsel %vm3091_vm2, %v12494_v36, 0.0 }
 0x5fc   : > { %v5859_v60 = vsel %vm3091_vm2, %v12498_v6, 0.0 }
 0x5fd   : > { %v12546_v5 = vadd.f32 %v12109_v2, %v5547_v25  ;;  %v5856_v25 = vadd.f32 %v5855_v56, %v5854_v55 }
 0x601   : > { %v5551_v62 = vpop.f32.mrb[70].mxu1 }
 0x602   : > { %v5552_v30 = vadd.f32 %v12451_v0, %v5551_v62  ;;  %v5553_v26 = vpop.f32.mrb[71].mxu1  ;;  %v5858_v62 = vadd.f32 %v5857_v52, %v5856_v25 }
 0x604   : > { %v12550_v46 = vadd.f32 %v14103_v37, %v5552_v30  ;;  %v5861_v30 = vsel %vm3091_vm2, %v12502_v39, 0.0  ;;  %v5860_v37 = vadd.f32 %v5859_v60, %v5858_v62 }
 0x606   : > { %v5556_v57 = vpop.f32.mrb[72].mxu1  ;;  %v5877_v15 = vsel %vm3091_vm2, %v12550_v46, 0.0 }
 0x607   : > { %v5558_v44 = vpop.f32.mrb[73].mxu1  ;;  %v5557_v13 = vadd.f32 %v12451_v0, %v5556_v57 }
 0x60e   : > { %v5561_v22 = vpop.f32.mrb[74].mxu1 }
 0x60f   : > { %v5563_v28 = vpop.f32.mrb[75].mxu1  ;;  %v5562_v31 = vadd.f32 %v12451_v0, %v5561_v22 }
 0x610   : > { %v5863_v28 = vsel %vm3091_vm2, %v12506_v51, 0.0 }
 0x613   : > { %v12552_v10 = vpop.f32.mrb[76].mxu1 }
 0x614   : > { %v5568_v63 = vpop.f32.mrb[77].mxu1 }
 0x615   : > { %v5862_v63 = vadd.f32 %v5861_v30, %v5860_v37  ;;  %v5567_v30 = vadd.f32 %v12451_v0, %v12552_v10 }
 0x61a   : > { %v5571_v59 = vpop.f32.mrb[78].mxu1 }
 0x61b   : > { %v5573_v41 = vpop.f32.mrb[79].mxu1  ;;  %v5572_v60 = vadd.f32 %v12451_v0, %v5571_v59 }
 0x61c   : > { %v5865_v41 = vsel %vm3091_vm2, %v12510_v40, 0.0 }
 0x61f   : > { %v12554_v34 = vpop.f32.mrb[80].mxu1 }
 0x620   : > { %v5578_v2 = vpop.f32.mrb[81].mxu1  ;;  %v5577_v10 = vadd.f32 %v12451_v0, %v12554_v34 }
 0x621   : > { %v5864_v2 = vadd.f32 %v5863_v28, %v5862_v63 }
 0x623   : > { %v5866_v21 = vadd.f32 %v5865_v41, %v5864_v2 }
 0x625   : > { %v5868_v18 = vadd.f32 %v5867_v27, %v5866_v21 }
 0x626   : > { %v12556_v20 = vpop.f32.mrb[82].mxu1 }
 0x627   : > { %v5583_v4 = vpop.f32.mrb[83].mxu1  ;;  %v5582_v59 = vadd.f32 %v12451_v0, %v12556_v20 }
 0x62b   : > { %v12560_v14 = vpop.f32.mrb[84].mxu1 }
 0x62c   : > { %v5588_v17 = vpop.f32.mrb[85].mxu1  ;;  %v5587_v34 = vadd.f32 %v12451_v0, %v12560_v14 }
 0x62d   : > { %v5869_v17 = vsel %vm3091_vm2, %v12525_v3, 0.0 }
 0x62e   : > { %v5870_v43 = vadd.f32 %v5869_v17, %v5868_v18 }
 0x630   : > { %v5872_v58 = vadd.f32 %v5871_v1, %v5870_v43 }
 0x632   : > { %v12572_v61 = vpop.f32.mrb[86].mxu1  ;;  %v5874_v54 = vadd.f32 %v5873_v32, %v5872_v58 }
 0x633   : > { %v5593_v50 = vpop.f32.mrb[87].mxu1  ;;  %v5592_v20 = vadd.f32 %v12451_v0, %v12572_v61 }
 0x634   : > { %v5875_v50 = vsel %vm3091_vm2, %v12546_v5, 0.0 }
 0x637   : > { %v12578_v35 = vpop.f32.mrb[88].mxu1 }
 0x638   : > { %v5598_v29 = vpop.f32.mrb[89].mxu1 }
 0x639   : > { %v5876_v29 = vadd.f32 %v5875_v50, %v5874_v54 }
 0x63b   : > { %v5878_v62 = vadd.f32 %v5877_v15, %v5876_v29  ;;  %v5597_v29 = vadd.f32 %v12451_v0, %v12578_v35 }
 0x63e   : > { %v5601_v26 = vpop.f32.mrb[90].mxu1 }
 0x63f   : > { %v5603_v44 = vpop.f32.mrb[91].mxu1 }
 0x643   : > { %v12592_v4 = vpop.f32.mrb[92].mxu1 }
 0x644   : > { %v5608_v47 = vpop.f32.mrb[93].mxu1 }
 0x64a   : > { %v5611_v33 = vpop.f32.mrb[94].mxu1 }
 0x64b   : > { %v5613_v45 = vpop.f32.mrb[95].mxu1 }
 0x64e   : > { %v6705_v56 = vpop.f32.mrb[96].mxu1 }
 0x64f   : > { %v12608_v55 = vadd.f32 %v6705_v56, %v5562_v31  ;;  %v5781_v52 = vpop.f32.mrb[97].mxu1  ;;  %v5602_v56 = vadd.f32 %v12451_v0, %v5601_v26 }
 0x650   : > { %v12610_v25 = vadd.f32 %v5781_v52, %v5557_v13 }
 0x651   : > { %v5881_v63 = vsel %vm3091_vm2, %v12608_v55, 0.0 }
 0x652   : > { %v5879_v22 = vsel %vm3091_vm2, %v12610_v25, 0.0  ;;  %v6708_v37 = vpop.f32.mrb[98].mxu1 }
 0x653   : > { %v5880_v44 = vadd.f32 %v5879_v22, %v5878_v62  ;;  %v12617_v28 = vadd.f32 %v6708_v37, %v5572_v60  ;;  %v5791_v57 = vpop.f32.mrb[99].mxu1 }
 0x654   : > { %v12621_v41 = vadd.f32 %v5791_v57, %v5567_v30  ;;  %v5607_v57 = vadd.f32 %v12451_v0, %v12592_v4 }
 0x655   : > { %v5882_v2 = vadd.f32 %v5881_v63, %v5880_v44  ;;  %v5885_v1 = vsel %vm3091_vm2, %v12617_v28, 0.0  ;;  %v5612_v44 = vadd.f32 %v12451_v0, %v5611_v33 }
 0x656   : > { %v5883_v27 = vsel %vm3091_vm2, %v12621_v41, 0.0  ;;  %v6711_v47 = vpop.f32.mrb[100].mxu1 }
 0x657   : > { %v5884_v21 = vadd.f32 %v5883_v27, %v5882_v2  ;;  %v12629_v17 = vadd.f32 %v6711_v47, %v5582_v59  ;;  %v5801_v18 = vpop.f32.mrb[101].mxu1 }
 0x658   : > { %v12633_v43 = vadd.f32 %v5801_v18, %v5577_v10 }
 0x659   : > { %v5886_v32 = vadd.f32 %v5885_v1, %v5884_v21  ;;  %v5889_v15 = vsel %vm3091_vm2, %v12629_v17, 0.0 }
 0x65a   : > { %v5887_v58 = vsel %vm3091_vm2, %v12633_v43, 0.0  ;;  %v6714_v45 = vpop.f32.mrb[102].mxu1 }
 0x65b   : > { %v5888_v50 = vadd.f32 %v5887_v58, %v5886_v32  ;;  %v12641_v54 = vadd.f32 %v6714_v45, %v5592_v20  ;;  %v5811_v31 = vpop.f32.mrb[103].mxu1 }
 0x65c   : > { %v12645_v13 = vadd.f32 %v5811_v31, %v5587_v34  ;;  %v5990_v31 = vld [vmem:[%s12868_s8] sm:$0xff] }
 0x65d   : > { %v5890_v61 = vadd.f32 %v5889_v15, %v5888_v50  ;;  %v5893_v22 = vsel %vm3091_vm2, %v12641_v54, 0.0  ;;  %v5915_v15 = vld [vmem:[%s12867_s7] sm:$0x1] }
 0x65e   : > { %v5891_v14 = vsel %vm3091_vm2, %v12645_v13, 0.0  ;;  %v6717_v52 = vpop.f32.mrb[104].mxu1 }
 0x65f   : > { %v5892_v60 = vadd.f32 %v5891_v14, %v5890_v61  ;;  %v12652_v62 = vadd.f32 %v6717_v52, %v5602_v56  ;;  %v5821_v30 = vpop.f32.mrb[105].mxu1  ;;  %v5991_v52 = vld [vmem:[%s12869_s9] sm:$0x1] }
 0x660   : > { %v12656_v37 = vadd.f32 %v5821_v30, %v5597_v29 }
 0x661   : > { %v5894_v26 = vadd.f32 %v5893_v22, %v5892_v60  ;;  %v5897_v27 = vsel %vm3091_vm2, %v12652_v62, 0.0 }
 0x662   : > { %v5895_v35 = vsel %vm3091_vm2, %v12656_v37, 0.0  ;;  %v6720_v63 = vpop.f32.mrb[106].mxu1 }
 0x663   : > { %v5896_v59 = vadd.f32 %v5895_v35, %v5894_v26  ;;  %v12663_v2 = vadd.f32 %v6720_v63, %v5612_v44  ;;  %v5831_v10 = vpop.f32.mrb[107].mxu1 }
 0x664   : > { %v12667_v47 = vadd.f32 %v5831_v10, %v5607_v57  ;;  %v6072_v57 = vsub.s32 0, %v8821_v9 }
 0x665   : > { %v5898_v21 = vadd.f32 %v5897_v27, %v5896_v59  ;;  %v5901_v0 = vsel %vm3091_vm2, %v12663_v2, 0.0 }
 0x666   : > { %v5899_v33 = vsel %vm3091_vm2, %v12667_v47, 0.0 }
 0x667   : > { %v5900_v18 = vadd.f32 %v5899_v33, %v5898_v21 }
 0x669   : > { %v5902_v4 = vadd.f32 %v5901_v0, %v5900_v18 }
 0x66b   : > { %v5903_v1 = vrot.slane %v5902_v4, 4 }
 0x66d   : > { %v5904_v20 = vadd.f32 %v5903_v1, %v5902_v4 }
 0x66f   : > { %v5905_v32 = vrot.slane %v5904_v20, 2 }
 0x671   : > { %v5906_v34 = vadd.f32 %v5905_v32, %v5904_v20  ;;  %v7870_v20 = vld [vmem:[%s8792_s28 + $0x20] sm:$0xff]  ;;  %v7871_v32 = vld [vmem:[%s8792_s28 + $0x28] sm:$0xff] }
 0x673   : > { %v5907_v58 = vrot.slane %v5906_v34, 1 }
 0x675   : > { %v5908_v45 = vadd.f32 %v5907_v58, %v5906_v34  ;;  %v7872_v34 = vld [vmem:[%s8792_s28 + $0x30] sm:$0xff] }
 0x677   : > { %v5910_v50 = vmul.f32 0.00390625, %v5908_v45  ;;  %v7873_v45 = vld [vmem:[%s8792_s28 + $0x38] sm:$0xff] }
 0x679   : > { %6730 = vmatmul.mubr.msk.f32.vlgmr.msra.gmra.mrb[108].mxu1 %vm3091_vm2, %v5910_v50 }
 0x67a   : > { %6734 = vmatprep.mubr.msk.f32.mxu1 %vm7911_vm5, %v7912_v42  ;;  %6733 = vmatpush3.msra.mxu1 %v5990_v31  ;;  %v7874_v31 = vld [vmem:[%s8792_s28 + $0x40] sm:$0xff] }
 0x74c   : > { %v5985_v56 = vpop.f32.mrb[108].mxu1 }
 0x74d   : > { %v5986_v61 = vadd.f32 %v5985_v56, %v5915_v15  ;;  %v6731_v29 = vpop.f32.mrb[109].mxu1  ;;  %v7875_v56 = vld [vmem:[%s8792_s28 + $0x48] sm:$0xff] }
 0x74e   : > { %v7876_v29 = vld [vmem:[%s8792_s28 + $0x50] sm:$0xff] }
 0x74f   : > { %v5989_v14 = vmax.f32 %v5986_v61, 0.0 }
 0x751   : > { %6735 = vmatmul.mubr.msk.f32.vlgmr.msra.gmra.mrb[110].mxu1 %vm5992_vm6, %v5989_v14 }
 0x824   : > { %v6062_v42 = vpop.f32.mrb[110].mxu1 }
 0x825   : > { %v6063_v60 = vadd.f32 %v6062_v42, %v5991_v52  ;;  %v6736_v30 = vpop.f32.mrb[111].mxu1  ;;  %v7877_v52 = vld [vmem:[%s8792_s28 + $0x58] sm:$0xff] }
 0x827   : > { %v6066_v22 = vmul.f32 0.5, %v6063_v60  ;;  %v7878_v60 = vld [vmem:[%s8792_s28 + $0x60] sm:$0xff] }
 0x829   : > { %7836 = vtanh.f32 %v6066_v22  ;;  %v7879_v22 = vld [vmem:[%s8792_s28 + $0x68] sm:$0xff] }
 0x833   : > { %v7837_v44 = vpop.eup %7836 }
 0x834   : > { %v6068_v26 = vadd.f32 1.0, %v7837_v44 }
 0x836   : > { %v6069_v35 = vmul.f32 0.5, %v6068_v26  ;;  %v7880_v26 = vld [vmem:[%s8792_s28 + $0x70] sm:$0xff] }
 0x838   : > { %v6073_v63 = vrot.slane %v6069_v35, %v6072_v57  ;;  %v7881_v35 = vld [vmem:[%s8792_s28 + $0x78] sm:$0xff] }
 0x83a   : > { %v6074_v59 = vmul.f32 %v6073_v63, %v12458_v8  ;;  %v6075_v10 = vmul.f32 %v6073_v63, %v12462_v24  ;;  %v6076_v27 = vmul.f32 %v6073_v63, %v12466_v53  ;;  %v6077_v21 = vmul.f32 %v6073_v63, %v12470_v16 }
 0x83b   : > { %v6078_v33 = vmul.f32 %v6073_v63, %v12474_v11  ;;  %v6079_v18 = vmul.f32 %v6073_v63, %v12478_v23  ;;  %v6080_v0 = vmul.f32 %v6073_v63, %v12482_v38  ;;  %v6081_v4 = vmul.f32 %v6073_v63, %v12486_v12 }
 0x83c   : > { %v6082_v9 = vmul.f32 %v6073_v63, %v12490_v48  ;;  %v6083_v1 = vmul.f32 %v6073_v63, %v12494_v36  ;;  %v6084_v8 = vmul.f32 %v6073_v63, %v12498_v6  ;;  %v6085_v24 = vmul.f32 %v6073_v63, %v12502_v39 }
 0x83d   : > { %v6086_v53 = vmul.f32 %v6073_v63, %v12506_v51  ;;  %v6087_v16 = vmul.f32 %v6073_v63, %v12510_v40  ;;  %v6088_v11 = vmul.f32 %v6073_v63, %v12520_v7  ;;  %v6089_v23 = vmul.f32 %v6073_v63, %v12525_v3 }
 0x83e   : > { %v6090_v38 = vmul.f32 %v6073_v63, %v12529_v49  ;;  %v6091_v12 = vmul.f32 %v6073_v63, %v12541_v19  ;;  %v6092_v48 = vmul.f32 %v6073_v63, %v12546_v5  ;;  %v6093_v36 = vmul.f32 %v6073_v63, %v12550_v46 }
 0x83f   : > { %v12707_v6 = vmul.f32 %v6073_v63, %v12610_v25  ;;  %v12710_v39 = vmul.f32 %v6073_v63, %v12608_v55  ;;  %v12713_v51 = vmul.f32 %v6073_v63, %v12621_v41  ;;  %v12716_v40 = vmul.f32 %v6073_v63, %v12617_v28  ;;  %v7866_v28 = vld [vmem:[%s8792_s28] sm:$0xff] }
 0x840   : > { %v12719_v7 = vmul.f32 %v6073_v63, %v12633_v43  ;;  %v12722_v3 = vmul.f32 %v6073_v63, %v12629_v17  ;;  %v12725_v49 = vmul.f32 %v6073_v63, %v12645_v13  ;;  %v12728_v19 = vmul.f32 %v6073_v63, %v12641_v54  ;;  %v7867_v17 = vld [vmem:[%s8792_s28 + $0x8] sm:$0xff]  ;;  %v7868_v54 = vld [vmem:[%s8792_s28 + $0x10] sm:$0xff] }
 0x841   : > { %v12738_v5 = vmul.f32 %v6073_v63, %v12656_v37  ;;  %v12741_v46 = vmul.f32 %v6073_v63, %v12652_v62  ;;  %v12744_v55 = vmul.f32 %v6073_v63, %v12667_v47  ;;  %v12747_v25 = vmul.f32 %v6073_v63, %v12663_v2  ;;  %v7869_v37 = vld [vmem:[%s8792_s28 + $0x18] sm:$0xff] }
 0x842   : > { %v6106_v41 = vadd.f32 %v7866_v28, %v6074_v59  ;;  %v6107_v43 = vadd.f32 %v7867_v17, %v6075_v10  ;;  %v6108_v13 = vadd.f32 %v7868_v54, %v6076_v27  ;;  %v6109_v62 = vadd.f32 %v7869_v37, %v6077_v21  ;;  %v7882_v59 = vld [vmem:[%s8792_s28 + $0x80] sm:$0xff]  ;;  %v7883_v27 = vld [vmem:[%s8792_s28 + $0x88] sm:$0xff]  ;;  %v7896_v28 = vld [vmem:[%s8792_s28 + $0xf0] sm:$0xff] }
 0x843   : > { %v6110_v47 = vadd.f32 %v7870_v20, %v6078_v33  ;;  %v6111_v2 = vadd.f32 %v7871_v32, %v6079_v18  ;;  %v6112_v58 = vadd.f32 %v7872_v34, %v6080_v0  ;;  %v6113_v50 = vadd.f32 %v7873_v45, %v6081_v4  ;;  %v7884_v33 = vld [vmem:[%s8792_s28 + $0x90] sm:$0xff]  ;;  %v7885_v0 = vld [vmem:[%s8792_s28 + $0x98] sm:$0xff] }
 0x844   : > { %v6114_v15 = vadd.f32 %v7874_v31, %v6082_v9  ;;  %v6115_v61 = vadd.f32 %v7875_v56, %v6083_v1  ;;  %v6116_v14 = vadd.f32 %v7876_v29, %v6084_v8  ;;  %v6117_v42 = vadd.f32 %v7877_v52, %v6085_v24  ;;  %6138 = vst.msk [vmem:[%s12735_s23] sm:$0xff] %vm3091_vm2, %v6106_v41  ;;  %v7886_v9 = vld [vmem:[%s8792_s28 + $0xa0] sm:$0xff]  ;;  %v7887_v8 = vld [vmem:[%s8792_s28 + $0xa8] sm:$0xff]  ;;  %v7897_v17 = vld [vmem:[%s8792_s28 + $0xf8] sm:$0xff] }
 0x845   : > { %6139 = vst.msk [vmem:[%s12735_s23 + $0x8] sm:$0xff] %vm3091_vm2, %v6107_v43  ;;  %6140 = vst.msk [vmem:[%s12735_s23 + $0x10] sm:$0xff] %vm3091_vm2, %v6108_v13  ;;  %v6118_v30 = vadd.f32 %v7878_v60, %v6086_v53  ;;  %v6119_v44 = vadd.f32 %v7879_v22, %v6087_v16  ;;  %v6120_v57 = vadd.f32 %v7880_v26, %v6088_v11  ;;  %v7888_v53 = vld [vmem:[%s8792_s28 + $0xb0] sm:$0xff]  ;;  %v7889_v11 = vld [vmem:[%s8792_s28 + $0xb8] sm:$0xff] }
 0x846   : > { %6141 = vst.msk [vmem:[%s12735_s23 + $0x18] sm:$0xff] %vm3091_vm2, %v6109_v62  ;;  %v6121_v63 = vadd.f32 %v7881_v35, %v6089_v23  ;;  %6142 = vst.msk [vmem:[%s12735_s23 + $0x20] sm:$0xff] %vm3091_vm2, %v6110_v47  ;;  %v6122_v10 = vadd.f32 %v7882_v59, %v6090_v38  ;;  %v6123_v21 = vadd.f32 %v7883_v27, %v6091_v12  ;;  %v7890_v38 = vld [vmem:[%s8792_s28 + $0xc0] sm:$0xff] }
 0x847   : > { %6143 = vst.msk [vmem:[%s12735_s23 + $0x28] sm:$0xff] %vm3091_vm2, %v6111_v2  ;;  %6144 = vst.msk [vmem:[%s12735_s23 + $0x30] sm:$0xff] %vm3091_vm2, %v6112_v58  ;;  %v6124_v18 = vadd.f32 %v7884_v33, %v6092_v48  ;;  %v6125_v4 = vadd.f32 %v7885_v0, %v6093_v36  ;;  %v6126_v1 = vadd.f32 %v7886_v9, %v12707_v6  ;;  %v7891_v48 = vld [vmem:[%s8792_s28 + $0xc8] sm:$0xff]  ;;  %v7892_v6 = vld [vmem:[%s8792_s28 + $0xd0] sm:$0xff] }
 0x848   : > { %6145 = vst.msk [vmem:[%s12735_s23 + $0x38] sm:$0xff] %vm3091_vm2, %v6113_v50  ;;  %6146 = vst.msk [vmem:[%s12735_s23 + $0x40] sm:$0xff] %vm3091_vm2, %v6114_v15  ;;  %v6127_v24 = vadd.f32 %v7887_v8, %v12710_v39  ;;  %v6128_v16 = vadd.f32 %v7888_v53, %v12713_v51  ;;  %v6129_v23 = vadd.f32 %v7889_v11, %v12716_v40  ;;  %v7893_v51 = vld [vmem:[%s8792_s28 + $0xd8] sm:$0xff] }
 0x849   : > { %6147 = vst.msk [vmem:[%s12735_s23 + $0x48] sm:$0xff] %vm3091_vm2, %v6115_v61  ;;  %6148 = vst.msk [vmem:[%s12735_s23 + $0x50] sm:$0xff] %vm3091_vm2, %v6116_v14  ;;  %v6130_v12 = vadd.f32 %v7890_v38, %v12719_v7  ;;  %v6131_v36 = vadd.f32 %v7891_v48, %v12722_v3  ;;  %v6132_v39 = vadd.f32 %v7892_v6, %v12725_v49  ;;  %v7894_v7 = vld [vmem:[%s8792_s28 + $0xe0] sm:$0xff]  ;;  %v7895_v49 = vld [vmem:[%s8792_s28 + $0xe8] sm:$0xff] }
 0x84a   : > { %6149 = vst.msk [vmem:[%s12735_s23 + $0x58] sm:$0xff] %vm3091_vm2, %v6117_v42  ;;  %6150 = vst.msk [vmem:[%s12735_s23 + $0x60] sm:$0xff] %vm3091_vm2, %v6118_v30  ;;  %v6133_v40 = vadd.f32 %v7893_v51, %v12728_v19  ;;  %v6134_v3 = vadd.f32 %v7894_v7, %v12738_v5  ;;  %v6135_v19 = vadd.f32 %v7895_v49, %v12741_v46 }
 0x84b   : > { %6151 = vst.msk [vmem:[%s12735_s23 + $0x68] sm:$0xff] %vm3091_vm2, %v6119_v44  ;;  %6152 = vst.msk [vmem:[%s12735_s23 + $0x70] sm:$0xff] %vm3091_vm2, %v6120_v57  ;;  %v6136_v41 = vadd.f32 %v7896_v28, %v12744_v55  ;;  %v6137_v43 = vadd.f32 %v7897_v17, %v12747_v25 }
 0x84c   : > { %6153 = vst.msk [vmem:[%s12735_s23 + $0x78] sm:$0xff] %vm3091_vm2, %v6121_v63  ;;  %6154 = vst.msk [vmem:[%s12735_s23 + $0x80] sm:$0xff] %vm3091_vm2, %v6122_v10 }
 0x84d   : > { %6155 = vst.msk [vmem:[%s12735_s23 + $0x88] sm:$0xff] %vm3091_vm2, %v6123_v21  ;;  %6156 = vst.msk [vmem:[%s12735_s23 + $0x90] sm:$0xff] %vm3091_vm2, %v6124_v18 }
 0x84e   : > { %6157 = vst.msk [vmem:[%s12735_s23 + $0x98] sm:$0xff] %vm3091_vm2, %v6125_v4  ;;  %6158 = vst.msk [vmem:[%s12735_s23 + $0xa0] sm:$0xff] %vm3091_vm2, %v6126_v1 }
 0x84f   : > { %6159 = vst.msk [vmem:[%s12735_s23 + $0xa8] sm:$0xff] %vm3091_vm2, %v6127_v24  ;;  %6160 = vst.msk [vmem:[%s12735_s23 + $0xb0] sm:$0xff] %vm3091_vm2, %v6128_v16 }
 0x850   : > { %6161 = vst.msk [vmem:[%s12735_s23 + $0xb8] sm:$0xff] %vm3091_vm2, %v6129_v23  ;;  %6162 = vst.msk [vmem:[%s12735_s23 + $0xc0] sm:$0xff] %vm3091_vm2, %v6130_v12 }
 0x851   : > { %6163 = vst.msk [vmem:[%s12735_s23 + $0xc8] sm:$0xff] %vm3091_vm2, %v6131_v36  ;;  %6164 = vst.msk [vmem:[%s12735_s23 + $0xd0] sm:$0xff] %vm3091_vm2, %v6132_v39 }
 0x852   : > { %6165 = vst.msk [vmem:[%s12735_s23 + $0xd8] sm:$0xff] %vm3091_vm2, %v6133_v40  ;;  %6166 = vst.msk [vmem:[%s12735_s23 + $0xe0] sm:$0xff] %vm3091_vm2, %v6134_v3 }
 0x853   : > { %6167 = vst.msk [vmem:[%s12735_s23 + $0xe8] sm:$0xff] %vm3091_vm2, %v6135_v19  ;;  %6168 = vst.msk [vmem:[%s12735_s23 + $0xf0] sm:$0xff] %vm3091_vm2, %v6136_v41 }
 0x854   : > { %6169 = vst.msk [vmem:[%s12735_s23 + $0xf8] sm:$0xff] %vm3091_vm2, %v6137_v43 }
 0x855 PF: > { %s20_s13 = sadd.s32 1, %s7904_s13  }
 0x856   : > { %p17_p4 = scmp.ge.s32.totalorder %s20_s13, 4  }
 0x858   :  { %19 = sbr.rel (!%p17_p4) target bundleno = 1 (0x1), region = 97 }

</bundles_post_ra>
